<compile_context>
chip_gen: v6e
topology: v6e:2x2x1
jax: 0.10.0
libtpu: 0.0.40
codegen_flags: <defaults>
</compile_context>

<pallas_src>
import functools

import jax
import jax.numpy as jnp
from jax.experimental import pallas as pl
from jax.experimental.pallas import tpu as pltpu

_BN_EPS = 1e-5   # nn.BatchNorm2d default
_IN_EPS = 1e-5   # nn.InstanceNorm2d default


# ------------------------------ tiling helpers -------------------------------

def _row_tile(m, row_bytes, budget=8 << 20):
    """Largest row tile that divides m, fits a per-block VMEM budget and leaves
    a grid of >= 2 steps (so both v7x TensorCores get work)."""
    for t in (1024, 512, 256, 128, 64, 32, 16, 8):
        if m % t == 0 and t != m and t * row_bytes <= budget:
            return t
    return m


def _tpu_params(n_grid_axes, est_block_bytes):
    """Parallel grid semantics + explicit VMEM cap (v7x: 64 MiB phys, keep <=48)."""
    vmem = int(min(48 << 20, max(8 << 20, 6 * est_block_bytes)))
    return pltpu.CompilerParams(
        dimension_semantics=("parallel",) * n_grid_axes,
        vmem_limit_bytes=vmem,
    )


# ------------------------------ Pallas kernels --------------------------------

def _matmul_kernel(x_ref, w_ref, o_ref):
    """1x1 conv as a row-tiled matmul (bf16 MXU inputs, f32 accumulate)."""
    o_ref[...] = jnp.dot(x_ref[...], w_ref[...],
                         preferred_element_type=jnp.float32).astype(o_ref.dtype)


def _upsample_block_kernel(x_ref, wup_ref, k1c_ref, s1_ref, b1_ref,
                           wr_ref, sr_ref, br_ref, k2_ref, s2_ref, b2_ref,
                           o_ref, *, H, W):
    """Fused Upsample block for one image (all intermediates stay in VMEM).

    x: (1, H*W, Cin) bf16   ->   out: (1, H*W, Cout) bf16
    """
    f32 = jnp.float32
    x = x_ref[0]                                                     # (HW, Cin) bf16

    # ConvTranspose2d(k=1, s=2): non-zero outputs exist only at even (2i, 2j)
    # positions; both consumers below (3x3 s=2 p=1 conv1, 1x1 s=2 rescale)
    # read exactly those positions -> compute at the original resolution.
    z = jnp.dot(x, wup_ref[...], preferred_element_type=f32).astype(jnp.bfloat16)

    # conv1: the 3x3 stride-2 conv sees zeros everywhere except its centre tap.
    h = jnp.dot(z, k1c_ref[...], preferred_element_type=f32)
    h = jnp.maximum(h * s1_ref[...] + b1_ref[...], 0.0)             # BN + ReLU (f32)

    # rescale branch (1x1 stride-2) + BN + ReLU.
    idn = jnp.dot(z, wr_ref[...], preferred_element_type=f32)
    idn = jnp.maximum(idn * sr_ref[...] + br_ref[...], 0.0)

    # conv2: 3x3 stride-1 pad-1 on h, streamed as a 9-tap reduction entirely in
    # VMEM (no HBM im2col).  Taps are row shifts of the flattened (HW, C) map
    # plus a column-boundary mask.
    cout = idn.shape[-1]
    hb = h.astype(jnp.bfloat16)
    col = jax.lax.broadcasted_iota(jnp.int32, (H * W, 1), 0) % W
    acc = jnp.zeros((H * W, cout), f32)
    for dy in range(3):
        for dx in range(3):
            s = (dy - 1) * W + (dx - 1)
            if s > 0:
                tap = jnp.concatenate(
                    [hb[s:], jnp.zeros((s, cout), hb.dtype)], axis=0)
            elif s < 0:
                tap = jnp.concatenate(
                    [jnp.zeros((-s, cout), hb.dtype), hb[:s]], axis=0)
            else:
                tap = hb
            if dx == 0:                                   # left neighbour invalid at j == 0
                tap = jnp.where(col > 0, tap, jnp.zeros_like(tap))
            elif dx == 2:                                 # right neighbour invalid at j == W-1
                tap = jnp.where(col < W - 1, tap, jnp.zeros_like(tap))
            acc = acc + jnp.dot(tap, k2_ref[dy * 3 + dx],
                                preferred_element_type=f32)

    # BN + ReLU, then residual add (matches reference: relu happens first).
    out = jnp.maximum(acc * s2_ref[...] + b2_ref[...], 0.0) + idn
    o_ref[0] = out.astype(o_ref.dtype)


def _instnorm_conv_kernel(x_ref, w_ref, o_ref, *, eps):
    """Per-image InstanceNorm2d (affine=False) fused with the final 1x1 conv."""
    # TODO(synk): for very large H*W on v7x (64 MiB VMEM), tile HW with a
    # two-pass (stats then normalize+matmul) scheme instead of one image/block.
    x = x_ref[0].astype(jnp.float32)                      # (HW, C), bf16 load
    mean = jnp.mean(x, axis=0, keepdims=True)             # (1, C)
    var = jnp.mean(jnp.square(x - mean), axis=0, keepdims=True)
    xn = (x - mean) * jax.lax.rsqrt(var + eps)
    y = jnp.dot(xn.astype(jnp.bfloat16), w_ref[...],
                preferred_element_type=jnp.float32)
    o_ref[0] = y


# ----------------------------- kernel wrappers --------------------------------

def pointwise_matmul(x3, w):
    """1x1 conv (no BN/ReLU): (N, HW, Cin) bf16 @ (Cin, Cout) bf16 -> bf16."""
    n, hw, cin = x3.shape
    cout = w.shape[1]
    m = n * hw
    x2 = x3.reshape(m, cin)
    tm = _row_tile(m, 2 * (cin + cout))
    est = 2 * (tm * cin + cin * cout + tm * cout)
    # TODO(synk): add a K-reduction grid axis if Cin ever gets large; all K in
    # this decoder are small so the whole K fits one block.
    y2 = pl.pallas_call(
        _matmul_kernel,
        out_shape=jax.ShapeDtypeStruct((m, cout), jnp.bfloat16),
        grid=(m // tm,),
        in_specs=[pl.BlockSpec((tm, cin), lambda i: (i, 0)),
                  pl.BlockSpec((cin, cout), lambda i: (0, 0))],
        out_specs=pl.BlockSpec((tm, cout), lambda i: (i, 0)),
        compiler_params=_tpu_params(1, est),
    )(x2, w)
    return y2.reshape(n, hw, cout)


def upsample_block(x3, bp, H, W):
    """One fused Upsample(in->out) block: (N, HW, Cin) bf16 -> (N, HW, Cout) bf16."""
    n, hw, cin = x3.shape
    cout = bp["wup"].shape[1]
    est = 2 * hw * (cin + cout) + 2 * (cin * cout + 11 * cout * cout) + 24 * cout
    kern = functools.partial(_upsample_block_kernel, H=H, W=W)
    return pl.pallas_call(
        kern,
        out_shape=jax.ShapeDtypeStruct((n, hw, cout), jnp.bfloat16),
        grid=(n,),
        in_specs=[
            pl.BlockSpec((1, hw, cin), lambda i: (i, 0, 0)),       # x (per image)
            pl.BlockSpec((cin, cout), lambda i: (0, 0)),           # W_up
            pl.BlockSpec((cout, cout), lambda i: (0, 0)),          # conv1 centre tap
            pl.BlockSpec((1, cout), lambda i: (0, 0)),             # bn1 scale
            pl.BlockSpec((1, cout), lambda i: (0, 0)),             # bn1 shift
            pl.BlockSpec((cout, cout), lambda i: (0, 0)),          # rescale weight
            pl.BlockSpec((1, cout), lambda i: (0, 0)),             # bn_rescale scale
            pl.BlockSpec((1, cout), lambda i: (0, 0)),             # bn_rescale shift
            pl.BlockSpec((9, cout, cout), lambda i: (0, 0, 0)),    # conv2 taps
            pl.BlockSpec((1, cout), lambda i: (0, 0)),             # bn2 scale
            pl.BlockSpec((1, cout), lambda i: (0, 0)),             # bn2 shift
        ],
        out_specs=pl.BlockSpec((1, hw, cout), lambda i: (i, 0, 0)),
        compiler_params=_tpu_params(1, est),
    )(x3, bp["wup"], bp["k1c"], bp["s1"], bp["b1"],
      bp["wr"], bp["sr"], bp["br"], bp["k2"], bp["s2"], bp["b2"])


def instnorm_out_conv(x3, w):
    """out_norm (InstanceNorm2d) + out_conv (1x1, no bias), final output in f32."""
    n, hw, c = x3.shape
    cout = w.shape[1]
    est = 2 * hw * c + 2 * c * cout + 4 * hw * cout
    return pl.pallas_call(
        functools.partial(_instnorm_conv_kernel, eps=_IN_EPS),
        out_shape=jax.ShapeDtypeStruct((n, hw, cout), jnp.float32),
        grid=(n,),
        in_specs=[pl.BlockSpec((1, hw, c), lambda i: (i, 0, 0)),
                  pl.BlockSpec((c, cout), lambda i: (0, 0))],
        out_specs=pl.BlockSpec((1, hw, cout), lambda i: (i, 0, 0)),
        compiler_params=_tpu_params(1, est),
    )(x3, w)


# --------------------------- parameter preparation ----------------------------

def prepare_params(raw):
    """One-time hoist: fold eval-mode BN, transpose weights, cast to bf16."""
    def fold_bn(bn):
        scale = bn["gamma"] / jnp.sqrt(bn["rv"] + _BN_EPS)
        shift = bn["beta"] - bn["rm"] * scale
        return (scale.reshape(1, -1).astype(jnp.float32),
                shift.reshape(1, -1).astype(jnp.float32))

    prep = {"in_w": jnp.transpose(raw["in_conv_w"][:, :, 0, 0]).astype(jnp.bfloat16)}
    blocks = []
    for p in raw["upsamples"]:
        r = p["residual"]
        cout = p["up_w"].shape[1]
        s1, b1 = fold_bn(r["conv1"]["bn"])
        s2, b2 = fold_bn(r["conv2"]["bn"])
        sr, br = fold_bn(r["rescale"]["bn"])
        blocks.append(dict(
            wup=p["up_w"][:, :, 0, 0].astype(jnp.bfloat16),                    # (Cin, Cout)
            k1c=jnp.transpose(r["conv1"]["w"][:, :, 1, 1]).astype(jnp.bfloat16),
            s1=s1, b1=b1,
            wr=jnp.transpose(r["rescale"]["w"][:, :, 0, 0]).astype(jnp.bfloat16),
            sr=sr, br=br,
            k2=jnp.transpose(r["conv2"]["w"], (2, 3, 1, 0))
               .reshape(9, cout, cout).astype(jnp.bfloat16),                   # (9, I, O)
            s2=s2, b2=b2,
        ))
    prep["blocks"] = blocks
    prep["out_w"] = jnp.transpose(raw["out_conv_w"][:, :, 0, 0]).astype(jnp.bfloat16)
    return prep


# --------------------------------- forward ------------------------------------

def unet_decoder_forward(prep, x_nchw, skips_nchw):
    n, _, h, w = x_nchw.shape
    x = jnp.transpose(x_nchw, (0, 2, 3, 1)).astype(jnp.bfloat16)    # NCHW -> NHWC
    x = x.reshape(n, h * w, x.shape[-1])                            # rows = spatial
    x = pointwise_matmul(x, prep["in_w"])                           # in_conv (1x1)
    for bp, skip in zip(prep["blocks"], reversed(skips_nchw)):
        x = upsample_block(x, bp, h, w)                             # fused Upsample(...)
        skip_r = jnp.transpose(skip, (0, 2, 3, 1)).reshape(
            n, h * w, skip.shape[1]).astype(jnp.bfloat16)
        x = jnp.concatenate([x, skip_r], axis=-1)                   # torch.cat dim=1
    out = instnorm_out_conv(x, prep["out_w"])                       # out_norm + out_conv
    out = out.reshape(n, h, w, out.shape[-1])
    return jnp.transpose(out, (0, 3, 1, 2))                         # NHWC -> NCHW


# ------------------------------ parameter init --------------------------------

def init_params(key, in_channels, base, depth, out_channels):
    keys = iter(jax.random.split(key, 64))

    def w(shape, fan_in):
        return jax.random.normal(next(keys), shape, jnp.float32) * (float(fan_in) ** -0.5)

    def bn(c):
        return dict(
            gamma=jax.random.uniform(next(keys), (c,), jnp.float32, 0.5, 1.5),
            beta=jax.random.normal(next(keys), (c,), jnp.float32) * 0.1,
            rm=jax.random.normal(next(keys), (c,), jnp.float32) * 0.1,
            rv=jax.random.uniform(next(keys), (c,), jnp.float32, 0.5, 1.5),
        )

    params = {"in_conv_w": w((base * 2 ** depth, in_channels, 1, 1), in_channels)}
    ups = []
    for i in range(depth, 0, -1):
        cin, cout = base * 2 ** i, base * 2 ** (i - 1)
        ups.append(dict(
            up_w=w((cin, cout, 1, 1), cin),                      # ConvTranspose2d weight
            residual=dict(
                conv1=dict(w=w((cout, cout, 3, 3), cout * 9), bn=bn(cout)),
                conv2=dict(w=w((cout, cout, 3, 3), cout * 9), bn=bn(cout)),
                rescale=dict(w=w((cout, cout, 1, 1), cout), bn=bn(cout)),
            ),
        ))
    params["upsamples"] = ups
    params["out_conv_w"] = w((out_channels, base, 1, 1), base)
    return params


# ----------------------------------- main --------------------------------------

if __name__ == "__main__":
    N, in_ch, H, W = 2, 4, 16, 16
    base, depth, out_ch = 8, 2, 3

    key = jax.random.PRNGKey(0)
    kp, kx = jax.random.split(key)
    raw = init_params(kp, in_ch, base, depth, out_ch)
    prep = prepare_params(raw)          # hoisted weight relayout / BN folding
    x = jax.random.normal(kx, (N, in_ch, H, W), jnp.float32)
    # Zero-channel skips: the only channel counts for which the reference
    # forward's `torch.cat` loop is shape-consistent with out_conv.
    skips = tuple(jnp.zeros((N, 0, H, W), jnp.float32) for _ in range(depth))

    fwd = jax.jit(unet_decoder_forward)
    out = jax.block_until_ready(fwd(prep, x, skips))

    assert out.shape == (N, out_ch, H, W), out.shape
    assert bool(jnp.all(jnp.isfinite(out)))
    print("KERNEL_OK")
</pallas_src>

<mosaic_0001>
module attributes {stable_mosaic.version = 11 : i64} {
  func.func @_matmul_kernel(%arg0: i32, %arg1: memref<256x4xbf16, #tpu.memory_space<vmem>>, %arg2: memref<4x32xbf16, #tpu.memory_space<vmem>>, %arg3: memref<256x32xbf16, #tpu.memory_space<vmem>>) attributes {dimension_semantics = [#tpu.dimension_semantics<parallel>], iteration_bounds = array<i64: 2>, scalar_prefetch = 0 : i64, scratch_operands = 0 : i64, tpu.core_type = #tpu.core_type<tc>, window_params = [{transform_indices = @transform_0, window_bounds = array<i64: 256, 4>}, {pipeline_mode = #tpu.pipeline_mode<synchronous>, transform_indices = @transform_1, window_bounds = array<i64: 4, 32>}, {transform_indices = @transform_2, window_bounds = array<i64: 256, 32>}]} {
    %c0 = arith.constant 0 : index
    %c0_0 = arith.constant 0 : index
    %0 = vector.load %arg1[%c0, %c0_0] : memref<256x4xbf16, #tpu.memory_space<vmem>>, vector<256x4xbf16>
    %c0_1 = arith.constant 0 : index
    %c0_2 = arith.constant 0 : index
    %1 = vector.load %arg2[%c0_1, %c0_2] : memref<4x32xbf16, #tpu.memory_space<vmem>>, vector<4x32xbf16>
    %cst = arith.constant dense<0.000000e+00> : vector<256x32xf32>
    %2 = tpu.matmul %0, %1, %cst {dimension_numbers = #tpu.dot_dimension_numbers<[1], [0], [0], [1], [0, 0, 1, 1], [], []>} : vector<256x4xbf16>, vector<4x32xbf16>, vector<256x32xf32> -> vector<256x32xf32>
    %3 = arith.truncf %2 : vector<256x32xf32> to vector<256x32xbf16>
    %c0_3 = arith.constant 0 : index
    %c0_4 = arith.constant 0 : index
    %4 = vector.load %arg3[%c0_3, %c0_4] : memref<256x32xbf16, #tpu.memory_space<vmem>>, vector<256x32xbf16>
    tpu.vector_store %arg3[%c0_3, %c0_4], %3 {strides = array<i32>} : memref<256x32xbf16, #tpu.memory_space<vmem>>, vector<256x32xbf16>,
    return
  }
  func.func @transform_0(%arg0: i32) -> (i32, i32) {
    %c0_i32 = arith.constant 0 : i32
    %c0_i32_0 = arith.constant 0 : i32
    return %arg0, %c0_i32 : i32, i32
  }
  func.func @transform_1(%arg0: i32) -> (i32, i32) {
    %c0_i32 = arith.constant 0 : i32
    %c0_i32_0 = arith.constant 0 : i32
    %c0_i32_1 = arith.constant 0 : i32
    return %c0_i32, %c0_i32_0 : i32, i32
  }
  func.func @transform_2(%arg0: i32) -> (i32, i32) {
    %c0_i32 = arith.constant 0 : i32
    %c0_i32_0 = arith.constant 0 : i32
    return %arg0, %c0_i32 : i32, i32
  }
}

module attributes {stable_mosaic.version = 11 : i64} {
  func.func @_upsample_block_kernel(%arg0: i32, %arg1: memref<1x256x32xbf16, #tpu.memory_space<vmem>>, %arg2: memref<32x16xbf16, #tpu.memory_space<vmem>>, %arg3: memref<16x16xbf16, #tpu.memory_space<vmem>>, %arg4: memref<1x16xf32, #tpu.memory_space<vmem>>, %arg5: memref<1x16xf32, #tpu.memory_space<vmem>>, %arg6: memref<16x16xbf16, #tpu.memory_space<vmem>>, %arg7: memref<1x16xf32, #tpu.memory_space<vmem>>, %arg8: memref<1x16xf32, #tpu.memory_space<vmem>>, %arg9: memref<9x16x16xbf16, #tpu.memory_space<vmem>>, %arg10: memref<1x16xf32, #tpu.memory_space<vmem>>, %arg11: memref<1x16xf32, #tpu.memory_space<vmem>>, %arg12: memref<1x256x16xbf16, #tpu.memory_space<vmem>>) attributes {dimension_semantics = [#tpu.dimension_semantics<parallel>], iteration_bounds = array<i64: 2>, scalar_prefetch = 0 : i64, scratch_operands = 0 : i64, tpu.core_type = #tpu.core_type<tc>, window_params = [{transform_indices = @transform_0, window_bounds = array<i64: 1, 256, 32>}, {pipeline_mode = #tpu.pipeline_mode<synchronous>, transform_indices = @transform_1, window_bounds = array<i64: 32, 16>}, {pipeline_mode = #tpu.pipeline_mode<synchronous>, transform_indices = @transform_2, window_bounds = array<i64: 16, 16>}, {pipeline_mode = #tpu.pipeline_mode<synchronous>, transform_indices = @transform_3, window_bounds = array<i64: 1, 16>}, {pipeline_mode = #tpu.pipeline_mode<synchronous>, transform_indices = @transform_4, window_bounds = array<i64: 1, 16>}, {pipeline_mode = #tpu.pipeline_mode<synchronous>, transform_indices = @transform_5, window_bounds = array<i64: 16, 16>}, {pipeline_mode = #tpu.pipeline_mode<synchronous>, transform_indices = @transform_6, window_bounds = array<i64: 1, 16>}, {pipeline_mode = #tpu.pipeline_mode<synchronous>, transform_indices = @transform_7, window_bounds = array<i64: 1, 16>}, {pipeline_mode = #tpu.pipeline_mode<synchronous>, transform_indices = @transform_8, window_bounds = array<i64: 9, 16, 16>}, {pipeline_mode = #tpu.pipeline_mode<synchronous>, transform_indices = @transform_9, window_bounds = array<i64: 1, 16>}, {pipeline_mode = #tpu.pipeline_mode<synchronous>, transform_indices = @transform_10, window_bounds = array<i64: 1, 16>}, {transform_indices = @transform_11, window_bounds = array<i64: 1, 256, 16>}]} {
    %c0 = arith.constant 0 : index
    %c0_0 = arith.constant 0 : index
    %c0_1 = arith.constant 0 : index
    %0 = vector.load %arg1[%c0, %c0_0, %c0_1] : memref<1x256x32xbf16, #tpu.memory_space<vmem>>, vector<1x256x32xbf16>
    %1 = vector.shape_cast %0 : vector<1x256x32xbf16> to vector<256x32xbf16>
    %c0_2 = arith.constant 0 : index
    %c0_3 = arith.constant 0 : index
    %2 = vector.load %arg2[%c0_2, %c0_3] : memref<32x16xbf16, #tpu.memory_space<vmem>>, vector<32x16xbf16>
    %cst = arith.constant dense<0.000000e+00> : vector<256x16xf32>
    %3 = tpu.matmul %1, %2, %cst {dimension_numbers = #tpu.dot_dimension_numbers<[1], [0], [0], [1], [0, 0, 1, 1], [], []>} : vector<256x32xbf16>, vector<32x16xbf16>, vector<256x16xf32> -> vector<256x16xf32>
    %4 = arith.truncf %3 : vector<256x16xf32> to vector<256x16xbf16>
    %c0_4 = arith.constant 0 : index
    %c0_5 = arith.constant 0 : index
    %5 = vector.load %arg3[%c0_4, %c0_5] : memref<16x16xbf16, #tpu.memory_space<vmem>>, vector<16x16xbf16>
    %cst_6 = arith.constant dense<0.000000e+00> : vector<256x16xf32>
    %6 = tpu.matmul %4, %5, %cst_6 {dimension_numbers = #tpu.dot_dimension_numbers<[1], [0], [0], [1], [0, 0, 1, 1], [], []>} : vector<256x16xbf16>, vector<16x16xbf16>, vector<256x16xf32> -> vector<256x16xf32>
    %c0_7 = arith.constant 0 : index
    %c0_8 = arith.constant 0 : index
    %7 = vector.load %arg4[%c0_7, %c0_8] : memref<1x16xf32, #tpu.memory_space<vmem>>, vector<1x16xf32>
    %8 = vector.broadcast %7 : vector<1x16xf32> to vector<256x16xf32>
    %9 = arith.mulf %6, %8 : vector<256x16xf32>
    %c0_9 = arith.constant 0 : index
    %c0_10 = arith.constant 0 : index
    %10 = vector.load %arg5[%c0_9, %c0_10] : memref<1x16xf32, #tpu.memory_space<vmem>>, vector<1x16xf32>
    %11 = vector.broadcast %10 : vector<1x16xf32> to vector<256x16xf32>
    %12 = arith.addf %9, %11 : vector<256x16xf32>
    %cst_11 = arith.constant 0.000000e+00 : f32
    %13 = vector.broadcast %cst_11 : f32 to vector<256x16xf32>
    %14 = arith.maximumf %12, %13 : vector<256x16xf32>
    %c0_12 = arith.constant 0 : index
    %c0_13 = arith.constant 0 : index
    %15 = vector.load %arg6[%c0_12, %c0_13] : memref<16x16xbf16, #tpu.memory_space<vmem>>, vector<16x16xbf16>
    %cst_14 = arith.constant dense<0.000000e+00> : vector<256x16xf32>
    %16 = tpu.matmul %4, %15, %cst_14 {dimension_numbers = #tpu.dot_dimension_numbers<[1], [0], [0], [1], [0, 0, 1, 1], [], []>} : vector<256x16xbf16>, vector<16x16xbf16>, vector<256x16xf32> -> vector<256x16xf32>
    %c0_15 = arith.constant 0 : index
    %c0_16 = arith.constant 0 : index
    %17 = vector.load %arg7[%c0_15, %c0_16] : memref<1x16xf32, #tpu.memory_space<vmem>>, vector<1x16xf32>
    %18 = vector.broadcast %17 : vector<1x16xf32> to vector<256x16xf32>
    %19 = arith.mulf %16, %18 : vector<256x16xf32>
    %c0_17 = arith.constant 0 : index
    %c0_18 = arith.constant 0 : index
    %20 = vector.load %arg8[%c0_17, %c0_18] : memref<1x16xf32, #tpu.memory_space<vmem>>, vector<1x16xf32>
    %21 = vector.broadcast %20 : vector<1x16xf32> to vector<256x16xf32>
    %22 = arith.addf %19, %21 : vector<256x16xf32>
    %cst_19 = arith.constant 0.000000e+00 : f32
    %23 = vector.broadcast %cst_19 : f32 to vector<256x16xf32>
    %24 = arith.maximumf %22, %23 : vector<256x16xf32>
    %25 = arith.truncf %14 : vector<256x16xf32> to vector<256x16xbf16>
    %26 = tpu.iota {dimensions = array<i32: 0>} : vector<256x1xi32>
    %c16_i32 = arith.constant 16 : i32
    %c0_i32 = arith.constant 0 : i32
    %27 = arith.cmpi eq, %c16_i32, %c0_i32 : i32
    %c1_i32 = arith.constant 1 : i32
    %28 = arith.select %27, %c1_i32, %c16_i32 : i32
    %29 = vector.broadcast %28 : i32 to vector<256x1xi32>
    %30 = arith.remsi %26, %29 : vector<256x1xi32>
    %c0_i32_20 = arith.constant 0 : i32
    %31 = vector.broadcast %c0_i32_20 : i32 to vector<256x1xi32>
    %32 = arith.cmpi ne, %30, %31 : vector<256x1xi32>
    %c0_i32_21 = arith.constant 0 : i32
    %33 = vector.broadcast %c0_i32_21 : i32 to vector<256x1xi32>
    %34 = arith.cmpi slt, %30, %33 : vector<256x1xi32>
    %c0_i32_22 = arith.constant 0 : i32
    %35 = arith.cmpi slt, %28, %c0_i32_22 : i32
    %36 = vector.broadcast %35 : i1 to vector<256x1xi1>
    %37 = vector.broadcast %36 : vector<256x1xi1> to vector<256x1xi1>
    %38 = arith.xori %34, %37 : vector<256x1xi1>
    %39 = arith.andi %38, %32 : vector<256x1xi1>
    %40 = vector.broadcast %28 : i32 to vector<256x1xi32>
    %41 = arith.addi %30, %40 : vector<256x1xi32>
    %42 = arith.select %39, %41, %30 : vector<256x1xi1>, vector<256x1xi32>
    %cst_23 = arith.constant 0.000000e+00 : f32
    %43 = vector.broadcast %cst_23 : f32 to vector<256x16xf32>
    %cst_24 = arith.constant 0.000000e+00 : bf16
    %44 = vector.broadcast %cst_24 : bf16 to vector<17x16xbf16>
    %45 = vector.extract_strided_slice %25 {offsets = [0, 0], sizes = [239, 16], strides = [1, 1]} : vector<256x16xbf16> to vector<239x16xbf16>
    %46 = tpu.concatenate %44, %45 in 0 : vector<17x16xbf16>, vector<239x16xbf16> -> vector<256x16xbf16>
    %c0_i32_25 = arith.constant 0 : i32
    %47 = vector.broadcast %c0_i32_25 : i32 to vector<256x1xi32>
    %48 = arith.cmpi sgt, %42, %47 : vector<256x1xi32>
    %cst_26 = arith.constant 0.000000e+00 : bf16
    %49 = vector.broadcast %cst_26 : bf16 to vector<256x16xbf16>
    %50 = vector.shape_cast %48 : vector<256x1xi1> to vector<256x1xi1>
    %51 = vector.broadcast %50 : vector<256x1xi1> to vector<256x16xi1>
    %52 = arith.select %51, %46, %49 : vector<256x16xi1>, vector<256x16xbf16>
    %c0_27 = arith.constant 0 : index
    %c0_28 = arith.constant 0 : index
    %c0_29 = arith.constant 0 : index
    %53 = vector.load %arg9[%c0_27, %c0_28, %c0_29] : memref<9x16x16xbf16, #tpu.memory_space<vmem>>, vector<1x16x16xbf16>
    %54 = vector.shape_cast %53 : vector<1x16x16xbf16> to vector<16x16xbf16>
    %cst_30 = arith.constant dense<0.000000e+00> : vector<256x16xf32>
    %55 = tpu.matmul %52, %54, %cst_30 {dimension_numbers = #tpu.dot_dimension_numbers<[1], [0], [0], [1], [0, 0, 1, 1], [], []>} : vector<256x16xbf16>, vector<16x16xbf16>, vector<256x16xf32> -> vector<256x16xf32>
    %56 = arith.addf %43, %55 : vector<256x16xf32>
    %cst_31 = arith.constant 0.000000e+00 : bf16
    %57 = vector.broadcast %cst_31 : bf16 to vector<16x16xbf16>
    %58 = vector.extract_strided_slice %25 {offsets = [0, 0], sizes = [240, 16], strides = [1, 1]} : vector<256x16xbf16> to vector<240x16xbf16>
    %59 = tpu.concatenate %57, %58 in 0 : vector<16x16xbf16>, vector<240x16xbf16> -> vector<256x16xbf16>
    %c1 = arith.constant 1 : index
    %c0_32 = arith.constant 0 : index
    %c0_33 = arith.constant 0 : index
    %60 = vector.load %arg9[%c1, %c0_32, %c0_33] : memref<9x16x16xbf16, #tpu.memory_space<vmem>>, vector<1x16x16xbf16>
    %61 = vector.shape_cast %60 : vector<1x16x16xbf16> to vector<16x16xbf16>
    %cst_34 = arith.constant dense<0.000000e+00> : vector<256x16xf32>
    %62 = tpu.matmul %59, %61, %cst_34 {dimension_numbers = #tpu.dot_dimension_numbers<[1], [0], [0], [1], [0, 0, 1, 1], [], []>} : vector<256x16xbf16>, vector<16x16xbf16>, vector<256x16xf32> -> vector<256x16xf32>
    %63 = arith.addf %56, %62 : vector<256x16xf32>
    %cst_35 = arith.constant 0.000000e+00 : bf16
    %64 = vector.broadcast %cst_35 : bf16 to vector<15x16xbf16>
    %65 = vector.extract_strided_slice %25 {offsets = [0, 0], sizes = [241, 16], strides = [1, 1]} : vector<256x16xbf16> to vector<241x16xbf16>
    %66 = tpu.concatenate %64, %65 in 0 : vector<15x16xbf16>, vector<241x16xbf16> -> vector<256x16xbf16>
    %c15_i32 = arith.constant 15 : i32
    %67 = vector.broadcast %c15_i32 : i32 to vector<256x1xi32>
    %68 = arith.cmpi slt, %42, %67 : vector<256x1xi32>
    %cst_36 = arith.constant 0.000000e+00 : bf16
    %69 = vector.broadcast %cst_36 : bf16 to vector<256x16xbf16>
    %70 = vector.shape_cast %68 : vector<256x1xi1> to vector<256x1xi1>
    %71 = vector.broadcast %70 : vector<256x1xi1> to vector<256x16xi1>
    %72 = arith.select %71, %66, %69 : vector<256x16xi1>, vector<256x16xbf16>
    %c2 = arith.constant 2 : index
    %c0_37 = arith.constant 0 : index
    %c0_38 = arith.constant 0 : index
    %73 = vector.load %arg9[%c2, %c0_37, %c0_38] : memref<9x16x16xbf16, #tpu.memory_space<vmem>>, vector<1x16x16xbf16>
    %74 = vector.shape_cast %73 : vector<1x16x16xbf16> to vector<16x16xbf16>
    %cst_39 = arith.constant dense<0.000000e+00> : vector<256x16xf32>
    %75 = tpu.matmul %72, %74, %cst_39 {dimension_numbers = #tpu.dot_dimension_numbers<[1], [0], [0], [1], [0, 0, 1, 1], [], []>} : vector<256x16xbf16>, vector<16x16xbf16>, vector<256x16xf32> -> vector<256x16xf32>
    %76 = arith.addf %63, %75 : vector<256x16xf32>
    %cst_40 = arith.constant 0.000000e+00 : bf16
    %77 = vector.broadcast %cst_40 : bf16 to vector<1x16xbf16>
    %78 = vector.extract_strided_slice %25 {offsets = [0, 0], sizes = [255, 16], strides = [1, 1]} : vector<256x16xbf16> to vector<255x16xbf16>
    %79 = tpu.concatenate %77, %78 in 0 : vector<1x16xbf16>, vector<255x16xbf16> -> vector<256x16xbf16>
    %c0_i32_41 = arith.constant 0 : i32
    %80 = vector.broadcast %c0_i32_41 : i32 to vector<256x1xi32>
    %81 = arith.cmpi sgt, %42, %80 : vector<256x1xi32>
    %cst_42 = arith.constant 0.000000e+00 : bf16
    %82 = vector.broadcast %cst_42 : bf16 to vector<256x16xbf16>
    %83 = vector.shape_cast %81 : vector<256x1xi1> to vector<256x1xi1>
    %84 = vector.broadcast %83 : vector<256x1xi1> to vector<256x16xi1>
    %85 = arith.select %84, %79, %82 : vector<256x16xi1>, vector<256x16xbf16>
    %c3 = arith.constant 3 : index
    %c0_43 = arith.constant 0 : index
    %c0_44 = arith.constant 0 : index
    %86 = vector.load %arg9[%c3, %c0_43, %c0_44] : memref<9x16x16xbf16, #tpu.memory_space<vmem>>, vector<1x16x16xbf16>
    %87 = vector.shape_cast %86 : vector<1x16x16xbf16> to vector<16x16xbf16>
    %cst_45 = arith.constant dense<0.000000e+00> : vector<256x16xf32>
    %88 = tpu.matmul %85, %87, %cst_45 {dimension_numbers = #tpu.dot_dimension_numbers<[1], [0], [0], [1], [0, 0, 1, 1], [], []>} : vector<256x16xbf16>, vector<16x16xbf16>, vector<256x16xf32> -> vector<256x16xf32>
    %89 = arith.addf %76, %88 : vector<256x16xf32>
    %c4 = arith.constant 4 : index
    %c0_46 = arith.constant 0 : index
    %c0_47 = arith.constant 0 : index
    %90 = vector.load %arg9[%c4, %c0_46, %c0_47] : memref<9x16x16xbf16, #tpu.memory_space<vmem>>, vector<1x16x16xbf16>
    %91 = vector.shape_cast %90 : vector<1x16x16xbf16> to vector<16x16xbf16>
    %cst_48 = arith.constant dense<0.000000e+00> : vector<256x16xf32>
    %92 = tpu.matmul %25, %91, %cst_48 {dimension_numbers = #tpu.dot_dimension_numbers<[1], [0], [0], [1], [0, 0, 1, 1], [], []>} : vector<256x16xbf16>, vector<16x16xbf16>, vector<256x16xf32> -> vector<256x16xf32>
    %93 = arith.addf %89, %92 : vector<256x16xf32>
    %94 = vector.extract_strided_slice %25 {offsets = [1, 0], sizes = [255, 16], strides = [1, 1]} : vector<256x16xbf16> to vector<255x16xbf16>
    %cst_49 = arith.constant 0.000000e+00 : bf16
    %95 = vector.broadcast %cst_49 : bf16 to vector<1x16xbf16>
    %96 = tpu.concatenate %94, %95 in 0 : vector<255x16xbf16>, vector<1x16xbf16> -> vector<256x16xbf16>
    %c15_i32_50 = arith.constant 15 : i32
    %97 = vector.broadcast %c15_i32_50 : i32 to vector<256x1xi32>
    %98 = arith.cmpi slt, %42, %97 : vector<256x1xi32>
    %cst_51 = arith.constant 0.000000e+00 : bf16
    %99 = vector.broadcast %cst_51 : bf16 to vector<256x16xbf16>
    %100 = vector.shape_cast %98 : vector<256x1xi1> to vector<256x1xi1>
    %101 = vector.broadcast %100 : vector<256x1xi1> to vector<256x16xi1>
    %102 = arith.select %101, %96, %99 : vector<256x16xi1>, vector<256x16xbf16>
    %c5 = arith.constant 5 : index
    %c0_52 = arith.constant 0 : index
    %c0_53 = arith.constant 0 : index
    %103 = vector.load %arg9[%c5, %c0_52, %c0_53] : memref<9x16x16xbf16, #tpu.memory_space<vmem>>, vector<1x16x16xbf16>
    %104 = vector.shape_cast %103 : vector<1x16x16xbf16> to vector<16x16xbf16>
    %cst_54 = arith.constant dense<0.000000e+00> : vector<256x16xf32>
    %105 = tpu.matmul %102, %104, %cst_54 {dimension_numbers = #tpu.dot_dimension_numbers<[1], [0], [0], [1], [0, 0, 1, 1], [], []>} : vector<256x16xbf16>, vector<16x16xbf16>, vector<256x16xf32> -> vector<256x16xf32>
    %106 = arith.addf %93, %105 : vector<256x16xf32>
    %107 = vector.extract_strided_slice %25 {offsets = [15, 0], sizes = [241, 16], strides = [1, 1]} : vector<256x16xbf16> to vector<241x16xbf16>
    %cst_55 = arith.constant 0.000000e+00 : bf16
    %108 = vector.broadcast %cst_55 : bf16 to vector<15x16xbf16>
    %109 = tpu.concatenate %107, %108 in 0 : vector<241x16xbf16>, vector<15x16xbf16> -> vector<256x16xbf16>
    %c0_i32_56 = arith.constant 0 : i32
    %110 = vector.broadcast %c0_i32_56 : i32 to vector<256x1xi32>
    %111 = arith.cmpi sgt, %42, %110 : vector<256x1xi32>
    %cst_57 = arith.constant 0.000000e+00 : bf16
    %112 = vector.broadcast %cst_57 : bf16 to vector<256x16xbf16>
    %113 = vector.shape_cast %111 : vector<256x1xi1> to vector<256x1xi1>
    %114 = vector.broadcast %113 : vector<256x1xi1> to vector<256x16xi1>
    %115 = arith.select %114, %109, %112 : vector<256x16xi1>, vector<256x16xbf16>
    %c6 = arith.constant 6 : index
    %c0_58 = arith.constant 0 : index
    %c0_59 = arith.constant 0 : index
    %116 = vector.load %arg9[%c6, %c0_58, %c0_59] : memref<9x16x16xbf16, #tpu.memory_space<vmem>>, vector<1x16x16xbf16>
    %117 = vector.shape_cast %116 : vector<1x16x16xbf16> to vector<16x16xbf16>
    %cst_60 = arith.constant dense<0.000000e+00> : vector<256x16xf32>
    %118 = tpu.matmul %115, %117, %cst_60 {dimension_numbers = #tpu.dot_dimension_numbers<[1], [0], [0], [1], [0, 0, 1, 1], [], []>} : vector<256x16xbf16>, vector<16x16xbf16>, vector<256x16xf32> -> vector<256x16xf32>
    %119 = arith.addf %106, %118 : vector<256x16xf32>
    %120 = vector.extract_strided_slice %25 {offsets = [16, 0], sizes = [240, 16], strides = [1, 1]} : vector<256x16xbf16> to vector<240x16xbf16>
    %cst_61 = arith.constant 0.000000e+00 : bf16
    %121 = vector.broadcast %cst_61 : bf16 to vector<16x16xbf16>
    %122 = tpu.concatenate %120, %121 in 0 : vector<240x16xbf16>, vector<16x16xbf16> -> vector<256x16xbf16>
    %c7 = arith.constant 7 : index
    %c0_62 = arith.constant 0 : index
    %c0_63 = arith.constant 0 : index
    %123 = vector.load %arg9[%c7, %c0_62, %c0_63] : memref<9x16x16xbf16, #tpu.memory_space<vmem>>, vector<1x16x16xbf16>
    %124 = vector.shape_cast %123 : vector<1x16x16xbf16> to vector<16x16xbf16>
    %cst_64 = arith.constant dense<0.000000e+00> : vector<256x16xf32>
    %125 = tpu.matmul %122, %124, %cst_64 {dimension_numbers = #tpu.dot_dimension_numbers<[1], [0], [0], [1], [0, 0, 1, 1], [], []>} : vector<256x16xbf16>, vector<16x16xbf16>, vector<256x16xf32> -> vector<256x16xf32>
    %126 = arith.addf %119, %125 : vector<256x16xf32>
    %127 = vector.extract_strided_slice %25 {offsets = [17, 0], sizes = [239, 16], strides = [1, 1]} : vector<256x16xbf16> to vector<239x16xbf16>
    %cst_65 = arith.constant 0.000000e+00 : bf16
    %128 = vector.broadcast %cst_65 : bf16 to vector<17x16xbf16>
    %129 = tpu.concatenate %127, %128 in 0 : vector<239x16xbf16>, vector<17x16xbf16> -> vector<256x16xbf16>
    %c15_i32_66 = arith.constant 15 : i32
    %130 = vector.broadcast %c15_i32_66 : i32 to vector<256x1xi32>
    %131 = arith.cmpi slt, %42, %130 : vector<256x1xi32>
    %cst_67 = arith.constant 0.000000e+00 : bf16
    %132 = vector.broadcast %cst_67 : bf16 to vector<256x16xbf16>
    %133 = vector.shape_cast %131 : vector<256x1xi1> to vector<256x1xi1>
    %134 = vector.broadcast %133 : vector<256x1xi1> to vector<256x16xi1>
    %135 = arith.select %134, %129, %132 : vector<256x16xi1>, vector<256x16xbf16>
    %c8 = arith.constant 8 : index
    %c0_68 = arith.constant 0 : index
    %c0_69 = arith.constant 0 : index
    %136 = vector.load %arg9[%c8, %c0_68, %c0_69] : memref<9x16x16xbf16, #tpu.memory_space<vmem>>, vector<1x16x16xbf16>
    %137 = vector.shape_cast %136 : vector<1x16x16xbf16> to vector<16x16xbf16>
    %cst_70 = arith.constant dense<0.000000e+00> : vector<256x16xf32>
    %138 = tpu.matmul %135, %137, %cst_70 {dimension_numbers = #tpu.dot_dimension_numbers<[1], [0], [0], [1], [0, 0, 1, 1], [], []>} : vector<256x16xbf16>, vector<16x16xbf16>, vector<256x16xf32> -> vector<256x16xf32>
    %139 = arith.addf %126, %138 : vector<256x16xf32>
    %c0_71 = arith.constant 0 : index
    %c0_72 = arith.constant 0 : index
    %140 = vector.load %arg10[%c0_71, %c0_72] : memref<1x16xf32, #tpu.memory_space<vmem>>, vector<1x16xf32>
    %141 = vector.broadcast %140 : vector<1x16xf32> to vector<256x16xf32>
    %142 = arith.mulf %139, %141 : vector<256x16xf32>
    %c0_73 = arith.constant 0 : index
    %c0_74 = arith.constant 0 : index
    %143 = vector.load %arg11[%c0_73, %c0_74] : memref<1x16xf32, #tpu.memory_space<vmem>>, vector<1x16xf32>
    %144 = vector.broadcast %143 : vector<1x16xf32> to vector<256x16xf32>
    %145 = arith.addf %142, %144 : vector<256x16xf32>
    %cst_75 = arith.constant 0.000000e+00 : f32
    %146 = vector.broadcast %cst_75 : f32 to vector<256x16xf32>
    %147 = arith.maximumf %145, %146 : vector<256x16xf32>
    %148 = arith.addf %147, %24 : vector<256x16xf32>
    %149 = arith.truncf %148 : vector<256x16xf32> to vector<256x16xbf16>
    %c0_76 = arith.constant 0 : index
    %c0_77 = arith.constant 0 : index
    %c0_78 = arith.constant 0 : index
    %150 = vector.load %arg12[%c0_76, %c0_77, %c0_78] : memref<1x256x16xbf16, #tpu.memory_space<vmem>>, vector<1x256x16xbf16>
    %151 = vector.shape_cast %150 : vector<1x256x16xbf16> to vector<256x16xbf16>
    %152 = vector.shape_cast %149 : vector<256x16xbf16> to vector<1x256x16xbf16>
    tpu.vector_store %arg12[%c0_76, %c0_77, %c0_78], %152 {strides = array<i32>} : memref<1x256x16xbf16, #tpu.memory_space<vmem>>, vector<1x256x16xbf16>,
    return
  }
  func.func @transform_0(%arg0: i32) -> (i32, i32, i32) {
    %c0_i32 = arith.constant 0 : i32
    %c0_i32_0 = arith.constant 0 : i32
    %c0_i32_1 = arith.constant 0 : i32
    return %arg0, %c0_i32, %c0_i32_0 : i32, i32, i32
  }
  func.func @transform_1(%arg0: i32) -> (i32, i32) {
    %c0_i32 = arith.constant 0 : i32
    %c0_i32_0 = arith.constant 0 : i32
    %c0_i32_1 = arith.constant 0 : i32
    return %c0_i32, %c0_i32_0 : i32, i32
  }
  func.func @transform_2(%arg0: i32) -> (i32, i32) {
    %c0_i32 = arith.constant 0 : i32
    %c0_i32_0 = arith.constant 0 : i32
    %c0_i32_1 = arith.constant 0 : i32
    return %c0_i32, %c0_i32_0 : i32, i32
  }
  func.func @transform_3(%arg0: i32) -> (i32, i32) {
    %c0_i32 = arith.constant 0 : i32
    %c0_i32_0 = arith.constant 0 : i32
    %c0_i32_1 = arith.constant 0 : i32
    return %c0_i32, %c0_i32_0 : i32, i32
  }
  func.func @transform_4(%arg0: i32) -> (i32, i32) {
    %c0_i32 = arith.constant 0 : i32
    %c0_i32_0 = arith.constant 0 : i32
    %c0_i32_1 = arith.constant 0 : i32
    return %c0_i32, %c0_i32_0 : i32, i32
  }
  func.func @transform_5(%arg0: i32) -> (i32, i32) {
    %c0_i32 = arith.constant 0 : i32
    %c0_i32_0 = arith.constant 0 : i32
    %c0_i32_1 = arith.constant 0 : i32
    return %c0_i32, %c0_i32_0 : i32, i32
  }
  func.func @transform_6(%arg0: i32) -> (i32, i32) {
    %c0_i32 = arith.constant 0 : i32
    %c0_i32_0 = arith.constant 0 : i32
    %c0_i32_1 = arith.constant 0 : i32
    return %c0_i32, %c0_i32_0 : i32, i32
  }
  func.func @transform_7(%arg0: i32) -> (i32, i32) {
    %c0_i32 = arith.constant 0 : i32
    %c0_i32_0 = arith.constant 0 : i32
    %c0_i32_1 = arith.constant 0 : i32
    return %c0_i32, %c0_i32_0 : i32, i32
  }
  func.func @transform_8(%arg0: i32) -> (i32, i32, i32) {
    %c0_i32 = arith.constant 0 : i32
    %c0_i32_0 = arith.constant 0 : i32
    %c0_i32_1 = arith.constant 0 : i32
    %c0_i32_2 = arith.constant 0 : i32
    return %c0_i32, %c0_i32_0, %c0_i32_1 : i32, i32, i32
  }
  func.func @transform_9(%arg0: i32) -> (i32, i32) {
    %c0_i32 = arith.constant 0 : i32
    %c0_i32_0 = arith.constant 0 : i32
    %c0_i32_1 = arith.constant 0 : i32
    return %c0_i32, %c0_i32_0 : i32, i32
  }
  func.func @transform_10(%arg0: i32) -> (i32, i32) {
    %c0_i32 = arith.constant 0 : i32
    %c0_i32_0 = arith.constant 0 : i32
    %c0_i32_1 = arith.constant 0 : i32
    return %c0_i32, %c0_i32_0 : i32, i32
  }
  func.func @transform_11(%arg0: i32) -> (i32, i32, i32) {
    %c0_i32 = arith.constant 0 : i32
    %c0_i32_0 = arith.constant 0 : i32
    %c0_i32_1 = arith.constant 0 : i32
    return %arg0, %c0_i32, %c0_i32_0 : i32, i32, i32
  }
}

module attributes {stable_mosaic.version = 11 : i64} {
  func.func @_upsample_block_kernel(%arg0: i32, %arg1: memref<1x256x16xbf16, #tpu.memory_space<vmem>>, %arg2: memref<16x8xbf16, #tpu.memory_space<vmem>>, %arg3: memref<8x8xbf16, #tpu.memory_space<vmem>>, %arg4: memref<1x8xf32, #tpu.memory_space<vmem>>, %arg5: memref<1x8xf32, #tpu.memory_space<vmem>>, %arg6: memref<8x8xbf16, #tpu.memory_space<vmem>>, %arg7: memref<1x8xf32, #tpu.memory_space<vmem>>, %arg8: memref<1x8xf32, #tpu.memory_space<vmem>>, %arg9: memref<9x8x8xbf16, #tpu.memory_space<vmem>>, %arg10: memref<1x8xf32, #tpu.memory_space<vmem>>, %arg11: memref<1x8xf32, #tpu.memory_space<vmem>>, %arg12: memref<1x256x8xbf16, #tpu.memory_space<vmem>>) attributes {dimension_semantics = [#tpu.dimension_semantics<parallel>], iteration_bounds = array<i64: 2>, scalar_prefetch = 0 : i64, scratch_operands = 0 : i64, tpu.core_type = #tpu.core_type<tc>, window_params = [{transform_indices = @transform_0, window_bounds = array<i64: 1, 256, 16>}, {pipeline_mode = #tpu.pipeline_mode<synchronous>, transform_indices = @transform_1, window_bounds = array<i64: 16, 8>}, {pipeline_mode = #tpu.pipeline_mode<synchronous>, transform_indices = @transform_2, window_bounds = array<i64: 8, 8>}, {pipeline_mode = #tpu.pipeline_mode<synchronous>, transform_indices = @transform_3, window_bounds = array<i64: 1, 8>}, {pipeline_mode = #tpu.pipeline_mode<synchronous>, transform_indices = @transform_4, window_bounds = array<i64: 1, 8>}, {pipeline_mode = #tpu.pipeline_mode<synchronous>, transform_indices = @transform_5, window_bounds = array<i64: 8, 8>}, {pipeline_mode = #tpu.pipeline_mode<synchronous>, transform_indices = @transform_6, window_bounds = array<i64: 1, 8>}, {pipeline_mode = #tpu.pipeline_mode<synchronous>, transform_indices = @transform_7, window_bounds = array<i64: 1, 8>}, {pipeline_mode = #tpu.pipeline_mode<synchronous>, transform_indices = @transform_8, window_bounds = array<i64: 9, 8, 8>}, {pipeline_mode = #tpu.pipeline_mode<synchronous>, transform_indices = @transform_9, window_bounds = array<i64: 1, 8>}, {pipeline_mode = #tpu.pipeline_mode<synchronous>, transform_indices = @transform_10, window_bounds = array<i64: 1, 8>}, {transform_indices = @transform_11, window_bounds = array<i64: 1, 256, 8>}]} {
    %c0 = arith.constant 0 : index
    %c0_0 = arith.constant 0 : index
    %c0_1 = arith.constant 0 : index
    %0 = vector.load %arg1[%c0, %c0_0, %c0_1] : memref<1x256x16xbf16, #tpu.memory_space<vmem>>, vector<1x256x16xbf16>
    %1 = vector.shape_cast %0 : vector<1x256x16xbf16> to vector<256x16xbf16>
    %c0_2 = arith.constant 0 : index
    %c0_3 = arith.constant 0 : index
    %2 = vector.load %arg2[%c0_2, %c0_3] : memref<16x8xbf16, #tpu.memory_space<vmem>>, vector<16x8xbf16>
    %cst = arith.constant dense<0.000000e+00> : vector<256x8xf32>
    %3 = tpu.matmul %1, %2, %cst {dimension_numbers = #tpu.dot_dimension_numbers<[1], [0], [0], [1], [0, 0, 1, 1], [], []>} : vector<256x16xbf16>, vector<16x8xbf16>, vector<256x8xf32> -> vector<256x8xf32>
    %4 = arith.truncf %3 : vector<256x8xf32> to vector<256x8xbf16>
    %c0_4 = arith.constant 0 : index
    %c0_5 = arith.constant 0 : index
    %5 = vector.load %arg3[%c0_4, %c0_5] : memref<8x8xbf16, #tpu.memory_space<vmem>>, vector<8x8xbf16>
    %cst_6 = arith.constant dense<0.000000e+00> : vector<256x8xf32>
    %6 = tpu.matmul %4, %5, %cst_6 {dimension_numbers = #tpu.dot_dimension_numbers<[1], [0], [0], [1], [0, 0, 1, 1], [], []>} : vector<256x8xbf16>, vector<8x8xbf16>, vector<256x8xf32> -> vector<256x8xf32>
    %c0_7 = arith.constant 0 : index
    %c0_8 = arith.constant 0 : index
    %7 = vector.load %arg4[%c0_7, %c0_8] : memref<1x8xf32, #tpu.memory_space<vmem>>, vector<1x8xf32>
    %8 = vector.broadcast %7 : vector<1x8xf32> to vector<256x8xf32>
    %9 = arith.mulf %6, %8 : vector<256x8xf32>
    %c0_9 = arith.constant 0 : index
    %c0_10 = arith.constant 0 : index
    %10 = vector.load %arg5[%c0_9, %c0_10] : memref<1x8xf32, #tpu.memory_space<vmem>>, vector<1x8xf32>
    %11 = vector.broadcast %10 : vector<1x8xf32> to vector<256x8xf32>
    %12 = arith.addf %9, %11 : vector<256x8xf32>
    %cst_11 = arith.constant 0.000000e+00 : f32
    %13 = vector.broadcast %cst_11 : f32 to vector<256x8xf32>
    %14 = arith.maximumf %12, %13 : vector<256x8xf32>
    %c0_12 = arith.constant 0 : index
    %c0_13 = arith.constant 0 : index
    %15 = vector.load %arg6[%c0_12, %c0_13] : memref<8x8xbf16, #tpu.memory_space<vmem>>, vector<8x8xbf16>
    %cst_14 = arith.constant dense<0.000000e+00> : vector<256x8xf32>
    %16 = tpu.matmul %4, %15, %cst_14 {dimension_numbers = #tpu.dot_dimension_numbers<[1], [0], [0], [1], [0, 0, 1, 1], [], []>} : vector<256x8xbf16>, vector<8x8xbf16>, vector<256x8xf32> -> vector<256x8xf32>
    %c0_15 = arith.constant 0 : index
    %c0_16 = arith.constant 0 : index
    %17 = vector.load %arg7[%c0_15, %c0_16] : memref<1x8xf32, #tpu.memory_space<vmem>>, vector<1x8xf32>
    %18 = vector.broadcast %17 : vector<1x8xf32> to vector<256x8xf32>
    %19 = arith.mulf %16, %18 : vector<256x8xf32>
    %c0_17 = arith.constant 0 : index
    %c0_18 = arith.constant 0 : index
    %20 = vector.load %arg8[%c0_17, %c0_18] : memref<1x8xf32, #tpu.memory_space<vmem>>, vector<1x8xf32>
    %21 = vector.broadcast %20 : vector<1x8xf32> to vector<256x8xf32>
    %22 = arith.addf %19, %21 : vector<256x8xf32>
    %cst_19 = arith.constant 0.000000e+00 : f32
    %23 = vector.broadcast %cst_19 : f32 to vector<256x8xf32>
    %24 = arith.maximumf %22, %23 : vector<256x8xf32>
    %25 = arith.truncf %14 : vector<256x8xf32> to vector<256x8xbf16>
    %26 = tpu.iota {dimensions = array<i32: 0>} : vector<256x1xi32>
    %c16_i32 = arith.constant 16 : i32
    %c0_i32 = arith.constant 0 : i32
    %27 = arith.cmpi eq, %c16_i32, %c0_i32 : i32
    %c1_i32 = arith.constant 1 : i32
    %28 = arith.select %27, %c1_i32, %c16_i32 : i32
    %29 = vector.broadcast %28 : i32 to vector<256x1xi32>
    %30 = arith.remsi %26, %29 : vector<256x1xi32>
    %c0_i32_20 = arith.constant 0 : i32
    %31 = vector.broadcast %c0_i32_20 : i32 to vector<256x1xi32>
    %32 = arith.cmpi ne, %30, %31 : vector<256x1xi32>
    %c0_i32_21 = arith.constant 0 : i32
    %33 = vector.broadcast %c0_i32_21 : i32 to vector<256x1xi32>
    %34 = arith.cmpi slt, %30, %33 : vector<256x1xi32>
    %c0_i32_22 = arith.constant 0 : i32
    %35 = arith.cmpi slt, %28, %c0_i32_22 : i32
    %36 = vector.broadcast %35 : i1 to vector<256x1xi1>
    %37 = vector.broadcast %36 : vector<256x1xi1> to vector<256x1xi1>
    %38 = arith.xori %34, %37 : vector<256x1xi1>
    %39 = arith.andi %38, %32 : vector<256x1xi1>
    %40 = vector.broadcast %28 : i32 to vector<256x1xi32>
    %41 = arith.addi %30, %40 : vector<256x1xi32>
    %42 = arith.select %39, %41, %30 : vector<256x1xi1>, vector<256x1xi32>
    %cst_23 = arith.constant 0.000000e+00 : f32
    %43 = vector.broadcast %cst_23 : f32 to vector<256x8xf32>
    %cst_24 = arith.constant 0.000000e+00 : bf16
    %44 = vector.broadcast %cst_24 : bf16 to vector<17x8xbf16>
    %45 = vector.extract_strided_slice %25 {offsets = [0, 0], sizes = [239, 8], strides = [1, 1]} : vector<256x8xbf16> to vector<239x8xbf16>
    %46 = tpu.concatenate %44, %45 in 0 : vector<17x8xbf16>, vector<239x8xbf16> -> vector<256x8xbf16>
    %c0_i32_25 = arith.constant 0 : i32
    %47 = vector.broadcast %c0_i32_25 : i32 to vector<256x1xi32>
    %48 = arith.cmpi sgt, %42, %47 : vector<256x1xi32>
    %cst_26 = arith.constant 0.000000e+00 : bf16
    %49 = vector.broadcast %cst_26 : bf16 to vector<256x8xbf16>
    %50 = vector.shape_cast %48 : vector<256x1xi1> to vector<256x1xi1>
    %51 = vector.broadcast %50 : vector<256x1xi1> to vector<256x8xi1>
    %52 = arith.select %51, %46, %49 : vector<256x8xi1>, vector<256x8xbf16>
    %c0_27 = arith.constant 0 : index
    %c0_28 = arith.constant 0 : index
    %c0_29 = arith.constant 0 : index
    %53 = vector.load %arg9[%c0_27, %c0_28, %c0_29] : memref<9x8x8xbf16, #tpu.memory_space<vmem>>, vector<1x8x8xbf16>
    %54 = vector.shape_cast %53 : vector<1x8x8xbf16> to vector<8x8xbf16>
    %cst_30 = arith.constant dense<0.000000e+00> : vector<256x8xf32>
    %55 = tpu.matmul %52, %54, %cst_30 {dimension_numbers = #tpu.dot_dimension_numbers<[1], [0], [0], [1], [0, 0, 1, 1], [], []>} : vector<256x8xbf16>, vector<8x8xbf16>, vector<256x8xf32> -> vector<256x8xf32>
    %56 = arith.addf %43, %55 : vector<256x8xf32>
    %cst_31 = arith.constant 0.000000e+00 : bf16
    %57 = vector.broadcast %cst_31 : bf16 to vector<16x8xbf16>
    %58 = vector.extract_strided_slice %25 {offsets = [0, 0], sizes = [240, 8], strides = [1, 1]} : vector<256x8xbf16> to vector<240x8xbf16>
    %59 = tpu.concatenate %57, %58 in 0 : vector<16x8xbf16>, vector<240x8xbf16> -> vector<256x8xbf16>
    %c1 = arith.constant 1 : index
    %c0_32 = arith.constant 0 : index
    %c0_33 = arith.constant 0 : index
    %60 = vector.load %arg9[%c1, %c0_32, %c0_33] : memref<9x8x8xbf16, #tpu.memory_space<vmem>>, vector<1x8x8xbf16>
    %61 = vector.shape_cast %60 : vector<1x8x8xbf16> to vector<8x8xbf16>
    %cst_34 = arith.constant dense<0.000000e+00> : vector<256x8xf32>
    %62 = tpu.matmul %59, %61, %cst_34 {dimension_numbers = #tpu.dot_dimension_numbers<[1], [0], [0], [1], [0, 0, 1, 1], [], []>} : vector<256x8xbf16>, vector<8x8xbf16>, vector<256x8xf32> -> vector<256x8xf32>
    %63 = arith.addf %56, %62 : vector<256x8xf32>
    %cst_35 = arith.constant 0.000000e+00 : bf16
    %64 = vector.broadcast %cst_35 : bf16 to vector<15x8xbf16>
    %65 = vector.extract_strided_slice %25 {offsets = [0, 0], sizes = [241, 8], strides = [1, 1]} : vector<256x8xbf16> to vector<241x8xbf16>
    %66 = tpu.concatenate %64, %65 in 0 : vector<15x8xbf16>, vector<241x8xbf16> -> vector<256x8xbf16>
    %c15_i32 = arith.constant 15 : i32
    %67 = vector.broadcast %c15_i32 : i32 to vector<256x1xi32>
    %68 = arith.cmpi slt, %42, %67 : vector<256x1xi32>
    %cst_36 = arith.constant 0.000000e+00 : bf16
    %69 = vector.broadcast %cst_36 : bf16 to vector<256x8xbf16>
    %70 = vector.shape_cast %68 : vector<256x1xi1> to vector<256x1xi1>
    %71 = vector.broadcast %70 : vector<256x1xi1> to vector<256x8xi1>
    %72 = arith.select %71, %66, %69 : vector<256x8xi1>, vector<256x8xbf16>
    %c2 = arith.constant 2 : index
    %c0_37 = arith.constant 0 : index
    %c0_38 = arith.constant 0 : index
    %73 = vector.load %arg9[%c2, %c0_37, %c0_38] : memref<9x8x8xbf16, #tpu.memory_space<vmem>>, vector<1x8x8xbf16>
    %74 = vector.shape_cast %73 : vector<1x8x8xbf16> to vector<8x8xbf16>
    %cst_39 = arith.constant dense<0.000000e+00> : vector<256x8xf32>
    %75 = tpu.matmul %72, %74, %cst_39 {dimension_numbers = #tpu.dot_dimension_numbers<[1], [0], [0], [1], [0, 0, 1, 1], [], []>} : vector<256x8xbf16>, vector<8x8xbf16>, vector<256x8xf32> -> vector<256x8xf32>
    %76 = arith.addf %63, %75 : vector<256x8xf32>
    %cst_40 = arith.constant 0.000000e+00 : bf16
    %77 = vector.broadcast %cst_40 : bf16 to vector<1x8xbf16>
    %78 = vector.extract_strided_slice %25 {offsets = [0, 0], sizes = [255, 8], strides = [1, 1]} : vector<256x8xbf16> to vector<255x8xbf16>
    %79 = tpu.concatenate %77, %78 in 0 : vector<1x8xbf16>, vector<255x8xbf16> -> vector<256x8xbf16>
    %c0_i32_41 = arith.constant 0 : i32
    %80 = vector.broadcast %c0_i32_41 : i32 to vector<256x1xi32>
    %81 = arith.cmpi sgt, %42, %80 : vector<256x1xi32>
    %cst_42 = arith.constant 0.000000e+00 : bf16
    %82 = vector.broadcast %cst_42 : bf16 to vector<256x8xbf16>
    %83 = vector.shape_cast %81 : vector<256x1xi1> to vector<256x1xi1>
    %84 = vector.broadcast %83 : vector<256x1xi1> to vector<256x8xi1>
    %85 = arith.select %84, %79, %82 : vector<256x8xi1>, vector<256x8xbf16>
    %c3 = arith.constant 3 : index
    %c0_43 = arith.constant 0 : index
    %c0_44 = arith.constant 0 : index
    %86 = vector.load %arg9[%c3, %c0_43, %c0_44] : memref<9x8x8xbf16, #tpu.memory_space<vmem>>, vector<1x8x8xbf16>
    %87 = vector.shape_cast %86 : vector<1x8x8xbf16> to vector<8x8xbf16>
    %cst_45 = arith.constant dense<0.000000e+00> : vector<256x8xf32>
    %88 = tpu.matmul %85, %87, %cst_45 {dimension_numbers = #tpu.dot_dimension_numbers<[1], [0], [0], [1], [0, 0, 1, 1], [], []>} : vector<256x8xbf16>, vector<8x8xbf16>, vector<256x8xf32> -> vector<256x8xf32>
    %89 = arith.addf %76, %88 : vector<256x8xf32>
    %c4 = arith.constant 4 : index
    %c0_46 = arith.constant 0 : index
    %c0_47 = arith.constant 0 : index
    %90 = vector.load %arg9[%c4, %c0_46, %c0_47] : memref<9x8x8xbf16, #tpu.memory_space<vmem>>, vector<1x8x8xbf16>
    %91 = vector.shape_cast %90 : vector<1x8x8xbf16> to vector<8x8xbf16>
    %cst_48 = arith.constant dense<0.000000e+00> : vector<256x8xf32>
    %92 = tpu.matmul %25, %91, %cst_48 {dimension_numbers = #tpu.dot_dimension_numbers<[1], [0], [0], [1], [0, 0, 1, 1], [], []>} : vector<256x8xbf16>, vector<8x8xbf16>, vector<256x8xf32> -> vector<256x8xf32>
    %93 = arith.addf %89, %92 : vector<256x8xf32>
    %94 = vector.extract_strided_slice %25 {offsets = [1, 0], sizes = [255, 8], strides = [1, 1]} : vector<256x8xbf16> to vector<255x8xbf16>
    %cst_49 = arith.constant 0.000000e+00 : bf16
    %95 = vector.broadcast %cst_49 : bf16 to vector<1x8xbf16>
    %96 = tpu.concatenate %94, %95 in 0 : vector<255x8xbf16>, vector<1x8xbf16> -> vector<256x8xbf16>
    %c15_i32_50 = arith.constant 15 : i32
    %97 = vector.broadcast %c15_i32_50 : i32 to vector<256x1xi32>
    %98 = arith.cmpi slt, %42, %97 : vector<256x1xi32>
    %cst_51 = arith.constant 0.000000e+00 : bf16
    %99 = vector.broadcast %cst_51 : bf16 to vector<256x8xbf16>
    %100 = vector.shape_cast %98 : vector<256x1xi1> to vector<256x1xi1>
    %101 = vector.broadcast %100 : vector<256x1xi1> to vector<256x8xi1>
    %102 = arith.select %101, %96, %99 : vector<256x8xi1>, vector<256x8xbf16>
    %c5 = arith.constant 5 : index
    %c0_52 = arith.constant 0 : index
    %c0_53 = arith.constant 0 : index
    %103 = vector.load %arg9[%c5, %c0_52, %c0_53] : memref<9x8x8xbf16, #tpu.memory_space<vmem>>, vector<1x8x8xbf16>
    %104 = vector.shape_cast %103 : vector<1x8x8xbf16> to vector<8x8xbf16>
    %cst_54 = arith.constant dense<0.000000e+00> : vector<256x8xf32>
    %105 = tpu.matmul %102, %104, %cst_54 {dimension_numbers = #tpu.dot_dimension_numbers<[1], [0], [0], [1], [0, 0, 1, 1], [], []>} : vector<256x8xbf16>, vector<8x8xbf16>, vector<256x8xf32> -> vector<256x8xf32>
    %106 = arith.addf %93, %105 : vector<256x8xf32>
    %107 = vector.extract_strided_slice %25 {offsets = [15, 0], sizes = [241, 8], strides = [1, 1]} : vector<256x8xbf16> to vector<241x8xbf16>
    %cst_55 = arith.constant 0.000000e+00 : bf16
    %108 = vector.broadcast %cst_55 : bf16 to vector<15x8xbf16>
    %109 = tpu.concatenate %107, %108 in 0 : vector<241x8xbf16>, vector<15x8xbf16> -> vector<256x8xbf16>
    %c0_i32_56 = arith.constant 0 : i32
    %110 = vector.broadcast %c0_i32_56 : i32 to vector<256x1xi32>
    %111 = arith.cmpi sgt, %42, %110 : vector<256x1xi32>
    %cst_57 = arith.constant 0.000000e+00 : bf16
    %112 = vector.broadcast %cst_57 : bf16 to vector<256x8xbf16>
    %113 = vector.shape_cast %111 : vector<256x1xi1> to vector<256x1xi1>
    %114 = vector.broadcast %113 : vector<256x1xi1> to vector<256x8xi1>
    %115 = arith.select %114, %109, %112 : vector<256x8xi1>, vector<256x8xbf16>
    %c6 = arith.constant 6 : index
    %c0_58 = arith.constant 0 : index
    %c0_59 = arith.constant 0 : index
    %116 = vector.load %arg9[%c6, %c0_58, %c0_59] : memref<9x8x8xbf16, #tpu.memory_space<vmem>>, vector<1x8x8xbf16>
    %117 = vector.shape_cast %116 : vector<1x8x8xbf16> to vector<8x8xbf16>
    %cst_60 = arith.constant dense<0.000000e+00> : vector<256x8xf32>
    %118 = tpu.matmul %115, %117, %cst_60 {dimension_numbers = #tpu.dot_dimension_numbers<[1], [0], [0], [1], [0, 0, 1, 1], [], []>} : vector<256x8xbf16>, vector<8x8xbf16>, vector<256x8xf32> -> vector<256x8xf32>
    %119 = arith.addf %106, %118 : vector<256x8xf32>
    %120 = vector.extract_strided_slice %25 {offsets = [16, 0], sizes = [240, 8], strides = [1, 1]} : vector<256x8xbf16> to vector<240x8xbf16>
    %cst_61 = arith.constant 0.000000e+00 : bf16
    %121 = vector.broadcast %cst_61 : bf16 to vector<16x8xbf16>
    %122 = tpu.concatenate %120, %121 in 0 : vector<240x8xbf16>, vector<16x8xbf16> -> vector<256x8xbf16>
    %c7 = arith.constant 7 : index
    %c0_62 = arith.constant 0 : index
    %c0_63 = arith.constant 0 : index
    %123 = vector.load %arg9[%c7, %c0_62, %c0_63] : memref<9x8x8xbf16, #tpu.memory_space<vmem>>, vector<1x8x8xbf16>
    %124 = vector.shape_cast %123 : vector<1x8x8xbf16> to vector<8x8xbf16>
    %cst_64 = arith.constant dense<0.000000e+00> : vector<256x8xf32>
    %125 = tpu.matmul %122, %124, %cst_64 {dimension_numbers = #tpu.dot_dimension_numbers<[1], [0], [0], [1], [0, 0, 1, 1], [], []>} : vector<256x8xbf16>, vector<8x8xbf16>, vector<256x8xf32> -> vector<256x8xf32>
    %126 = arith.addf %119, %125 : vector<256x8xf32>
    %127 = vector.extract_strided_slice %25 {offsets = [17, 0], sizes = [239, 8], strides = [1, 1]} : vector<256x8xbf16> to vector<239x8xbf16>
    %cst_65 = arith.constant 0.000000e+00 : bf16
    %128 = vector.broadcast %cst_65 : bf16 to vector<17x8xbf16>
    %129 = tpu.concatenate %127, %128 in 0 : vector<239x8xbf16>, vector<17x8xbf16> -> vector<256x8xbf16>
    %c15_i32_66 = arith.constant 15 : i32
    %130 = vector.broadcast %c15_i32_66 : i32 to vector<256x1xi32>
    %131 = arith.cmpi slt, %42, %130 : vector<256x1xi32>
    %cst_67 = arith.constant 0.000000e+00 : bf16
    %132 = vector.broadcast %cst_67 : bf16 to vector<256x8xbf16>
    %133 = vector.shape_cast %131 : vector<256x1xi1> to vector<256x1xi1>
    %134 = vector.broadcast %133 : vector<256x1xi1> to vector<256x8xi1>
    %135 = arith.select %134, %129, %132 : vector<256x8xi1>, vector<256x8xbf16>
    %c8 = arith.constant 8 : index
    %c0_68 = arith.constant 0 : index
    %c0_69 = arith.constant 0 : index
    %136 = vector.load %arg9[%c8, %c0_68, %c0_69] : memref<9x8x8xbf16, #tpu.memory_space<vmem>>, vector<1x8x8xbf16>
    %137 = vector.shape_cast %136 : vector<1x8x8xbf16> to vector<8x8xbf16>
    %cst_70 = arith.constant dense<0.000000e+00> : vector<256x8xf32>
    %138 = tpu.matmul %135, %137, %cst_70 {dimension_numbers = #tpu.dot_dimension_numbers<[1], [0], [0], [1], [0, 0, 1, 1], [], []>} : vector<256x8xbf16>, vector<8x8xbf16>, vector<256x8xf32> -> vector<256x8xf32>
    %139 = arith.addf %126, %138 : vector<256x8xf32>
    %c0_71 = arith.constant 0 : index
    %c0_72 = arith.constant 0 : index
    %140 = vector.load %arg10[%c0_71, %c0_72] : memref<1x8xf32, #tpu.memory_space<vmem>>, vector<1x8xf32>
    %141 = vector.broadcast %140 : vector<1x8xf32> to vector<256x8xf32>
    %142 = arith.mulf %139, %141 : vector<256x8xf32>
    %c0_73 = arith.constant 0 : index
    %c0_74 = arith.constant 0 : index
    %143 = vector.load %arg11[%c0_73, %c0_74] : memref<1x8xf32, #tpu.memory_space<vmem>>, vector<1x8xf32>
    %144 = vector.broadcast %143 : vector<1x8xf32> to vector<256x8xf32>
    %145 = arith.addf %142, %144 : vector<256x8xf32>
    %cst_75 = arith.constant 0.000000e+00 : f32
    %146 = vector.broadcast %cst_75 : f32 to vector<256x8xf32>
    %147 = arith.maximumf %145, %146 : vector<256x8xf32>
    %148 = arith.addf %147, %24 : vector<256x8xf32>
    %149 = arith.truncf %148 : vector<256x8xf32> to vector<256x8xbf16>
    %c0_76 = arith.constant 0 : index
    %c0_77 = arith.constant 0 : index
    %c0_78 = arith.constant 0 : index
    %150 = vector.load %arg12[%c0_76, %c0_77, %c0_78] : memref<1x256x8xbf16, #tpu.memory_space<vmem>>, vector<1x256x8xbf16>
    %151 = vector.shape_cast %150 : vector<1x256x8xbf16> to vector<256x8xbf16>
    %152 = vector.shape_cast %149 : vector<256x8xbf16> to vector<1x256x8xbf16>
    tpu.vector_store %arg12[%c0_76, %c0_77, %c0_78], %152 {strides = array<i32>} : memref<1x256x8xbf16, #tpu.memory_space<vmem>>, vector<1x256x8xbf16>,
    return
  }
  func.func @transform_0(%arg0: i32) -> (i32, i32, i32) {
    %c0_i32 = arith.constant 0 : i32
    %c0_i32_0 = arith.constant 0 : i32
    %c0_i32_1 = arith.constant 0 : i32
    return %arg0, %c0_i32, %c0_i32_0 : i32, i32, i32
  }
  func.func @transform_1(%arg0: i32) -> (i32, i32) {
    %c0_i32 = arith.constant 0 : i32
    %c0_i32_0 = arith.constant 0 : i32
    %c0_i32_1 = arith.constant 0 : i32
    return %c0_i32, %c0_i32_0 : i32, i32
  }
  func.func @transform_2(%arg0: i32) -> (i32, i32) {
    %c0_i32 = arith.constant 0 : i32
    %c0_i32_0 = arith.constant 0 : i32
    %c0_i32_1 = arith.constant 0 : i32
    return %c0_i32, %c0_i32_0 : i32, i32
  }
  func.func @transform_3(%arg0: i32) -> (i32, i32) {
    %c0_i32 = arith.constant 0 : i32
    %c0_i32_0 = arith.constant 0 : i32
    %c0_i32_1 = arith.constant 0 : i32
    return %c0_i32, %c0_i32_0 : i32, i32
  }
  func.func @transform_4(%arg0: i32) -> (i32, i32) {
    %c0_i32 = arith.constant 0 : i32
    %c0_i32_0 = arith.constant 0 : i32
    %c0_i32_1 = arith.constant 0 : i32
    return %c0_i32, %c0_i32_0 : i32, i32
  }
  func.func @transform_5(%arg0: i32) -> (i32, i32) {
    %c0_i32 = arith.constant 0 : i32
    %c0_i32_0 = arith.constant 0 : i32
    %c0_i32_1 = arith.constant 0 : i32
    return %c0_i32, %c0_i32_0 : i32, i32
  }
  func.func @transform_6(%arg0: i32) -> (i32, i32) {
    %c0_i32 = arith.constant 0 : i32
    %c0_i32_0 = arith.constant 0 : i32
    %c0_i32_1 = arith.constant 0 : i32
    return %c0_i32, %c0_i32_0 : i32, i32
  }
  func.func @transform_7(%arg0: i32) -> (i32, i32) {
    %c0_i32 = arith.constant 0 : i32
    %c0_i32_0 = arith.constant 0 : i32
    %c0_i32_1 = arith.constant 0 : i32
    return %c0_i32, %c0_i32_0 : i32, i32
  }
  func.func @transform_8(%arg0: i32) -> (i32, i32, i32) {
    %c0_i32 = arith.constant 0 : i32
    %c0_i32_0 = arith.constant 0 : i32
    %c0_i32_1 = arith.constant 0 : i32
    %c0_i32_2 = arith.constant 0 : i32
    return %c0_i32, %c0_i32_0, %c0_i32_1 : i32, i32, i32
  }
  func.func @transform_9(%arg0: i32) -> (i32, i32) {
    %c0_i32 = arith.constant 0 : i32
    %c0_i32_0 = arith.constant 0 : i32
    %c0_i32_1 = arith.constant 0 : i32
    return %c0_i32, %c0_i32_0 : i32, i32
  }
  func.func @transform_10(%arg0: i32) -> (i32, i32) {
    %c0_i32 = arith.constant 0 : i32
    %c0_i32_0 = arith.constant 0 : i32
    %c0_i32_1 = arith.constant 0 : i32
    return %c0_i32, %c0_i32_0 : i32, i32
  }
  func.func @transform_11(%arg0: i32) -> (i32, i32, i32) {
    %c0_i32 = arith.constant 0 : i32
    %c0_i32_0 = arith.constant 0 : i32
    %c0_i32_1 = arith.constant 0 : i32
    return %arg0, %c0_i32, %c0_i32_0 : i32, i32, i32
  }
}

module attributes {stable_mosaic.version = 11 : i64} {
  func.func @_instnorm_conv_kernel(%arg0: i32, %arg1: memref<1x256x8xbf16, #tpu.memory_space<vmem>>, %arg2: memref<8x3xbf16, #tpu.memory_space<vmem>>, %arg3: memref<1x256x3xf32, #tpu.memory_space<vmem>>) attributes {dimension_semantics = [#tpu.dimension_semantics<parallel>], iteration_bounds = array<i64: 2>, scalar_prefetch = 0 : i64, scratch_operands = 0 : i64, tpu.core_type = #tpu.core_type<tc>, window_params = [{transform_indices = @transform_0, window_bounds = array<i64: 1, 256, 8>}, {pipeline_mode = #tpu.pipeline_mode<synchronous>, transform_indices = @transform_1, window_bounds = array<i64: 8, 3>}, {transform_indices = @transform_2, window_bounds = array<i64: 1, 256, 3>}]} {
    %c0 = arith.constant 0 : index
    %c0_0 = arith.constant 0 : index
    %c0_1 = arith.constant 0 : index
    %0 = vector.load %arg1[%c0, %c0_0, %c0_1] : memref<1x256x8xbf16, #tpu.memory_space<vmem>>, vector<1x256x8xbf16>
    %1 = vector.shape_cast %0 : vector<1x256x8xbf16> to vector<256x8xbf16>
    %2 = arith.extf %1 : vector<256x8xbf16> to vector<256x8xf32>
    %cst = arith.constant dense<0.000000e+00> : vector<8xf32>
    %3 = vector.multi_reduction <add>, %2, %cst [0] : vector<256x8xf32> to vector<8xf32>
    %4 = vector.shape_cast %3 : vector<8xf32> to vector<1x8xf32>
    %cst_2 = arith.constant 2.560000e+02 : f32
    %5 = vector.broadcast %cst_2 : f32 to vector<1x8xf32>
    %6 = arith.divf %4, %5 : vector<1x8xf32>
    %7 = vector.broadcast %6 : vector<1x8xf32> to vector<256x8xf32>
    %8 = arith.subf %2, %7 : vector<256x8xf32>
    %9 = arith.mulf %8, %8 : vector<256x8xf32>
    %cst_3 = arith.constant dense<0.000000e+00> : vector<8xf32>
    %10 = vector.multi_reduction <add>, %9, %cst_3 [0] : vector<256x8xf32> to vector<8xf32>
    %11 = vector.shape_cast %10 : vector<8xf32> to vector<1x8xf32>
    %cst_4 = arith.constant 2.560000e+02 : f32
    %12 = vector.broadcast %cst_4 : f32 to vector<1x8xf32>
    %13 = arith.divf %11, %12 : vector<1x8xf32>
    %14 = vector.broadcast %6 : vector<1x8xf32> to vector<256x8xf32>
    %15 = arith.subf %2, %14 : vector<256x8xf32>
    %cst_5 = arith.constant 9.99999974E-6 : f32
    %16 = vector.broadcast %cst_5 : f32 to vector<1x8xf32>
    %17 = arith.addf %13, %16 : vector<1x8xf32>
    %18 = math.rsqrt %17 : vector<1x8xf32>
    %19 = vector.broadcast %18 : vector<1x8xf32> to vector<256x8xf32>
    %20 = arith.mulf %15, %19 : vector<256x8xf32>
    %21 = arith.truncf %20 : vector<256x8xf32> to vector<256x8xbf16>
    %c0_6 = arith.constant 0 : index
    %c0_7 = arith.constant 0 : index
    %22 = vector.load %arg2[%c0_6, %c0_7] : memref<8x3xbf16, #tpu.memory_space<vmem>>, vector<8x3xbf16>
    %cst_8 = arith.constant dense<0.000000e+00> : vector<256x3xf32>
    %23 = tpu.matmul %21, %22, %cst_8 {dimension_numbers = #tpu.dot_dimension_numbers<[1], [0], [0], [1], [0, 0, 1, 1], [], []>} : vector<256x8xbf16>, vector<8x3xbf16>, vector<256x3xf32> -> vector<256x3xf32>
    %c0_9 = arith.constant 0 : index
    %c0_10 = arith.constant 0 : index
    %c0_11 = arith.constant 0 : index
    %24 = vector.load %arg3[%c0_9, %c0_10, %c0_11] : memref<1x256x3xf32, #tpu.memory_space<vmem>>, vector<1x256x3xf32>
    %25 = vector.shape_cast %24 : vector<1x256x3xf32> to vector<256x3xf32>
    %26 = vector.shape_cast %23 : vector<256x3xf32> to vector<1x256x3xf32>
    tpu.vector_store %arg3[%c0_9, %c0_10, %c0_11], %26 {strides = array<i32>} : memref<1x256x3xf32, #tpu.memory_space<vmem>>, vector<1x256x3xf32>,
    return
  }
  func.func @transform_0(%arg0: i32) -> (i32, i32, i32) {
    %c0_i32 = arith.constant 0 : i32
    %c0_i32_0 = arith.constant 0 : i32
    %c0_i32_1 = arith.constant 0 : i32
    return %arg0, %c0_i32, %c0_i32_0 : i32, i32, i32
  }
  func.func @transform_1(%arg0: i32) -> (i32, i32) {
    %c0_i32 = arith.constant 0 : i32
    %c0_i32_0 = arith.constant 0 : i32
    %c0_i32_1 = arith.constant 0 : i32
    return %c0_i32, %c0_i32_0 : i32, i32
  }
  func.func @transform_2(%arg0: i32) -> (i32, i32, i32) {
    %c0_i32 = arith.constant 0 : i32
    %c0_i32_0 = arith.constant 0 : i32
    %c0_i32_1 = arith.constant 0 : i32
    return %arg0, %c0_i32, %c0_i32_0 : i32, i32, i32
  }
}

</mosaic_0001>

<bundles_post_ra>
// kernel: unet_decoder_forward.4
= control target key start
LH: loop header
LB: loop body
LE: loop exit
PB: predicated region body
PF: predicated region fallthrough
CT: control target
= control target key end

     0   :  { %s901_s9 = smov 0   ;;  %s1028_s0 = inlined_call_operand.vmem [shape: bf16[512,4], index: 0, kind: input, shape index: {}]   ;;  %s1029_s1 = inlined_call_operand.vmem [shape: bf16[4,32], index: 1, kind: input, shape index: {}]   ;;  %s1030_s2 = inlined_call_operand.vmem [shape: bf16[512,32], index: 2, kind: output, shape index: {}]  }
   0x1 LB: > { %s692_s10 = sadd.s32 4294967295, %s884_s9   ;;  %p696_p0 = scmp.ge.s32.totalorder %s884_s9, 1  ;;  %s884_s9 = sphi %s901_s9, %s12_s9  }
   0x2   : > { %p113_p1 = scmp.lt.s32.totalorder %s884_s9, 3 }
   0x4   : > { %p114_p2 = pnand %p696_p0, %p113_p1 }
   0x5   : > { %s697_s13 = sshll.u32 (!%p114_p2), %s692_s10, 5 }
   0x6   : > { %117 = sbr.rel (%p114_p2) target bundleno = 243 (0xf3), region = 28  ;;  %p136_p3 = scmp.lt.s32.totalorder (!%p114_p2), %s697_s13, 63 }
   0xb   : > { %v180_v0 = vld [vmem:[%s1029_s1] sm:$0x3]  ;;  %vm310_vm0 = vcmask 1041408   ;;  %s1032_s13 = smov (!%p136_p3, %s697_s13), 63  ;;  %vm261_vm1 = vcmask 31744   ;;  %vm603_vm2 = vcmask 257024  }
   0xc   : > { %852 = vmatprep.subr.msk.bf16.mxu0 %vm310_vm0, %v180_v0  ;;  %853 = vmatprep.subr.msk.bf16.mxu1 %vm310_vm0, %v180_v0  ;;  %v312_v1 = vsel %vm310_vm0, %v180_v0, 0  ;;  %s698_s14 = sshll.u32 %s1032_s13, 2 }
   0xd   : > { %817 = vmatpush3.bf16.msra.mxu0 %v312_v1  ;;  %851 = vmatpush3.bf16.msra.mxu1 %v312_v1  ;;  %s920_s17 = scalar_lea.vmem %s1028_s0, %s698_s14  ;;  %s959_s20 = scalar_lea.vmem %s1030_s2, %s698_s14 }
   0xe   : > { %v862_v2 = vld [vmem:[%s920_s17] sm:$0xff]   ;;  %v864_v4 = vld [vmem:[%s920_s17 + $0x8] sm:$0xff]   ;;  %v866_v6 = vld [vmem:[%s920_s17 + $0x10] sm:$0xff]  }
   0xf   : > { %v863_v3 = vld [vmem:[%s920_s17 + $0x40] sm:$0xff]   ;;  %818 = vmatprep.mubr.msk.bf16.mxu0 %vm261_vm1, %v862_v2  ;;  %v865_v5 = vld [vmem:[%s920_s17 + $0x48] sm:$0xff]   ;;  %v867_v7 = vld [vmem:[%s920_s17 + $0x50] sm:$0xff]  }
  0x10   : > { %834 = vmatprep.mubr.msk.bf16.mxu1 %vm261_vm1, %v863_v3  ;;  %819 = vmatmul.mubr.msk.bf16.vlgmr.msra.gmra.mxu0 %vm261_vm1, %v864_v4  ;;  %v868_v8 = vld [vmem:[%s920_s17 + $0x18] sm:$0xff]   ;;  %v870_v10 = vld [vmem:[%s920_s17 + $0x20] sm:$0xff]   ;;  %v872_v12 = vld [vmem:[%s920_s17 + $0x28] sm:$0xff]  }
  0x11   : > { %835 = vmatmul.mubr.msk.bf16.vlgmr.msra.gmra.mxu1 %vm261_vm1, %v865_v5  ;;  %822 = vmatprep.mubr.msk.bf16.mxu0 %vm261_vm1, %v866_v6  ;;  %v869_v9 = vld [vmem:[%s920_s17 + $0x58] sm:$0xff]   ;;  %v871_v11 = vld [vmem:[%s920_s17 + $0x60] sm:$0xff]   ;;  %v873_v13 = vld [vmem:[%s920_s17 + $0x68] sm:$0xff]  }
  0x12   : > { %838 = vmatprep.mubr.msk.bf16.mxu1 %vm261_vm1, %v867_v7  ;;  %v874_v14 = vld [vmem:[%s920_s17 + $0x30] sm:$0xff]   ;;  %v876_v16 = vld [vmem:[%s920_s17 + $0x38] sm:$0xff]  }
  0x13   : > { %v875_v15 = vld [vmem:[%s920_s17 + $0x70] sm:$0xff]   ;;  %v877_v17 = vld [vmem:[%s920_s17 + $0x78] sm:$0xff]  }
  0x18   : > { %823 = vmatmul.mubr.msk.bf16.gmra.mxu0 %vm261_vm1, %v868_v8 }
  0x19   : > { %839 = vmatmul.mubr.msk.bf16.gmra.mxu1 %vm261_vm1, %v869_v9  ;;  %826 = vmatprep.mubr.msk.bf16.mxu0 %vm261_vm1, %v870_v10 }
  0x1a   : > { %842 = vmatprep.mubr.msk.bf16.mxu1 %vm261_vm1, %v871_v11 }
  0x20   : > { %827 = vmatmul.mubr.msk.bf16.gmra.mxu0 %vm261_vm1, %v872_v12 }
  0x21   : > { %843 = vmatmul.mubr.msk.bf16.gmra.mxu1 %vm261_vm1, %v873_v13  ;;  %830 = vmatprep.mubr.msk.bf16.mxu0 %vm261_vm1, %v874_v14 }
  0x22   : > { %846 = vmatprep.mubr.msk.bf16.mxu1 %vm261_vm1, %v875_v15 }
  0x28   : > { %831 = vmatmul.mubr.msk.bf16.gmra.mxu0 %vm261_vm1, %v876_v16 }
  0x29   : > { %847 = vmatmul.mubr.msk.bf16.gmra.mxu1 %vm261_vm1, %v877_v17 }
  0xd0   : > { %v820_v18 = vpop.f32.mrf.mxu0 }
  0xd1   : > { %v769_v19 = vpack.c.bf16 %v820_v18, %v820_v18  ;;  %v836_v20 = vpop.f32.mrf.mxu1 }
  0xd2   : > { %v785_v21 = vpack.c.bf16 %v836_v20, %v836_v20  ;;  %v348_v22 = vpop.f32.mrf.mxu0 }
  0xd3   : > { %606 = vst.msk [vmem:[%s959_s20 + $0x8] sm:$0xf] %vm603_vm2, %v769_v19  ;;  %v767_v23 = vpack.c.bf16 %v348_v22, %v348_v22  ;;  %v412_v24 = vpop.f32.mrf.mxu1 }
  0xd4   : > { %622 = vst.msk [vmem:[%s959_s20 + $0x48] sm:$0xf] %vm603_vm2, %v785_v21  ;;  %v783_v25 = vpack.c.bf16 %v412_v24, %v412_v24  ;;  %v821_v26 = vpop.f32.mrf.mxu0 }
  0xd5   : > { %604 = vst.msk [vmem:[%s959_s20] sm:$0xf] %vm603_vm2, %v767_v23  ;;  %v770_v27 = vpack.c.bf16 %v821_v26, %v821_v26  ;;  %v837_v28 = vpop.f32.mrf.mxu1 }
  0xd6   : > { %620 = vst.msk [vmem:[%s959_s20 + $0x40] sm:$0xf] %vm603_vm2, %v783_v25  ;;  %v786_v29 = vpack.c.bf16 %v837_v28, %v837_v28  ;;  %v351_v30 = vpop.f32.mrf.mxu0 }
  0xd7   : > { %607 = vst.msk [vmem:[%s959_s20 + $0xc] sm:$0xf] %vm603_vm2, %v770_v27  ;;  %v768_v31 = vpack.c.bf16 %v351_v30, %v351_v30  ;;  %v415_v32 = vpop.f32.mrf.mxu1 }
  0xd8   : > { %623 = vst.msk [vmem:[%s959_s20 + $0x4c] sm:$0xf] %vm603_vm2, %v786_v29  ;;  %v784_v33 = vpack.c.bf16 %v415_v32, %v415_v32  ;;  %v824_v34 = vpop.f32.mrf.mxu0 }
  0xd9   : > { %605 = vst.msk [vmem:[%s959_s20 + $0x4] sm:$0xf] %vm603_vm2, %v768_v31  ;;  %v773_v35 = vpack.c.bf16 %v824_v34, %v824_v34  ;;  %v840_v36 = vpop.f32.mrf.mxu1 }
  0xda   : > { %621 = vst.msk [vmem:[%s959_s20 + $0x44] sm:$0xf] %vm603_vm2, %v784_v33  ;;  %v789_v37 = vpack.c.bf16 %v840_v36, %v840_v36  ;;  %v364_v38 = vpop.f32.mrf.mxu0 }
  0xdb   : > { %610 = vst.msk [vmem:[%s959_s20 + $0x18] sm:$0xf] %vm603_vm2, %v773_v35  ;;  %v771_v39 = vpack.c.bf16 %v364_v38, %v364_v38  ;;  %v428_v40 = vpop.f32.mrf.mxu1 }
  0xdc   : > { %626 = vst.msk [vmem:[%s959_s20 + $0x58] sm:$0xf] %vm603_vm2, %v789_v37  ;;  %v787_v41 = vpack.c.bf16 %v428_v40, %v428_v40  ;;  %v825_v42 = vpop.f32.mrf.mxu0 }
  0xdd   : > { %608 = vst.msk [vmem:[%s959_s20 + $0x10] sm:$0xf] %vm603_vm2, %v771_v39  ;;  %v774_v43 = vpack.c.bf16 %v825_v42, %v825_v42  ;;  %v841_v44 = vpop.f32.mrf.mxu1 }
  0xde   : > { %624 = vst.msk [vmem:[%s959_s20 + $0x50] sm:$0xf] %vm603_vm2, %v787_v41  ;;  %v790_v45 = vpack.c.bf16 %v841_v44, %v841_v44  ;;  %v367_v46 = vpop.f32.mrf.mxu0 }
  0xdf   : > { %611 = vst.msk [vmem:[%s959_s20 + $0x1c] sm:$0xf] %vm603_vm2, %v774_v43  ;;  %v772_v47 = vpack.c.bf16 %v367_v46, %v367_v46  ;;  %v431_v48 = vpop.f32.mrf.mxu1 }
  0xe0   : > { %627 = vst.msk [vmem:[%s959_s20 + $0x5c] sm:$0xf] %vm603_vm2, %v790_v45  ;;  %v788_v49 = vpack.c.bf16 %v431_v48, %v431_v48  ;;  %v828_v50 = vpop.f32.mrf.mxu0 }
  0xe1   : > { %609 = vst.msk [vmem:[%s959_s20 + $0x14] sm:$0xf] %vm603_vm2, %v772_v47  ;;  %v777_v51 = vpack.c.bf16 %v828_v50, %v828_v50  ;;  %v844_v52 = vpop.f32.mrf.mxu1 }
  0xe2   : > { %625 = vst.msk [vmem:[%s959_s20 + $0x54] sm:$0xf] %vm603_vm2, %v788_v49  ;;  %v793_v53 = vpack.c.bf16 %v844_v52, %v844_v52  ;;  %v380_v54 = vpop.f32.mrf.mxu0 }
  0xe3   : > { %614 = vst.msk [vmem:[%s959_s20 + $0x28] sm:$0xf] %vm603_vm2, %v777_v51  ;;  %v775_v55 = vpack.c.bf16 %v380_v54, %v380_v54  ;;  %v444_v56 = vpop.f32.mrf.mxu1 }
  0xe4   : > { %630 = vst.msk [vmem:[%s959_s20 + $0x68] sm:$0xf] %vm603_vm2, %v793_v53  ;;  %v791_v57 = vpack.c.bf16 %v444_v56, %v444_v56  ;;  %v829_v58 = vpop.f32.mrf.mxu0 }
  0xe5   : > { %612 = vst.msk [vmem:[%s959_s20 + $0x20] sm:$0xf] %vm603_vm2, %v775_v55  ;;  %v778_v59 = vpack.c.bf16 %v829_v58, %v829_v58  ;;  %v845_v60 = vpop.f32.mrf.mxu1 }
  0xe6   : > { %628 = vst.msk [vmem:[%s959_s20 + $0x60] sm:$0xf] %vm603_vm2, %v791_v57  ;;  %v794_v61 = vpack.c.bf16 %v845_v60, %v845_v60  ;;  %v383_v62 = vpop.f32.mrf.mxu0 }
  0xe7   : > { %615 = vst.msk [vmem:[%s959_s20 + $0x2c] sm:$0xf] %vm603_vm2, %v778_v59  ;;  %v776_v63 = vpack.c.bf16 %v383_v62, %v383_v62  ;;  %v447_v0 = vpop.f32.mrf.mxu1 }
  0xe8   : > { %631 = vst.msk [vmem:[%s959_s20 + $0x6c] sm:$0xf] %vm603_vm2, %v794_v61  ;;  %v792_v1 = vpack.c.bf16 %v447_v0, %v447_v0  ;;  %v832_v2 = vpop.f32.mrf.mxu0 }
  0xe9   : > { %613 = vst.msk [vmem:[%s959_s20 + $0x24] sm:$0xf] %vm603_vm2, %v776_v63  ;;  %v781_v3 = vpack.c.bf16 %v832_v2, %v832_v2  ;;  %v848_v4 = vpop.f32.mrf.mxu1 }
  0xea   : > { %629 = vst.msk [vmem:[%s959_s20 + $0x64] sm:$0xf] %vm603_vm2, %v792_v1  ;;  %v797_v5 = vpack.c.bf16 %v848_v4, %v848_v4  ;;  %v396_v6 = vpop.f32.mrf.mxu0 }
  0xeb   : > { %618 = vst.msk [vmem:[%s959_s20 + $0x38] sm:$0xf] %vm603_vm2, %v781_v3  ;;  %v779_v7 = vpack.c.bf16 %v396_v6, %v396_v6  ;;  %v460_v8 = vpop.f32.mrf.mxu1 }
  0xec   : > { %634 = vst.msk [vmem:[%s959_s20 + $0x78] sm:$0xf] %vm603_vm2, %v797_v5  ;;  %v795_v9 = vpack.c.bf16 %v460_v8, %v460_v8  ;;  %v833_v10 = vpop.f32.mrf.mxu0 }
  0xed   : > { %616 = vst.msk [vmem:[%s959_s20 + $0x30] sm:$0xf] %vm603_vm2, %v779_v7  ;;  %v782_v11 = vpack.c.bf16 %v833_v10, %v833_v10  ;;  %v849_v12 = vpop.f32.mrf.mxu1 }
  0xee   : > { %632 = vst.msk [vmem:[%s959_s20 + $0x70] sm:$0xf] %vm603_vm2, %v795_v9  ;;  %v798_v13 = vpack.c.bf16 %v849_v12, %v849_v12  ;;  %v399_v14 = vpop.f32.mrf.mxu0 }
  0xef   : > { %619 = vst.msk [vmem:[%s959_s20 + $0x3c] sm:$0xf] %vm603_vm2, %v782_v11  ;;  %v780_v15 = vpack.c.bf16 %v399_v14, %v399_v14  ;;  %v463_v16 = vpop.f32.mrf.mxu1 }
  0xf0   : > { %635 = vst.msk [vmem:[%s959_s20 + $0x7c] sm:$0xf] %vm603_vm2, %v798_v13  ;;  %v796_v17 = vpack.c.bf16 %v463_v16, %v463_v16 }
  0xf1   : > { %617 = vst.msk [vmem:[%s959_s20 + $0x34] sm:$0xf] %vm603_vm2, %v780_v15 }
  0xf2   : > { %633 = vst.msk [vmem:[%s959_s20 + $0x74] sm:$0xf] %vm603_vm2, %v796_v17 }
  0xf3 PF: > { %s12_s9 = sadd.s32 1, %s884_s9  }
  0xf4   : > { %p9_p4 = scmp.ge.s32.totalorder %s12_s9, 4  }
  0xf6   :  { %11 = sbr.rel (!%p9_p4) target bundleno = 1 (0x1), region = 58 }

// kernel: unet_decoder_forward.7
= control target key start
LH: loop header
LB: loop body
LE: loop exit
PB: predicated region body
PF: predicated region fallthrough
CT: control target
= control target key end

     0   :  { %s963_s9 = smov 0   ;;  %s1537_s0 = inlined_call_operand.vmem [shape: bf16[2,256,8], index: 0, kind: input, shape index: {}]   ;;  %s1538_s1 = inlined_call_operand.vmem [shape: bf16[8,3], index: 1, kind: input, shape index: {}]   ;;  %s1539_s2 = inlined_call_operand.vmem [shape: f32[2,256,3], index: 2, kind: output, shape index: {}]  }
   0x1 LB: > { %s767_s10 = sadd.s32 4294967295, %s946_s9   ;;  %p771_p0 = scmp.ge.s32.totalorder %s946_s9, 1  ;;  %s946_s9 = sphi %s963_s9, %s12_s9  }
   0x2   : > { %p112_p1 = scmp.lt.s32.totalorder %s946_s9, 3 }
   0x4   : > { %p113_p2 = pnand %p771_p0, %p112_p1 }
   0x5   : > { %p134_p3 = scmp.lt.s32.totalorder (!%p113_p2), %s767_s10, 1 }
   0x6   : > { %116 = sbr.rel (%p113_p2) target bundleno = 420 (0x1a4), region = 28 }
   0xb   : > { %v465_v0 = vld [vmem:[%s1538_s1] sm:$0xf]  ;;  %vm514_vm0 = vcmask 1043456   ;;  %s1541_s10 = smov (!%p134_p3, %s767_s10), 1  ;;  %vm209_vm1 = vcmask 64512   ;;  %vm679_vm2 = vcmask 23552  }
   0xc   : > { %928 = vmatprep.subr.msk.bf16.mxu0 %vm514_vm0, %v465_v0  ;;  %929 = vmatprep.subr.msk.bf16.mxu1 %vm514_vm0, %v465_v0  ;;  %v516_v1 = vsel %vm514_vm0, %v465_v0, 0  ;;  %s794_s13 = sshll.u32 %s1541_s10, 7  ;;  %s795_s17 = sshll.u32 %s1541_s10, 8 }
   0xd   : > { %893 = vmatpush3.bf16.msra.mxu0 %v516_v1  ;;  %927 = vmatpush3.bf16.msra.mxu1 %v516_v1  ;;  %s980_s16 = scalar_lea.vmem %s1537_s0, %s794_s13  ;;  %s1468_s20 = scalar_lea.vmem %s1539_s2, %s795_s17 }
   0xe   : > { %v983_v2 = vld [vmem:[%s980_s16] sm:$0xff]   ;;  %v986_v3 = vld [vmem:[%s980_s16 + $0x8] sm:$0xff]   ;;  %v992_v7 = vld [vmem:[%s980_s16 + $0x10] sm:$0xff]  }
   0xf   : > { %v798_v4 = vunpack.c.l.bf16 %v983_v2  ;;  %v799_v5 = vunpack.c.h.bf16 %v983_v2  ;;  %v802_v6 = vunpack.c.l.bf16 %v986_v3  ;;  %v803_v8 = vunpack.c.h.bf16 %v986_v3  ;;  %v1006_v13 = vld [vmem:[%s980_s16 + $0x18] sm:$0xff]   ;;  %v1017_v20 = vld [vmem:[%s980_s16 + $0x20] sm:$0xff]   ;;  %v1028_v27 = vld [vmem:[%s980_s16 + $0x28] sm:$0xff]  }
  0x10   : > { %v806_v9 = vunpack.c.l.bf16 %v992_v7  ;;  %v807_v15 = vunpack.c.h.bf16 %v992_v7  ;;  %v810_v18 = vunpack.c.l.bf16 %v1006_v13  ;;  %v811_v22 = vunpack.c.h.bf16 %v1006_v13  ;;  %v1039_v34 = vld [vmem:[%s980_s16 + $0x30] sm:$0xff]   ;;  %v1050_v41 = vld [vmem:[%s980_s16 + $0x38] sm:$0xff]   ;;  %v1061_v48 = vld [vmem:[%s980_s16 + $0x40] sm:$0xff]  }
  0x11   : > { %v210_v10 = vsel %vm209_vm1, %v798_v4, 0.0  ;;  %v211_v11 = vsel %vm209_vm1, %v799_v5, 0.0  ;;  %v213_v12 = vsel %vm209_vm1, %v802_v6, 0.0  ;;  %v215_v16 = vsel %vm209_vm1, %v803_v8, 0.0  ;;  %v1072_v55 = vld [vmem:[%s980_s16 + $0x48] sm:$0xff]   ;;  %v1083_v62 = vld [vmem:[%s980_s16 + $0x50] sm:$0xff]  }
  0x12   : > { %v212_v14 = vadd.f32 %v211_v11, %v210_v10  ;;  %v217_v19 = vsel %vm209_vm1, %v806_v9, 0.0  ;;  %v219_v23 = vsel %vm209_vm1, %v807_v15, 0.0  ;;  %v814_v25 = vunpack.c.l.bf16 %v1017_v20 }
  0x13   : > { %v221_v26 = vsel %vm209_vm1, %v810_v18, 0.0  ;;  %v815_v29 = vunpack.c.h.bf16 %v1017_v20  ;;  %v223_v30 = vsel %vm209_vm1, %v811_v22, 0.0  ;;  %v818_v32 = vunpack.c.l.bf16 %v1028_v27 }
  0x14   : > { %v214_v17 = vadd.f32 %v213_v12, %v212_v14  ;;  %v225_v33 = vsel %vm209_vm1, %v814_v25, 0.0  ;;  %v819_v36 = vunpack.c.h.bf16 %v1028_v27  ;;  %v822_v39 = vunpack.c.l.bf16 %v1039_v34  ;;  %v1094_v14 = vld [vmem:[%s980_s16 + $0x58] sm:$0xff]  }
  0x15   : > { %v227_v37 = vsel %vm209_vm1, %v815_v29, 0.0  ;;  %v229_v40 = vsel %vm209_vm1, %v818_v32, 0.0  ;;  %v823_v43 = vunpack.c.h.bf16 %v1039_v34  ;;  %v826_v46 = vunpack.c.l.bf16 %v1050_v41 }
  0x16   : > { %v216_v21 = vadd.f32 %v215_v16, %v214_v17  ;;  %v231_v44 = vsel %vm209_vm1, %v819_v36, 0.0  ;;  %v233_v47 = vsel %vm209_vm1, %v822_v39, 0.0  ;;  %v827_v50 = vunpack.c.h.bf16 %v1050_v41 }
  0x17   : > { %v235_v51 = vsel %vm209_vm1, %v823_v43, 0.0  ;;  %v830_v53 = vunpack.c.l.bf16 %v1061_v48  ;;  %v237_v54 = vsel %vm209_vm1, %v826_v46, 0.0  ;;  %v831_v57 = vunpack.c.h.bf16 %v1061_v48 }
  0x18   : > { %v218_v24 = vadd.f32 %v217_v19, %v216_v21  ;;  %v239_v58 = vsel %vm209_vm1, %v827_v50, 0.0  ;;  %v834_v60 = vunpack.c.l.bf16 %v1072_v55  ;;  %v835_v0 = vunpack.c.h.bf16 %v1072_v55 }
  0x19   : > { %v241_v61 = vsel %vm209_vm1, %v830_v53, 0.0  ;;  %v243_v1 = vsel %vm209_vm1, %v831_v57, 0.0  ;;  %v838_v11 = vunpack.c.l.bf16 %v1083_v62  ;;  %v839_v17 = vunpack.c.h.bf16 %v1083_v62 }
  0x1a   : > { %v220_v28 = vadd.f32 %v219_v23, %v218_v24  ;;  %v245_v12 = vsel %vm209_vm1, %v834_v60, 0.0  ;;  %v247_v19 = vsel %vm209_vm1, %v835_v0, 0.0  ;;  %v842_v23 = vunpack.c.l.bf16 %v1094_v14 }
  0x1b   : > { %v249_v24 = vsel %vm209_vm1, %v838_v11, 0.0 }
  0x1c   : > { %v222_v31 = vadd.f32 %v221_v26, %v220_v28  ;;  %v1105_v26 = vld [vmem:[%s980_s16 + $0x60] sm:$0xff]  }
  0x1e   : > { %v224_v35 = vadd.f32 %v223_v30, %v222_v31  ;;  %v843_v30 = vunpack.c.h.bf16 %v1094_v14  ;;  %v251_v31 = vsel %vm209_vm1, %v839_v17, 0.0 }
  0x20   : > { %v226_v38 = vadd.f32 %v225_v33, %v224_v35  ;;  %v846_v35 = vunpack.c.l.bf16 %v1105_v26 }
  0x22   : > { %v228_v42 = vadd.f32 %v227_v37, %v226_v38  ;;  %v253_v37 = vsel %vm209_vm1, %v842_v23, 0.0  ;;  %v1116_v38 = vld [vmem:[%s980_s16 + $0x68] sm:$0xff]  }
  0x24   : > { %v230_v45 = vadd.f32 %v229_v40, %v228_v42  ;;  %v847_v42 = vunpack.c.h.bf16 %v1105_v26 }
  0x26   : > { %v232_v49 = vadd.f32 %v231_v44, %v230_v45  ;;  %v255_v44 = vsel %vm209_vm1, %v843_v30, 0.0 }
  0x28   : > { %v234_v52 = vadd.f32 %v233_v47, %v232_v49  ;;  %v850_v47 = vunpack.c.l.bf16 %v1116_v38  ;;  %v257_v49 = vsel %vm209_vm1, %v846_v35, 0.0 }
  0x2a   : > { %v236_v56 = vadd.f32 %v235_v51, %v234_v52  ;;  %v1127_v51 = vld [vmem:[%s980_s16 + $0x70] sm:$0xff]  }
  0x2c   : > { %v238_v59 = vadd.f32 %v237_v54, %v236_v56  ;;  %v851_v54 = vunpack.c.h.bf16 %v1116_v38  ;;  %v259_v56 = vsel %vm209_vm1, %v847_v42, 0.0 }
  0x2e   : > { %v240_v63 = vadd.f32 %v239_v58, %v238_v59  ;;  %v854_v59 = vunpack.c.l.bf16 %v1127_v51 }
  0x30   : > { %v242_v10 = vadd.f32 %v241_v61, %v240_v63  ;;  %v261_v61 = vsel %vm209_vm1, %v850_v47, 0.0  ;;  %v1138_v63 = vld [vmem:[%s980_s16 + $0x78] sm:$0xff]  }
  0x32   : > { %v244_v16 = vadd.f32 %v243_v1, %v242_v10  ;;  %v855_v10 = vunpack.c.h.bf16 %v1127_v51 }
  0x34   : > { %v246_v21 = vadd.f32 %v245_v12, %v244_v16  ;;  %v263_v12 = vsel %vm209_vm1, %v851_v54, 0.0 }
  0x36   : > { %v248_v28 = vadd.f32 %v247_v19, %v246_v21  ;;  %v858_v19 = vunpack.c.l.bf16 %v1138_v63  ;;  %v265_v21 = vsel %vm209_vm1, %v854_v59, 0.0 }
  0x38   : > { %v250_v33 = vadd.f32 %v249_v24, %v248_v28  ;;  %v859_v28 = vunpack.c.h.bf16 %v1138_v63 }
  0x3a   : > { %v252_v40 = vadd.f32 %v251_v31, %v250_v33  ;;  %v267_v31 = vsel %vm209_vm1, %v855_v10, 0.0 }
  0x3c   : > { %v254_v45 = vadd.f32 %v253_v37, %v252_v40  ;;  %v269_v37 = vsel %vm209_vm1, %v858_v19, 0.0 }
  0x3e   : > { %v256_v52 = vadd.f32 %v255_v44, %v254_v45  ;;  %v271_v44 = vsel %vm209_vm1, %v859_v28, 0.0 }
  0x40   : > { %v258_v58 = vadd.f32 %v257_v49, %v256_v52 }
  0x42   : > { %v260_v1 = vadd.f32 %v259_v56, %v258_v58 }
  0x44   : > { %v262_v16 = vadd.f32 %v261_v61, %v260_v1 }
  0x46   : > { %v264_v24 = vadd.f32 %v263_v12, %v262_v16 }
  0x48   : > { %v266_v33 = vadd.f32 %v265_v21, %v264_v24 }
  0x4a   : > { %v268_v40 = vadd.f32 %v267_v31, %v266_v33 }
  0x4c   : > { %v270_v45 = vadd.f32 %v269_v37, %v268_v40 }
  0x4e   : > { %v272_v49 = vadd.f32 %v271_v44, %v270_v45 }
  0x50   : > { %v273_v52 = vrot.slane %v272_v49, 4 }
  0x52   : > { %v274_v56 = vadd.f32 %v273_v52, %v272_v49 }
  0x54   : > { %v275_v58 = vrot.slane %v274_v56, 2 }
  0x56   : > { %v276_v61 = vadd.f32 %v275_v58, %v274_v56 }
  0x58   : > { %v277_v1 = vrot.slane %v276_v61, 1 }
  0x5a   : > { %v278_v12 = vadd.f32 %v277_v1, %v276_v61 }
  0x5c   : > { %v1158_v16 = vmul.f32 0.00390625, %v278_v12 }
  0x5e   : > { %v1163_v21 = vsub.f32 %v798_v4, %v1158_v16  ;;  %v1168_v24 = vsub.f32 %v799_v5, %v1158_v16  ;;  %v1173_v31 = vsub.f32 %v802_v6, %v1158_v16  ;;  %v1178_v33 = vsub.f32 %v803_v8, %v1158_v16 }
  0x5f   : > { %v1183_v4 = vsub.f32 %v806_v9, %v1158_v16  ;;  %v1194_v3 = vsub.f32 %v807_v15, %v1158_v16  ;;  %v1201_v9 = vsub.f32 %v810_v18, %v1158_v16  ;;  %v1211_v15 = vsub.f32 %v811_v22, %v1158_v16 }
  0x60   : > { %v313_v2 = vmul.f32 %v1163_v21, %v1163_v21  ;;  %v314_v5 = vmul.f32 %v1168_v24, %v1168_v24  ;;  %v315_v6 = vmul.f32 %v1173_v31, %v1173_v31  ;;  %v316_v8 = vmul.f32 %v1178_v33, %v1178_v33 }
  0x61   : > { %v317_v37 = vmul.f32 %v1183_v4, %v1183_v4  ;;  %v318_v49 = vmul.f32 %v1194_v3, %v1194_v3  ;;  %v1219_v56 = vsub.f32 %v814_v25, %v1158_v16  ;;  %v319_v58 = vmul.f32 %v1201_v9, %v1201_v9 }
  0x62   : > { %v345_v40 = vsel %vm209_vm1, %v313_v2, 0.0  ;;  %v346_v44 = vsel %vm209_vm1, %v314_v5, 0.0  ;;  %v348_v45 = vsel %vm209_vm1, %v315_v6, 0.0  ;;  %v350_v18 = vsel %vm209_vm1, %v316_v8, 0.0 }
  0x63   : > { %v347_v7 = vadd.f32 %v346_v44, %v345_v40  ;;  %v352_v61 = vsel %vm209_vm1, %v317_v37, 0.0  ;;  %v1227_v13 = vsub.f32 %v815_v29, %v1158_v16  ;;  %v320_v22 = vmul.f32 %v1211_v15, %v1211_v15 }
  0x64   : > { %v354_v12 = vsel %vm209_vm1, %v318_v49, 0.0  ;;  %v1235_v25 = vsub.f32 %v818_v32, %v1158_v16  ;;  %v321_v5 = vmul.f32 %v1219_v56, %v1219_v56  ;;  %v356_v6 = vsel %vm209_vm1, %v319_v58, 0.0 }
  0x65   : > { %v349_v52 = vadd.f32 %v348_v45, %v347_v7  ;;  %v1243_v20 = vsub.f32 %v819_v36, %v1158_v16  ;;  %v322_v29 = vmul.f32 %v1227_v13, %v1227_v13  ;;  %v358_v37 = vsel %vm209_vm1, %v320_v22, 0.0 }
  0x66   : > { %v1251_v32 = vsub.f32 %v822_v39, %v1158_v16  ;;  %v323_v44 = vmul.f32 %v1235_v25, %v1235_v25  ;;  %v360_v45 = vsel %vm209_vm1, %v321_v5, 0.0  ;;  %v1259_v27 = vsub.f32 %v823_v43, %v1158_v16 }
  0x67   : > { %v351_v1 = vadd.f32 %v350_v18, %v349_v52  ;;  %v324_v36 = vmul.f32 %v1243_v20, %v1243_v20  ;;  %v362_v49 = vsel %vm209_vm1, %v322_v29, 0.0  ;;  %v1267_v39 = vsub.f32 %v826_v46, %v1158_v16 }
  0x68   : > { %v325_v52 = vmul.f32 %v1251_v32, %v1251_v32  ;;  %v364_v58 = vsel %vm209_vm1, %v323_v44, 0.0  ;;  %v1275_v34 = vsub.f32 %v827_v50, %v1158_v16  ;;  %v326_v43 = vmul.f32 %v1259_v27, %v1259_v27 }
  0x69   : > { %v353_v2 = vadd.f32 %v352_v61, %v351_v1  ;;  %v366_v1 = vsel %vm209_vm1, %v324_v36, 0.0  ;;  %v1283_v46 = vsub.f32 %v830_v53, %v1158_v16  ;;  %v1291_v41 = vsub.f32 %v831_v57, %v1158_v16 }
  0x6a   : > { %v328_v50 = vmul.f32 %v1275_v34, %v1275_v34  ;;  %v1299_v53 = vsub.f32 %v834_v60, %v1158_v16  ;;  %v1307_v48 = vsub.f32 %v835_v0, %v1158_v16  ;;  %v1315_v60 = vsub.f32 %v838_v11, %v1158_v16 }
  0x6b   : > { %v355_v8 = vadd.f32 %v354_v12, %v353_v2  ;;  %v327_v12 = vmul.f32 %v1267_v39, %v1267_v39  ;;  %v368_v2 = vsel %vm209_vm1, %v325_v52, 0.0  ;;  %v329_v29 = vmul.f32 %v1283_v46, %v1283_v46 }
  0x6c   : > { %v330_v57 = vmul.f32 %v1291_v41, %v1291_v41  ;;  %v374_v44 = vsel %vm209_vm1, %v328_v50, 0.0  ;;  %v1323_v55 = vsub.f32 %v839_v17, %v1158_v16  ;;  %v332_v0 = vmul.f32 %v1307_v48, %v1307_v48 }
  0x6d   : > { %v357_v40 = vadd.f32 %v356_v6, %v355_v8  ;;  %v370_v6 = vsel %vm209_vm1, %v326_v43, 0.0  ;;  %v376_v36 = vsel %vm209_vm1, %v329_v29, 0.0  ;;  %v1331_v11 = vsub.f32 %v842_v23, %v1158_v16 }
  0x6e   : > { %v1339_v62 = vsub.f32 %v843_v30, %v1158_v16  ;;  %v334_v17 = vmul.f32 %v1323_v55, %v1323_v55  ;;  %v1347_v23 = vsub.f32 %v846_v35, %v1158_v16  ;;  %v1355_v14 = vsub.f32 %v847_v42, %v1158_v16 }
  0x6f   : > { %v359_v7 = vadd.f32 %v358_v37, %v357_v40  ;;  %v372_v37 = vsel %vm209_vm1, %v327_v12, 0.0  ;;  %v335_v12 = vmul.f32 %v1331_v11, %v1331_v11  ;;  %v1363_v35 = vsub.f32 %v850_v47, %v1158_v16 }
  0x70   : > { %v336_v30 = vmul.f32 %v1339_v62, %v1339_v62  ;;  %v386_v50 = vsel %vm209_vm1, %v334_v17, 0.0  ;;  %v1371_v26 = vsub.f32 %v851_v54, %v1158_v16  ;;  %v338_v42 = vmul.f32 %v1355_v14, %v1355_v14 }
  0x71   : > { %v361_v18 = vadd.f32 %v360_v45, %v359_v7  ;;  %v331_v7 = vmul.f32 %v1299_v53, %v1299_v53  ;;  %v388_v29 = vsel %vm209_vm1, %v335_v12, 0.0  ;;  %v1379_v47 = vsub.f32 %v854_v59, %v1158_v16 }
  0x72   : > { %v1387_v38 = vsub.f32 %v855_v10, %v1158_v16  ;;  %v340_v54 = vmul.f32 %v1371_v26, %v1371_v26  ;;  %v1395_v59 = vsub.f32 %v858_v19, %v1158_v16  ;;  %v1403_v51 = vsub.f32 %v859_v28, %v1158_v16 }
  0x73   : > { %v363_v61 = vadd.f32 %v362_v49, %v361_v18  ;;  %v378_v18 = vsel %vm209_vm1, %v330_v57, 0.0 }
  0x74   : > { %v342_v10 = vmul.f32 %v1387_v38, %v1387_v38  ;;  %v343_v19 = vmul.f32 %v1395_v59, %v1395_v59 }
  0x75   : > { %v365_v22 = vadd.f32 %v364_v58, %v363_v61  ;;  %v333_v58 = vmul.f32 %v1315_v60, %v1315_v60  ;;  %v380_v61 = vsel %vm209_vm1, %v331_v7, 0.0 }
  0x76   : > { %v404_v28 = vsel %vm209_vm1, %v343_v19, 0.0 }
  0x77   : > { %v367_v5 = vadd.f32 %v366_v1, %v365_v22  ;;  %v382_v1 = vsel %vm209_vm1, %v332_v0, 0.0  ;;  %v341_v0 = vmul.f32 %v1379_v47, %v1379_v47 }
  0x79   : > { %v369_v8 = vadd.f32 %v368_v2, %v367_v5  ;;  %v384_v2 = vsel %vm209_vm1, %v333_v58, 0.0  ;;  %v398_v58 = vsel %vm209_vm1, %v340_v54, 0.0 }
  0x7b   : > { %v371_v40 = vadd.f32 %v370_v6, %v369_v8  ;;  %v337_v8 = vmul.f32 %v1347_v23, %v1347_v23 }
  0x7d   : > { %v373_v45 = vadd.f32 %v372_v37, %v371_v40  ;;  %v390_v40 = vsel %vm209_vm1, %v336_v30, 0.0 }
  0x7f   : > { %v375_v49 = vadd.f32 %v374_v44, %v373_v45  ;;  %v339_v44 = vmul.f32 %v1363_v35, %v1363_v35  ;;  %v392_v45 = vsel %vm209_vm1, %v337_v8, 0.0 }
  0x81   : > { %v377_v52 = vadd.f32 %v376_v36, %v375_v49  ;;  %v394_v36 = vsel %vm209_vm1, %v338_v42, 0.0 }
  0x83   : > { %v379_v43 = vadd.f32 %v378_v18, %v377_v52  ;;  %v396_v18 = vsel %vm209_vm1, %v339_v44, 0.0 }
  0x85   : > { %v381_v22 = vadd.f32 %v380_v61, %v379_v43  ;;  %v400_v43 = vsel %vm209_vm1, %v341_v0, 0.0 }
  0x87   : > { %v383_v5 = vadd.f32 %v382_v1, %v381_v22  ;;  %v344_v1 = vmul.f32 %v1403_v51, %v1403_v51  ;;  %v402_v22 = vsel %vm209_vm1, %v342_v10, 0.0 }
  0x89   : > { %v385_v6 = vadd.f32 %v384_v2, %v383_v5  ;;  %v406_v12 = vsel %vm209_vm1, %v344_v1, 0.0 }
  0x8b   : > { %v387_v37 = vadd.f32 %v386_v50, %v385_v6 }
  0x8d   : > { %v389_v57 = vadd.f32 %v388_v29, %v387_v37 }
  0x8f   : > { %v391_v7 = vadd.f32 %v390_v40, %v389_v57 }
  0x91   : > { %v393_v49 = vadd.f32 %v392_v45, %v391_v7 }
  0x93   : > { %v395_v52 = vadd.f32 %v394_v36, %v393_v49 }
  0x95   : > { %v397_v61 = vadd.f32 %v396_v18, %v395_v52 }
  0x97   : > { %v399_v17 = vadd.f32 %v398_v58, %v397_v61 }
  0x99   : > { %v401_v63 = vadd.f32 %v400_v43, %v399_v17 }
  0x9b   : > { %v403_v16 = vadd.f32 %v402_v22, %v401_v63 }
  0x9d   : > { %v405_v2 = vadd.f32 %v404_v28, %v403_v16 }
  0x9f   : > { %v407_v5 = vadd.f32 %v406_v12, %v405_v2 }
  0xa1   : > { %v408_v30 = vrot.slane %v407_v5, 4 }
  0xa3   : > { %v409_v50 = vadd.f32 %v408_v30, %v407_v5 }
  0xa5   : > { %v410_v6 = vrot.slane %v409_v50, 2 }
  0xa7   : > { %v411_v8 = vadd.f32 %v410_v6, %v409_v50 }
  0xa9   : > { %v412_v29 = vrot.slane %v411_v8, 1 }
  0xab   : > { %v413_v37 = vadd.f32 %v412_v29, %v411_v8 }
  0xad   : > { %v414_v42 = vmul.f32 0.00390625, %v413_v37 }
  0xaf   : > { %v415_v40 = vadd.f32 1e-05, %v414_v42 }
  0xb1   : > { %938 = vrsqrt.f32 %v415_v40 }
  0xbe   : > { %v939_v57 = vpop.eup %938 }
  0xbf   : > { %v417_v44 = vmul.f32 %v939_v57, %v1163_v21  ;;  %v418_v45 = vmul.f32 %v939_v57, %v1168_v24  ;;  %v433_v7 = vmul.f32 %v939_v57, %v1283_v46  ;;  %v434_v54 = vmul.f32 %v939_v57, %v1291_v41 }
  0xc0   : > { %v419_v36 = vmul.f32 %v939_v57, %v1173_v31  ;;  %v420_v49 = vmul.f32 %v939_v57, %v1178_v33  ;;  %v435_v0 = vmul.f32 %v939_v57, %v1299_v53  ;;  %v436_v18 = vmul.f32 %v939_v57, %v1307_v48 }
  0xc1   : > { %v449_v52 = vpack.c.bf16 %v418_v45, %v417_v44  ;;  %v457_v10 = vpack.c.bf16 %v434_v54, %v433_v7  ;;  %v421_v58 = vmul.f32 %v939_v57, %v1183_v4  ;;  %v422_v21 = vmul.f32 %v939_v57, %v1194_v3 }
  0xc2   : > { %v450_v61 = vpack.c.bf16 %v420_v49, %v419_v36  ;;  %v458_v24 = vpack.c.bf16 %v436_v18, %v435_v0  ;;  %v437_v46 = vmul.f32 %v939_v57, %v1315_v60  ;;  %v438_v41 = vmul.f32 %v939_v57, %v1323_v55 }
  0xc3   : > { %894 = vmatprep.mubr.msk.bf16.mxu0 %vm209_vm1, %v449_v52  ;;  %910 = vmatprep.mubr.msk.bf16.mxu1 %vm209_vm1, %v457_v10  ;;  %v451_v31 = vpack.c.bf16 %v422_v21, %v421_v58  ;;  %v423_v33 = vmul.f32 %v939_v57, %v1201_v9  ;;  %v424_v53 = vmul.f32 %v939_v57, %v1211_v15 }
  0xc4   : > { %895 = vmatmul.mubr.msk.bf16.vlgmr.msra.gmra.mxu0 %vm209_vm1, %v450_v61  ;;  %911 = vmatmul.mubr.msk.bf16.vlgmr.msra.gmra.mxu1 %vm209_vm1, %v458_v24  ;;  %v459_v4 = vpack.c.bf16 %v438_v41, %v437_v46  ;;  %v439_v3 = vmul.f32 %v939_v57, %v1331_v11  ;;  %v440_v48 = vmul.f32 %v939_v57, %v1339_v62 }
  0xc5   : > { %898 = vmatprep.mubr.msk.bf16.mxu0 %vm209_vm1, %v451_v31  ;;  %v425_v60 = vmul.f32 %v939_v57, %v1219_v56  ;;  %v426_v55 = vmul.f32 %v939_v57, %v1227_v13  ;;  %v441_v19 = vmul.f32 %v939_v57, %v1347_v23  ;;  %v442_v9 = vmul.f32 %v939_v57, %v1355_v14 }
  0xc6   : > { %914 = vmatprep.mubr.msk.bf16.mxu1 %vm209_vm1, %v459_v4  ;;  %v452_v15 = vpack.c.bf16 %v424_v53, %v423_v33  ;;  %v460_v43 = vpack.c.bf16 %v440_v48, %v439_v3  ;;  %v427_v11 = vmul.f32 %v939_v57, %v1235_v25  ;;  %v428_v62 = vmul.f32 %v939_v57, %v1243_v20 }
  0xc7   : > { %v453_v17 = vpack.c.bf16 %v426_v55, %v425_v60  ;;  %v461_v1 = vpack.c.bf16 %v442_v9, %v441_v19  ;;  %v443_v56 = vmul.f32 %v939_v57, %v1363_v35  ;;  %v444_v13 = vmul.f32 %v939_v57, %v1371_v26 }
  0xc8   : > { %v429_v23 = vmul.f32 %v939_v57, %v1251_v32  ;;  %v430_v14 = vmul.f32 %v939_v57, %v1259_v27  ;;  %v445_v25 = vmul.f32 %v939_v57, %v1379_v47  ;;  %v446_v20 = vmul.f32 %v939_v57, %v1387_v38 }
  0xc9   : > { %v454_v22 = vpack.c.bf16 %v428_v62, %v427_v11  ;;  %v462_v63 = vpack.c.bf16 %v444_v13, %v443_v56  ;;  %v431_v35 = vmul.f32 %v939_v57, %v1267_v39  ;;  %v432_v32 = vmul.f32 %v939_v57, %v1275_v34 }
  0xca   : > { %v455_v28 = vpack.c.bf16 %v430_v14, %v429_v23  ;;  %v463_v16 = vpack.c.bf16 %v446_v20, %v445_v25  ;;  %v447_v26 = vmul.f32 %v939_v57, %v1395_v59  ;;  %v448_v27 = vmul.f32 %v939_v57, %v1403_v51 }
  0xcb   : > { %v456_v47 = vpack.c.bf16 %v432_v32, %v431_v35 }
  0xcc   : > { %899 = vmatmul.mubr.msk.bf16.gmra.mxu0 %vm209_vm1, %v452_v15  ;;  %915 = vmatmul.mubr.msk.bf16.gmra.mxu1 %vm209_vm1, %v460_v43  ;;  %v464_v38 = vpack.c.bf16 %v448_v27, %v447_v26 }
  0xcd   : > { %902 = vmatprep.mubr.msk.bf16.mxu0 %vm209_vm1, %v453_v17  ;;  %918 = vmatprep.mubr.msk.bf16.mxu1 %vm209_vm1, %v461_v1 }
  0xd4   : > { %903 = vmatmul.mubr.msk.bf16.gmra.mxu0 %vm209_vm1, %v454_v22  ;;  %919 = vmatmul.mubr.msk.bf16.gmra.mxu1 %vm209_vm1, %v462_v63 }
  0xd5   : > { %906 = vmatprep.mubr.msk.bf16.mxu0 %vm209_vm1, %v455_v28  ;;  %922 = vmatprep.mubr.msk.bf16.mxu1 %vm209_vm1, %v463_v16 }
  0xdc   : > { %907 = vmatmul.mubr.msk.bf16.gmra.mxu0 %vm209_vm1, %v456_v47  ;;  %923 = vmatmul.mubr.msk.bf16.gmra.mxu1 %vm209_vm1, %v464_v38 }
 0x184   : > { %v896_v39 = vpop.f32.mrf.mxu0  ;;  %v912_v34 = vpop.f32.mrf.mxu1 }
 0x185   : > { %682 = vst.msk [vmem:[%s1468_s20 + $0x10] sm:$0xff] %vm679_vm2, %v896_v39  ;;  %698 = vst.msk [vmem:[%s1468_s20 + $0x90] sm:$0xff] %vm679_vm2, %v912_v34 }
 0x186   : > { %v552_v59 = vpop.f32.mrf.mxu0  ;;  %v616_v51 = vpop.f32.mrf.mxu1 }
 0x187   : > { %680 = vst.msk [vmem:[%s1468_s20] sm:$0xff] %vm679_vm2, %v552_v59  ;;  %696 = vst.msk [vmem:[%s1468_s20 + $0x80] sm:$0xff] %vm679_vm2, %v616_v51 }
 0x188   : > { %v897_v12 = vpop.f32.mrf.mxu0  ;;  %v913_v2 = vpop.f32.mrf.mxu1 }
 0x189   : > { %683 = vst.msk [vmem:[%s1468_s20 + $0x18] sm:$0xff] %vm679_vm2, %v897_v12  ;;  %699 = vst.msk [vmem:[%s1468_s20 + $0x98] sm:$0xff] %vm679_vm2, %v913_v2 }
 0x18a   : > { %v555_v5 = vpop.f32.mrf.mxu0  ;;  %v619_v30 = vpop.f32.mrf.mxu1 }
 0x18b   : > { %681 = vst.msk [vmem:[%s1468_s20 + $0x8] sm:$0xff] %vm679_vm2, %v555_v5  ;;  %697 = vst.msk [vmem:[%s1468_s20 + $0x88] sm:$0xff] %vm679_vm2, %v619_v30 }
 0x18c   : > { %v900_v50 = vpop.f32.mrf.mxu0  ;;  %v916_v6 = vpop.f32.mrf.mxu1 }
 0x18d   : > { %686 = vst.msk [vmem:[%s1468_s20 + $0x30] sm:$0xff] %vm679_vm2, %v900_v50  ;;  %702 = vst.msk [vmem:[%s1468_s20 + $0xb0] sm:$0xff] %vm679_vm2, %v916_v6 }
 0x18e   : > { %v568_v8 = vpop.f32.mrf.mxu0  ;;  %v632_v29 = vpop.f32.mrf.mxu1 }
 0x18f   : > { %684 = vst.msk [vmem:[%s1468_s20 + $0x20] sm:$0xff] %vm679_vm2, %v568_v8  ;;  %700 = vst.msk [vmem:[%s1468_s20 + $0xa0] sm:$0xff] %vm679_vm2, %v632_v29 }
 0x190   : > { %v901_v37 = vpop.f32.mrf.mxu0  ;;  %v917_v42 = vpop.f32.mrf.mxu1 }
 0x191   : > { %687 = vst.msk [vmem:[%s1468_s20 + $0x38] sm:$0xff] %vm679_vm2, %v901_v37  ;;  %703 = vst.msk [vmem:[%s1468_s20 + $0xb8] sm:$0xff] %vm679_vm2, %v917_v42 }
 0x192   : > { %v571_v40 = vpop.f32.mrf.mxu0  ;;  %v635_v57 = vpop.f32.mrf.mxu1 }
 0x193   : > { %685 = vst.msk [vmem:[%s1468_s20 + $0x28] sm:$0xff] %vm679_vm2, %v571_v40  ;;  %701 = vst.msk [vmem:[%s1468_s20 + $0xa8] sm:$0xff] %vm679_vm2, %v635_v57 }
 0x194   : > { %v904_v44 = vpop.f32.mrf.mxu0  ;;  %v920_v45 = vpop.f32.mrf.mxu1 }
 0x195   : > { %690 = vst.msk [vmem:[%s1468_s20 + $0x50] sm:$0xff] %vm679_vm2, %v904_v44  ;;  %706 = vst.msk [vmem:[%s1468_s20 + $0xd0] sm:$0xff] %vm679_vm2, %v920_v45 }
 0x196   : > { %v584_v7 = vpop.f32.mrf.mxu0  ;;  %v648_v54 = vpop.f32.mrf.mxu1 }
 0x197   : > { %688 = vst.msk [vmem:[%s1468_s20 + $0x40] sm:$0xff] %vm679_vm2, %v584_v7  ;;  %704 = vst.msk [vmem:[%s1468_s20 + $0xc0] sm:$0xff] %vm679_vm2, %v648_v54 }
 0x198   : > { %v905_v36 = vpop.f32.mrf.mxu0  ;;  %v921_v49 = vpop.f32.mrf.mxu1 }
 0x199   : > { %691 = vst.msk [vmem:[%s1468_s20 + $0x58] sm:$0xff] %vm679_vm2, %v905_v36  ;;  %707 = vst.msk [vmem:[%s1468_s20 + $0xd8] sm:$0xff] %vm679_vm2, %v921_v49 }
 0x19a   : > { %v587_v0 = vpop.f32.mrf.mxu0  ;;  %v651_v18 = vpop.f32.mrf.mxu1 }
 0x19b   : > { %689 = vst.msk [vmem:[%s1468_s20 + $0x48] sm:$0xff] %vm679_vm2, %v587_v0  ;;  %705 = vst.msk [vmem:[%s1468_s20 + $0xc8] sm:$0xff] %vm679_vm2, %v651_v18 }
 0x19c   : > { %v908_v52 = vpop.f32.mrf.mxu0  ;;  %v924_v10 = vpop.f32.mrf.mxu1 }
 0x19d   : > { %694 = vst.msk [vmem:[%s1468_s20 + $0x70] sm:$0xff] %vm679_vm2, %v908_v52  ;;  %710 = vst.msk [vmem:[%s1468_s20 + $0xf0] sm:$0xff] %vm679_vm2, %v924_v10 }
 0x19e   : > { %v600_v58 = vpop.f32.mrf.mxu0  ;;  %v664_v21 = vpop.f32.mrf.mxu1 }
 0x19f   : > { %692 = vst.msk [vmem:[%s1468_s20 + $0x60] sm:$0xff] %vm679_vm2, %v600_v58  ;;  %708 = vst.msk [vmem:[%s1468_s20 + $0xe0] sm:$0xff] %vm679_vm2, %v664_v21 }
 0x1a0   : > { %v909_v61 = vpop.f32.mrf.mxu0  ;;  %v925_v24 = vpop.f32.mrf.mxu1 }
 0x1a1   : > { %695 = vst.msk [vmem:[%s1468_s20 + $0x78] sm:$0xff] %vm679_vm2, %v909_v61  ;;  %711 = vst.msk [vmem:[%s1468_s20 + $0xf8] sm:$0xff] %vm679_vm2, %v925_v24 }
 0x1a2   : > { %v603_v46 = vpop.f32.mrf.mxu0  ;;  %v667_v41 = vpop.f32.mrf.mxu1 }
 0x1a3   : > { %693 = vst.msk [vmem:[%s1468_s20 + $0x68] sm:$0xff] %vm679_vm2, %v603_v46  ;;  %709 = vst.msk [vmem:[%s1468_s20 + $0xe8] sm:$0xff] %vm679_vm2, %v667_v41 }
 0x1a4 PF: > { %s12_s9 = sadd.s32 1, %s946_s9  }
 0x1a5   : > { %p9_p4 = scmp.ge.s32.totalorder %s12_s9, 4  }
 0x1a7   :  { %11 = sbr.rel (!%p9_p4) target bundleno = 1 (0x1), region = 58 }

// kernel: unet_decoder_forward.6
= control target key start
LH: loop header
LB: loop body
LE: loop exit
PB: predicated region body
PF: predicated region fallthrough
CT: control target
= control target key end

     0   :  { %s5969_s17 = smov 0   ;;  %s9013_s0 = inlined_call_operand.vmem [shape: bf16[2,256,16], index: 0, kind: input, shape index: {}]   ;;  %s9014_s1 = inlined_call_operand.vmem [shape: bf16[16,8], index: 1, kind: input, shape index: {}]   ;;  %s9015_s2 = inlined_call_operand.vmem [shape: bf16[8,8], index: 2, kind: input, shape index: {}]   ;;  %s9016_s3 = inlined_call_operand.vmem [shape: f32[1,8], index: 3, kind: input, shape index: {}]   ;;  %s9017_s4 = inlined_call_operand.vmem [shape: f32[1,8], index: 4, kind: input, shape index: {}]   ;;  %s9018_s5 = inlined_call_operand.vmem [shape: bf16[8,8], index: 5, kind: input, shape index: {}]   ;;  %s9019_s6 = inlined_call_operand.vmem [shape: f32[1,8], index: 6, kind: input, shape index: {}]   ;;  %s9020_s7 = inlined_call_operand.vmem [shape: f32[1,8], index: 7, kind: input, shape index: {}]   ;;  %s9021_s8 = inlined_call_operand.vmem [shape: bf16[9,8,8], index: 8, kind: input, shape index: {}]   ;;  %s9022_s9 = inlined_call_operand.vmem [shape: f32[1,8], index: 9, kind: input, shape index: {}]   ;;  %s9023_s10 = inlined_call_operand.vmem [shape: f32[1,8], index: 10, kind: input, shape index: {}]   ;;  %s9024_s11 = inlined_call_operand.vmem [shape: bf16[2,256,8], index: 11, kind: output, shape index: {}]  }
   0x1 LB: > { %s4921_s18 = sadd.s32 4294967295, %s5905_s17   ;;  %p4925_p0 = scmp.ge.s32.totalorder %s5905_s17, 1  ;;  %s5905_s17 = sphi %s5969_s17, %s21_s17  }
   0x2   : > { %p337_p1 = scmp.lt.s32.totalorder %s5905_s17, 3 }
   0x4   : > { %p338_p2 = pnand %p4925_p0, %p337_p1 }
   0x6   : > { %341 = sbr.rel (%p338_p2) target bundleno = 994 (0x3e2), region = 64 }
   0xb   : > { %v5882_v0 = vld [vmem:[%s9014_s1] sm:$0xff]   ;;  %p377_p3 = scmp.lt.s32.totalorder %s4921_s18, 1  ;;  %vm510_vm0 = vcmask 130048   ;;  %vm9056_vm1 = vcmask 1043456   ;;  %vm9060_vm2 = vcmask 64512   ;;  %vm5908_vm7 = vmmov 1  }
   0xc   : > { %5453 = vmatprep.subr.bf16.mxu0 %v5882_v0  ;;  %v736_v17 = vld [vmem:[%s9015_s2] sm:$0xf]  ;;  %v5014_v21 = vld [vmem:[%s9021_s8 + $0x4] sm:$0xf]  ;;  %vm2004_vm8 = vmpackc.low %vm5908_vm7, %vm5908_vm7 }
   0xd   : > { %s10110_s18 = smov (!%p377_p3, %s4921_s18), 1  ;;  %5454 = vmatpush3.bf16.msra.mxu0 %v5882_v0  ;;  %v1061_v18 = vld [vmem:[%s9018_s5] sm:$0xf]  ;;  %5861 = vmatprep.subr.msk.bf16.mxu1 %vm9056_vm1, %v736_v17  ;;  %v788_v19 = vsel %vm9056_vm1, %v736_v17, 0  ;;  %v2175_v29 = vsel %vm9056_vm1, %v5014_v21, 0 }
   0xe   : > { %s5215_s21 = sshll.u32 %s10110_s18, 7  ;;  %5862 = vmatprep.subr.msk.bf16.mxu0 %vm9056_vm1, %v1061_v18  ;;  %v1063_v20 = vsel %vm9056_vm1, %v1061_v18, 0  ;;  %5488 = vmatpush3.bf16.msra.mxu1 %v788_v19 }
   0xf   : > { %s5988_s24 = scalar_lea.vmem %s9013_s0, %s5215_s21  ;;  %5863 = vmatprep.subr.msk.bf16.mxu1 %vm9056_vm1, %v5014_v21  ;;  %s8740_s29 = scalar_lea.vmem %s9024_s11, %s5215_s21 }
  0x10   : > { %v5883_v1 = vld [vmem:[%s5988_s24] sm:$0xff]   ;;  %v5884_v2 = vld [vmem:[%s5988_s24 + $0x8] sm:$0xff]   ;;  %v5885_v3 = vld [vmem:[%s5988_s24 + $0x10] sm:$0xff]  }
  0x11   : > { %5455 = vmatprep.mubr.msk.bf16.mxu0 %vm510_vm0, %v5883_v1  ;;  %v5886_v4 = vld [vmem:[%s5988_s24 + $0x18] sm:$0xff]   ;;  %v5887_v5 = vld [vmem:[%s5988_s24 + $0x20] sm:$0xff]   ;;  %v5888_v6 = vld [vmem:[%s5988_s24 + $0x28] sm:$0xff]  }
  0x12   : > { %5456 = vmatmul.mubr.msk.bf16.vlgmr.msra.gmra.mxu0 %vm510_vm0, %v5884_v2  ;;  %v5889_v7 = vld [vmem:[%s5988_s24 + $0x30] sm:$0xff]   ;;  %v5890_v8 = vld [vmem:[%s5988_s24 + $0x38] sm:$0xff]   ;;  %v5891_v9 = vld [vmem:[%s5988_s24 + $0x40] sm:$0xff]  }
  0x13   : > { %5459 = vmatprep.mubr.msk.bf16.mxu0 %vm510_vm0, %v5885_v3  ;;  %v5892_v10 = vld [vmem:[%s5988_s24 + $0x48] sm:$0xff]   ;;  %v5893_v11 = vld [vmem:[%s5988_s24 + $0x50] sm:$0xff]   ;;  %v5894_v12 = vld [vmem:[%s5988_s24 + $0x58] sm:$0xff]   ;;  %5522 = vmatpush3.bf16.msra.mxu0 %v1063_v20 }
  0x14   : > { %v5895_v13 = vld [vmem:[%s5988_s24 + $0x60] sm:$0xff]   ;;  %v5896_v14 = vld [vmem:[%s5988_s24 + $0x68] sm:$0xff]   ;;  %v5897_v15 = vld [vmem:[%s5988_s24 + $0x70] sm:$0xff]  }
  0x15   : > { %v5898_v16 = vld [vmem:[%s5988_s24 + $0x78] sm:$0xff]  }
  0x1a   : > { %5460 = vmatmul.mubr.msk.bf16.gmra.mxu0 %vm510_vm0, %v5886_v4 }
  0x1b   : > { %5463 = vmatprep.mubr.msk.bf16.mxu0 %vm510_vm0, %v5887_v5 }
  0x22   : > { %5464 = vmatmul.mubr.msk.bf16.gmra.mxu0 %vm510_vm0, %v5888_v6 }
  0x23   : > { %5467 = vmatprep.mubr.msk.bf16.mxu0 %vm510_vm0, %v5889_v7  ;;  %v9036_v7 = vmov 0  }
  0x2a   : > { %5468 = vmatmul.mubr.msk.bf16.gmra.mxu0 %vm510_vm0, %v5890_v8  ;;  %v2138_v8 = vld [vmem:[%s9021_s8] sm:$0xf] }
  0x2b   : > { %5471 = vmatprep.mubr.msk.bf16.mxu0 %vm510_vm0, %v5891_v9  ;;  %5864 = vmatprep.subr.msk.bf16.mxu0 %vm9056_vm1, %v2138_v8  ;;  %v2384_v9 = vsel %vm9056_vm1, %v2138_v8, 0 }
  0x32   : > { %5472 = vmatmul.mubr.msk.bf16.gmra.mxu0 %vm510_vm0, %v5892_v10  ;;  %v5061_v10 = vld [vmem:[%s9021_s8 + $0x8] sm:$0xf] }
  0x33   : > { %5475 = vmatprep.mubr.msk.bf16.mxu0 %vm510_vm0, %v5893_v11  ;;  %v6083_v11 = vld [vmem:[%s9021_s8 + $0xc] sm:$0xf] }
  0x3a   : > { %5476 = vmatmul.mubr.msk.bf16.gmra.mxu0 %vm510_vm0, %v5894_v12  ;;  %v1352_v12 = vlaneseq }
  0x3b   : > { %5479 = vmatprep.mubr.msk.bf16.mxu0 %vm510_vm0, %v5895_v13 }
  0x3c   : > { %v6087_v13 = vshrl.u32 %v1352_v12, 7 }
  0x3e   : > { %v1361_v18 = vadd.s32 64, %v6087_v13  ;;  %v1363_v19 = vadd.s32 80, %v6087_v13  ;;  %v1365_v21 = vadd.s32 96, %v6087_v13 }
  0x42   : > { %5480 = vmatmul.mubr.msk.bf16.gmra.mxu0 %vm510_vm0, %v5896_v14  ;;  %v1355_v14 = vadd.s32 16, %v6087_v13 }
  0x43   : > { %5483 = vmatprep.mubr.msk.bf16.mxu0 %vm510_vm0, %v5897_v15  ;;  %v1357_v15 = vadd.s32 32, %v6087_v13 }
  0x44   : > { %v1403_v17 = vand.u32 15, %v1355_v14 }
  0x45   : > { %v1417_v20 = vand.u32 15, %v1357_v15 }
  0x46   : > { %vm6096_vm3 = vcmp.gt.s32.totalorder %v1403_v17, 0 }
  0x47   : > { %vm6102_vm4 = vcmp.gt.s32.totalorder %v1417_v20, 0  ;;  %vm2003_vm5 = vmpackc.low %vm6096_vm3, %vm6096_vm3 }
  0x48   : > { %vm2005_vm10 = vmpackc.low %vm6102_vm4, %vm6102_vm4 }
  0x4a   : > { %5484 = vmatmul.mubr.msk.bf16.gmra.mxu0 %vm510_vm0, %v5898_v16  ;;  %v1359_v16 = vadd.s32 48, %v6087_v13 }
  0xd2   : > { %v5457_v22 = vpop.f32.mrf.mxu0 }
  0xd4   : > { %v593_v23 = vpop.f32.mrf.mxu0 }
  0xd6   : > { %v5458_v24 = vpop.f32.mrf.mxu0 }
  0xd7   : > { %v721_v27 = vpack.c.bf16 %v5458_v24, %v5457_v22  ;;  %v1431_v22 = vand.u32 15, %v1359_v16 }
  0xd8   : > { %v596_v25 = vpop.f32.mrf.mxu0 }
  0xd9   : > { %v720_v26 = vpack.c.bf16 %v596_v25, %v593_v23  ;;  %v1367_v23 = vadd.s32 112, %v6087_v13  ;;  %v1445_v25 = vand.u32 15, %v1361_v18  ;;  %vm6110_vm6 = vcmp.gt.s32.totalorder %v1431_v22, 0 }
  0xda   : > { %v5461_v28 = vpop.f32.mrf.mxu0  ;;  %vm2007_vm12 = vmpackc.low %vm6110_vm6, %vm6110_vm6 }
  0xdb   : > { %5489 = vmatprep.mubr.msk.bf16.mxu1 %vm9060_vm2, %v720_v26  ;;  %5523 = vmatprep.mubr.msk.bf16.mxu0 %vm9060_vm2, %v720_v26  ;;  %v1369_v26 = vadd.s32 128, %v6087_v13  ;;  %vm6114_vm9 = vcmp.gt.s32.totalorder %v1445_v25, 0 }
  0xdc   : > { %v609_v30 = vpop.f32.mrf.mxu0  ;;  %5490 = vmatmul.mubr.msk.bf16.vlgmr.msra.gmra.mxu1 %vm9060_vm2, %v721_v27  ;;  %5524 = vmatmul.mubr.msk.bf16.vlgmr.msra.gmra.mxu0 %vm9060_vm2, %v721_v27  ;;  %v1459_v27 = vand.u32 15, %v1363_v19  ;;  %vm2009_vm14 = vmpackc.low %vm6114_vm9, %vm6114_vm9 }
  0xdd   : > { %5556 = vmatpush3.bf16.msra.mxu1 %v2175_v29  ;;  %5590 = vmatpush3.bf16.msra.mxu0 %v2384_v9  ;;  %v1356_v29 = vadd.s32 24, %v6087_v13 }
  0xde   : > { %v5462_v31 = vpop.f32.mrf.mxu0  ;;  %5865 = vmatprep.subr.msk.bf16.mxu1 %vm9056_vm1, %v5061_v10  ;;  %5866 = vmatprep.subr.msk.bf16.mxu0 %vm9056_vm1, %v6083_v11  ;;  %vm6121_vm11 = vcmp.gt.s32.totalorder %v1459_v27, 0 }
  0xdf   : > { %v723_v34 = vpack.c.bf16 %v5462_v31, %v5461_v28  ;;  %v1371_v28 = vadd.s32 144, %v6087_v13  ;;  %v1373_v31 = vadd.s32 160, %v6087_v13  ;;  %vm2011_vm0 = vmpackc.low %vm6121_vm11, %vm6121_vm11 }
  0xe0   : > { %v612_v32 = vpop.f32.mrf.mxu0 }
  0xe1   : > { %v722_v33 = vpack.c.bf16 %v612_v32, %v609_v30  ;;  %v1473_v30 = vand.u32 15, %v1365_v21 }
  0xe2   : > { %v5465_v35 = vpop.f32.mrf.mxu0 }
  0xe3   : > { %5493 = vmatprep.mubr.msk.bf16.mxu1 %vm9060_vm2, %v722_v33  ;;  %5527 = vmatprep.mubr.msk.bf16.mxu0 %vm9060_vm2, %v722_v33  ;;  %v1487_v33 = vand.u32 15, %v1367_v23  ;;  %vm6128_vm13 = vcmp.gt.s32.totalorder %v1473_v30, 0 }
  0xe4   : > { %v625_v36 = vpop.f32.mrf.mxu0  ;;  %5494 = vmatmul.mubr.msk.bf16.gmra.mxu1 %vm9060_vm2, %v723_v34  ;;  %5528 = vmatmul.mubr.msk.bf16.gmra.mxu0 %vm9060_vm2, %v723_v34  ;;  %vm2013_vm3 = vmpackc.low %vm6128_vm13, %vm6128_vm13  ;;  %vm9058_vm13 = vsmask.f32 256 }
  0xe5   : > { %vm6136_vm15 = vcmp.gt.s32.totalorder %v1487_v33, 0 }
  0xe6   : > { %v5466_v37 = vpop.f32.mrf.mxu0  ;;  %vm2015_vm4 = vmpackc.low %vm6136_vm15, %vm6136_vm15 }
  0xe7   : > { %v725_v40 = vpack.c.bf16 %v5466_v37, %v5465_v35  ;;  %v1501_v35 = vand.u32 15, %v1369_v26  ;;  %v1515_v37 = vand.u32 15, %v1371_v28 }
  0xe8   : > { %v628_v38 = vpop.f32.mrf.mxu0 }
  0xe9   : > { %v724_v39 = vpack.c.bf16 %v628_v38, %v625_v36  ;;  %vm6155_vm7 = vcmp.gt.s32.totalorder %v1501_v35, 0  ;;  %v1389_v38 = vand.u32 15, %v6087_v13 }
  0xea   : > { %v5469_v41 = vpop.f32.mrf.mxu0  ;;  %vm2017_vm6 = vmpackc.low %vm6155_vm7, %vm6155_vm7 }
  0xeb   : > { %5497 = vmatprep.mubr.msk.bf16.mxu1 %vm9060_vm2, %v724_v39  ;;  %5531 = vmatprep.mubr.msk.bf16.mxu0 %vm9060_vm2, %v724_v39  ;;  %v1529_v39 = vand.u32 15, %v1373_v31  ;;  %v6259_v8 = vsel %vm2017_vm6, 65537, %v9036_v7 }
  0xec   : > { %v641_v42 = vpop.f32.mrf.mxu0  ;;  %5498 = vmatmul.mubr.msk.bf16.gmra.mxu1 %vm9060_vm2, %v725_v40  ;;  %5532 = vmatmul.mubr.msk.bf16.gmra.mxu0 %vm9060_vm2, %v725_v40  ;;  %v1354_v40 = vadd.s32 8, %v6087_v13 }
  0xee   : > { %v5470_v43 = vpop.f32.mrf.mxu0 }
  0xef   : > { %v727_v46 = vpack.c.bf16 %v5470_v43, %v5469_v41 }
  0xf0   : > { %v644_v44 = vpop.f32.mrf.mxu0 }
  0xf1   : > { %v726_v45 = vpack.c.bf16 %v644_v44, %v641_v42  ;;  %v1375_v42 = vadd.s32 176, %v6087_v13  ;;  %v6147_v44 = vsel %vm2003_vm5, 65537, %v9036_v7  ;;  %vm6176_vm5 = vcmp.gt.s32.totalorder %v1515_v37, 0 }
  0xf2   : > { %v5473_v47 = vpop.f32.mrf.mxu0 }
  0xf3   : > { %5501 = vmatprep.mubr.msk.bf16.mxu1 %vm9060_vm2, %v726_v45  ;;  %5535 = vmatprep.mubr.msk.bf16.mxu0 %vm9060_vm2, %v726_v45  ;;  %v6150_v45 = vsel %vm2004_vm8, 65537, %v9036_v7  ;;  %vm6191_vm8 = vcmp.gt.s32.totalorder %v1529_v39, 0 }
  0xf4   : > { %v657_v48 = vpop.f32.mrf.mxu0  ;;  %5502 = vmatmul.mubr.msk.bf16.gmra.mxu1 %vm9060_vm2, %v727_v46  ;;  %5536 = vmatmul.mubr.msk.bf16.gmra.mxu0 %vm9060_vm2, %v727_v46  ;;  %vm2021_vm9 = vmpackc.low %vm6191_vm8, %vm6191_vm8  ;;  %v5006_v28 = vcombine.low %v6259_v8, %v6150_v45 }
  0xf5   : > { %v6277_v19 = vsel %vm2021_vm9, 65537, %v9036_v7 }
  0xf6   : > { %v5474_v49 = vpop.f32.mrf.mxu0 }
  0xf7   : > { %v729_v52 = vpack.c.bf16 %v5474_v49, %v5473_v47  ;;  %v1377_v47 = vadd.s32 192, %v6087_v13  ;;  %v6171_v49 = vsel %vm2005_vm10, 65537, %v9036_v7  ;;  %vm2019_vm10 = vmpackc.low %vm6176_vm5, %vm6176_vm5 }
  0xf8   : > { %v660_v50 = vpop.f32.mrf.mxu0  ;;  %v6268_v14 = vsel %vm2019_vm10, 65537, %v9036_v7 }
  0xf9   : > { %v728_v51 = vpack.c.bf16 %v660_v50, %v657_v48  ;;  %v6163_v48 = vld [vmem:[%s9016_s3] ss:$0 sm:$0xff]  ;;  %v1379_v50 = vadd.s32 208, %v6087_v13 }
  0xfa   : > { %v5477_v53 = vpop.f32.mrf.mxu0 }
  0xfb   : > { %5505 = vmatprep.mubr.msk.bf16.mxu1 %vm9060_vm2, %v728_v51  ;;  %5539 = vmatprep.mubr.msk.bf16.mxu0 %vm9060_vm2, %v728_v51 }
  0xfc   : > { %v673_v54 = vpop.f32.mrf.mxu0  ;;  %5506 = vmatmul.mubr.msk.bf16.gmra.mxu1 %vm9060_vm2, %v729_v52  ;;  %5540 = vmatmul.mubr.msk.bf16.gmra.mxu0 %vm9060_vm2, %v729_v52  ;;  %v6186_v52 = vsel %vm2007_vm12, 65537, %v9036_v7 }
  0xfe   : > { %v5478_v55 = vpop.f32.mrf.mxu0 }
  0xff   : > { %v731_v58 = vpack.c.bf16 %v5478_v55, %v5477_v53  ;;  %v1410_v53 = vand.u32 15, %v1356_v29  ;;  %v9274_v29 = vmov 0 }
 0x100   : > { %v676_v56 = vpop.f32.mrf.mxu0 }
 0x101   : > { %v730_v57 = vpack.c.bf16 %v676_v56, %v673_v54  ;;  %v1396_v54 = vand.u32 15, %v1354_v40  ;;  %v4999_v56 = vcombine.low %v6147_v44, %v6150_v45  ;;  %vm6385_vm10 = vcmp.lt.s32.totalorder %v1410_v53, 15 }
 0x102   : > { %v5481_v59 = vpop.f32.mrf.mxu0  ;;  %v1383_v44 = vadd.s32 240, %v6087_v13 }
 0x103   : > { %5509 = vmatprep.mubr.msk.bf16.mxu1 %vm9060_vm2, %v730_v57  ;;  %5543 = vmatprep.mubr.msk.bf16.mxu0 %vm9060_vm2, %v730_v57  ;;  %v1543_v57 = vand.u32 15, %v1375_v42  ;;  %vm6261_vm11 = vcmp.lt.s32.totalorder %v1396_v54, 15  ;;  %vm6345_vm5 = vcmp.ne.s16.totalorder %v4999_v56, 0 }
 0x104   : > { %v689_v60 = vpop.f32.mrf.mxu0  ;;  %5510 = vmatmul.mubr.msk.bf16.gmra.mxu1 %vm9060_vm2, %v731_v58  ;;  %5544 = vmatmul.mubr.msk.bf16.gmra.mxu0 %vm9060_vm2, %v731_v58 }
 0x105   : > { %vm6270_vm12 = vcmp.gt.s32.totalorder %v1543_v57, 0 }
 0x106   : > { %v5482_v61 = vpop.f32.mrf.mxu0  ;;  %vm2023_vm7 = vmpackc.low %vm6270_vm12, %vm6270_vm12 }
 0x107   : > { %v733_v0 = vpack.c.bf16 %v5482_v61, %v5481_v59  ;;  %v5000_v61 = vcombine.low %v6171_v49, %v6150_v45  ;;  %v6315_v41 = vsel %vm2023_vm7, 65537, %v9036_v7 }
 0x108   : > { %v692_v62 = vpop.f32.mrf.mxu0 }
 0x109   : > { %v732_v63 = vpack.c.bf16 %v692_v62, %v689_v60  ;;  %v6203_v60 = vsel %vm9056_vm1, %v5061_v10, 0  ;;  %v1557_v62 = vand.u32 15, %v1377_v47  ;;  %vm6375_vm8 = vcmp.ne.s16.totalorder %v5000_v61, 0 }
 0x10a   : > { %v5485_v1 = vpop.f32.mrf.mxu0 }
 0x10b   : > { %5513 = vmatprep.mubr.msk.bf16.mxu1 %vm9060_vm2, %v732_v63  ;;  %5547 = vmatprep.mubr.msk.bf16.mxu0 %vm9060_vm2, %v732_v63  ;;  %v6213_v63 = vld [vmem:[%s9017_s4] ss:$0 sm:$0xff]  ;;  %vm6279_vm15 = vcmp.gt.s32.totalorder %v1557_v62, 0 }
 0x10c   : > { %v705_v2 = vpop.f32.mrf.mxu0  ;;  %5514 = vmatmul.mubr.msk.bf16.gmra.mxu1 %vm9060_vm2, %v733_v0  ;;  %5548 = vmatmul.mubr.msk.bf16.gmra.mxu0 %vm9060_vm2, %v733_v0  ;;  %v5001_v0 = vcombine.low %v6186_v52, %v6150_v45 }
 0x10e   : > { %v5486_v3 = vpop.f32.mrf.mxu0  ;;  %vm6480_vm7 = vcmp.ne.s16.totalorder %v5001_v0, 0 }
 0x10f   : > { %v735_v6 = vpack.c.bf16 %v5486_v3, %v5485_v1  ;;  %v6223_v1 = vsel %vm2009_vm14, 65537, %v9036_v7  ;;  %v6239_v3 = vsel %vm2013_vm3, 65537, %v9036_v7  ;;  %vm1904_vm14 = vcmask 1040384   ;;  %vm2025_vm3 = vmpackc.low %vm6279_vm15, %vm6279_vm15 }
 0x110   : > { %v708_v4 = vpop.f32.mrf.mxu0  ;;  %v5002_v22 = vcombine.low %v6223_v1, %v6150_v45  ;;  %v5004_v24 = vcombine.low %v6239_v3, %v6150_v45  ;;  %v6328_v47 = vsel %vm2025_vm3, 65537, %v9036_v7  ;;  %vm6381_vm6 = vmand %vm1904_vm14, %vm9058_vm13 }
 0x111   : > { %v734_v5 = vpack.c.bf16 %v708_v4, %v705_v2  ;;  %v6231_v2 = vsel %vm2011_vm0, 65537, %v9036_v7  ;;  %vm2713_vm0 = vmpackc.low %vm6261_vm11, %vm6261_vm11  ;;  %v9275_v29 = vsel %vm6381_vm6, 4294967295, %v9274_v29 }
 0x112   : > { %v5003_v23 = vcombine.low %v6231_v2, %v6150_v45  ;;  %v6323_v42 = vsel %vm2713_vm0, 65537, %v9036_v7  ;;  %9276 = vst [vmem:[#allocation6_spill] sm:$0xff] %v9275_v29  ;;  %vm2715_vm11 = vmpackc.low %vm6385_vm10, %vm6385_vm10 }
 0x113   : > { %5517 = vmatprep.mubr.msk.bf16.mxu1 %vm9060_vm2, %v734_v5  ;;  %5551 = vmatprep.mubr.msk.bf16.mxu0 %vm9060_vm2, %v734_v5 }
 0x114   : > { %5518 = vmatmul.mubr.msk.bf16.gmra.mxu1 %vm9060_vm2, %v735_v6  ;;  %5552 = vmatmul.mubr.msk.bf16.gmra.mxu0 %vm9060_vm2, %v735_v6  ;;  %v6251_v6 = vsel %vm2015_vm4, 65537, %v9036_v7  ;;  %vm6357_vm4 = vcmp.gt.s32.totalorder %v1389_v38, 0 }
 0x115   : > { %5557 = vmatprep.mubr.bf16.mxu1 %v9036_v7  ;;  %5591 = vmatprep.mubr.bf16.mxu0 %v9036_v7  ;;  %v5005_v27 = vcombine.low %v6251_v6, %v6150_v45  ;;  %vm3108_vm9 = vmpackc.low %vm6357_vm4, %vm6357_vm4 }
 0x19c   : > { %v5491_v43 = vpop.f32.mrf.mxu1 }
 0x19d   : > { %v960_v58 = vmul.f32 %v5491_v43, %v6163_v48 }
 0x19e   : > { %v824_v51 = vpop.f32.mrf.mxu1 }
 0x19f   : > { %v958_v55 = vmul.f32 %v6163_v48, %v824_v51  ;;  %v999_v16 = vadd.f32 %v6213_v63, %v960_v58  ;;  %v6334_v51 = vld [vmem:[%s9021_s8 + $0x10] sm:$0xf] }
 0x1a0   : > { %v5492_v59 = vpop.f32.mrf.mxu1 }
 0x1a1   : > { %v961_v4 = vmul.f32 %v5492_v59, %v6163_v48  ;;  %v997_v10 = vadd.f32 %v6213_v63, %v958_v55  ;;  %v1031_v34 = vmax.f32 %v999_v16, 0.0  ;;  %v9266_v59 = vmov 0 }
 0x1a2   : > { %v827_v5 = vpop.f32.mrf.mxu1  ;;  %v9267_v59 = vsel %vm6345_vm5, 4294967295, %v9266_v59 }
 0x1a3   : > { %v959_v12 = vmul.f32 %v6163_v48, %v827_v5  ;;  %v1000_v17 = vadd.f32 %v6213_v63, %v961_v4  ;;  %v1029_v30 = vmax.f32 %v997_v10, 0.0  ;;  %9268 = vst [vmem:[#allocation4_spill] sm:$0xff] %v9267_v59 }
 0x1a4   : > { %v5495_v18 = vpop.f32.mrf.mxu1 }
 0x1a5   : > { %v998_v21 = vadd.f32 %v6213_v63, %v959_v12  ;;  %v1032_v25 = vmax.f32 %v1000_v17, 0.0  ;;  %v964_v35 = vmul.f32 %v5495_v18, %v6163_v48  ;;  %v1358_v12 = vadd.s32 40, %v6087_v13 }
 0x1a6   : > { %v840_v26 = vpop.f32.mrf.mxu1 }
 0x1a7   : > { %v1030_v31 = vmax.f32 %v998_v21, 0.0  ;;  %v962_v36 = vmul.f32 %v6163_v48, %v840_v26  ;;  %v6325_v43 = vpack.c.bf16 %v1032_v25, %v1031_v34  ;;  %v1003_v62 = vadd.f32 %v6213_v63, %v964_v35 }
 0x1a8   : > { %v5496_v37 = vpop.f32.mrf.mxu1  ;;  %v9271_v21 = vmov 0 }
 0x1a9   : > { %v6311_v39 = vpack.c.bf16 %v1030_v31, %v1029_v30  ;;  %v965_v40 = vmul.f32 %v5496_v37, %v6163_v48  ;;  %9265 = vst [vmem:[#allocation3_spill] sm:$0xff] %v6325_v43  ;;  %v1001_v55 = vadd.f32 %v6213_v63, %v962_v36  ;;  %v9025_v20 = vshrl.u32 %v6325_v43, 16 }
 0x1aa   : > { %v843_v46 = vpop.f32.mrf.mxu1  ;;  %v9272_v21 = vsel %vm6375_vm8, 4294967295, %v9271_v21  ;;  %v1571_v30 = vand.u32 15, %v1379_v50  ;;  %v1035_v34 = vmax.f32 %v1003_v62, 0.0 }
 0x1ab   : > { %9264 = vst [vmem:[#allocation2_spill] sm:$0xff] %v6311_v39  ;;  %v9028_v54 = vshrl.u32 %v6311_v39, 16  ;;  %v1004_v57 = vadd.f32 %v6213_v63, %v965_v40  ;;  %v963_v58 = vmul.f32 %v6163_v48, %v843_v46  ;;  %5558 = vmatmul.mubr.msk.bf16.vlgmr.msra.gmra.mxu1 %vm9060_vm2, %v6311_v39  ;;  %v9029_v18 = vshll.u32 %v6311_v39, 16  ;;  %9273 = vst [vmem:[#allocation5_spill] sm:$0xff] %v9272_v21 }
 0x1ac   : > { %5624 = vmatpush3.bf16.msra.mxu1 %v6203_v60  ;;  %v5499_v4 = vpop.f32.mrf.mxu1  ;;  %5561 = vmatprep.mubr.msk.bf16.mxu1 %vm9060_vm2, %v6325_v43  ;;  %v1381_v60 = vadd.s32 224, %v6087_v13  ;;  %v1033_v25 = vmax.f32 %v1001_v55, 0.0  ;;  %v1424_v46 = vand.u32 15, %v1358_v12  ;;  %vm6427_vm12 = vcmp.gt.s32.totalorder %v1571_v30, 0 }
 0x1ad   : > { %v1002_v56 = vadd.f32 %v6213_v63, %v963_v58  ;;  %5867 = vmatprep.subr.msk.bf16.mxu1 %vm9056_vm1, %v6334_v51  ;;  %v1036_v15 = vmax.f32 %v1004_v57, 0.0  ;;  %v1773_v17 = vrot.slane %v9028_v54, 7  ;;  %v968_v49 = vmul.f32 %v5499_v4, %v6163_v48  ;;  %vm2027_vm0 = vmpackc.low %vm6427_vm12, %vm6427_vm12 }
 0x1ae   : > { %v856_v16 = vpop.f32.mrf.mxu1  ;;  %v1585_v40 = vand.u32 15, %v1381_v60  ;;  %v6407_v57 = vrot.slane %v9025_v20, 7  ;;  %v1360_v58 = vadd.s32 56, %v6087_v13  ;;  %v3183_v60 = vsel %vm9056_vm1, %v6083_v11, 0  ;;  %v6434_v11 = vld [vmem:[%s9021_s8 + $0x14] sm:$0xf] }
 0x1af   : > { %v1034_v26 = vmax.f32 %v1002_v56, 0.0  ;;  %v966_v61 = vmul.f32 %v6163_v48, %v856_v16  ;;  %v1776_v36 = vor.u32 %v9029_v18, %v1773_v17  ;;  %v6399_v50 = vpack.c.bf16 %v1036_v15, %v1035_v34  ;;  %9284 = vst [vmem:[#allocation10_spill] sm:$0xff] %v6434_v11 }
 0x1b0   : > { %v5500_v35 = vpop.f32.mrf.mxu1  ;;  %v1007_v12 = vadd.f32 %v6213_v63, %v968_v49  ;;  %vm6438_vm14 = vcmp.gt.s32.totalorder %v1585_v40, 0  ;;  %v6448_v30 = vsel %vm2715_vm11, 65537, %v9036_v7  ;;  %vm6461_vm15 = vcmp.lt.s32.totalorder %v1424_v46, 15 }
 0x1b1   : > { %v6393_v37 = vpack.c.bf16 %v1034_v26, %v1033_v25  ;;  %v969_v38 = vmul.f32 %v5500_v35, %v6163_v48  ;;  %9280 = vst [vmem:[#allocation8_spill] sm:$0xff] %v6399_v50  ;;  %v6403_v55 = vsel %vm6381_vm6, 0, %v1776_v36  ;;  %v1005_v62 = vadd.f32 %v6213_v63, %v966_v61  ;;  %vm2029_vm3 = vmpackc.low %vm6438_vm14, %vm6438_vm14 }
 0x1b2   : > { %v859_v53 = vpop.f32.mrf.mxu1  ;;  %9281 = vst [vmem:[#allocation9_spill] sm:$0xff] %v6403_v55  ;;  %v2123_v15 = vsel %vm6345_vm5, %v6403_v55, 0  ;;  %v9026_v25 = vshll.u32 %v6325_v43, 16  ;;  %v6456_v61 = vsel %vm3108_vm9, 65537, %v9036_v7  ;;  %v1438_v40 = vand.u32 15, %v1360_v58  ;;  %vm2717_vm4 = vmpackc.low %vm6461_vm15, %vm6461_vm15 }
 0x1b3   : > { %9279 = vst [vmem:[#allocation7_spill] sm:$0xff] %v6393_v37  ;;  %v1008_v4 = vadd.f32 %v6213_v63, %v969_v38  ;;  %v967_v56 = vmul.f32 %v6163_v48, %v859_v53  ;;  %5562 = vmatmul.mubr.msk.bf16.gmra.mxu1 %vm9060_vm2, %v6393_v37  ;;  %5592 = vmatmul.mubr.msk.bf16.vlgmr.msra.gmra.mxu0 %vm9060_vm2, %v2123_v15  ;;  %v1037_v53 = vmax.f32 %v1005_v62, 0.0  ;;  %v9027_v62 = vshrl.u32 %v6393_v37, 16 }
 0x1b4   : > { %v5503_v16 = vpop.f32.mrf.mxu1  ;;  %5565 = vmatprep.mubr.msk.bf16.mxu1 %vm9060_vm2, %v6399_v50  ;;  %v1783_v36 = vor.u32 %v9026_v25, %v6407_v57  ;;  %5658 = vmatpush3.bf16.msra.mxu0 %v3183_v60  ;;  %vm6511_vm10 = vcmp.lt.s32.totalorder %v1438_v40, 15  ;;  %v1362_v26 = vadd.s32 72, %v6087_v13  ;;  %v9030_v20 = vshll.u32 %v6393_v37, 16 }
 0x1b5   : > { %v1006_v34 = vadd.f32 %v6213_v63, %v967_v56  ;;  %v1040_v35 = vmax.f32 %v1008_v4, 0.0  ;;  %5868 = vmatprep.subr.msk.bf16.mxu0 %vm9056_vm1, %v6434_v11  ;;  %v1039_v4 = vmax.f32 %v1007_v12, 0.0  ;;  %v972_v46 = vmul.f32 %v5503_v16, %v6163_v48  ;;  %vm2719_vm11 = vmpackc.low %vm6511_vm10, %vm6511_vm10 }
 0x1b6   : > { %v872_v38 = vpop.f32.mrf.mxu1  ;;  %v6474_v60 = vsel %vm9058_vm13, %v1773_v17, %v1783_v36  ;;  %v1788_v40 = vrot.slane %v9027_v62, 7  ;;  %vm6530_vm9 = vcmp.ne.s16.totalorder %v5002_v22, 0  ;;  %v6551_v1 = vsel %vm2717_vm4, 65537, %v9036_v7 }
 0x1b7   : > { %v1038_v56 = vmax.f32 %v1006_v34, 0.0  ;;  %v970_v15 = vmul.f32 %v6163_v48, %v872_v38  ;;  %9289 = vst [vmem:[#allocation11_spill] sm:$0xff] %v6474_v60  ;;  %v9290_v34 = vmov 0  ;;  %v2124_v12 = vsel %vm6375_vm8, %v6474_v60, 0 }
 0x1b8   : > { %v5504_v58 = vpop.f32.mrf.mxu1  ;;  %v9291_v34 = vsel %vm6480_vm7, 4294967295, %v9290_v34  ;;  %v6496_v0 = vpack.c.bf16 %v1040_v35, %v1039_v4  ;;  %5595 = vmatprep.mubr.msk.bf16.mxu0 %vm9060_vm2, %v2124_v12  ;;  %v1011_v12 = vadd.f32 %v6213_v63, %v972_v46  ;;  %v1364_v49 = vadd.s32 88, %v6087_v13 }
 0x1b9   : > { %9292 = vst [vmem:[#allocation12_spill] sm:$0xff] %v9291_v34  ;;  %v6484_v38 = vpack.c.bf16 %v1038_v56, %v1037_v53  ;;  %v973_v16 = vmul.f32 %v5504_v58, %v6163_v48  ;;  %v6506_v53 = vsel %vm2027_vm0, 65537, %v9036_v7  ;;  %v1009_v56 = vadd.f32 %v6213_v63, %v970_v15 }
 0x1ba   : > { %9294 = vst [vmem:[#allocation14_spill] sm:$0xff] %v6496_v0  ;;  %v875_v36 = vpop.f32.mrf.mxu1  ;;  %v1599_v58 = vand.u32 15, %v1383_v44  ;;  %v9297_v15 = vmov 0  ;;  %v1452_v46 = vand.u32 15, %v1362_v26  ;;  %v6580_v26 = vsel %vm2719_vm11, 65537, %v9036_v7 }
 0x1bb   : > { %9293 = vst [vmem:[#allocation13_spill] sm:$0xff] %v6484_v38  ;;  %v971_v4 = vmul.f32 %v6163_v48, %v875_v36  ;;  %5566 = vmatmul.mubr.msk.bf16.gmra.mxu1 %vm9060_vm2, %v6484_v38  ;;  %v1012_v52 = vadd.f32 %v6213_v63, %v973_v16  ;;  %v9298_v15 = vsel %vm6530_vm9, 4294967295, %v9297_v15  ;;  %v6543_v16 = vsel %vm2029_vm3, 65537, %v9036_v7 }
 0x1bc   : > { %v5507_v25 = vpop.f32.mrf.mxu1  ;;  %5569 = vmatprep.mubr.msk.bf16.mxu1 %vm9060_vm2, %v6496_v0  ;;  %9299 = vst [vmem:[#allocation15_spill] sm:$0xff] %v9298_v15  ;;  %v1791_v36 = vor.u32 %v9030_v20, %v1788_v40  ;;  %v1041_v54 = vmax.f32 %v1009_v56, 0.0  ;;  %vm6560_vm12 = vcmp.gt.s32.totalorder %v1599_v58, 0  ;;  %vm6596_vm15 = vcmp.lt.s32.totalorder %v1452_v46, 15 }
 0x1bd   : > { %v1010_v44 = vadd.f32 %v6213_v63, %v971_v4  ;;  %v1044_v22 = vmax.f32 %v1012_v52, 0.0  ;;  %v9031_v4 = vshrl.u32 %v6399_v50, 16  ;;  %v1043_v52 = vmax.f32 %v1011_v12, 0.0  ;;  %vm2031_vm14 = vmpackc.low %vm6560_vm12, %vm6560_vm12 }
 0x1be   : > { %v888_v62 = vpop.f32.mrf.mxu1  ;;  %v6566_v20 = vsel %vm9058_vm13, %v6407_v57, %v1791_v36  ;;  %v976_v17 = vmul.f32 %v5507_v25, %v6163_v48  ;;  %v9033_v25 = vshll.u32 %v6399_v50, 16  ;;  %v1466_v12 = vand.u32 15, %v1364_v49  ;;  %vm2721_vm4 = vmpackc.low %vm6596_vm15, %vm6596_vm15 }
 0x1bf   : > { %v1042_v18 = vmax.f32 %v1010_v44, 0.0  ;;  %9302 = vst [vmem:[#allocation16_spill] sm:$0xff] %v6566_v20  ;;  %v1796_v35 = vrot.slane %v9031_v4, 7  ;;  %v2125_v56 = vsel %vm6480_vm7, %v6566_v20, 0  ;;  %v6582_v57 = vpack.c.bf16 %v1044_v22, %v1043_v52 }
 0x1c0   : > { %v5508_v9 = vpop.f32.mrf.mxu1  ;;  %5596 = vmatmul.mubr.msk.bf16.gmra.mxu0 %vm9060_vm2, %v2125_v56  ;;  %v9032_v52 = vshrl.u32 %v6484_v38, 16  ;;  %vm6608_vm0 = vcmp.ne.s16.totalorder %v5003_v23, 0  ;;  %v9307_v56 = vmov 0  ;;  %vm6619_vm3 = vcmp.ne.s16.totalorder %v5004_v24, 0 }
 0x1c1   : > { %v6571_v10 = vpack.c.bf16 %v1042_v18, %v1041_v54  ;;  %9304 = vst [vmem:[#allocation18_spill] sm:$0xff] %v6582_v57  ;;  %v974_v54 = vmul.f32 %v6163_v48, %v888_v62  ;;  %v977_v44 = vmul.f32 %v5508_v9, %v6163_v48  ;;  %v1015_v62 = vadd.f32 %v6213_v63, %v976_v17 }
 0x1c2   : > { %v891_v18 = vpop.f32.mrf.mxu1  ;;  %v1799_v9 = vor.u32 %v9033_v25, %v1796_v35  ;;  %v9308_v56 = vsel %vm6608_vm0, 4294967295, %v9307_v56  ;;  %v6638_v3 = vsel %vm2031_vm14, 65537, %v9036_v7  ;;  %vm6643_vm10 = vcmp.lt.s32.totalorder %v1466_v12, 15 }
 0x1c3   : > { %9303 = vst [vmem:[#allocation17_spill] sm:$0xff] %v6571_v10  ;;  %v975_v36 = vmul.f32 %v6163_v48, %v891_v18  ;;  %5570 = vmatmul.mubr.msk.bf16.gmra.mxu1 %vm9060_vm2, %v6571_v10  ;;  %v1013_v49 = vadd.f32 %v6213_v63, %v974_v54  ;;  %v1016_v17 = vadd.f32 %v6213_v63, %v977_v44  ;;  %v9309_v54 = vmov 0  ;;  %vm2723_vm11 = vmpackc.low %vm6643_vm10, %vm6643_vm10 }
 0x1c4   : > { %v5511_v46 = vpop.f32.mrf.mxu1  ;;  %5573 = vmatprep.mubr.msk.bf16.mxu1 %vm9060_vm2, %v6582_v57  ;;  %v9310_v54 = vsel %vm6619_vm3, 4294967295, %v9309_v54  ;;  %v6628_v4 = vsel %vm9058_vm13, %v1788_v40, %v1799_v9  ;;  %v1804_v44 = vrot.slane %v9032_v52, 7  ;;  %v1047_v23 = vmax.f32 %v1015_v62, 0.0 }
 0x1c5   : > { %v1014_v18 = vadd.f32 %v6213_v63, %v975_v36  ;;  %9311 = vst [vmem:[#allocation19_spill] sm:$0xff] %v9310_v54  ;;  %9312 = vst [vmem:[#allocation20_spill] sm:$0xff] %v6628_v4  ;;  %v2126_v40 = vsel %vm6530_vm9, %v6628_v4, 0  ;;  %v1045_v9 = vmax.f32 %v1013_v49, 0.0  ;;  %v1048_v52 = vmax.f32 %v1016_v17, 0.0 }
 0x1c6   : > { %v904_v36 = vpop.f32.mrf.mxu1  ;;  %5599 = vmatprep.mubr.msk.bf16.mxu0 %vm9060_vm2, %v2126_v40  ;;  %v9035_v31 = vshll.u32 %v6484_v38, 16  ;;  %v1366_v22 = vadd.s32 104, %v6087_v13  ;;  %v1368_v12 = vadd.s32 120, %v6087_v13  ;;  %v9034_v5 = vshrl.u32 %v6496_v0, 16 }
 0x1c7   : > { %v1046_v25 = vmax.f32 %v1014_v18, 0.0  ;;  %v6660_v49 = vsel %vm2721_vm4, 65537, %v9036_v7  ;;  %v6662_v62 = vpack.c.bf16 %v1048_v52, %v1047_v23  ;;  %v978_v18 = vmul.f32 %v6163_v48, %v904_v36 }
 0x1c8   : > { %v5512_v58 = vpop.f32.mrf.mxu1  ;;  %v1807_v17 = vor.u32 %v9035_v31, %v1804_v44  ;;  %v1812_v33 = vrot.slane %v9034_v5, 7  ;;  %v9038_v32 = vshll.u32 %v6496_v0, 16  ;;  %v1480_v36 = vand.u32 15, %v1366_v22 }
 0x1c9   : > { %v6654_v2 = vpack.c.bf16 %v1046_v25, %v1045_v9  ;;  %9316 = vst [vmem:[#allocation22_spill] sm:$0xff] %v6662_v62  ;;  %v6669_v25 = vsel %vm9056_vm1, %v6334_v51, 0  ;;  %v980_v9 = vmul.f32 %v5511_v46, %v6163_v48  ;;  %v981_v52 = vmul.f32 %v5512_v58, %v6163_v48 }
 0x1ca   : > { %v907_v40 = vpop.f32.mrf.mxu1  ;;  %v6682_v23 = vsel %vm9058_vm13, %v1796_v35, %v1807_v17  ;;  %v1494_v5 = vand.u32 15, %v1368_v12  ;;  %v1815_v31 = vor.u32 %v9038_v32, %v1812_v33  ;;  %vm6697_vm12 = vcmp.ne.s16.totalorder %v5005_v27, 0 }
 0x1cb   : > { %9315 = vst [vmem:[#allocation21_spill] sm:$0xff] %v6654_v2  ;;  %5574 = vmatmul.mubr.msk.bf16.gmra.mxu1 %vm9060_vm2, %v6654_v2  ;;  %9317 = vst [vmem:[#allocation23_spill] sm:$0xff] %v6682_v23  ;;  %v2127_v58 = vsel %vm6608_vm0, %v6682_v23, 0  ;;  %v1020_v7 = vadd.f32 %v6213_v63, %v981_v52  ;;  %v9318_v35 = vmov 0  ;;  %v1370_v17 = vadd.s32 136, %v6087_v13 }
 0x1cc   : > { %v5515_v51 = vpop.f32.mrf.mxu1  ;;  %5577 = vmatprep.mubr.msk.bf16.mxu1 %vm9060_vm2, %v6662_v62  ;;  %v9319_v35 = vsel %vm6697_vm12, 4294967295, %v9318_v35  ;;  %5600 = vmatmul.mubr.msk.bf16.gmra.mxu0 %vm9060_vm2, %v2127_v58  ;;  %v1017_v22 = vadd.f32 %v6213_v63, %v978_v18  ;;  %v979_v12 = vmul.f32 %v6163_v48, %v907_v40  ;;  %vm6708_vm14 = vcmp.ne.s16.totalorder %v5006_v28, 0 }
 0x1cd   : > { %v9320_v52 = vmov 0  ;;  %v9323_v27 = vmov 0   ;;  %v1372_v18 = vadd.s32 152, %v6087_v13  ;;  %v1019_v40 = vadd.f32 %v6213_v63, %v980_v9 }
 0x1ce   : > { %v9321_v52 = vsel %vm6708_vm14, 4294967295, %v9320_v52  ;;  %v920_v6 = vpop.f32.mrf.mxu1  ;;  %v6718_v32 = vsel %vm2723_vm11, 65537, %v9323_v27  ;;  %v6723_v58 = vsel %vm9058_vm13, %v1804_v44, %v1815_v31  ;;  %v9055_v8 = vshrl.u32 %v6571_v10, 16 }
 0x1cf   : > { %9322 = vst [vmem:[#allocation24_spill] sm:$0xff] %v9321_v52  ;;  %9324 = vst [vmem:[#allocation25_spill] sm:$0xff] %v6723_v58  ;;  %v1374_v28 = vadd.s32 168, %v6087_v13  ;;  %v2128_v46 = vsel %vm6619_vm3, %v6723_v58, 0  ;;  %v1018_v24 = vadd.f32 %v6213_v63, %v979_v12  ;;  %vm6731_vm15 = vcmp.lt.s32.totalorder %v1480_v36, 15 }
 0x1d0   : > { %v5516_v29 = vpop.f32.mrf.mxu1  ;;  %vm6735_vm4 = vcmp.lt.s32.totalorder %v1494_v5, 15  ;;  %5603 = vmatprep.mubr.msk.bf16.mxu0 %vm9060_vm2, %v2128_v46  ;;  %v1052_v44 = vmax.f32 %v1020_v7, 0.0  ;;  %v1820_v31 = vrot.slane %v9055_v8, 7  ;;  %v9064_v54 = vshll.u32 %v6571_v10, 16  ;;  %vm2725_vm10 = vmpackc.low %vm6731_vm15, %vm6731_vm15 }
 0x1d1   : > { %v1508_v23 = vand.u32 15, %v1370_v17  ;;  %v1049_v34 = vmax.f32 %v1017_v22, 0.0  ;;  %v1050_v12 = vmax.f32 %v1018_v24, 0.0  ;;  %v9057_v36 = vshrl.u32 %v6582_v57, 16 }
 0x1d2   : > { %v923_v4 = vpop.f32.mrf.mxu1  ;;  %v1522_v11 = vand.u32 15, %v1372_v18  ;;  %v1051_v21 = vmax.f32 %v1019_v40, 0.0  ;;  %v1823_v5 = vor.u32 %v9064_v54, %v1820_v31  ;;  %v982_v20 = vmul.f32 %v6163_v48, %v920_v6 }
 0x1d3   : > { %v1536_v46 = vand.u32 15, %v1374_v28  ;;  %v6747_v7 = vpack.c.bf16 %v1050_v12, %v1049_v34  ;;  %v1828_v8 = vrot.slane %v9057_v36, 7  ;;  %v9063_v17 = vshll.u32 %v6582_v57, 16 }
 0x1d4   : > { %v6752_v22 = vpop.f32.mrf.mxu1  ;;  %v1376_v18 = vadd.s32 184, %v6087_v13  ;;  %v6758_v40 = vpack.c.bf16 %v1052_v44, %v1051_v21  ;;  %v6761_v6 = vsel %vm9058_vm13, %v1812_v33, %v1823_v5  ;;  %v984_v34 = vmul.f32 %v5515_v51, %v6163_v48  ;;  %vm2727_vm13 = vmpackc.low %vm6735_vm4, %vm6735_vm4 }
 0x1d5   : > { %9329 = vst [vmem:[#allocation26_spill] sm:$0xff] %v6747_v7  ;;  %9331 = vst [vmem:[#allocation28_spill] sm:$0xff] %v6761_v6  ;;  %v985_v28 = vmul.f32 %v5516_v29, %v6163_v48  ;;  %v2129_v24 = vsel %vm6697_vm12, %v6761_v6, 0  ;;  %v1831_v12 = vor.u32 %v9063_v17, %v1828_v8  ;;  %5578 = vmatmul.mubr.msk.bf16.gmra.mxu1 %vm9060_vm2, %v6747_v7  ;;  %v9333_v33 = vmov 0 }
 0x1d6   : > { %9330 = vst [vmem:[#allocation27_spill] sm:$0xff] %v6758_v40  ;;  %v9332_v21 = vcombine.low %v6268_v14, %v6150_v45  ;;  %v936_v51 = vpop.f32.mrf.mxu1  ;;  %vm6781_vm1 = vcmp.lt.s32.totalorder %v1508_v23, 15  ;;  %5604 = vmatmul.mubr.msk.bf16.gmra.mxu0 %vm9060_vm2, %v2129_v24  ;;  %v1021_v5 = vadd.f32 %v6213_v63, %v982_v20  ;;  %v983_v14 = vmul.f32 %v6163_v48, %v923_v4 }
 0x1d7   : > { %v1024_v36 = vadd.f32 %v6213_v63, %v985_v28  ;;  %5581 = vmatprep.mubr.msk.bf16.mxu1 %vm9060_vm2, %v6758_v40  ;;  %v6797_v23 = vsel %vm2725_vm10, 65537, %v9323_v27  ;;  %vm9338_vm6 = vsmask.f32 256  ;;  %v9065_v4 = vshrl.u32 %v6654_v2, 16 }
 0x1d8   : > { %vm6775_vm11 = vcmp.ne.s16.totalorder %v9332_v21, 0  ;;  %v6803_v20 = vsel %vm9338_vm6, %v1820_v31, %v1831_v12  ;;  %v9339_v28 = vcombine.low %v6277_v19, %v6150_v45  ;;  %v9340_v24 = vmov 0  ;;  %v6822_v54 = vpop.f32.mrf.mxu1 }
 0x1d9   : > { %v9334_v33 = vsel %vm6775_vm11, 4294967295, %v9333_v33  ;;  %vm6813_vm3 = vcmp.lt.s32.totalorder %v1522_v11, 15  ;;  %v1550_v21 = vand.u32 15, %v1376_v18  ;;  %v1023_v17 = vadd.f32 %v6213_v63, %v984_v34 }
 0x1da   : > { %9335 = vst [vmem:[#allocation29_spill] sm:$0xff] %v9334_v33  ;;  %vm6809_vm2 = vcmp.ne.s16.totalorder %v9339_v28, 0  ;;  %v2130_v31 = vsel %vm6708_vm14, %v6803_v20, 0  ;;  %v1022_v12 = vadd.f32 %v6213_v63, %v983_v14  ;;  %vm6827_vm15 = vcmp.lt.s32.totalorder %v1536_v46, 15  ;;  %v939_v34 = vpop.f32.mrf.mxu1  ;;  %vm9353_vm14 = vmmov %vm9338_vm6 }
 0x1db   : > { %v9341_v24 = vsel %vm6809_vm2, 4294967295, %v9340_v24  ;;  %vm9347_vm10 = vcmask 64512   ;;  %v1836_v11 = vrot.slane %v9065_v4, 7  ;;  %v9068_v18 = vshll.u32 %v6654_v2, 16  ;;  %vm2733_vm4 = vmpackc.low %vm6827_vm15, %vm6827_vm15 }
 0x1dc   : > { %9342 = vst [vmem:[#allocation30_spill] sm:$0xff] %v9341_v24  ;;  %5607 = vmatprep.mubr.msk.bf16.mxu0 %vm9347_vm10, %v2130_v31  ;;  %v6843_v46 = vsel %vm2727_vm13, 65537, %v9323_v27  ;;  %v1053_v14 = vmax.f32 %v1021_v5, 0.0  ;;  %v1056_v28 = vmax.f32 %v1024_v36, 0.0  ;;  %v1054_v29 = vmax.f32 %v1022_v12, 0.0  ;;  %vm9348_vm13 = vmpackc.low %vm6781_vm1, %vm6781_vm1 }
 0x1dd   : > { %v1378_v31 = vadd.s32 200, %v6087_v13  ;;  %v1839_v4 = vor.u32 %v9068_v18, %v1836_v11  ;;  %v6858_v9 = vsel %vm9348_vm13, 65537, %v9323_v27  ;;  %vm6863_vm10 = vcmp.lt.s32.totalorder %v1550_v21, 15  ;;  %vm9356_vm1 = vmpackc.low %vm6813_vm3, %vm6813_vm3 }
 0x1de   : > { %9349 = vst [vmem:[#allocation31_spill] sm:$0xff] %v6858_v9  ;;  %v1055_v5 = vmax.f32 %v1023_v17, 0.0  ;;  %v6867_v12 = vpack.c.bf16 %v1054_v29, %v1053_v14  ;;  %v986_v18 = vmul.f32 %v6163_v48, %v936_v51  ;;  %v1380_v52 = vadd.s32 216, %v6087_v13 }
 0x1df   : > { %v6872_v44 = vsel %vm9353_vm14, %v1828_v8, %v1839_v4  ;;  %v9355_v6 = vshrl.u32 %v6662_v62, 16  ;;  %v9074_v55 = vshll.u32 %v6662_v62, 16  ;;  %v6883_v17 = vsel %vm9356_vm1, 65537, %v9323_v27  ;;  %vm2735_vm1 = vmpackc.low %vm6863_vm10, %vm6863_vm10 }
 0x1e0   : > { %9352 = vst [vmem:[#allocation32_spill] sm:$0xff] %v6867_v12  ;;  %9354 = vst [vmem:[#allocation33_spill] sm:$0xff] %v6872_v44  ;;  %v6885_v51 = vpack.c.bf16 %v1056_v28, %v1055_v5  ;;  %v2131_v8 = vsel %vm6775_vm11, %v6872_v44, 0  ;;  %vm9358_vm14 = vcmask 64512   ;;  %v1564_v29 = vand.u32 15, %v1378_v31 }
 0x1e1   : > { %v1844_v19 = vrot.slane %v9355_v6, 7  ;;  %9357 = vst [vmem:[#allocation34_spill] sm:$0xff] %v6883_v17  ;;  %5582 = vmatmul.mubr.msk.bf16.gmra.mxu1 %vm9358_vm14, %v6867_v12  ;;  %v6893_v6 = vsel %vm2733_vm4, 65537, %v9323_v27  ;;  %vm9360_vm15 = vmmov %vm9358_vm14  ;;  %v1025_v15 = vadd.f32 %v6213_v63, %v986_v18  ;;  %v987_v21 = vmul.f32 %v6163_v48, %v939_v34 }
 0x1e2   : > { %9359 = vst [vmem:[#allocation35_spill] sm:$0xff] %v6893_v6  ;;  %5608 = vmatmul.mubr.msk.bf16.gmra.mxu0 %vm9360_vm15, %v2131_v8  ;;  %v9361_v14 = vcombine.low %v6315_v41, %v6150_v45  ;;  %v9362_v28 = vmov 0  ;;  %v9365_v5 = vcombine.low %v6328_v47, %v6150_v45  ;;  %v9366_v31 = vmov 0  ;;  %5585 = vmatprep.mubr.msk.bf16.mxu1 %vm9358_vm14, %v6885_v51  ;;  %vm9372_vm15 = vmmov %vm9338_vm6 }
 0x1e3   : > { %v1847_v4 = vor.u32 %v9074_v55, %v1844_v19  ;;  %v9368_v8 = vcombine.low %v6150_v45, %v6323_v42  ;;  %v9369_v18 = vmov 0  ;;  %v9077_v47 = vshrl.u32 %v6747_v7, 16 }
 0x1e4   : > { %vm6903_vm3 = vcmp.ne.s16.totalorder %v9361_v14, 0  ;;  %vm6910_vm13 = vcmp.ne.s16.totalorder %v9365_v5, 0  ;;  %v1578_v42 = vand.u32 15, %v1380_v52  ;;  %v1382_v14 = vadd.s32 232, %v6087_v13 }
 0x1e5   : > { %v9363_v28 = vsel %vm6903_vm3, 4294967295, %v9362_v28  ;;  %v9367_v31 = vsel %vm6910_vm13, 4294967295, %v9366_v31  ;;  %vm6917_vm4 = vcmp.ne.s16.totalorder %v9368_v8, 0  ;;  %v6933_v5 = vsel %vm9372_vm15, %v1836_v11, %v1847_v4 }
 0x1e6   : > { %9364 = vst [vmem:[#allocation36_spill] sm:$0xff] %v9363_v28  ;;  %v9370_v18 = vsel %vm6917_vm4, 4294967295, %v9369_v18  ;;  %9373 = vst [vmem:[#allocation38_spill] sm:$0xff] %v6933_v5  ;;  %v1026_v8 = vadd.f32 %v6213_v63, %v987_v21  ;;  %v2132_v55 = vsel %vm6809_vm2, %v6933_v5, 0  ;;  %v1852_v52 = vrot.slane %v9077_v47, 7 }
 0x1e7   : > { %9371 = vst [vmem:[#allocation37_spill] sm:$0xff] %v9370_v18  ;;  %v6946_v34 = vsel %vm2735_vm1, 65537, %v9323_v27  ;;  %vm6948_vm10 = vcmp.lt.s32.totalorder %v1564_v29, 15  ;;  %5611 = vmatprep.mubr.msk.bf16.mxu0 %vm9358_vm14, %v2132_v55  ;;  %v1057_v4 = vmax.f32 %v1025_v15, 0.0  ;;  %v9095_v41 = vshll.u32 %v6747_v7, 16 }
 0x1e8   : > { %v1058_v21 = vmax.f32 %v1026_v8, 0.0  ;;  %v9376_v24 = vcombine.low %v6150_v45, %v6448_v30  ;;  %v9377_v47 = vmov 0  ;;  %v9380_v33 = vcombine.low %v6506_v53, %v6150_v45 }
 0x1e9   : > { %v9381_v55 = vmov 0  ;;  %v9384_v15 = vcombine.low %v6150_v45, %v6551_v1  ;;  %v9385_v8 = vmov 0  ;;  %vm6977_vm6 = vcmp.lt.s32.totalorder %v1578_v42, 15 }
 0x1ea   : > { %vm6958_vm15 = vcmp.ne.s16.totalorder %v9376_v24, 0  ;;  %vm6966_vm1 = vcmp.ne.s16.totalorder %v9380_v33, 0  ;;  %v1592_v24 = vand.u32 15, %v1382_v14  ;;  %v1384_v29 = vadd.s32 248, %v6087_v13 }
 0x1eb   : > { %v9378_v47 = vsel %vm6958_vm15, 4294967295, %v9377_v47  ;;  %v9382_v55 = vsel %vm6966_vm1, 4294967295, %v9381_v55  ;;  %vm6973_vm14 = vcmp.ne.s16.totalorder %v9384_v15, 0  ;;  %v6982_v36 = vpack.c.bf16 %v1058_v21, %v1057_v4 }
 0x1ec   : > { %9379 = vst [vmem:[#allocation39_spill] sm:$0xff] %v9378_v47  ;;  %9383 = vst [vmem:[#allocation40_spill] sm:$0xff] %v9382_v55  ;;  %v9386_v8 = vsel %vm6973_vm14, 4294967295, %v9385_v8  ;;  %v1855_v53 = vor.u32 %v9095_v41, %v1852_v52  ;;  %v9390_v33 = vshrl.u32 %v6758_v40, 16  ;;  %v9099_v1 = vshll.u32 %v6758_v40, 16  ;;  %v7229_v47 = vpop.f32.mrf.mxu0 }
 0x1ed   : > { %9387 = vst [vmem:[#allocation41_spill] sm:$0xff] %v9386_v8  ;;  %v9391_v15 = vshrl.u32 %v6867_v12, 16  ;;  %v9103_v42 = vshll.u32 %v6867_v12, 16  ;;  %v9392_v13 = vcombine.low %v6543_v16, %v6150_v45  ;;  %v9393_v14 = vmov 0  ;;  %9464 = vst [vmem:[#allocation49_spill] sm:$0xff] %v7229_v47 }
 0x1ee   : > { %v1860_v5 = vrot.slane %v9390_v33, 7  ;;  %v9396_v4 = vshll.u32 %v6311_v39, 16  ;;  %vm9397_vm11 = vsmask.f32 7424  ;;  %vm9398_vm9 = vcmask 1047552  }
 0x1ef   : > { %v1868_v44 = vrot.slane %v9391_v15, 7  ;;  %vm6996_vm2 = vcmp.ne.s16.totalorder %v9392_v13, 0  ;;  %vm7004_vm7 = vmand %vm9398_vm9, %vm9397_vm11  ;;  %v9399_v33 = vmov 0  ;;  %vm9401_vm8 = vsmask.f32 256 }
 0x1f0   : > { %v9394_v14 = vsel %vm6996_vm2, 4294967295, %v9393_v14  ;;  %v2548_v21 = vrot.slane %v9396_v4, 1  ;;  %v9400_v33 = vsel %vm7004_vm7, 4294967295, %v9399_v33  ;;  %v7009_v15 = vsel %vm9401_vm8, %v1844_v19, %v1855_v53 }
 0x1f1   : > { %9395 = vst [vmem:[#allocation42_spill] sm:$0xff] %v9394_v14  ;;  %9402 = vst [vmem:[#allocation43_spill] sm:$0xff] %v7009_v15  ;;  %v1863_v41 = vor.u32 %v9099_v1, %v1860_v5  ;;  %vm9403_vm5 = vcmask 64512   ;;  %v9106_v13 = vshrl.u32 %v6982_v36, 16  ;;  %v2133_v4 = vsel %vm6903_vm3, %v7009_v15, 0 }
 0x1f2   : > { %5586 = vmatmul.mubr.msk.bf16.gmra.mxu1 %vm9403_vm5, %v6982_v36  ;;  %v1871_v6 = vor.u32 %v9103_v42, %v1868_v44  ;;  %v9404_v19 = vshrl.u32 %v6885_v51, 16  ;;  %v9405_v17 = vshrl.u32 %v6311_v39, 16  ;;  %vm9406_vm8 = vmmov %vm9403_vm5  ;;  %vm9407_vm5 = vsmask.f32 256 }
 0x1f3   : > { %5612 = vmatmul.mubr.msk.bf16.gmra.mxu0 %vm9406_vm8, %v2133_v4  ;;  %v7028_v9 = vsel %vm9407_vm5, %v1852_v52, %v1863_v41  ;;  %v2615_v16 = vsel %vm7004_vm7, 0, %v2548_v21  ;;  %v7034_v28 = vrot.slane %v9106_v13, 7  ;;  %v9408_v42 = vshll.u32 %v6325_v43, 16  ;;  %vm9409_vm11 = vmmov %vm9407_vm5 }
 0x1f4   : > { %v1876_v53 = vrot.slane %v9404_v19, 7  ;;  %v2549_v1 = vor.u32 %v2548_v21, %v9405_v17  ;;  %v2134_v17 = vsel %vm6910_vm13, %v7028_v9, 0  ;;  %v7045_v41 = vsel %vm9409_vm11, %v1860_v5, %v1871_v6  ;;  %vm9411_vm5 = vmmov %vm9406_vm8 }
 0x1f5   : > { %v2550_v15 = vrot.slane %v9408_v42, 1  ;;  %v9410_v52 = vshll.u32 %v6885_v51, 16  ;;  %v2840_v4 = vsel %vm6917_vm4, %v2615_v16, 0  ;;  %v989_v42 = vmul.f32 %v6822_v54, %v6163_v48  ;;  %5615 = vmatprep.mubr.msk.bf16.mxu0 %vm9406_vm8, %v2134_v17  ;;  %vm9425_vm8 = vmpackc.low %vm6948_vm10, %vm6948_vm10 }
 0x1f6   : > { %5625 = vmatprep.mubr.msk.bf16.mxu1 %vm9411_vm5, %v2840_v4  ;;  %vm9412_vm9 = vsmask.f32 7424  ;;  %v9413_v6 = vcombine.low %v6150_v45, %v6580_v26  ;;  %v9414_v5 = vmov 0  ;;  %v1606_v16 = vand.u32 15, %v1384_v29 }
 0x1f7   : > { %v1879_v21 = vor.u32 %v9410_v52, %v1876_v53  ;;  %v7057_v13 = vsel %vm9412_vm9, %v2549_v1, %v2550_v15  ;;  %v9416_v54 = vcombine.low %v6638_v3, %v6150_v45  ;;  %v9419_v52 = vshrl.u32 %v6325_v43, 16 }
 0x1f8   : > { %vm7062_vm11 = vcmp.ne.s16.totalorder %v9413_v6, 0  ;;  %v9420_v1 = vshll.u32 %v6393_v37, 16  ;;  %v9421_v26 = vcombine.low %v6150_v45, %v6660_v49  ;;  %v9422_v6 = vmov 0 }
 0x1f9   : > { %v9415_v5 = vsel %vm7062_vm11, 4294967295, %v9414_v5  ;;  %vm7069_vm13 = vcmp.ne.s16.totalorder %v9416_v54, 0  ;;  %v2552_v4 = vor.u32 %v2550_v15, %v9419_v52  ;;  %v7090_v3 = vsel %vm9425_vm8, 65537, %v9323_v27 }
 0x1fa   : > { %v2553_v19 = vrot.slane %v9420_v1, 1  ;;  %vm7080_vm9 = vcmp.ne.s16.totalorder %v9421_v26, 0  ;;  %vm7092_vm5 = vcmp.lt.s32.totalorder %v1592_v24, 15  ;;  %v988_v15 = vmul.f32 %v6752_v22, %v6163_v48  ;;  %v7123_v26 = vld [vmem:[%s9021_s8 + $0x18] sm:$0xf] }
 0x1fb   : > { %v9423_v6 = vsel %vm7080_vm9, 4294967295, %v9422_v6  ;;  %v2135_v49 = vsel %vm6966_vm1, %v7045_v41, 0  ;;  %vm9428_vm3 = vsmask.f32 256  ;;  %v9429_v11 = vshll.u32 %v6982_v36, 16  ;;  %9434 = vst [vmem:[#allocation46_spill] sm:$0xff] %v7123_v26 }
 0x1fc   : > { %9424 = vst [vmem:[#allocation44_spill] sm:$0xff] %v9423_v6  ;;  %v7102_v54 = vsel %vm9428_vm3, %v1868_v44, %v1879_v21  ;;  %v2841_v24 = vsel %vm6958_vm15, %v7057_v13, 0  ;;  %vm9430_vm8 = vsmask.f32 7424  ;;  %v9432_v22 = vshrl.u32 %v6393_v37, 16 }
 0x1fd   : > { %v1887_v52 = vor.u32 %v9429_v11, %v7034_v28  ;;  %v7114_v48 = vsel %vm9430_vm8, %v2552_v4, %v2553_v19  ;;  %v9433_v44 = vshll.u32 %v6399_v50, 16  ;;  %v1028_v11 = vadd.f32 %v6213_v63, %v989_v42  ;;  %vm9443_vm7 = vmmov %vm9430_vm8 }
 0x1fe   : > { %9431 = vst [vmem:[#allocation45_spill] sm:$0xff] %v7114_v48  ;;  %v2555_v1 = vor.u32 %v2553_v19, %v9432_v22  ;;  %vm9435_vm3 = vcmask 64512   ;;  %v2842_v4 = vsel %vm6973_vm14, %v7114_v48, 0  ;;  %vm7136_vm10 = vcmp.lt.s32.totalorder %v1606_v16, 15 }
 0x1ff   : > { %v2556_v21 = vrot.slane %v9433_v44, 1  ;;  %5626 = vmatmul.mubr.msk.bf16.vlgmr.msra.gmra.mxu1 %vm9435_vm3, %v2841_v24  ;;  %vm9438_vm1 = vmmov %vm9435_vm3  ;;  %v9439_v42 = vcombine.low %v6456_v61, %v6150_v45  ;;  %v9440_v24 = vmov 0  ;;  %v9444_v19 = vshll.u32 %v6484_v38, 16 }
 0x200   : > { %5692 = vmatpush3.bf16.msra.mxu1 %v6669_v25  ;;  %5629 = vmatprep.mubr.msk.bf16.mxu1 %vm9438_vm1, %v2842_v4  ;;  %v9445_v37 = vcombine.low %v6150_v45, %v6718_v32  ;;  %v9446_v25 = vmov 0  ;;  %v9448_v61 = vcombine.low %v6150_v45, %v6797_v23  ;;  %v9449_v4 = vmov 0 }
 0x201   : > { %vm7145_vm3 = vcmp.ne.s16.totalorder %v9439_v42, 0  ;;  %v7150_v44 = vsel %vm9443_vm7, %v2555_v1, %v2556_v21  ;;  %v2559_v16 = vrot.slane %v9444_v19, 1  ;;  %v5056_v1 = vcombine.low %v6150_v45, %v6946_v34  ;;  %vm9451_vm7 = vmpackc.low %vm6977_vm6, %vm6977_vm6 }
 0x202   : > { %v9441_v24 = vsel %vm7145_vm3, 4294967295, %v9440_v24  ;;  %vm7157_vm8 = vcmp.ne.s16.totalorder %v9445_v37, 0  ;;  %vm7164_vm1 = vcmp.ne.s16.totalorder %v9448_v61, 0  ;;  %v7176_v32 = vsel %vm9451_vm7, 65537, %v9323_v27 }
 0x203   : > { %9442 = vst [vmem:[#allocation47_spill] sm:$0xff] %v9441_v24  ;;  %v9447_v25 = vsel %vm7157_vm8, 4294967295, %v9446_v25  ;;  %v9450_v4 = vsel %vm7164_vm1, 4294967295, %v9449_v4  ;;  %v1027_v37 = vadd.f32 %v6213_v63, %v988_v15  ;;  %vm9452_vm14 = vcmask 64512  }
 0x204   : > { %5616 = vmatmul.mubr.msk.bf16.gmra.mxu0 %vm9452_vm14, %v2135_v49  ;;  %v2136_v23 = vsel %vm6996_vm2, %v7102_v54, 0  ;;  %v5057_v19 = vcombine.low %v6150_v45, %v7090_v3  ;;  %vm9453_vm4 = vcmask 1043456   ;;  %vm9454_vm6 = vmmov %vm9452_vm14  ;;  %vm9455_vm7 = vsmask.f32 256 }
 0x205   : > { %5869 = vmatprep.subr.msk.bf16.mxu1 %vm9453_vm4, %v7123_v26  ;;  %5619 = vmatprep.mubr.msk.bf16.mxu0 %vm9454_vm6, %v2136_v23  ;;  %v7192_v63 = vsel %vm9455_vm7, %v1876_v53, %v1887_v52  ;;  %v9457_v30 = vshrl.u32 %v6399_v50, 16  ;;  %v9458_v49 = vshll.u32 %v6496_v0, 16  ;;  %vm9459_vm14 = vmpackc.low %vm7092_vm5, %vm7092_vm5  ;;  %v1060_v61 = vmax.f32 %v1028_v11, 0.0 }
 0x206   : > { %9456 = vst [vmem:[#allocation48_spill] sm:$0xff] %v7192_v63  ;;  %v2773_v3 = vsel %vm9459_vm14, 65537, %v9323_v27  ;;  %vm2743_vm4 = vmpackc.low %vm7136_vm10, %vm7136_vm10  ;;  %v9460_v53 = vshll.u32 %v6571_v10, 16  ;;  %v5058_v23 = vcombine.low %v6150_v45, %v7176_v32  ;;  %vm9461_vm6 = vsmask.f32 7424 }
 0x207   : > { %v2558_v15 = vor.u32 %v2556_v21, %v9457_v30  ;;  %v2562_v42 = vrot.slane %v9458_v49, 1  ;;  %v9462_v29 = vshrl.u32 %v6484_v38, 16  ;;  %v9463_v22 = vshll.u32 %v6654_v2, 16  ;;  %vm9473_vm14 = vmmov %vm9461_vm6 }
 0x208   : > { %v2565_v52 = vrot.slane %v9460_v53, 1  ;;  %v1059_v53 = vmax.f32 %v1027_v37, 0.0  ;;  %v2137_v21 = vsel %vm7069_vm13, %v7192_v63, 0  ;;  %v5059_v32 = vcombine.low %v6150_v45, %v2773_v3 }
 0x209   : > { %v7215_v30 = vsel %vm9461_vm6, %v2558_v15, %v2559_v16  ;;  %v2561_v49 = vor.u32 %v2559_v16, %v9462_v29  ;;  %v2571_v34 = vrot.slane %v9463_v22, 1  ;;  %v2775_v15 = vsel %vm2743_vm4, 65537, %v9323_v27  ;;  %vm9475_vm4 = vmmov %vm9461_vm6 }
 0x20a   : > { %v2843_v16 = vsel %vm7062_vm11, %v7150_v44, 0  ;;  %v9465_v29 = vshrl.u32 %v6496_v0, 16  ;;  %v9466_v11 = vshll.u32 %v6582_v57, 16  ;;  %v9467_v38 = vshll.u32 %v6747_v7, 16 }
 0x20b   : > { %vm9468_vm5 = vnez %v9267_v59  ;;  %v7243_v27 = vpack.c.bf16 %v1060_v61, %v1059_v53  ;;  %vm9470_vm10 = vcmask 64512   ;;  %v2844_v47 = vsel %vm7080_vm9, %v7215_v30, 0 }
 0x20c   : > { %v2564_v22 = vor.u32 %v2562_v42, %v9465_v29  ;;  %v2568_v37 = vrot.slane %v9466_v11, 1  ;;  %v2577_v50 = vrot.slane %v9467_v38, 1  ;;  %v3117_v3 = vsel %vm9468_vm5, %v6474_v60, 0  ;;  %5630 = vmatmul.mubr.msk.bf16.gmra.mxu1 %vm9470_vm10, %v2843_v16  ;;  %vm9472_vm7 = vmmov %vm9470_vm10  ;;  %v9479_v60 = vld [vmem:[#allocation9_spill] sm:$0xff] }
 0x20d   : > { %9469 = vst [vmem:[#allocation50_spill] sm:$0xff] %v7243_v27  ;;  %v9471_v29 = vshrl.u32 %v6571_v10, 16  ;;  %5633 = vmatprep.mubr.msk.bf16.mxu1 %vm9472_vm7, %v2844_v47  ;;  %v7253_v11 = vsel %vm9473_vm14, %v2561_v49, %v2562_v42  ;;  %v9476_v61 = vshrl.u32 %v6654_v2, 16  ;;  %v9477_v16 = vshll.u32 %v6662_v62, 16  ;;  %vm9478_vm6 = vmmov %vm9472_vm7  ;;  %v9480_v10 = vld [vmem:[#allocation16_spill] sm:$0xff]  ;;  %v9481_v47 = vld [vmem:[#allocation5_spill] sm:$0xff] }
 0x20e   : > { %9474 = vst [vmem:[#allocation51_spill] sm:$0xff] %v7253_v11  ;;  %v7256_v38 = vsel %vm9475_vm4, %v2564_v22, %v2565_v52  ;;  %5620 = vmatmul.mubr.msk.bf16.gmra.mxu0 %vm9478_vm6, %v2137_v21  ;;  %vm9482_vm10 = vnez %v9481_v47  ;;  %v9483_v49 = vshll.u32 %v6758_v40, 16  ;;  %v9484_v22 = vshll.u32 %v6867_v12, 16  ;;  %vm9486_vm7 = vmmov %vm9478_vm6 }
 0x20f   : > { %v2567_v0 = vor.u32 %v2565_v52, %v9471_v29  ;;  %v2573_v53 = vor.u32 %v2571_v34, %v9476_v61  ;;  %v2574_v59 = vrot.slane %v9477_v16, 1  ;;  %v3116_v29 = vsel %vm7145_vm3, %v9479_v60, 0  ;;  %v7273_v61 = vpop.f32.mrf.mxu0 }
 0x210   : > { %v3118_v42 = vsel %vm9482_vm10, %v9480_v10, 0  ;;  %v2580_v52 = vrot.slane %v9483_v49, 1  ;;  %v2583_v2 = vrot.slane %v9484_v22, 1  ;;  %9485 = vst [vmem:[#allocation9_spill] sm:$0xff] %v7273_v61  ;;  %5659 = vmatprep.mubr.msk.bf16.mxu0 %vm9486_vm7, %v3116_v29  ;;  %v9487_v21 = vcombine.low %v6150_v45, %v6843_v46  ;;  %v9492_v10 = vld [vmem:[#allocation31_spill] sm:$0xff] }
 0x211   : > { %v9488_v16 = vmov 0  ;;  %v9491_v60 = vshrl.u32 %v6582_v57, 16  ;;  %v9493_v49 = vcombine.low %v6150_v45, %v9492_v10  ;;  %v9494_v24 = vmov 0 }
 0x212   : > { %vm7279_vm14 = vcmp.ne.s16.totalorder %v9487_v21, 0  ;;  %v9497_v22 = vshrl.u32 %v6747_v7, 16  ;;  %v9498_v61 = vshll.u32 %v6885_v51, 16  ;;  %v9499_v21 = vshll.u32 %v6982_v36, 16  ;;  %v9501_v7 = vld [vmem:[#allocation34_spill] sm:$0xff] }
 0x213   : > { %v9489_v16 = vsel %vm7279_vm14, 4294967295, %v9488_v16  ;;  %v2570_v47 = vor.u32 %v2568_v37, %v9491_v60  ;;  %vm7288_vm4 = vcmp.ne.s16.totalorder %v9493_v49, 0  ;;  %v2845_v60 = vsel %vm7157_vm8, %v7253_v11, 0 }
 0x214   : > { %9490 = vst [vmem:[#allocation52_spill] sm:$0xff] %v9489_v16  ;;  %v9495_v24 = vsel %vm7288_vm4, 4294967295, %v9494_v24  ;;  %v2579_v29 = vor.u32 %v2577_v50, %v9497_v22  ;;  %v2586_v46 = vrot.slane %v9498_v61, 1  ;;  %v2589_v43 = vrot.slane %v9499_v21, 1  ;;  %v9506_v61 = vld [vmem:[#allocation35_spill] sm:$0xff] }
 0x215   : > { %9496 = vst [vmem:[#allocation31_spill] sm:$0xff] %v9495_v24  ;;  %v2846_v10 = vsel %vm7164_vm1, %v7256_v38, 0  ;;  %vm9500_vm6 = vsmask.f32 7424  ;;  %v9502_v22 = vcombine.low %v6150_v45, %v9501_v7  ;;  %v9503_v57 = vmov 0 }
 0x216   : > { %v7305_v49 = vsel %vm9500_vm6, %v2567_v0, %v2568_v37  ;;  %v9507_v21 = vcombine.low %v6150_v45, %v9506_v61  ;;  %v9508_v26 = vmov 0  ;;  %vm7321_vm5 = vcmp.ne.s16.totalorder %v5056_v1, 0  ;;  %vm9515_vm3 = vmmov %vm9500_vm6 }
 0x217   : > { %vm7310_vm7 = vcmp.ne.s16.totalorder %v9502_v22, 0  ;;  %v9511_v39 = vmov 0  ;;  %v9514_v0 = vshrl.u32 %v6867_v12, 16  ;;  %v7328_v7 = vsel %vm9500_vm6, %v2570_v47, %v2571_v34  ;;  %vm9530_vm6 = vmmov %vm9515_vm3 }
 0x218   : > { %v9504_v57 = vsel %vm7310_vm7, 4294967295, %v9503_v57  ;;  %vm7317_vm10 = vcmp.ne.s16.totalorder %v9507_v21, 0  ;;  %v9512_v39 = vsel %vm7321_vm5, 4294967295, %v9511_v39  ;;  %v7331_v22 = vsel %vm9515_vm3, %v2573_v53, %v2574_v59 }
 0x219   : > { %9505 = vst [vmem:[#allocation34_spill] sm:$0xff] %v9504_v57  ;;  %v9509_v26 = vsel %vm7317_vm10, 4294967295, %v9508_v26  ;;  %9513 = vst [vmem:[#allocation53_spill] sm:$0xff] %v9512_v39  ;;  %v2585_v37 = vor.u32 %v2583_v2, %v9514_v0  ;;  %v9517_v58 = vshrl.u32 %v6662_v62, 16  ;;  %vm7335_vm15 = vcmp.ne.s16.totalorder %v5057_v19, 0 }
 0x21a   : > { %9510 = vst [vmem:[#allocation35_spill] sm:$0xff] %v9509_v26  ;;  %9516 = vst [vmem:[#allocation54_spill] sm:$0xff] %v7331_v22  ;;  %v9518_v21 = vmov 0  ;;  %vm7339_vm2 = vcmp.ne.s16.totalorder %v5058_v23, 0  ;;  %v9521_v1 = vmov 0  ;;  %vm7343_vm12 = vcmp.ne.s16.totalorder %v5059_v32, 0  ;;  %v7354_v23 = vpop.f32.mrf.mxu0 }
 0x21b   : > { %v2576_v61 = vor.u32 %v2574_v59, %v9517_v58  ;;  %v9519_v21 = vsel %vm7335_vm15, 4294967295, %v9518_v21  ;;  %v9522_v1 = vsel %vm7339_vm2, 4294967295, %v9521_v1  ;;  %v9524_v12 = vmov 0  ;;  %9529 = vst [vmem:[#allocation58_spill] sm:$0xff] %v7354_v23  ;;  %vm9536_vm2 = vmmov %vm9515_vm3  ;;  %v9578_v23 = vld [vmem:[#allocation29_spill] sm:$0xff] }
 0x21c   : > { %9520 = vst [vmem:[#allocation55_spill] sm:$0xff] %v9519_v21  ;;  %9523 = vst [vmem:[#allocation56_spill] sm:$0xff] %v9522_v1  ;;  %v9525_v12 = vsel %vm7343_vm12, 4294967295, %v9524_v12  ;;  %v2593_v34 = vshll.u32 %v7243_v27, 16  ;;  %v9527_v53 = vshrl.u32 %v6758_v40, 16  ;;  %v9528_v0 = vshrl.u32 %v6982_v36, 16 }
 0x21d   : > { %9526 = vst [vmem:[#allocation57_spill] sm:$0xff] %v9525_v12  ;;  %v5060_v58 = vcombine.low %v6150_v45, %v2775_v15  ;;  %v3102_v19 = vshrl.u32 %v7243_v27, 16  ;;  %v7357_v62 = vsel %vm9515_vm3, %v2576_v61, %v2577_v50  ;;  %v7360_v32 = vsel %vm9530_vm6, %v2579_v29, %v2580_v52  ;;  %vm9534_vm12 = vmmov %vm9515_vm3 }
 0x21e   : > { %v2582_v47 = vor.u32 %v2580_v52, %v9527_v53  ;;  %v2591_v59 = vor.u32 %v2589_v43, %v9528_v0  ;;  %9531 = vst [vmem:[#allocation59_spill] sm:$0xff] %v7360_v32  ;;  %v9532_v48 = vshrl.u32 %v6885_v51, 16  ;;  %v2595_v40 = vrot.slane %v2593_v34, 1  ;;  %v9538_v0 = vld [vmem:[#allocation10_spill] sm:$0xff]  ;;  %vm9541_vm6 = vmmov %vm9536_vm2 }
 0x21f   : > { %vm9533_vm0 = vcmask 64512   ;;  %v7369_v45 = vsel %vm9536_vm2, %v2585_v37, %v2586_v46  ;;  %v3104_v15 = vrot.slane %v3102_v19, 7  ;;  %vm9539_vm15 = vcmask 1043456   ;;  %v7399_v37 = vpop.f32.mrf.mxu0 }
 0x220   : > { %v2588_v14 = vor.u32 %v2586_v46, %v9532_v48  ;;  %5634 = vmatmul.mubr.msk.bf16.gmra.mxu1 %vm9533_vm0, %v2845_v60  ;;  %v7366_v53 = vsel %vm9534_vm12, %v2582_v47, %v2583_v2  ;;  %9537 = vst [vmem:[#allocation61_spill] sm:$0xff] %v7369_v45  ;;  %v3648_v50 = vsel %vm9539_vm15, %v9538_v0, 0  ;;  %vm9540_vm3 = vmmov %vm9533_vm0  ;;  %vm7377_vm5 = vcmp.ne.s16.totalorder %v5060_v58, 0  ;;  %v7387_v46 = vld [vmem:[%s9021_s8 + $0x1c] sm:$0xf]  ;;  %v9563_v47 = vld [vmem:[#allocation23_spill] sm:$0xff] }
 0x221   : > { %9535 = vst [vmem:[#allocation60_spill] sm:$0xff] %v7366_v53  ;;  %5637 = vmatprep.mubr.msk.bf16.mxu1 %vm9540_vm3, %v2846_v10  ;;  %v9543_v48 = vmov 0  ;;  %v3578_v29 = vor.u32 %v3102_v19, %v2595_v40  ;;  %vm9546_vm2 = vmmov %vm9540_vm3  ;;  %v9561_v19 = vld [vmem:[#allocation12_spill] sm:$0xff]  ;;  %v9564_v0 = vld [vmem:[#allocation15_spill] sm:$0xff]  ;;  %vm9598_vm1 = vnez %v9519_v21  ;;  %vm9602_vm8 = vcmask 64512  }
 0x222   : > { %v7375_v52 = vsel %vm9541_vm6, %v2588_v14, %v2589_v43  ;;  %v9544_v48 = vsel %vm7377_vm5, 4294967295, %v9543_v48  ;;  %5660 = vmatmul.mubr.msk.bf16.vlgmr.msra.gmra.mxu0 %vm9546_vm2, %v3117_v3  ;;  %vm9547_vm12 = vmmov %vm9541_vm6  ;;  %v3105_v43 = vor.u32 %v3104_v15, %v2593_v34  ;;  %9550 = vst [vmem:[#allocation63_spill] sm:$0xff] %v7399_v37  ;;  %vm9552_vm6 = vnez %v9400_v33  ;;  %v9571_v14 = vld [vmem:[#allocation33_spill] sm:$0xff]  ;;  %v9574_v58 = vld [vmem:[#allocation38_spill] sm:$0xff] }
 0x223   : > { %9542 = vst [vmem:[#allocation10_spill] sm:$0xff] %v7375_v52  ;;  %v7391_v60 = vsel %vm9547_vm12, %v2591_v59, %v2595_v40  ;;  %vm9551_vm3 = vmmov %vm9546_vm2  ;;  %v7404_v61 = vsel %vm9552_vm6, %v3578_v29, 0  ;;  %5726 = vmatpush3.bf16.msra.mxu0 %v3648_v50  ;;  %vm9553_vm2 = vsmask.f32 256  ;;  %vm9554_vm12 = vcmask 1043456   ;;  %v9567_v29 = vld [vmem:[#allocation28_spill] sm:$0xff] }
 0x224   : > { %9548 = vst [vmem:[#allocation62_spill] sm:$0xff] %v7391_v60  ;;  %5663 = vmatprep.mubr.msk.bf16.mxu0 %vm9551_vm3, %v3118_v42  ;;  %v7420_v33 = vsel %vm9553_vm2, %v7034_v28, %v3105_v43  ;;  %5870 = vmatprep.subr.msk.bf16.mxu0 %vm9554_vm12, %v7387_v46  ;;  %v7451_v42 = vpop.f32.mrf.mxu0  ;;  %v9560_v28 = vld [vmem:[#allocation20_spill] sm:$0xff]  ;;  %vm9562_vm5 = vnez %v9561_v19  ;;  %vm9565_vm3 = vnez %v9564_v0  ;;  %v2847_v50 = vsel %vm7279_vm14, %v7305_v49, 0  ;;  %v9569_v40 = vld [vmem:[#allocation19_spill] sm:$0xff]  ;;  %v9580_v3 = vld [vmem:[#allocation30_spill] sm:$0xff] }
 0x225   : > { %9559 = vst [vmem:[#allocation64_spill] sm:$0xff] %v7451_v42  ;;  %v3119_v59 = vsel %vm9562_vm5, %v9560_v28, 0  ;;  %v3120_v34 = vsel %vm9565_vm3, %v9563_v47, 0  ;;  %vm9566_vm6 = vcmask 64512   ;;  %v2848_v43 = vsel %vm7288_vm4, %v7328_v7, 0  ;;  %v9577_v37 = vld [vmem:[#allocation43_spill] sm:$0xff]  ;;  %vm9603_vm9 = vmmov %vm9602_vm8 }
 0x226   : > { %vm9572_vm3 = vnez %v9319_v35  ;;  %vm9573_vm2 = vmmov %vm9566_vm6  ;;  %v9582_v10 = vld [vmem:[#allocation36_spill] sm:$0xff]  ;;  %v9587_v0 = vld [vmem:[#allocation42_spill] sm:$0xff]  ;;  %v7500_v27 = vpop.f32.mrf.mxu0  ;;  %vm9599_vm14 = vnez %v9522_v1  ;;  %vm9600_vm4 = vnez %v9525_v12  ;;  %vm9604_vm11 = vnez %v9308_v56 }
 0x227   : > { %vm9584_vm7 = vmmov %vm9573_vm2  ;;  %vm9588_vm10 = vnez %v9587_v0  ;;  %v9589_v28 = vld [vmem:[#allocation6_spill] sm:$0xff]  ;;  %9591 = vst [vmem:[#allocation28_spill] sm:$0xff] %v7500_v27  ;;  %vm9608_vm0 = vnez %v9569_v40 }
 0x228   : > { %5638 = vmatmul.mubr.msk.bf16.gmra.mxu1 %vm9566_vm6, %v2847_v50  ;;  %v9575_v50 = vld [vmem:[#allocation24_spill] sm:$0xff]  ;;  %vm9586_vm6 = vnez %v9382_v55  ;;  %vm9590_vm12 = vnez %v9589_v28  ;;  %vm9592_vm5 = vmmov %vm9584_vm7  ;;  %v7549_v47 = vpop.f32.mrf.mxu0 }
 0x229   : > { %5641 = vmatprep.mubr.msk.bf16.mxu1 %vm9573_vm2, %v2848_v43  ;;  %vm9585_vm2 = vnez %v9367_v31  ;;  %v3844_v19 = vsel %vm9590_vm12, %v3104_v15, 0  ;;  %v9594_v43 = vld [vmem:[#allocation45_spill] sm:$0xff]  ;;  %vm9597_vm12 = vnez %v9512_v39  ;;  %9601 = vst [vmem:[#allocation33_spill] sm:$0xff] %v7549_v47  ;;  %vm9607_vm15 = vmmov %vm9602_vm8  ;;  %v9646_v55 = vld [vmem:[#allocation8_spill] sm:$0xff] }
 0x22a   : > { %5664 = vmatmul.mubr.msk.bf16.gmra.mxu0 %vm9584_vm7, %v3119_v59  ;;  %v7505_v59 = vsel %vm7069_vm13, %v3844_v19, 0  ;;  %vm9596_vm7 = vnez %v9509_v26  ;;  %v9605_v15 = vld [vmem:[#allocation25_spill] sm:$0xff]  ;;  %v7567_v2 = vpop.f32.mrf.mxu0  ;;  %v9722_v39 = vld [vmem:[#allocation4_spill] sm:$0xff] }
 0x22b   : > { %5667 = vmatprep.mubr.msk.bf16.mxu0 %vm9592_vm5, %v3120_v34  ;;  %9593 = vst [vmem:[#allocation19_spill] sm:$0xff] %v7505_v59  ;;  %vm9595_vm5 = vnez %v9504_v57  ;;  %v2850_v42 = vsel %vm9596_vm7, %v7357_v62, 0  ;;  %v9606_v19 = vsel %vm9604_vm11, %v9605_v15, 0  ;;  %v3122_v34 = vsel %vm9608_vm0, %v9567_v29, 0  ;;  %9609 = vst [vmem:[#allocation38_spill] sm:$0xff] %v7567_v2 }
 0x22c   : > { %v2849_v28 = vsel %vm9595_vm5, %v7331_v22, 0  ;;  %vm9610_vm5 = vmmov %vm9602_vm8  ;;  %v9614_v2 = vsel %vm9572_vm3, %v6803_v20, 0  ;;  %v5163_v59 = vld [vmem:[%s9021_s8 + $0x20] sm:$0xf] }
 0x230   : > { %5642 = vmatmul.mubr.msk.bf16.gmra.mxu1 %vm9602_vm8, %v2849_v28  ;;  %v7570_v28 = vpop.f32.mrf.mxu0  ;;  %vm9613_vm8 = vmmov %vm9610_vm5 }
 0x231   : > { %5645 = vmatprep.mubr.msk.bf16.mxu1 %vm9603_vm9, %v2850_v42  ;;  %9611 = vst [vmem:[#allocation24_spill] sm:$0xff] %v7570_v28  ;;  %v2851_v42 = vsel %vm9597_vm12, %v7360_v32, 0  ;;  %vm9612_vm9 = vmmov %vm9610_vm5 }
 0x232   : > { %5668 = vmatmul.mubr.msk.bf16.gmra.mxu0 %vm9607_vm15, %v9606_v19  ;;  %v2852_v19 = vsel %vm9598_vm1, %v7366_v53, 0  ;;  %vm9615_vm15 = vmmov %vm9610_vm5  ;;  %v7588_v28 = vpop.f32.mrf.mxu0 }
 0x233   : > { %5671 = vmatprep.mubr.msk.bf16.mxu0 %vm9610_vm5, %v3122_v34  ;;  %vm9616_vm5 = vnez %v9575_v50  ;;  %9617 = vst [vmem:[#allocation43_spill] sm:$0xff] %v7588_v28  ;;  %vm9618_vm0 = vmmov %vm9613_vm8 }
 0x234   : > { %v3124_v34 = vsel %vm9616_vm5, %v9571_v14, 0  ;;  %vm9623_vm5 = vmmov %vm9618_vm0 }
 0x235   : > { %vm9626_vm3 = vmmov %vm9623_vm5 }
 0x236   : > { %vm9629_vm11 = vmmov %vm9626_vm3 }
 0x238   : > { %5646 = vmatmul.mubr.msk.bf16.gmra.mxu1 %vm9612_vm9, %v2851_v42  ;;  %v7591_v42 = vpop.f32.mrf.mxu0  ;;  %vm9620_vm9 = vmmov %vm9618_vm0 }
 0x239   : > { %5649 = vmatprep.mubr.msk.bf16.mxu1 %vm9613_vm8, %v2852_v19  ;;  %9619 = vst [vmem:[#allocation29_spill] sm:$0xff] %v7591_v42  ;;  %v2853_v19 = vsel %vm9599_vm14, %v7369_v45, 0  ;;  %vm9621_vm8 = vnez %v9578_v23 }
 0x23a   : > { %5672 = vmatmul.mubr.msk.bf16.gmra.mxu0 %vm9615_vm15, %v9614_v2  ;;  %v2854_v2 = vsel %vm9600_vm4, %v7375_v52, 0  ;;  %v3125_v47 = vsel %vm9621_vm8, %v9574_v58, 0  ;;  %vm9622_vm15 = vmmov %vm9618_vm0  ;;  %v7608_v42 = vpop.f32.mrf.mxu0  ;;  %vm9637_vm8 = vcmask 1043456  }
 0x23b   : > { %5675 = vmatprep.mubr.msk.bf16.mxu0 %vm9618_vm0, %v3124_v34  ;;  %vm9624_vm0 = vnez %v9580_v3  ;;  %9625 = vst [vmem:[#allocation30_spill] sm:$0xff] %v7608_v42  ;;  %v9636_v42 = vld [vmem:[#allocation46_spill] sm:$0xff] }
 0x23c   : > { %v3126_v34 = vsel %vm9624_vm0, %v9577_v37, 0  ;;  %vm9633_vm0 = vmmov %vm9626_vm3 }
 0x240   : > { %5650 = vmatmul.mubr.msk.bf16.gmra.mxu1 %vm9620_vm9, %v2853_v19  ;;  %v7611_v19 = vpop.f32.mrf.mxu0  ;;  %vm9628_vm9 = vnez %v9544_v48 }
 0x241   : > { %5653 = vmatprep.mubr.msk.bf16.mxu1 %vm9622_vm15, %v2854_v2  ;;  %9627 = vst [vmem:[#allocation36_spill] sm:$0xff] %v7611_v19  ;;  %v2855_v28 = vsel %vm9628_vm9, %v7391_v60, 0  ;;  %vm9630_vm15 = vnez %v9582_v10  ;;  %v9631_v2 = vld [vmem:[#allocation2_spill] sm:$0xff] }
 0x242   : > { %5676 = vmatmul.mubr.msk.bf16.gmra.mxu0 %vm9623_vm5, %v3125_v47  ;;  %v3127_v47 = vsel %vm9630_vm15, %v7028_v9, 0  ;;  %vm9632_vm5 = vmmov %vm9626_vm3  ;;  %v7626_v19 = vpop.f32.mrf.mxu0 }
 0x243   : > { %5679 = vmatprep.mubr.msk.bf16.mxu0 %vm9626_vm3, %v3126_v34  ;;  %v3128_v34 = vsel %vm9585_vm2, %v7045_v41, 0  ;;  %9634 = vst [vmem:[#allocation6_spill] sm:$0xff] %v7626_v19  ;;  %vm9635_vm3 = vmmov %vm9633_vm0  ;;  %v9641_v19 = vld [vmem:[#allocation7_spill] sm:$0xff] }
 0x244   : > { %v7631_v27 = vpop.f32.mrf.mxu0 }
 0x245   : > { %9638 = vst [vmem:[#allocation45_spill] sm:$0xff] %v7631_v27 }
 0x248   : > { %5654 = vmatmul.mubr.msk.bf16.gmra.mxu1 %vm9629_vm11, %v2855_v28  ;;  %v3912_v28 = vsel %vm9637_vm8, %v9636_v42, 0  ;;  %vm9640_vm11 = vmmov %vm9633_vm0  ;;  %v3130_v42 = vsel %vm9588_vm10, %v7192_v63, 0  ;;  %v9659_v63 = vld [vmem:[#allocation17_spill] sm:$0xff] }
 0x249   : > { %5693 = vmatprep.mubr.msk.bf16.mxu1 %vm9632_vm5, %v9631_v2  ;;  %v9639_v2 = vld [vmem:[#allocation3_spill] sm:$0xff]  ;;  %vm9642_vm5 = vmmov %vm9633_vm0 }
 0x24a   : > { %5680 = vmatmul.mubr.msk.bf16.gmra.mxu0 %vm9633_vm0, %v3127_v47  ;;  %v3129_v47 = vsel %vm9586_vm6, %v7102_v54, 0  ;;  %vm9649_vm6 = vmmov %vm9633_vm0 }
 0x24b   : > { %5683 = vmatprep.mubr.msk.bf16.mxu0 %vm9635_vm3, %v3128_v34  ;;  %v7648_v34 = vpop.f32.mrf.mxu0  ;;  %vm9644_vm3 = vmmov %vm9633_vm0 }
 0x24c   : > { %9643 = vst [vmem:[#allocation25_spill] sm:$0xff] %v7648_v34  ;;  %v9656_v34 = vld [vmem:[#allocation14_spill] sm:$0xff] }
 0x24d   : > { %v7651_v27 = vpop.f32.mrf.mxu0 }
 0x24e   : > { %9645 = vst [vmem:[#allocation2_spill] sm:$0xff] %v7651_v27 }
 0x24f   : > { %v7662_v0 = vpop.f32.mrf.mxu0 }
 0x250   : > { %5694 = vmatmul.mubr.msk.bf16.vlgmr.msra.gmra.mxu1 %vm9640_vm11, %v9639_v2  ;;  %vm9647_vm11 = vmmov %vm9633_vm0  ;;  %9651 = vst [vmem:[#allocation46_spill] sm:$0xff] %v7662_v0 }
 0x251   : > { %5760 = vmatpush3.bf16.msra.mxu1 %v3912_v28  ;;  %5697 = vmatprep.mubr.msk.bf16.mxu1 %vm9633_vm0, %v9641_v19  ;;  %v9648_v28 = vld [vmem:[#allocation13_spill] sm:$0xff]  ;;  %v7669_v27 = vpop.f32.mrf.mxu0 }
 0x252   : > { %5684 = vmatmul.mubr.msk.bf16.gmra.mxu0 %vm9642_vm5, %v3129_v47  ;;  %5871 = vmatprep.subr.msk.bf16.mxu1 %vm9637_vm8, %v5163_v59  ;;  %v9650_v47 = vsel %vm7069_vm13, %v7420_v33, 0  ;;  %vm9652_vm5 = vnez %v9370_v18  ;;  %vm9654_vm8 = vmmov %vm9633_vm0  ;;  %9655 = vst [vmem:[#allocation3_spill] sm:$0xff] %v7669_v27  ;;  %v9671_v18 = vld [vmem:[#allocation21_spill] sm:$0xff] }
 0x253   : > { %5687 = vmatprep.mubr.msk.bf16.mxu0 %vm9644_vm3, %v3130_v42  ;;  %v9653_v42 = vsel %vm9652_vm5, %v7057_v13, 0  ;;  %vm9657_vm3 = vmmov %vm9633_vm0  ;;  %v7682_v13 = vpop.f32.mrf.mxu0 }
 0x254   : > { %vm9660_vm13 = vmmov %vm9633_vm0  ;;  %9664 = vst [vmem:[#allocation7_spill] sm:$0xff] %v7682_v13 }
 0x255   : > { %vm9667_vm5 = vmmov %vm9633_vm0  ;;  %v7689_v27 = vpop.f32.mrf.mxu0 }
 0x256   : > { %9668 = vst [vmem:[#allocation8_spill] sm:$0xff] %v7689_v27  ;;  %v9680_v27 = vld [vmem:[#allocation22_spill] sm:$0xff] }
 0x257   : > { %v7700_v13 = vpop.f32.mrf.mxu0 }
 0x258   : > { %5698 = vmatmul.mubr.msk.bf16.gmra.mxu1 %vm9647_vm11, %v9646_v55  ;;  %9675 = vst [vmem:[#allocation13_spill] sm:$0xff] %v7700_v13 }
 0x259   : > { %5701 = vmatprep.mubr.msk.bf16.mxu1 %vm9649_vm6, %v9648_v28  ;;  %vm9658_vm6 = vcmask 1043456  }
 0x25a   : > { %5688 = vmatmul.mubr.msk.bf16.gmra.mxu0 %vm9633_vm0, %v9650_v47  ;;  %v4110_v17 = vsel %vm9658_vm6, %v7387_v46, 0  ;;  %v9661_v47 = vld [vmem:[#allocation39_spill] sm:$0xff]  ;;  %v9669_v46 = vld [vmem:[#allocation18_spill] sm:$0xff]  ;;  %vm9672_vm6 = vmmov %vm9633_vm0 }
 0x25b   : > { %5727 = vmatprep.mubr.msk.bf16.mxu0 %vm9654_vm8, %v9653_v42  ;;  %vm9662_vm11 = vnez %v9661_v47  ;;  %vm9665_vm8 = vnez %v9386_v8  ;;  %v9682_v8 = vld [vmem:[#allocation26_spill] sm:$0xff] }
 0x25c   : > { %v9663_v0 = vsel %vm9662_vm11, %v9594_v43, 0  ;;  %v9666_v42 = vsel %vm9665_vm8, %v7150_v44, 0  ;;  %vm9676_vm8 = vnez %v9423_v6  ;;  %v9691_v6 = vld [vmem:[#allocation27_spill] sm:$0xff] }
 0x260   : > { %5702 = vmatmul.mubr.msk.bf16.gmra.mxu1 %vm9657_vm3, %v9656_v34  ;;  %vm9670_vm3 = vmmov %vm9633_vm0 }
 0x261   : > { %5705 = vmatprep.mubr.msk.bf16.mxu1 %vm9660_vm13, %v9659_v63  ;;  %vm9673_vm13 = vnez %v9415_v5 }
 0x262   : > { %5728 = vmatmul.mubr.msk.bf16.vlgmr.msra.gmra.mxu0 %vm9633_vm0, %v9663_v0  ;;  %v9674_v0 = vsel %vm9673_vm13, %v7215_v30, 0  ;;  %vm9684_vm13 = vnez %v9447_v25 }
 0x263   : > { %5731 = vmatprep.mubr.msk.bf16.mxu0 %vm9667_vm5, %v9666_v42  ;;  %5794 = vmatpush3.bf16.msra.mxu0 %v4110_v17  ;;  %v9677_v17 = vsel %vm9676_vm8, %v7253_v11, 0  ;;  %vm9678_vm5 = vmmov %vm9633_vm0  ;;  %v7707_v42 = vpop.f32.mrf.mxu0  ;;  %vm9687_vm8 = vnez %v9450_v4  ;;  %v9693_v11 = vld [vmem:[#allocation32_spill] sm:$0xff] }
 0x264   : > { %9679 = vst [vmem:[#allocation14_spill] sm:$0xff] %v7707_v42 }
 0x265   : > { %v7718_v13 = vpop.f32.mrf.mxu0 }
 0x266   : > { %9686 = vst [vmem:[#allocation17_spill] sm:$0xff] %v7718_v13 }
 0x267   : > { %v7725_v42 = vpop.f32.mrf.mxu0 }
 0x268   : > { %5706 = vmatmul.mubr.msk.bf16.gmra.mxu1 %vm9670_vm3, %v9669_v46  ;;  %vm9681_vm3 = vmmov %vm9633_vm0  ;;  %9690 = vst [vmem:[#allocation39_spill] sm:$0xff] %v7725_v42 }
 0x269   : > { %5709 = vmatprep.mubr.msk.bf16.mxu1 %vm9672_vm6, %v9671_v18  ;;  %vm9683_vm6 = vmmov %vm9633_vm0  ;;  %v7736_v13 = vpop.f32.mrf.mxu0 }
 0x26a   : > { %5732 = vmatmul.mubr.msk.bf16.gmra.mxu0 %vm9633_vm0, %v9674_v0  ;;  %v9685_v0 = vsel %vm9684_vm13, %v7256_v38, 0  ;;  %vm9695_vm13 = vnez %v9489_v16  ;;  %9697 = vst [vmem:[#allocation18_spill] sm:$0xff] %v7736_v13  ;;  %v9713_v16 = vld [vmem:[#allocation47_spill] sm:$0xff] }
 0x26b   : > { %5735 = vmatprep.mubr.msk.bf16.mxu0 %vm9678_vm5, %v9677_v17  ;;  %v9688_v17 = vsel %vm9687_vm8, %v7305_v49, 0  ;;  %vm9689_vm5 = vmmov %vm9633_vm0  ;;  %vm9698_vm8 = vnez %v9495_v24  ;;  %v7743_v42 = vpop.f32.mrf.mxu0  ;;  %v9710_v24 = vld [vmem:[#allocation50_spill] sm:$0xff] }
 0x26c   : > { %9701 = vst [vmem:[#allocation21_spill] sm:$0xff] %v7743_v42 }
 0x26d   : > { %v7754_v13 = vpop.f32.mrf.mxu0 }
 0x26e   : > { %9706 = vst [vmem:[#allocation22_spill] sm:$0xff] %v7754_v13 }
 0x26f   : > { %v7761_v42 = vpop.f32.mrf.mxu0 }
 0x270   : > { %5710 = vmatmul.mubr.msk.bf16.gmra.mxu1 %vm9681_vm3, %v9680_v27  ;;  %vm9692_vm3 = vmmov %vm9633_vm0  ;;  %9709 = vst [vmem:[#allocation26_spill] sm:$0xff] %v7761_v42  ;;  %v5559_v42 = vpop.f32.mrf.mxu1 }
 0x271   : > { %5713 = vmatprep.mubr.msk.bf16.mxu1 %vm9683_vm6, %v9682_v8  ;;  %vm9694_vm6 = vmmov %vm9633_vm0  ;;  %v7774_v13 = vpop.f32.mrf.mxu0 }
 0x272   : > { %5736 = vmatmul.mubr.msk.bf16.gmra.mxu0 %vm9633_vm0, %v9685_v0  ;;  %v9696_v0 = vsel %vm9695_vm13, %v7328_v7, 0  ;;  %vm9704_vm13 = vnez %v9504_v57  ;;  %9717 = vst [vmem:[#allocation27_spill] sm:$0xff] %v7774_v13  ;;  %v2211_v26 = vpop.f32.mrf.mxu1  ;;  %v9728_v13 = vld [vmem:[#allocation5_spill] sm:$0xff] }
 0x273   : > { %5739 = vmatprep.mubr.msk.bf16.mxu0 %vm9689_vm5, %v9688_v17  ;;  %v9699_v17 = vsel %vm9698_vm8, %v7331_v22, 0  ;;  %vm9700_vm5 = vmmov %vm9633_vm0  ;;  %v9712_v22 = vld [vmem:[#allocation11_spill] sm:$0xff] }
 0x278   : > { %5714 = vmatmul.mubr.msk.bf16.gmra.mxu1 %vm9692_vm3, %v9691_v6  ;;  %vm9702_vm3 = vmmov %vm9633_vm0 }
 0x279   : > { %5717 = vmatprep.mubr.msk.bf16.mxu1 %vm9694_vm6, %v9693_v11  ;;  %vm9703_vm6 = vmmov %vm9633_vm0 }
 0x27a   : > { %5740 = vmatmul.mubr.msk.bf16.gmra.mxu0 %vm9633_vm0, %v9696_v0  ;;  %v9705_v0 = vsel %vm9704_vm13, %v7357_v62, 0  ;;  %vm9715_vm13 = vmmov %vm9633_vm0 }
 0x27b   : > { %5743 = vmatprep.mubr.msk.bf16.mxu0 %vm9700_vm5, %v9699_v17  ;;  %v9707_v17 = vsel %vm9596_vm7, %v7360_v32, 0  ;;  %vm9708_vm5 = vmmov %vm9633_vm0 }
 0x280   : > { %5718 = vmatmul.mubr.msk.bf16.gmra.mxu1 %vm9702_vm3, %v6885_v51  ;;  %vm9711_vm3 = vmmov %vm9633_vm0 }
 0x281   : > { %5721 = vmatprep.mubr.msk.bf16.mxu1 %vm9703_vm6, %v6982_v36  ;;  %vm9714_vm6 = vnez %v9713_v16 }
 0x282   : > { %5744 = vmatmul.mubr.msk.bf16.gmra.mxu0 %vm9633_vm0, %v9705_v0  ;;  %v3845_v57 = vsel %vm9714_vm6, %v9712_v22, 0  ;;  %v9716_v0 = vsel %vm9597_vm12, %v7366_v53, 0  ;;  %v7782_v22 = vpop.f32.mrf.mxu0  ;;  %v9724_v53 = vld [vmem:[#allocation16_spill] sm:$0xff]  ;;  %vm9726_vm6 = vmmov %vm9633_vm0 }
 0x283   : > { %5747 = vmatprep.mubr.msk.bf16.mxu0 %vm9708_vm5, %v9707_v17  ;;  %v9718_v17 = vsel %vm9598_vm1, %v7369_v45, 0  ;;  %vm9719_vm5 = vmmov %vm9633_vm0  ;;  %9721 = vst [vmem:[#allocation32_spill] sm:$0xff] %v7782_v22 }
 0x284   : > { %vm9730_vm1 = vmmov %vm9719_vm5  ;;  %v7798_v22 = vpop.f32.mrf.mxu0 }
 0x285   : > { %9733 = vst [vmem:[#allocation50_spill] sm:$0xff] %v7798_v22 }
 0x288   : > { %5722 = vmatmul.mubr.msk.bf16.gmra.mxu1 %vm9711_vm3, %v9710_v24  ;;  %vm9720_vm3 = vcmask 1043456  }
 0x289   : > { %5761 = vmatprep.mubr.msk.bf16.mxu1 %vm9715_vm13, %v3845_v57  ;;  %v4368_v16 = vsel %vm9720_vm3, %v5163_v59, 0  ;;  %v5560_v57 = vpop.f32.mrf.mxu1  ;;  %vm9723_vm13 = vnez %v9722_v39  ;;  %v9731_v59 = vsel %vm9599_vm14, %v7375_v52, 0  ;;  %v9734_v39 = vsel %vm9600_vm4, %v7391_v60, 0  ;;  %vm9735_vm3 = vmmov %vm9730_vm1 }
 0x28a   : > { %5748 = vmatmul.mubr.msk.bf16.gmra.mxu0 %vm9633_vm0, %v9716_v0  ;;  %v9725_v32 = vsel %vm9723_vm13, %v9724_v53, 0  ;;  %v9727_v0 = vld [vmem:[#allocation20_spill] sm:$0xff]  ;;  %vm9729_vm0 = vnez %v9728_v13  ;;  %v5593_v53 = vpop.f32.mrf.mxu0  ;;  %vm9739_vm13 = vmmov %vm9735_vm3 }
 0x28b   : > { %5751 = vmatprep.mubr.msk.bf16.mxu0 %vm9719_vm5, %v9718_v17  ;;  %v3847_v21 = vsel %vm9729_vm0, %v9727_v0, 0  ;;  %v2214_v17 = vpop.f32.mrf.mxu1  ;;  %vm9732_vm5 = vmmov %vm9730_vm1  ;;  %v9737_v0 = vld [vmem:[#allocation12_spill] sm:$0xff] }
 0x28c   : > { %v2420_v52 = vpop.f32.mrf.mxu0  ;;  %vm9742_vm0 = vmmov %vm9735_vm3 }
 0x28d   : > { %v7814_v12 = vadd.f32 %v2420_v52, %v2211_v26 }
 0x290   : > { %5762 = vmatmul.mubr.msk.bf16.vlgmr.msra.gmra.mxu1 %vm9726_vm6, %v9725_v32  ;;  %v5563_v32 = vpop.f32.mrf.mxu1 }
 0x291   : > { %5828 = vmatpush3.bf16.msra.mxu1 %v4368_v16  ;;  %5765 = vmatprep.mubr.msk.bf16.mxu1 %vm9730_vm1, %v3847_v21  ;;  %v7805_v16 = vadd.f32 %v5593_v53, %v5559_v42  ;;  %v9736_v21 = vld [vmem:[#allocation23_spill] sm:$0xff]  ;;  %vm9738_vm1 = vnez %v9737_v0  ;;  %v9743_v42 = vsel %vm9628_vm9, %v7404_v61, 0  ;;  %vm9749_vm9 = vnez %v9569_v40 }
 0x292   : > { %5752 = vmatmul.mubr.msk.bf16.gmra.mxu0 %vm9732_vm5, %v9731_v59  ;;  %v2227_v13 = vpop.f32.mrf.mxu1  ;;  %v3848_v1 = vsel %vm9738_vm1, %v9736_v21, 0  ;;  %v9740_v59 = vld [vmem:[#allocation15_spill] sm:$0xff]  ;;  %vm9744_vm5 = vmmov %vm9742_vm0  ;;  %vm9746_vm1 = vnez %v9308_v56  ;;  %v9750_v48 = vsel %vm9749_vm9, %v6803_v20, 0 }
 0x293   : > { %5755 = vmatprep.mubr.msk.bf16.mxu0 %vm9735_vm3, %v9734_v39  ;;  %vm9741_vm6 = vnez %v9740_v59  ;;  %v5594_v39 = vpop.f32.mrf.mxu0  ;;  %vm9745_vm3 = vmmov %vm9742_vm0 }
 0x294   : > { %v5564_v45 = vpop.f32.mrf.mxu1  ;;  %v3849_v22 = vsel %vm9741_vm6, %v9605_v15, 0  ;;  %v7822_v53 = vadd.f32 %v5594_v39, %v5560_v57  ;;  %vm9751_vm6 = vmmov %vm9742_vm0 }
 0x295   : > { %vm9758_vm9 = vmmov %vm9742_vm0 }
 0x296   : > { %v2230_v60 = vpop.f32.mrf.mxu1 }
 0x298   : > { %5766 = vmatmul.mubr.msk.bf16.gmra.mxu1 %vm9739_vm13, %v3848_v1  ;;  %v2423_v1 = vpop.f32.mrf.mxu0  ;;  %v5567_v21 = vpop.f32.mrf.mxu1  ;;  %vm9748_vm13 = vmmov %vm9742_vm0 }
 0x299   : > { %5769 = vmatprep.mubr.msk.bf16.mxu1 %vm9742_vm0, %v3849_v22  ;;  %v7826_v15 = vadd.f32 %v2423_v1, %v2214_v17  ;;  %v9747_v22 = vsel %vm9746_vm1, %v9567_v29, 0  ;;  %vm9755_vm1 = vmmov %vm9742_vm0 }
 0x29a   : > { %5756 = vmatmul.mubr.msk.bf16.gmra.mxu0 %vm9744_vm5, %v9743_v42  ;;  %v2243_v26 = vpop.f32.mrf.mxu1  ;;  %vm9752_vm5 = vmmov %vm9742_vm0 }
 0x29b   : > { %5795 = vmatprep.mubr.msk.bf16.mxu0 %vm9745_vm3, %v9639_v2  ;;  %v5597_v2 = vpop.f32.mrf.mxu0  ;;  %vm9753_vm3 = vnez %v9319_v35 }
 0x29c   : > { %v5568_v52 = vpop.f32.mrf.mxu1  ;;  %v7842_v17 = vadd.f32 %v5597_v2, %v5563_v32 }
 0x29d   : > { %v2436_v29 = vpop.f32.mrf.mxu0 }
 0x29e   : > { %v2246_v57 = vpop.f32.mrf.mxu1  ;;  %v7844_v0 = vadd.f32 %v2436_v29, %v2227_v13 }
 0x29f   : > { %v5598_v40 = vpop.f32.mrf.mxu0 }
 0x2a0   : > { %5770 = vmatmul.mubr.msk.bf16.gmra.mxu1 %vm9748_vm13, %v9747_v22  ;;  %v5571_v56 = vpop.f32.mrf.mxu1  ;;  %v7846_v39 = vadd.f32 %v5598_v40, %v5564_v45  ;;  %vm9756_vm13 = vnez %v9575_v50 }
 0x2a1   : > { %5773 = vmatprep.mubr.msk.bf16.mxu1 %vm9751_vm6, %v9750_v48  ;;  %v2439_v42 = vpop.f32.mrf.mxu0  ;;  %vm9759_vm6 = vmmov %vm9742_vm0 }
 0x2a2   : > { %5796 = vmatmul.mubr.msk.bf16.vlgmr.msra.gmra.mxu0 %vm9742_vm0, %v9641_v19  ;;  %v2259_v59 = vpop.f32.mrf.mxu1  ;;  %v9754_v19 = vsel %vm9753_vm3, %v9571_v14, 0  ;;  %v7853_v1 = vadd.f32 %v2439_v42, %v2230_v60  ;;  %vm9762_vm3 = vmmov %vm9742_vm0 }
 0x2a3   : > { %5799 = vmatprep.mubr.msk.bf16.mxu0 %vm9752_vm5, %v9646_v55  ;;  %v9757_v55 = vsel %vm9756_vm13, %v9574_v58, 0  ;;  %v5601_v14 = vpop.f32.mrf.mxu0  ;;  %vm9760_vm5 = vnez %v9578_v23  ;;  %vm9765_vm13 = vmmov %vm9742_vm0 }
 0x2a4   : > { %v5572_v20 = vpop.f32.mrf.mxu1  ;;  %v7864_v13 = vadd.f32 %v5601_v14, %v5567_v21  ;;  %v9761_v58 = vsel %vm9760_vm5, %v9577_v37, 0  ;;  %vm9770_vm5 = vmmov %vm9742_vm0 }
 0x2a5   : > { %v2452_v22 = vpop.f32.mrf.mxu0 }
 0x2a6   : > { %v2262_v32 = vpop.f32.mrf.mxu1  ;;  %v7871_v50 = vadd.f32 %v2452_v22, %v2243_v26 }
 0x2a8   : > { %5774 = vmatmul.mubr.msk.bf16.gmra.mxu1 %vm9755_vm1, %v9754_v19  ;;  %v5575_v35 = vpop.f32.mrf.mxu1  ;;  %vm9763_vm1 = vnez %v9580_v3  ;;  %v9773_v19 = vld [vmem:[#allocation40_spill] sm:$0xff] }
 0x2a9   : > { %5777 = vmatprep.mubr.msk.bf16.mxu1 %vm9758_vm9, %v9757_v55  ;;  %vm9766_vm9 = vmmov %vm9742_vm0  ;;  %v9775_v55 = vld [vmem:[#allocation48_spill] sm:$0xff] }
 0x2aa   : > { %5800 = vmatmul.mubr.msk.bf16.gmra.mxu0 %vm9759_vm6, %v9648_v28  ;;  %v2275_v45 = vpop.f32.mrf.mxu1  ;;  %v9764_v28 = vsel %vm9763_vm1, %v7028_v9, 0  ;;  %vm9767_vm6 = vmmov %vm9742_vm0  ;;  %v9768_v9 = vsel %vm9630_vm15, %v7045_v41, 0 }
 0x2ab   : > { %5803 = vmatprep.mubr.msk.bf16.mxu0 %vm9742_vm0, %v9656_v34  ;;  %v5602_v34 = vpop.f32.mrf.mxu0  ;;  %vm9772_vm1 = vmmov %vm9742_vm0 }
 0x2ac   : > { %v5576_v60 = vpop.f32.mrf.mxu1  ;;  %v7882_v23 = vadd.f32 %v5602_v34, %v5568_v52  ;;  %vm9777_vm15 = vmmov %vm9742_vm0 }
 0x2ad   : > { %v2455_v37 = vpop.f32.mrf.mxu0 }
 0x2ae   : > { %v2278_v21 = vpop.f32.mrf.mxu1  ;;  %v7884_v48 = vadd.f32 %v2455_v37, %v2246_v57 }
 0x2af   : > { %v5605_v2 = vpop.f32.mrf.mxu0 }
 0x2b0   : > { %5778 = vmatmul.mubr.msk.bf16.gmra.mxu1 %vm9762_vm3, %v9761_v58  ;;  %v5579_v26 = vpop.f32.mrf.mxu1  ;;  %v7886_v3 = vadd.f32 %v5605_v2, %v5571_v56  ;;  %vm9771_vm3 = vmmov %vm9742_vm0 }
 0x2b1   : > { %5781 = vmatprep.mubr.msk.bf16.mxu1 %vm9765_vm13, %v9764_v28  ;;  %v2468_v29 = vpop.f32.mrf.mxu0  ;;  %vm9780_vm13 = vmmov %vm9742_vm0 }
 0x2b2   : > { %5804 = vmatmul.mubr.msk.bf16.gmra.mxu0 %vm9766_vm9, %v9659_v63  ;;  %v2291_v63 = vpop.f32.mrf.mxu1  ;;  %v7900_v52 = vadd.f32 %v2468_v29, %v2259_v59  ;;  %vm9781_vm9 = vmmov %vm9742_vm0  ;;  %v9785_v29 = vld [vmem:[#allocation37_spill] sm:$0xff] }
 0x2b3   : > { %5807 = vmatprep.mubr.msk.bf16.mxu0 %vm9767_vm6, %v9669_v46  ;;  %v9769_v46 = vsel %vm9585_vm2, %v7102_v54, 0  ;;  %v5606_v41 = vpop.f32.mrf.mxu0  ;;  %vm9774_vm2 = vnez %v9773_v19  ;;  %vm9782_vm6 = vmmov %vm9742_vm0 }
 0x2b4   : > { %v5580_v57 = vpop.f32.mrf.mxu1  ;;  %v7904_v10 = vadd.f32 %v5606_v41, %v5572_v20  ;;  %v9776_v14 = vsel %vm9774_vm2, %v9775_v55, 0  ;;  %vm9791_vm2 = vmmov %vm9772_vm1 }
 0x2b5   : > { %v2471_v40 = vpop.f32.mrf.mxu0 }
 0x2b6   : > { %v2294_v56 = vpop.f32.mrf.mxu1  ;;  %v7906_v42 = vadd.f32 %v2471_v40, %v2262_v32 }
 0x2b7   : > { %v5609_v54 = vpop.f32.mrf.mxu0 }
 0x2b8   : > { %5782 = vmatmul.mubr.msk.bf16.gmra.mxu1 %vm9742_vm0, %v9768_v9  ;;  %v5583_v31 = vpop.f32.mrf.mxu1  ;;  %v9783_v9 = vld [vmem:[#allocation19_spill] sm:$0xff] }
 0x2b9   : > { %5785 = vmatprep.mubr.msk.bf16.mxu1 %vm9770_vm5, %v9769_v46  ;;  %v2484_v32 = vpop.f32.mrf.mxu0  ;;  %vm9788_vm5 = vmmov %vm9772_vm1 }
 0x2ba   : > { %5808 = vmatmul.mubr.msk.bf16.gmra.mxu0 %vm9771_vm3, %v9671_v18  ;;  %v7913_v18 = vadd.f32 %v5609_v54, %v5575_v35  ;;  %v2307_v20 = vpop.f32.mrf.mxu1  ;;  %v7924_v22 = vadd.f32 %v2484_v32, %v2275_v45  ;;  %vm9789_vm3 = vmmov %vm9772_vm1 }
 0x2bb   : > { %5811 = vmatprep.mubr.msk.bf16.mxu0 %vm9772_vm1, %v9680_v27  ;;  %v9779_v27 = vsel %vm9588_vm10, %v7420_v33, 0  ;;  %v5610_v28 = vpop.f32.mrf.mxu0  ;;  %vm9784_vm10 = vmmov %vm9742_vm0  ;;  %vm9786_vm0 = vnez %v9785_v29  ;;  %v9799_v29 = vld [vmem:[#allocation51_spill] sm:$0xff] }
 0x2bc   : > { %v5584_v58 = vpop.f32.mrf.mxu1  ;;  %v7926_v35 = vadd.f32 %v5610_v28, %v5576_v60 }
 0x2bd   : > { %v2487_v37 = vpop.f32.mrf.mxu0 }
 0x2be   : > { %v2310_v34 = vpop.f32.mrf.mxu1  ;;  %v7928_v2 = vadd.f32 %v2487_v37, %v2278_v21 }
 0x2c0   : > { %5786 = vmatmul.mubr.msk.bf16.gmra.mxu1 %vm9777_vm15, %v9776_v14  ;;  %v5587_v33 = vpop.f32.mrf.mxu1  ;;  %v9792_v14 = vld [vmem:[#allocation41_spill] sm:$0xff] }
 0x2c1   : > { %5789 = vmatprep.mubr.msk.bf16.mxu1 %vm9780_vm13, %v9779_v27  ;;  %vm9793_vm15 = vnez %v9792_v14  ;;  %vm9795_vm13 = vmmov %vm9772_vm1 }
 0x2c2   : > { %5812 = vmatmul.mubr.msk.bf16.gmra.mxu0 %vm9781_vm9, %v9682_v8  ;;  %v9787_v8 = vsel %vm9786_vm0, %v9594_v43, 0  ;;  %v2323_v45 = vpop.f32.mrf.mxu1  ;;  %vm9796_vm9 = vmmov %vm9772_vm1 }
 0x2c3   : > { %5815 = vmatprep.mubr.msk.bf16.mxu0 %vm9782_vm6, %v9691_v6  ;;  %v5613_v6 = vpop.f32.mrf.mxu0  ;;  %vm9798_vm6 = vnez %v9415_v5 }
 0x2c4   : > { %v7939_v60 = vadd.f32 %v5613_v6, %v5579_v26  ;;  %v5588_v46 = vpop.f32.mrf.mxu1 }
 0x2c5   : > { %v2500_v21 = vpop.f32.mrf.mxu0 }
 0x2c6   : > { %v7943_v41 = vadd.f32 %v2500_v21, %v2291_v63  ;;  %v2326_v54 = vpop.f32.mrf.mxu1  ;;  %v9794_v63 = vsel %vm9793_vm15, %v7215_v30, 0  ;;  %vm9811_vm15 = vmmov %vm9772_vm1 }
 0x2c7   : > { %v5614_v40 = vpop.f32.mrf.mxu0 }
 0x2c8   : > { %5790 = vmatmul.mubr.msk.bf16.gmra.mxu1 %vm9784_vm10, %v9783_v9  ;;  %v7945_v19 = vadd.f32 %v5614_v40, %v5580_v57  ;;  %v5627_v55 = vpop.f32.mrf.mxu1  ;;  %vm9801_vm10 = vmmov %vm9772_vm1 }
 0x2c9   : > { %5829 = vmatprep.mubr.msk.bf16.mxu1 %vm9788_vm5, %v9787_v8  ;;  %v2503_v43 = vpop.f32.mrf.mxu0  ;;  %v9802_v8 = vld [vmem:[#allocation44_spill] sm:$0xff]  ;;  %vm9805_vm5 = vmmov %vm9772_vm1 }
 0x2ca   : > { %5816 = vmatmul.mubr.msk.bf16.gmra.mxu0 %vm9789_vm3, %v9693_v11  ;;  %v9790_v11 = vsel %vm9662_vm11, %v7150_v44, 0  ;;  %v7952_v26 = vadd.f32 %v2503_v43, %v2294_v56  ;;  %v2943_v59 = vpop.f32.mrf.mxu1  ;;  %vm9797_vm11 = vmmov %vm9772_vm1  ;;  %vm9803_vm0 = vnez %v9802_v8  ;;  %vm9807_vm3 = vnez %v9447_v25 }
 0x2cb   : > { %5819 = vmatprep.mubr.msk.bf16.mxu0 %vm9772_vm1, %v6885_v51  ;;  %v3072_v51 = vadd.f32 %v5627_v55, %v7805_v16  ;;  %v5617_v57 = vpop.f32.mrf.mxu0  ;;  %v3070_v44 = vadd.f32 %v2943_v59, %v7814_v12 }
 0x2cc   : > { %v7962_v47 = vadd.f32 %v5617_v57, %v5583_v31  ;;  %v5628_v16 = vpop.f32.mrf.mxu1 }
 0x2cd   : > { %v2516_v56 = vpop.f32.mrf.mxu0  ;;  %v3073_v30 = vadd.f32 %v5628_v16, %v7822_v53  ;;  %v9804_v53 = vsel %vm9803_vm0, %v7256_v38, 0 }
 0x2ce   : > { %v7967_v27 = vadd.f32 %v2516_v56, %v2307_v20  ;;  %v2946_v28 = vpop.f32.mrf.mxu1 }
 0x2cf   : > { %v5618_v32 = vpop.f32.mrf.mxu0 }
 0x2d0   : > { %5830 = vmatmul.mubr.msk.bf16.vlgmr.msra.gmra.mxu1 %vm9791_vm2, %v9790_v11  ;;  %v7970_v37 = vadd.f32 %v5618_v32, %v5584_v58  ;;  %v5631_v31 = vpop.f32.mrf.mxu1  ;;  %vm9809_vm2 = vnez %v9450_v4 }
 0x2d1   : > { %5833 = vmatprep.mubr.msk.bf16.mxu1 %vm9795_vm13, %v9794_v63  ;;  %v2519_v9 = vpop.f32.mrf.mxu0  ;;  %v3076_v20 = vadd.f32 %v5631_v31, %v7842_v17  ;;  %v9812_v31 = vld [vmem:[#allocation52_spill] sm:$0xff] }
 0x2d2   : > { %5820 = vmatmul.mubr.msk.bf16.gmra.mxu0 %vm9796_vm9, %v6982_v36  ;;  %v3071_v36 = vadd.f32 %v2946_v28, %v7826_v15  ;;  %v7978_v12 = vadd.f32 %v2519_v9, %v2310_v34  ;;  %v9806_v15 = vmov 0   ;;  %v2959_v6 = vpop.f32.mrf.mxu1  ;;  %vm9813_vm13 = vnez %v9812_v31  ;;  %vm9816_vm9 = vmmov %vm9772_vm1 }
 0x2d3   : > { %5823 = vmatprep.mubr.msk.bf16.mxu0 %vm9797_vm11, %v9710_v24  ;;  %v9800_v24 = vsel %vm9798_vm6, %v9799_v29, 0  ;;  %v5621_v58 = vpop.f32.mrf.mxu0  ;;  %v3074_v5 = vadd.f32 %v2959_v6, %v7844_v0  ;;  %vm9819_vm11 = vmmov %vm9772_vm1 }
 0x2d4   : > { %v7987_v21 = vadd.f32 %v5621_v58, %v5587_v33  ;;  %v5632_v43 = vpop.f32.mrf.mxu1  ;;  %v9808_v33 = vsel %vm9807_vm3, %v7305_v49, 0  ;;  %vm9824_vm6 = vmmov %vm9772_vm1 }
 0x2d5   : > { %v2532_v40 = vpop.f32.mrf.mxu0  ;;  %v3077_v17 = vadd.f32 %v5632_v43, %v7846_v39  ;;  %v9810_v39 = vsel %vm9809_vm2, %v7328_v7, 0  ;;  %vm9844_vm3 = vmmov %vm9772_vm1 }
 0x2d6   : > { %v7990_v34 = vadd.f32 %v2532_v40, %v2323_v45  ;;  %v2962_v11 = vpop.f32.mrf.mxu1 }
 0x2d7   : > { %v5622_v55 = vpop.f32.mrf.mxu0  ;;  %v3075_v38 = vadd.f32 %v2962_v11, %v7853_v1 }
 0x2d8   : > { %5834 = vmatmul.mubr.msk.bf16.gmra.mxu1 %vm9801_vm10, %v9800_v24  ;;  %v7993_v14 = vadd.f32 %v5622_v55, %v5588_v46  ;;  %vm9828_vm10 = vmmov %vm9772_vm1 }
 0x2d9   : > { %5837 = vmatprep.mubr.msk.bf16.mxu1 %vm9805_vm5, %v9804_v53  ;;  %v2535_v63 = vpop.f32.mrf.mxu0  ;;  %vm9837_vm5 = vmmov %vm9772_vm1 }
 0x2da   : > { %5824 = vmatmul.mubr.bf16.gmra.mxu0 %v9806_v15  ;;  %v8001_v0 = vadd.f32 %v2535_v63, %v2326_v54 }
 0x2e0   : > { %v5635_v57 = vpop.f32.mrf.mxu1  ;;  %5838 = vmatmul.mubr.msk.bf16.gmra.mxu1 %vm9772_vm1, %v9808_v33 }
 0x2e1   : > { %v3080_v45 = vadd.f32 %v5635_v57, %v7864_v13  ;;  %5841 = vmatprep.mubr.msk.bf16.mxu1 %vm9811_vm15, %v9810_v39  ;;  %v9820_v57 = vld [vmem:[#allocation34_spill] sm:$0xff] }
 0x2e2   : > { %v5661_v46 = vpop.f32.mrf.mxu0  ;;  %v2975_v1 = vpop.f32.mrf.mxu1 }
 0x2e3   : > { %v8009_v59 = vadd.f32 %v5661_v46, %v3072_v51  ;;  %v3078_v25 = vadd.f32 %v2975_v1, %v7871_v50  ;;  %v9814_v51 = vld [vmem:[#allocation54_spill] sm:$0xff] }
 0x2e4   : > { %v3219_v56 = vpop.f32.mrf.mxu0  ;;  %v5636_v49 = vpop.f32.mrf.mxu1  ;;  %v9815_v29 = vsel %vm9813_vm13, %v9814_v51, 0 }
 0x2e5   : > { %v8012_v16 = vadd.f32 %v3219_v56, %v3070_v44  ;;  %v3081_v54 = vadd.f32 %v5636_v49, %v7882_v23  ;;  %v9818_v23 = vsel %vm9698_vm8, %v7357_v62, 0  ;;  %vm9821_vm8 = vnez %v9820_v57 }
 0x2e6   : > { %v5662_v32 = vpop.f32.mrf.mxu0  ;;  %v2978_v13 = vpop.f32.mrf.mxu1 }
 0x2e7   : > { %v8015_v28 = vadd.f32 %v5662_v32, %v3073_v30  ;;  %v3079_v4 = vadd.f32 %v2978_v13, %v7884_v48 }
 0x2e8   : > { %v3222_v7 = vpop.f32.mrf.mxu0  ;;  %v5639_v9 = vpop.f32.mrf.mxu1  ;;  %5842 = vmatmul.mubr.msk.bf16.gmra.mxu1 %vm9816_vm9, %v9815_v29 }
 0x2e9   : > { %v8023_v50 = vadd.f32 %v3222_v7, %v3071_v36  ;;  %v3084_v44 = vadd.f32 %v5639_v9, %v7886_v3  ;;  %5845 = vmatprep.mubr.msk.bf16.mxu1 %vm9819_vm11, %v9818_v23 }
 0x2ea   : > { %v5665_v30 = vpop.f32.mrf.mxu0  ;;  %v2991_v48 = vpop.f32.mrf.mxu1 }
 0x2eb   : > { %v8031_v8 = vadd.f32 %v5665_v30, %v3076_v20  ;;  %v3082_v53 = vadd.f32 %v2991_v48, %v7900_v52  ;;  %v9822_v20 = vld [vmem:[#allocation59_spill] sm:$0xff] }
 0x2ec   : > { %v3235_v58 = vpop.f32.mrf.mxu0  ;;  %v5640_v6 = vpop.f32.mrf.mxu1  ;;  %v9823_v33 = vsel %vm9821_vm8, %v9822_v20, 0  ;;  %v9833_v30 = vld [vmem:[#allocation55_spill] sm:$0xff] }
 0x2ed   : > { %v8034_v40 = vadd.f32 %v3235_v58, %v3074_v5  ;;  %v3085_v36 = vadd.f32 %v5640_v6, %v7904_v10  ;;  %v9826_v10 = vld [vmem:[#allocation60_spill] sm:$0xff]  ;;  %vm9834_vm0 = vnez %v9833_v30 }
 0x2ee   : > { %v5666_v43 = vpop.f32.mrf.mxu0  ;;  %v2994_v3 = vpop.f32.mrf.mxu1  ;;  %v9827_v46 = vsel %vm9596_vm7, %v9826_v10, 0  ;;  %vm9832_vm7 = vmmov %vm9772_vm1 }
 0x2ef   : > { %v8037_v55 = vadd.f32 %v5666_v43, %v3077_v17  ;;  %v3083_v62 = vadd.f32 %v2994_v3, %v7906_v42 }
 0x2f0   : > { %v3238_v11 = vpop.f32.mrf.mxu0  ;;  %v5643_v63 = vpop.f32.mrf.mxu1  ;;  %5846 = vmatmul.mubr.msk.bf16.gmra.mxu1 %vm9824_vm6, %v9823_v33 }
 0x2f1   : > { %v8045_v52 = vadd.f32 %v3238_v11, %v3075_v38  ;;  %v3088_v5 = vadd.f32 %v5643_v63, %v7913_v18  ;;  %5849 = vmatprep.mubr.msk.bf16.mxu1 %vm9828_vm10, %v9827_v46 }
 0x2f2   : > { %v5669_v17 = vpop.f32.mrf.mxu0  ;;  %v3007_v42 = vpop.f32.mrf.mxu1 }
 0x2f3   : > { %v8053_v1 = vadd.f32 %v5669_v17, %v3080_v45  ;;  %v3086_v56 = vadd.f32 %v3007_v42, %v7924_v22  ;;  %v9830_v45 = vld [vmem:[#allocation61_spill] sm:$0xff] }
 0x2f4   : > { %v3251_v49 = vpop.f32.mrf.mxu0  ;;  %v5644_v32 = vpop.f32.mrf.mxu1  ;;  %v9831_v23 = vsel %vm9597_vm12, %v9830_v45, 0  ;;  %vm9841_vm12 = vmmov %vm9772_vm1 }
 0x2f5   : > { %v8056_v13 = vadd.f32 %v3251_v49, %v3078_v25  ;;  %v3089_v38 = vadd.f32 %v5644_v32, %v7926_v35  ;;  %v9835_v35 = vld [vmem:[#allocation10_spill] sm:$0xff] }
 0x2f6   : > { %v5670_v7 = vpop.f32.mrf.mxu0  ;;  %v3010_v18 = vpop.f32.mrf.mxu1  ;;  %v9836_v48 = vsel %vm9834_vm0, %v9835_v35, 0 }
 0x2f7   : > { %v8059_v9 = vadd.f32 %v5670_v7, %v3081_v54  ;;  %v3087_v31 = vadd.f32 %v3010_v18, %v7928_v2 }
 0x2f8   : > { %v3254_v51 = vpop.f32.mrf.mxu0  ;;  %v5647_v29 = vpop.f32.mrf.mxu1  ;;  %5850 = vmatmul.mubr.msk.bf16.gmra.mxu1 %vm9832_vm7, %v9831_v23 }
 0x2f9   : > { %v8067_v22 = vadd.f32 %v3254_v51, %v3079_v4  ;;  %v3092_v25 = vadd.f32 %v5647_v29, %v7939_v60  ;;  %5853 = vmatprep.mubr.msk.bf16.mxu1 %vm9837_vm5, %v9836_v48 }
 0x2fa   : > { %v5673_v54 = vpop.f32.mrf.mxu0  ;;  %v3023_v2 = vpop.f32.mrf.mxu1 }
 0x2fb   : > { %v8075_v58 = vadd.f32 %v5673_v54, %v3084_v44  ;;  %v3090_v6 = vadd.f32 %v3023_v2, %v7943_v41  ;;  %v9839_v44 = vld [vmem:[#allocation62_spill] sm:$0xff] }
 0x2fc   : > { %v3267_v43 = vpop.f32.mrf.mxu0  ;;  %v5648_v3 = vpop.f32.mrf.mxu1  ;;  %v9840_v46 = vsel %vm9599_vm14, %v9839_v44, 0  ;;  %vm4833_vm14 = vcmask 60416  }
 0x2fd   : > { %v8078_v11 = vadd.f32 %v3267_v43, %v3082_v53  ;;  %v3093_v4 = vadd.f32 %v5648_v3, %v7945_v19  ;;  %v9843_v19 = vsel %vm9600_vm4, %v7404_v61, 0 }
 0x2fe   : > { %v5674_v63 = vpop.f32.mrf.mxu0  ;;  %v3026_v60 = vpop.f32.mrf.mxu1 }
 0x2ff   : > { %v8081_v57 = vadd.f32 %v5674_v63, %v3085_v36  ;;  %v3091_v20 = vadd.f32 %v3026_v60, %v7952_v26 }
 0x300   : > { %v3270_v33 = vpop.f32.mrf.mxu0  ;;  %v5651_v39 = vpop.f32.mrf.mxu1  ;;  %5854 = vmatmul.mubr.msk.bf16.gmra.mxu1 %vm9841_vm12, %v9840_v46 }
 0x301   : > { %v8089_v41 = vadd.f32 %v3270_v33, %v3083_v62  ;;  %v3096_v53 = vadd.f32 %v5651_v39, %v7962_v47  ;;  %5857 = vmatprep.mubr.msk.bf16.mxu1 %vm9844_vm3, %v9843_v19 }
 0x302   : > { %v5677_v36 = vpop.f32.mrf.mxu0  ;;  %v3039_v26 = vpop.f32.mrf.mxu1 }
 0x303   : > { %v8097_v42 = vadd.f32 %v5677_v36, %v3088_v5  ;;  %v3094_v49 = vadd.f32 %v3039_v26, %v7967_v27 }
 0x304   : > { %v3283_v32 = vpop.f32.mrf.mxu0  ;;  %v5652_v7 = vpop.f32.mrf.mxu1 }
 0x305   : > { %v8100_v18 = vadd.f32 %v3283_v32, %v3086_v56  ;;  %v3097_v62 = vadd.f32 %v5652_v7, %v7970_v37 }
 0x306   : > { %v5678_v51 = vpop.f32.mrf.mxu0  ;;  %v3042_v47 = vpop.f32.mrf.mxu1 }
 0x307   : > { %v8103_v29 = vadd.f32 %v5678_v51, %v3089_v38  ;;  %v3095_v61 = vadd.f32 %v3042_v47, %v7978_v12 }
 0x308   : > { %v3286_v24 = vpop.f32.mrf.mxu0  ;;  %v5655_v45 = vpop.f32.mrf.mxu1  ;;  %5858 = vmatmul.mubr.bf16.gmra.mxu1 %v9806_v15 }
 0x309   : > { %v8107_v5 = vadd.f32 %v3286_v24, %v3087_v31  ;;  %v3100_v27 = vadd.f32 %v5655_v45, %v7987_v21 }
 0x30a   : > { %v5681_v23 = vpop.f32.mrf.mxu0  ;;  %v3055_v30 = vpop.f32.mrf.mxu1 }
 0x30b   : > { %v8110_v56 = vadd.f32 %v5681_v23, %v3092_v25  ;;  %v3098_v37 = vadd.f32 %v3055_v30, %v7990_v34 }
 0x30c   : > { %v3299_v35 = vpop.f32.mrf.mxu0  ;;  %v5656_v48 = vpop.f32.mrf.mxu1 }
 0x30d   : > { %v8113_v38 = vadd.f32 %v3299_v35, %v3090_v6  ;;  %v3101_v12 = vadd.f32 %v5656_v48, %v7993_v14 }
 0x30e   : > { %v5682_v54 = vpop.f32.mrf.mxu0  ;;  %v3058_v2 = vpop.f32.mrf.mxu1 }
 0x30f   : > { %v8116_v43 = vadd.f32 %v5682_v54, %v3093_v4  ;;  %v3099_v15 = vadd.f32 %v3058_v2, %v8001_v0 }
 0x310   : > { %v3302_v31 = vpop.f32.mrf.mxu0  ;;  %v5695_v21 = vpop.f32.mrf.mxu1 }
 0x311   : > { %v8119_v3 = vadd.f32 %v3302_v31, %v3091_v20  ;;  %v8122_v25 = vadd.f32 %v5695_v21, %v8009_v59 }
 0x312   : > { %v5685_v34 = vpop.f32.mrf.mxu0  ;;  %v3419_v63 = vpop.f32.mrf.mxu1 }
 0x313   : > { %v8124_v60 = vadd.f32 %v5685_v34, %v3096_v53  ;;  %v8127_v6 = vadd.f32 %v3419_v63, %v8012_v16 }
 0x314   : > { %v3315_v14 = vpop.f32.mrf.mxu0  ;;  %v5696_v33 = vpop.f32.mrf.mxu1 }
 0x315   : > { %v8129_v4 = vadd.f32 %v3315_v14, %v3094_v49  ;;  %v8132_v0 = vadd.f32 %v5696_v33, %v8015_v28 }
 0x316   : > { %v5686_v39 = vpop.f32.mrf.mxu0  ;;  %v3422_v20 = vpop.f32.mrf.mxu1 }
 0x317   : > { %v8134_v10 = vadd.f32 %v5686_v39, %v3097_v62  ;;  %v8137_v59 = vadd.f32 %v3422_v20, %v8023_v50 }
 0x318   : > { %v3318_v44 = vpop.f32.mrf.mxu0  ;;  %v5699_v46 = vpop.f32.mrf.mxu1 }
 0x319   : > { %v8139_v53 = vadd.f32 %v3318_v44, %v3095_v61  ;;  %v8142_v16 = vadd.f32 %v5699_v46, %v8031_v8 }
 0x31a   : > { %v5689_v17 = vpop.f32.mrf.mxu0  ;;  %v3435_v19 = vpop.f32.mrf.mxu1 }
 0x31b   : > { %v8144_v36 = vadd.f32 %v5689_v17, %v3100_v27  ;;  %v8147_v28 = vadd.f32 %v3435_v19, %v8034_v40 }
 0x31c   : > { %v3331_v26 = vpop.f32.mrf.mxu0  ;;  %v5700_v49 = vpop.f32.mrf.mxu1 }
 0x31d   : > { %v8149_v32 = vadd.f32 %v3331_v26, %v3098_v37  ;;  %v8152_v50 = vadd.f32 %v5700_v49, %v8037_v55 }
 0x31e   : > { %v5690_v7 = vpop.f32.mrf.mxu0  ;;  %v3438_v62 = vpop.f32.mrf.mxu1 }
 0x31f   : > { %v8154_v51 = vadd.f32 %v5690_v7, %v3101_v12  ;;  %v8157_v8 = vadd.f32 %v3438_v62, %v8045_v52 }
 0x320   : > { %v3334_v47 = vpop.f32.mrf.mxu0  ;;  %v5703_v61 = vpop.f32.mrf.mxu1 }
 0x321   : > { %v8159_v24 = vadd.f32 %v3334_v47, %v3099_v15  ;;  %v8162_v40 = vadd.f32 %v5703_v61, %v8053_v1 }
 0x322   : > { %v8164_v45 = vpop.f32.mrf.mxu0  ;;  %v3451_v27 = vpop.f32.mrf.mxu1 }
 0x323   : > { %v8167_v55 = vadd.f32 %v3451_v27, %v8056_v13 }
 0x324   : > { %v8169_v23 = vpop.f32.mrf.mxu0  ;;  %v5704_v30 = vpop.f32.mrf.mxu1 }
 0x325   : > { %v8172_v37 = vadd.f32 %v5704_v30, %v8059_v9 }
 0x326   : > { %v8174_v52 = vpop.f32.mrf.mxu0  ;;  %v3454_v35 = vpop.f32.mrf.mxu1 }
 0x327   : > { %v8177_v48 = vadd.f32 %v3454_v35, %v8067_v22 }
 0x328   : > { %v8179_v1 = vpop.f32.mrf.mxu0  ;;  %v5707_v12 = vpop.f32.mrf.mxu1 }
 0x329   : > { %v8182_v54 = vadd.f32 %v5707_v12, %v8075_v58 }
 0x32a   : > { %v8184_v13 = vpop.f32.mrf.mxu0  ;;  %v3467_v2 = vpop.f32.mrf.mxu1 }
 0x32b   : > { %v8187_v15 = vadd.f32 %v3467_v2, %v8078_v11 }
 0x32c   : > { %v8189_v9 = vpop.f32.mrf.mxu0  ;;  %v5708_v31 = vpop.f32.mrf.mxu1 }
 0x32d   : > { %v8192_v21 = vadd.f32 %v5708_v31, %v8081_v57 }
 0x32e   : > { %v8194_v22 = vpop.f32.mrf.mxu0  ;;  %v3470_v34 = vpop.f32.mrf.mxu1 }
 0x32f   : > { %v8197_v63 = vadd.f32 %v3470_v34, %v8089_v41 }
 0x330   : > { %v8199_v58 = vpop.f32.mrf.mxu0  ;;  %v5711_v14 = vpop.f32.mrf.mxu1 }
 0x331   : > { %v8202_v33 = vadd.f32 %v5711_v14, %v8097_v42 }
 0x332   : > { %v8204_v11 = vpop.f32.mrf.mxu0  ;;  %v3483_v39 = vpop.f32.mrf.mxu1 }
 0x333   : > { %9845 = vst [vmem:[#allocation11_spill] sm:$0xff] %v8202_v33  ;;  %v8207_v20 = vadd.f32 %v3483_v39, %v8100_v18 }
 0x334   : > { %v8209_v57 = vpop.f32.mrf.mxu0  ;;  %v5712_v44 = vpop.f32.mrf.mxu1 }
 0x335   : > { %9846 = vst [vmem:[#allocation47_spill] sm:$0xff] %v8207_v20  ;;  %v8212_v46 = vadd.f32 %v5712_v44, %v8103_v29  ;;  %v3813_v20 = vadd.f32 %v8164_v45, %v8122_v25  ;;  %v3818_v25 = vadd.f32 %v8194_v22, %v8152_v50 }
 0x336   : > { %v8214_v41 = vpop.f32.mrf.mxu0  ;;  %v3486_v17 = vpop.f32.mrf.mxu1 }
 0x337   : > { %9847 = vst [vmem:[#allocation4_spill] sm:$0xff] %v8212_v46  ;;  %v8217_v19 = vadd.f32 %v3486_v17, %v8107_v5 }
 0x338   : > { %v8219_v42 = vpop.f32.mrf.mxu0  ;;  %v5715_v26 = vpop.f32.mrf.mxu1 }
 0x339   : > { %9848 = vst [vmem:[#allocation16_spill] sm:$0xff] %v8217_v19  ;;  %v8222_v49 = vadd.f32 %v5715_v26, %v8110_v56  ;;  %v8615_v50 = vadd.f32 %v8219_v42, %v8177_v48 }
 0x33a   : > { %v8224_v18 = vpop.f32.mrf.mxu0  ;;  %v3499_v7 = vpop.f32.mrf.mxu1 }
 0x33b   : > { %9849 = vst [vmem:[#allocation20_spill] sm:$0xff] %v8222_v49  ;;  %v8227_v62 = vadd.f32 %v3499_v7, %v8113_v38 }
 0x33c   : > { %v8229_v29 = vpop.f32.mrf.mxu0  ;;  %v5716_v47 = vpop.f32.mrf.mxu1 }
 0x33d   : > { %9850 = vst [vmem:[#allocation5_spill] sm:$0xff] %v8227_v62  ;;  %v8232_v61 = vadd.f32 %v5716_v47, %v8116_v43 }
 0x33e   : > { %v8234_v5 = vpop.f32.mrf.mxu0  ;;  %v3502_v27 = vpop.f32.mrf.mxu1 }
 0x33f   : > { %9851 = vst [vmem:[#allocation23_spill] sm:$0xff] %v8232_v61  ;;  %v8237_v30 = vadd.f32 %v3502_v27, %v8119_v3 }
 0x340   : > { %v8239_v56 = vpop.f32.mrf.mxu0  ;;  %v5719_v35 = vpop.f32.mrf.mxu1 }
 0x341   : > { %9852 = vst [vmem:[#allocation12_spill] sm:$0xff] %v8237_v30  ;;  %v8242_v12 = vadd.f32 %v5719_v35, %v8124_v60  ;;  %v8635_v48 = vadd.f32 %v8239_v56, %v8197_v63  ;;  %v9981_v63 = vld [vmem:[#allocation16_spill] sm:$0xff] }
 0x342   : > { %v8244_v38 = vpop.f32.mrf.mxu0  ;;  %v3515_v2 = vpop.f32.mrf.mxu1 }
 0x343   : > { %9853 = vst [vmem:[#allocation15_spill] sm:$0xff] %v8242_v12  ;;  %9854 = vst [vmem:[#allocation40_spill] sm:$0xff] %v8244_v38  ;;  %v8247_v31 = vadd.f32 %v3515_v2, %v8129_v4 }
 0x344   : > { %v8249_v43 = vpop.f32.mrf.mxu0  ;;  %v5720_v34 = vpop.f32.mrf.mxu1 }
 0x345   : > { %9855 = vst [vmem:[#allocation48_spill] sm:$0xff] %v8247_v31  ;;  %9856 = vst [vmem:[#allocation42_spill] sm:$0xff] %v8249_v43  ;;  %v8252_v14 = vadd.f32 %v5720_v34, %v8134_v10 }
 0x346   : > { %v8254_v3 = vpop.f32.mrf.mxu0  ;;  %v3518_v39 = vpop.f32.mrf.mxu1 }
 0x347   : > { %9857 = vst [vmem:[#allocation19_spill] sm:$0xff] %v8252_v14  ;;  %9858 = vst [vmem:[#allocation37_spill] sm:$0xff] %v8254_v3  ;;  %v8257_v44 = vadd.f32 %v3518_v39, %v8139_v53 }
 0x348   : > { %v8259_v60 = vpop.f32.mrf.mxu0  ;;  %v5723_v17 = vpop.f32.mrf.mxu1 }
 0x349   : > { %9859 = vst [vmem:[#allocation41_spill] sm:$0xff] %v8257_v44  ;;  %9860 = vst [vmem:[#allocation51_spill] sm:$0xff] %v8259_v60  ;;  %v8262_v26 = vadd.f32 %v5723_v17, %v8144_v36 }
 0x34a   : > { %v8264_v4 = vpop.f32.mrf.mxu0  ;;  %v3531_v7 = vpop.f32.mrf.mxu1 }
 0x34b   : > { %9861 = vst [vmem:[#allocation44_spill] sm:$0xff] %v8262_v26  ;;  %9862 = vst [vmem:[#allocation52_spill] sm:$0xff] %v8264_v4  ;;  %v8267_v47 = vadd.f32 %v3531_v7, %v8149_v32 }
 0x34c   : > { %v8269_v10 = vpop.f32.mrf.mxu0  ;;  %v5724_v27 = vpop.f32.mrf.mxu1  ;;  %v9978_v22 = vld [vmem:[#allocation42_spill] sm:$0xff] }
 0x34d   : > { %9863 = vst [vmem:[#allocation54_spill] sm:$0xff] %v8267_v47  ;;  %9864 = vst [vmem:[#allocation31_spill] sm:$0xff] %v8269_v10  ;;  %v8272_v35 = vadd.f32 %v5724_v27, %v8154_v51  ;;  %v9911_v10 = vld [vmem:[#allocation33_spill] sm:$0xff] }
 0x34e   : > { %v8274_v53 = vpop.f32.mrf.mxu0  ;;  %v3534_v2 = vpop.f32.mrf.mxu1 }
 0x34f   : > { %9865 = vst [vmem:[#allocation34_spill] sm:$0xff] %v8272_v35  ;;  %9866 = vst [vmem:[#allocation59_spill] sm:$0xff] %v8274_v53  ;;  %v8277_v34 = vadd.f32 %v3534_v2, %v8159_v24  ;;  %v9910_v53 = vld [vmem:[#allocation28_spill] sm:$0xff] }
 0x350   : > { %v8279_v36 = vpop.f32.mrf.mxu0  ;;  %v8281_v39 = vpop.f32.mrf.mxu1 }
 0x351   : > { %9867 = vst [vmem:[#allocation35_spill] sm:$0xff] %v8277_v34  ;;  %9868 = vst [vmem:[#allocation60_spill] sm:$0xff] %v8279_v36  ;;  %v9906_v36 = vld [vmem:[#allocation63_spill] sm:$0xff] }
 0x352   : > { %v8283_v17 = vpop.f32.mrf.mxu0  ;;  %v8285_v32 = vpop.f32.mrf.mxu1 }
 0x353   : > { %9869 = vst [vmem:[#allocation53_spill] sm:$0xff] %v8283_v17 }
 0x354   : > { %v8287_v7 = vpop.f32.mrf.mxu0  ;;  %v8289_v47 = vpop.f32.mrf.mxu1 }
 0x355   : > { %9870 = vst [vmem:[#allocation61_spill] sm:$0xff] %v8287_v7  ;;  %9871 = vst [vmem:[#allocation55_spill] sm:$0xff] %v8289_v47  ;;  %v9916_v47 = vld [vmem:[#allocation30_spill] sm:$0xff] }
 0x356   : > { %v8291_v51 = vpop.f32.mrf.mxu0  ;;  %v8293_v27 = vpop.f32.mrf.mxu1 }
 0x357   : > { %9872 = vst [vmem:[#allocation10_spill] sm:$0xff] %v8291_v51  ;;  %9873 = vst [vmem:[#allocation56_spill] sm:$0xff] %v8293_v27 }
 0x358   : > { %v8295_v35 = vpop.f32.mrf.mxu0  ;;  %v8297_v24 = vpop.f32.mrf.mxu1 }
 0x359   : > { %9874 = vst [vmem:[#allocation62_spill] sm:$0xff] %v8295_v35  ;;  %9875 = vst [vmem:[#allocation57_spill] sm:$0xff] %v8297_v24 }
 0x35a   : > { %v8299_v2 = vpop.f32.mrf.mxu0  ;;  %v8301_v34 = vpop.f32.mrf.mxu1 }
 0x35b   : > { %9876 = vst [vmem:[#allocation65_spill] sm:$0xff] %v8299_v2  ;;  %9877 = vst [vmem:[#allocation66_spill] sm:$0xff] %v8301_v34 }
 0x35c   : > { %v8303_v26 = vpop.f32.mrf.mxu0  ;;  %v8305_v44 = vpop.f32.mrf.mxu1 }
 0x35d   : > { %9878 = vst [vmem:[#allocation67_spill] sm:$0xff] %v8303_v26  ;;  %9879 = vst [vmem:[#allocation68_spill] sm:$0xff] %v8305_v44 }
 0x35e   : > { %v8307_v14 = vpop.f32.mrf.mxu0  ;;  %v8309_v7 = vpop.f32.mrf.mxu1 }
 0x35f   : > { %9880 = vst [vmem:[#allocation69_spill] sm:$0xff] %v8307_v14  ;;  %9881 = vst [vmem:[#allocation70_spill] sm:$0xff] %v8309_v7 }
 0x360   : > { %v8311_v31 = vpop.f32.mrf.mxu0  ;;  %v8313_v51 = vpop.f32.mrf.mxu1 }
 0x361   : > { %9882 = vst [vmem:[#allocation71_spill] sm:$0xff] %v8311_v31  ;;  %9883 = vst [vmem:[#allocation72_spill] sm:$0xff] %v8313_v51 }
 0x362   : > { %v8315_v27 = vpop.f32.mrf.mxu0  ;;  %v8317_v35 = vpop.f32.mrf.mxu1 }
 0x363   : > { %9884 = vst [vmem:[#allocation73_spill] sm:$0xff] %v8317_v35 }
 0x364   : > { %v8319_v24 = vpop.f32.mrf.mxu0  ;;  %v8321_v2 = vpop.f32.mrf.mxu1 }
 0x365   : > { %9885 = vst [vmem:[#allocation74_spill] sm:$0xff] %v8319_v24  ;;  %9886 = vst [vmem:[#allocation75_spill] sm:$0xff] %v8321_v2 }
 0x366   : > { %v8323_v34 = vpop.f32.mrf.mxu0  ;;  %v8325_v26 = vpop.f32.mrf.mxu1 }
 0x367   : > { %9887 = vst [vmem:[#allocation76_spill] sm:$0xff] %v8323_v34  ;;  %9888 = vst [vmem:[#allocation77_spill] sm:$0xff] %v8325_v26  ;;  %v8346_v26 = vld [vmem:[%s9019_s6] ss:$0 sm:$0xff] }
 0x368   : > { %v8327_v44 = vpop.f32.mrf.mxu0  ;;  %v8329_v14 = vpop.f32.mrf.mxu1  ;;  %9897 = vst [vmem:[#allocation86_spill] sm:$0xff] %v8346_v26  ;;  %v9905_v34 = vld [vmem:[#allocation58_spill] sm:$0xff]  ;;  %v1237_v61 = vmul.f32 %v8346_v26, %v9910_v53  ;;  %v1240_v62 = vmul.f32 %v9911_v10, %v8346_v26 }
 0x369   : > { %9889 = vst [vmem:[#allocation78_spill] sm:$0xff] %v8327_v44  ;;  %9890 = vst [vmem:[#allocation79_spill] sm:$0xff] %v8329_v14 }
 0x36a   : > { %v8331_v7 = vpop.f32.mrf.mxu0  ;;  %v8333_v31 = vpop.f32.mrf.mxu1 }
 0x36b   : > { %9891 = vst [vmem:[#allocation80_spill] sm:$0xff] %v8331_v7  ;;  %9892 = vst [vmem:[#allocation81_spill] sm:$0xff] %v8333_v31 }
 0x36c   : > { %v8335_v51 = vpop.f32.mrf.mxu0  ;;  %v8337_v17 = vpop.f32.mrf.mxu1 }
 0x36d   : > { %9893 = vst [vmem:[#allocation82_spill] sm:$0xff] %v8335_v51  ;;  %9894 = vst [vmem:[#allocation83_spill] sm:$0xff] %v8337_v17  ;;  %v9902_v51 = vld [vmem:[#allocation49_spill] sm:$0xff] }
 0x36e   : > { %v8339_v35 = vpop.f32.mrf.mxu0  ;;  %v8341_v12 = vpop.f32.mrf.mxu1  ;;  %v1235_v17 = vmul.f32 %v9902_v51, %v8346_v26 }
 0x36f   : > { %9895 = vst [vmem:[#allocation84_spill] sm:$0xff] %v8339_v35  ;;  %9896 = vst [vmem:[#allocation85_spill] sm:$0xff] %v8341_v12  ;;  %v8361_v12 = vld [vmem:[%s9020_s7] ss:$0 sm:$0xff]  ;;  %v9904_v35 = vld [vmem:[#allocation9_spill] sm:$0xff] }
 0x370   : > { %v8348_v2 = vpop.f32.mrf.mxu0  ;;  %v8350_v14 = vpop.f32.mrf.mxu1  ;;  %9903 = vst [vmem:[#allocation49_spill] sm:$0xff] %v8361_v12  ;;  %v1233_v44 = vmul.f32 %v8346_v26, %v9904_v35  ;;  %v9912_v35 = vld [vmem:[#allocation38_spill] sm:$0xff]  ;;  %v8394_v10 = vadd.f32 %v8361_v12, %v1235_v17  ;;  %v8414_v17 = vadd.f32 %v8361_v12, %v1240_v62  ;;  %v9933_v62 = vld [vmem:[#allocation36_spill] sm:$0xff] }
 0x371   : > { %9898 = vst [vmem:[#allocation87_spill] sm:$0xff] %v8348_v2  ;;  %9899 = vst [vmem:[#allocation88_spill] sm:$0xff] %v8350_v14  ;;  %v1236_v2 = vmul.f32 %v9905_v34, %v8346_v26  ;;  %v1234_v14 = vmul.f32 %v8346_v26, %v9906_v36  ;;  %v1238_v4 = vmul.f32 %v8346_v26, %v9912_v35  ;;  %v9913_v34 = vld [vmem:[#allocation24_spill] sm:$0xff]  ;;  %v9914_v36 = vld [vmem:[#allocation43_spill] sm:$0xff] }
 0x372   : > { %v8352_v7 = vpop.f32.mrf.mxu0  ;;  %v8354_v31 = vpop.f32.mrf.mxu1  ;;  %v1243_v49 = vmul.f32 %v9913_v34, %v8346_v26  ;;  %v1241_v24 = vmul.f32 %v8346_v26, %v9914_v36  ;;  %9919 = vst [vmem:[#allocation28_spill] sm:$0xff] %v8394_v10  ;;  %v8397_v35 = vadd.f32 %v8361_v12, %v1233_v44  ;;  %9926 = vst [vmem:[#allocation91_spill] sm:$0xff] %v8414_v17  ;;  %v9949_v17 = vld [vmem:[#allocation14_spill] sm:$0xff] }
 0x373   : > { %9900 = vst [vmem:[#allocation89_spill] sm:$0xff] %v8352_v7  ;;  %9901 = vst [vmem:[#allocation90_spill] sm:$0xff] %v8354_v31  ;;  %v9907_v7 = vld [vmem:[#allocation64_spill] sm:$0xff]  ;;  %v8400_v34 = vadd.f32 %v8361_v12, %v1236_v2  ;;  %v8403_v36 = vadd.f32 %v8361_v12, %v1234_v14  ;;  %v8417_v44 = vadd.f32 %v8361_v12, %v1238_v4 }
 0x374   : > { %v1239_v31 = vmul.f32 %v9907_v7, %v8346_v26  ;;  %v8371_v30 = vpop.f32.mrf.mxu0  ;;  %v8373_v51 = vpop.f32.mrf.mxu1  ;;  %v9915_v7 = vld [vmem:[#allocation29_spill] sm:$0xff]  ;;  %9920 = vst [vmem:[#allocation33_spill] sm:$0xff] %v8397_v35  ;;  %v8420_v2 = vadd.f32 %v8361_v12, %v1243_v49  ;;  %v8425_v14 = vadd.f32 %v8361_v12, %v1241_v24  ;;  %v9942_v49 = vld [vmem:[#allocation2_spill] sm:$0xff] }
 0x375   : > { %9908 = vst [vmem:[#allocation9_spill] sm:$0xff] %v8371_v30  ;;  %9909 = vst [vmem:[#allocation58_spill] sm:$0xff] %v8373_v51  ;;  %v1244_v30 = vmul.f32 %v9915_v7, %v8346_v26  ;;  %v1242_v51 = vmul.f32 %v8346_v26, %v9916_v47 }
 0x376   : > { %v8389_v60 = vpop.f32.mrf.mxu0  ;;  %v8391_v53 = vpop.f32.mrf.mxu1  ;;  %9921 = vst [vmem:[#allocation38_spill] sm:$0xff] %v8400_v34  ;;  %9922 = vst [vmem:[#allocation24_spill] sm:$0xff] %v8403_v36  ;;  %v8406_v7 = vadd.f32 %v8361_v12, %v1239_v31  ;;  %v9953_v34 = vld [vmem:[#allocation18_spill] sm:$0xff] }
 0x377   : > { %9917 = vst [vmem:[#allocation63_spill] sm:$0xff] %v8389_v60  ;;  %9918 = vst [vmem:[#allocation64_spill] sm:$0xff] %v8391_v53  ;;  %v8411_v60 = vadd.f32 %v8361_v12, %v1237_v61  ;;  %v8428_v31 = vadd.f32 %v8361_v12, %v1244_v30  ;;  %v8431_v61 = vadd.f32 %v8361_v12, %v1242_v51  ;;  %v9939_v51 = vld [vmem:[#allocation6_spill] sm:$0xff] }
 0x378   : > { %9923 = vst [vmem:[#allocation43_spill] sm:$0xff] %v8406_v7  ;;  %v8408_v47 = vpop.f32.mrf.mxu1  ;;  %9927 = vst [vmem:[#allocation92_spill] sm:$0xff] %v8417_v44  ;;  %v8422_v53 = vpop.f32.mrf.mxu0  ;;  %v1245_v46 = vmul.f32 %v8346_v26, %v9939_v51  ;;  %v9946_v51 = vld [vmem:[#allocation8_spill] sm:$0xff]  ;;  %v9951_v7 = vld [vmem:[#allocation39_spill] sm:$0xff] }
 0x379   : > { %9924 = vst [vmem:[#allocation29_spill] sm:$0xff] %v8408_v47  ;;  %9925 = vst [vmem:[#allocation30_spill] sm:$0xff] %v8411_v60  ;;  %v1247_v47 = vmul.f32 %v9933_v62, %v8346_v26  ;;  %v9940_v62 = vld [vmem:[#allocation45_spill] sm:$0xff]  ;;  %v1255_v44 = vmul.f32 %v9946_v51, %v8346_v26  ;;  %v1257_v51 = vmul.f32 %v8346_v26, %v9953_v34 }
 0x37a   : > { %9928 = vst [vmem:[#allocation93_spill] sm:$0xff] %v8420_v2  ;;  %9929 = vst [vmem:[#allocation94_spill] sm:$0xff] %v8422_v53  ;;  %v8435_v19 = vpop.f32.mrf.mxu1  ;;  %v8448_v43 = vpop.f32.mrf.mxu0  ;;  %v9943_v53 = vld [vmem:[#allocation46_spill] sm:$0xff]  ;;  %v9950_v60 = vld [vmem:[#allocation17_spill] sm:$0xff] }
 0x37b   : > { %9930 = vst [vmem:[#allocation95_spill] sm:$0xff] %v8425_v14  ;;  %9931 = vst [vmem:[#allocation96_spill] sm:$0xff] %v8428_v31  ;;  %v8454_v3 = vadd.f32 %v8361_v12, %v1247_v47  ;;  %v1251_v14 = vmul.f32 %v9942_v49, %v8346_v26  ;;  %v1249_v24 = vmul.f32 %v8346_v26, %v9943_v53  ;;  %v9944_v47 = vld [vmem:[#allocation3_spill] sm:$0xff] }
 0x37c   : > { %9932 = vst [vmem:[#allocation97_spill] sm:$0xff] %v8431_v61  ;;  %9934 = vst [vmem:[#allocation36_spill] sm:$0xff] %v8435_v19  ;;  %v8442_v30 = vpop.f32.mrf.mxu1  ;;  %v9941_v19 = vld [vmem:[#allocation25_spill] sm:$0xff]  ;;  %v1252_v61 = vmul.f32 %v9944_v47, %v8346_v26  ;;  %v9945_v31 = vld [vmem:[#allocation7_spill] sm:$0xff]  ;;  %v1256_v49 = vmul.f32 %v9949_v17, %v8346_v26  ;;  %v1254_v53 = vmul.f32 %v8346_v26, %v9950_v60  ;;  %v8484_v36 = vpop.f32.mrf.mxu0 }
 0x37d   : > { %9935 = vst [vmem:[#allocation98_spill] sm:$0xff] %v8442_v30  ;;  %9936 = vst [vmem:[#allocation99_spill] sm:$0xff] %v8448_v43  ;;  %v1248_v30 = vmul.f32 %v9940_v62, %v8346_v26  ;;  %v1246_v2 = vmul.f32 %v8346_v26, %v9941_v19  ;;  %v9948_v62 = vld [vmem:[#allocation13_spill] sm:$0xff]  ;;  %v1259_v47 = vmul.f32 %v9951_v7, %v8346_v26 }
 0x37e   : > { %9937 = vst [vmem:[#allocation100_spill] sm:$0xff] %v8454_v3  ;;  %v8456_v4 = vpop.f32.mrf.mxu1  ;;  %v1253_v19 = vmul.f32 %v8346_v26, %v9948_v62  ;;  %9952 = vst [vmem:[#allocation45_spill] sm:$0xff] %v8484_v36  ;;  %v9955_v62 = vld [vmem:[#allocation22_spill] sm:$0xff]  ;;  %v8496_v60 = vadd.f32 %v8361_v12, %v1245_v46  ;;  %v8508_v34 = vadd.f32 %v8361_v12, %v1249_v24 }
 0x37f   : > { %9938 = vst [vmem:[#allocation101_spill] sm:$0xff] %v8456_v4  ;;  %v1250_v4 = vmul.f32 %v8346_v26, %v9945_v31  ;;  %v1258_v10 = vmul.f32 %v8346_v26, %v9955_v62  ;;  %v8499_v7 = vadd.f32 %v8361_v12, %v1248_v30  ;;  %v8502_v36 = vadd.f32 %v8361_v12, %v1246_v2 }
 0x380   : > { %v8474_v43 = vpop.f32.mrf.mxu1  ;;  %v8505_v31 = vadd.f32 %v8361_v12, %v1251_v14  ;;  %v8517_v46 = vadd.f32 %v8361_v12, %v1255_v44  ;;  %v8522_v2 = vadd.f32 %v8361_v12, %v1253_v19  ;;  %v8525_v14 = vadd.f32 %v8361_v12, %v1256_v49  ;;  %v9965_v49 = vld [vmem:[#allocation26_spill] sm:$0xff] }
 0x381   : > { %9947 = vst [vmem:[#allocation6_spill] sm:$0xff] %v8474_v43  ;;  %v9954_v43 = vld [vmem:[#allocation21_spill] sm:$0xff]  ;;  %v8514_v62 = vadd.f32 %v8361_v12, %v1250_v4  ;;  %v8528_v24 = vadd.f32 %v8361_v12, %v1254_v53  ;;  %v8536_v4 = vadd.f32 %v8361_v12, %v1257_v51  ;;  %v8542_v19 = vadd.f32 %v8361_v12, %v1258_v10 }
 0x382   : > { %v1260_v35 = vmul.f32 %v9954_v43, %v8346_v26  ;;  %v8493_v17 = vpop.f32.mrf.mxu1  ;;  %v8511_v43 = vadd.f32 %v8361_v12, %v1252_v61  ;;  %9958 = vst [vmem:[#allocation46_spill] sm:$0xff] %v8525_v14  ;;  %v8531_v61 = vadd.f32 %v8361_v12, %v1259_v47  ;;  %v9971_v47 = vld [vmem:[#allocation32_spill] sm:$0xff]  ;;  %v3812_v10 = vadd.f32 %v8179_v1, %v8137_v59  ;;  %v9975_v1 = vld [vmem:[#allocation11_spill] sm:$0xff]  ;;  %v10015_v14 = vld [vmem:[#allocation70_spill] sm:$0xff] }
 0x383   : > { %9956 = vst [vmem:[#allocation25_spill] sm:$0xff] %v8493_v17  ;;  %9959 = vst [vmem:[#allocation3_spill] sm:$0xff] %v8528_v24  ;;  %v8533_v17 = vpop.f32.mrf.mxu0  ;;  %v4077_v59 = vadd.f32 %v8281_v39, %v3813_v20 }
 0x384   : > { %v8519_v30 = vpop.f32.mrf.mxu1  ;;  %9960 = vst [vmem:[#allocation7_spill] sm:$0xff] %v8531_v61  ;;  %9961 = vst [vmem:[#allocation8_spill] sm:$0xff] %v8533_v17  ;;  %v8539_v44 = vadd.f32 %v8361_v12, %v1260_v35  ;;  %v8578_v17 = vmul.f32 %v9971_v47, %v8346_v26  ;;  %v3811_v35 = vadd.f32 %v8169_v23, %v8127_v6  ;;  %v10007_v61 = vld [vmem:[#allocation67_spill] sm:$0xff] }
 0x385   : > { %9957 = vst [vmem:[#allocation2_spill] sm:$0xff] %v8519_v30  ;;  %9962 = vst [vmem:[#allocation13_spill] sm:$0xff] %v8536_v4  ;;  %v1263_v30 = vmul.f32 %v9965_v49, %v8346_v26  ;;  %v9969_v49 = vld [vmem:[#allocation27_spill] sm:$0xff]  ;;  %v3816_v6 = vadd.f32 %v8199_v58, %v8157_v8  ;;  %v8619_v8 = vadd.f32 %v8224_v18, %v8182_v54  ;;  %v9976_v54 = vld [vmem:[#allocation40_spill] sm:$0xff] }
 0x386   : > { %9963 = vst [vmem:[#allocation14_spill] sm:$0xff] %v8539_v44  ;;  %9964 = vst [vmem:[#allocation17_spill] sm:$0xff] %v8542_v19  ;;  %v8546_v3 = vpop.f32.mrf.mxu1  ;;  %v8574_v53 = vmul.f32 %v8346_v26, %v9969_v49  ;;  %v3817_v49 = vadd.f32 %v8184_v13, %v8142_v16  ;;  %v8607_v16 = vadd.f32 %v8209_v57, %v8167_v55  ;;  %v9979_v58 = vld [vmem:[#allocation4_spill] sm:$0xff]  ;;  %v8652_v57 = vld [vmem:[%s9022_s9] ss:$0 sm:$0xff] }
 0x387   : > { %9966 = vst [vmem:[#allocation39_spill] sm:$0xff] %v8546_v3  ;;  %v8562_v3 = vpop.f32.mrf.mxu0  ;;  %v8568_v38 = vadd.f32 %v8361_v12, %v1263_v30  ;;  %9972 = vst [vmem:[#allocation26_spill] sm:$0xff] %v8578_v17  ;;  %v3814_v30 = vadd.f32 %v8174_v52, %v8132_v0  ;;  %v8600_v0 = vadd.f32 %v8204_v11, %v8162_v40  ;;  %v9980_v11 = vld [vmem:[#allocation37_spill] sm:$0xff]  ;;  %v9983_v18 = vld [vmem:[#allocation55_spill] sm:$0xff] }
 0x388   : > { %v8556_v33 = vpop.f32.mrf.mxu1  ;;  %9970 = vst [vmem:[#allocation22_spill] sm:$0xff] %v8574_v53  ;;  %v8625_v23 = vadd.f32 %v8229_v29, %v8187_v15  ;;  %v8629_v55 = vadd.f32 %v8234_v5, %v8192_v21  ;;  %v4275_v52 = vadd.f32 %v8315_v27, %v4077_v59  ;;  %v8639_v13 = vadd.f32 %v9976_v54, %v9975_v1  ;;  %v9984_v5 = vld [vmem:[#allocation74_spill] sm:$0xff]  ;;  %v9985_v27 = vld [vmem:[#allocation20_spill] sm:$0xff]  ;;  %v9987_v1 = vld [vmem:[#allocation5_spill] sm:$0xff] }
 0x389   : > { %9967 = vst [vmem:[#allocation18_spill] sm:$0xff] %v8568_v38  ;;  %v3815_v38 = vadd.f32 %v8189_v9, %v8147_v28  ;;  %v8603_v45 = vpop.f32.mrf.mxu0  ;;  %v8611_v28 = vadd.f32 %v8214_v41, %v8172_v37  ;;  %v4075_v37 = vadd.f32 %v8285_v32, %v3811_v35  ;;  %v9977_v9 = vld [vmem:[#allocation47_spill] sm:$0xff]  ;;  %v8647_v21 = vadd.f32 %v9980_v11, %v9979_v58  ;;  %v9986_v35 = vld [vmem:[#allocation52_spill] sm:$0xff]  ;;  %v9999_v19 = vld [vmem:[#allocation10_spill] sm:$0xff] }
 0x38a   : > { %v8570_v51 = vpop.f32.mrf.mxu1  ;;  %v8643_v15 = vadd.f32 %v9978_v22, %v9977_v9  ;;  %v9982_v41 = vld [vmem:[#allocation51_spill] sm:$0xff]  ;;  %v4078_v29 = vadd.f32 %v9983_v18, %v3814_v30  ;;  %v8664_v59 = vadd.f32 %v9986_v35, %v9985_v27  ;;  %v9994_v18 = vld [vmem:[#allocation53_spill] sm:$0xff]  ;;  %v9995_v27 = vld [vmem:[#allocation76_spill] sm:$0xff] }
 0x38b   : > { %9968 = vst [vmem:[#allocation21_spill] sm:$0xff] %v8570_v51  ;;  %v8656_v42 = vadd.f32 %v9982_v41, %v9981_v63  ;;  %v4273_v56 = vadd.f32 %v9984_v5, %v4075_v37  ;;  %v8660_v39 = vpop.f32.mrf.mxu0  ;;  %v9988_v54 = vld [vmem:[#allocation31_spill] sm:$0xff]  ;;  %v9991_v63 = vld [vmem:[#allocation12_spill] sm:$0xff]  ;;  %v8681_v37 = vld [vmem:[%s9023_s10] ss:$0 sm:$0xff] }
 0x38c   : > { %v8592_v47 = vpop.f32.mrf.mxu1  ;;  %v8668_v9 = vadd.f32 %v9988_v54, %v9987_v1  ;;  %v9989_v22 = vld [vmem:[#allocation23_spill] sm:$0xff]  ;;  %v9992_v41 = vld [vmem:[#allocation60_spill] sm:$0xff]  ;;  %v4276_v35 = vadd.f32 %v9995_v27, %v4078_v29  ;;  %v10000_v12 = vld [vmem:[#allocation41_spill] sm:$0xff] }
 0x38d   : > { %9973 = vst [vmem:[#allocation27_spill] sm:$0xff] %v8592_v47  ;;  %v9990_v58 = vld [vmem:[#allocation59_spill] sm:$0xff]  ;;  %v8676_v30 = vadd.f32 %v9992_v41, %v9991_v63  ;;  %v10001_v53 = vld [vmem:[#allocation62_spill] sm:$0xff]  ;;  %v10002_v26 = vld [vmem:[#allocation56_spill] sm:$0xff]  ;;  %v8703_v27 = vpop.f32.mrf.mxu0 }
 0x38e   : > { %v8621_v40 = vpop.f32.mrf.mxu1  ;;  %v8672_v11 = vadd.f32 %v9990_v58, %v9989_v22  ;;  %v9996_v22 = vld [vmem:[#allocation48_spill] sm:$0xff]  ;;  %v9997_v58 = vld [vmem:[#allocation61_spill] sm:$0xff]  ;;  %v9998_v41 = vld [vmem:[#allocation19_spill] sm:$0xff]  ;;  %v8699_v44 = vadd.f32 %v10001_v53, %v10000_v12 }
 0x38f   : > { %9974 = vst [vmem:[#allocation32_spill] sm:$0xff] %v8621_v40  ;;  %v8691_v63 = vadd.f32 %v9997_v58, %v9996_v22  ;;  %v8695_v17 = vadd.f32 %v9999_v19, %v9998_v41  ;;  %v10003_v4 = vld [vmem:[#allocation57_spill] sm:$0xff]  ;;  %v10004_v22 = vld [vmem:[#allocation44_spill] sm:$0xff]  ;;  %v10006_v41 = vld [vmem:[#allocation54_spill] sm:$0xff] }
 0x390   : > { %v5831_v20 = vpop.f32.mrf.mxu1  ;;  %v4081_v29 = vadd.f32 %v10003_v4, %v3817_v49  ;;  %v10005_v58 = vld [vmem:[#allocation65_spill] sm:$0xff]  ;;  %v8713_v12 = vadd.f32 %v10007_v61, %v10006_v41  ;;  %v10009_v53 = vld [vmem:[#allocation66_spill] sm:$0xff]  ;;  %v10011_v49 = vld [vmem:[#allocation68_spill] sm:$0xff]  ;;  %v4080_v61 = vadd.f32 %v10015_v14, %v3816_v6 }
 0x391   : > { %v4533_v32 = vadd.f32 %v5831_v20, %v4275_v52  ;;  %v9993_v20 = vld [vmem:[#allocation15_spill] sm:$0xff]  ;;  %v8709_v19 = vadd.f32 %v10005_v58, %v10004_v22  ;;  %v4082_v40 = vadd.f32 %v10011_v49, %v3818_v25  ;;  %v10013_v22 = vld [vmem:[#allocation69_spill] sm:$0xff]  ;;  %v10016_v41 = vld [vmem:[#allocation80_spill] sm:$0xff]  ;;  %v8730_v25 = vpop.f32.mrf.mxu0 }
 0x392   : > { %v4404_v52 = vpop.f32.mrf.mxu1  ;;  %v8685_v5 = vadd.f32 %v9994_v18, %v9993_v20  ;;  %v4076_v20 = vadd.f32 %v10002_v26, %v3812_v10  ;;  %10008 = vst [vmem:[#allocation11_spill] sm:$0xff] %v8713_v12  ;;  %v4079_v26 = vadd.f32 %v10009_v53, %v3815_v38  ;;  %v10010_v10 = vld [vmem:[#allocation78_spill] sm:$0xff]  ;;  %v4279_v47 = vadd.f32 %v10016_v41, %v4081_v29  ;;  %v10022_v14 = vld [vmem:[#allocation72_spill] sm:$0xff] }
 0x393   : > { %v4572_v1 = vmul.f32 %v8652_v57, %v4533_v32  ;;  %v4531_v54 = vadd.f32 %v4404_v52, %v4273_v56  ;;  %v10023_v6 = vld [vmem:[#allocation82_spill] sm:$0xff] }
 0x394   : > { %v5832_v18 = vpop.f32.mrf.mxu1  ;;  %v4274_v24 = vadd.f32 %v10010_v10, %v4076_v20  ;;  %v10017_v20 = vld [vmem:[#allocation35_spill] sm:$0xff]  ;;  %v4277_v29 = vadd.f32 %v10023_v6, %v4079_v26 }
 0x395   : > { %v4611_v56 = vadd.f32 %v8681_v37, %v4572_v1  ;;  %v4570_v32 = vmul.f32 %v8652_v57, %v4531_v54  ;;  %v4534_v52 = vadd.f32 %v5832_v18, %v4276_v35  ;;  %v10012_v18 = vld [vmem:[#allocation34_spill] sm:$0xff]  ;;  %v10018_v10 = vld [vmem:[#allocation71_spill] sm:$0xff] }
 0x396   : > { %v4407_v4 = vpop.f32.mrf.mxu1  ;;  %v8722_v58 = vadd.f32 %v10013_v22, %v10012_v18  ;;  %v8728_v51 = vadd.f32 %v10018_v10, %v10017_v20 }
 0x397   : > { %v4643_v1 = vmax.f32 %v4611_v56, 0.0  ;;  %v4609_v54 = vadd.f32 %v8681_v37, %v4570_v32  ;;  %v4573_v35 = vmul.f32 %v8652_v57, %v4534_v52  ;;  %v4532_v38 = vadd.f32 %v4407_v4, %v4274_v24  ;;  %v10020_v56 = vld [vmem:[#allocation28_spill] sm:$0xff] }
 0x398   : > { %10014 = vst [vmem:[#allocation40_spill] sm:$0xff] %v8722_v58  ;;  %v5835_v53 = vpop.f32.mrf.mxu1  ;;  %10019 = vst [vmem:[#allocation47_spill] sm:$0xff] %v8728_v51  ;;  %v10021_v32 = vmax.f32 %v10020_v56, 0.0  ;;  %v4085_v24 = vadd.f32 %v10022_v14, %v8600_v0 }
 0x399   : > { %v4641_v52 = vmax.f32 %v4609_v54, 0.0  ;;  %v4612_v12 = vadd.f32 %v8681_v37, %v4573_v35  ;;  %v4571_v4 = vmul.f32 %v8652_v57, %v4532_v38  ;;  %v4537_v18 = vadd.f32 %v5835_v53, %v4279_v47  ;;  %v10025_v35 = vld [vmem:[#allocation33_spill] sm:$0xff]  ;;  %v10028_v38 = vld [vmem:[#allocation87_spill] sm:$0xff]  ;;  %v8754_v53 = vpop.f32.mrf.mxu0 }
 0x39a   : > { %v4675_v49 = vadd.f32 %v4643_v1, %v10021_v32  ;;  %v4420_v22 = vpop.f32.mrf.mxu1  ;;  %v10024_v1 = vld [vmem:[#allocation84_spill] sm:$0xff]  ;;  %v10026_v20 = vmax.f32 %v10025_v35, 0.0  ;;  %v10027_v32 = vld [vmem:[#allocation73_spill] sm:$0xff]  ;;  %v4278_v47 = vadd.f32 %v10028_v38, %v4080_v61 }
 0x39b   : > { %v4280_v54 = vadd.f32 %v10024_v1, %v4082_v40  ;;  %v4644_v56 = vmax.f32 %v4612_v12, 0.0  ;;  %v4083_v51 = vadd.f32 %v10027_v32, %v8607_v16  ;;  %v4610_v58 = vadd.f32 %v8681_v37, %v4571_v4  ;;  %v10031_v16 = vld [vmem:[#allocation75_spill] sm:$0xff]  ;;  %v10032_v61 = vld [vmem:[#allocation89_spill] sm:$0xff]  ;;  %v10034_v32 = vld [vmem:[#allocation24_spill] sm:$0xff] }
 0x39c   : > { %v5219_v41 = vpack.c.bf16 %v4675_v49, %v4675_v49  ;;  %v4673_v10 = vadd.f32 %v4641_v52, %v10026_v20  ;;  %v4576_v0 = vmul.f32 %v8652_v57, %v4537_v18  ;;  %v4535_v26 = vadd.f32 %v4420_v22, %v4277_v29  ;;  %v5836_v14 = vpop.f32.mrf.mxu1  ;;  %v10029_v49 = vld [vmem:[#allocation38_spill] sm:$0xff] }
 0x39d   : > { %v10030_v52 = vmax.f32 %v10029_v49, 0.0  ;;  %v4538_v6 = vadd.f32 %v5836_v14, %v4280_v54  ;;  %v4086_v1 = vadd.f32 %v10031_v16, %v8611_v28  ;;  %v4642_v4 = vmax.f32 %v4610_v58, 0.0  ;;  %v10033_v54 = vld [vmem:[#allocation77_spill] sm:$0xff]  ;;  %v10038_v16 = vld [vmem:[#allocation43_spill] sm:$0xff] }
 0x39e   : > { %4836 = vst.msk [vmem:[%s8740_s29 + $0x8] sm:$0xf] %vm4833_vm14, %v5219_v41  ;;  %v5217_v40 = vpack.c.bf16 %v4673_v10, %v4673_v10  ;;  %v4615_v18 = vadd.f32 %v8681_v37, %v4576_v0  ;;  %v4574_v29 = vmul.f32 %v8652_v57, %v4535_v26  ;;  %v4423_v22 = vpop.f32.mrf.mxu1  ;;  %v4283_v35 = vadd.f32 %v10032_v61, %v4085_v24  ;;  %v10036_v26 = vld [vmem:[#allocation9_spill] sm:$0xff] }
 0x39f   : > { %v4676_v12 = vadd.f32 %v4644_v56, %v10030_v52  ;;  %v4577_v20 = vmul.f32 %v8652_v57, %v4538_v6  ;;  %v4536_v10 = vadd.f32 %v4423_v22, %v4278_v47  ;;  %v4084_v56 = vadd.f32 %v10033_v54, %v8615_v50  ;;  %v8774_v52 = vpop.f32.mrf.mxu0  ;;  %v10037_v50 = vld [vmem:[#allocation79_spill] sm:$0xff] }
 0x3a0   : > { %4834 = vst.msk [vmem:[%s8740_s29] sm:$0xf] %vm4833_vm14, %v5217_v40  ;;  %v10035_v28 = vmax.f32 %v10034_v32, 0.0  ;;  %v4647_v14 = vmax.f32 %v4615_v18, 0.0  ;;  %v4613_v0 = vadd.f32 %v8681_v37, %v4574_v29  ;;  %v5839_v38 = vpop.f32.mrf.mxu1  ;;  %v4281_v49 = vadd.f32 %v10036_v26, %v4083_v51  ;;  %v10044_v26 = vld [vmem:[#allocation91_spill] sm:$0xff] }
 0x3a1   : > { %v5220_v41 = vpack.c.bf16 %v4676_v12, %v4676_v12  ;;  %v4616_v24 = vadd.f32 %v8681_v37, %v4577_v20  ;;  %v4575_v47 = vmul.f32 %v8652_v57, %v4536_v10  ;;  %v4541_v40 = vadd.f32 %v5839_v38, %v4283_v35  ;;  %v10040_v20 = vld [vmem:[#allocation81_spill] sm:$0xff]  ;;  %v10041_v35 = vld [vmem:[#allocation63_spill] sm:$0xff]  ;;  %v8793_v38 = vpop.f32.mrf.mxu0 }
 0x3a2   : > { %v4674_v58 = vadd.f32 %v4642_v4, %v10035_v28  ;;  %v4089_v12 = vadd.f32 %v10037_v50, %v8619_v8  ;;  %v10039_v4 = vmax.f32 %v10038_v16, 0.0  ;;  %v4645_v29 = vmax.f32 %v4613_v0, 0.0  ;;  %v4436_v22 = vpop.f32.mrf.mxu1  ;;  %v10042_v28 = vld [vmem:[#allocation30_spill] sm:$0xff]  ;;  %v10047_v16 = vld [vmem:[#allocation99_spill] sm:$0xff] }
 0x3a3   : > { %4837 = vst.msk [vmem:[%s8740_s29 + $0xc] sm:$0xf] %vm4833_vm14, %v5220_v41  ;;  %v4648_v51 = vmax.f32 %v4616_v24, 0.0  ;;  %v4614_v61 = vadd.f32 %v8681_v37, %v4575_v47  ;;  %v4580_v41 = vmul.f32 %v8652_v57, %v4541_v40  ;;  %v4539_v54 = vadd.f32 %v4436_v22, %v4281_v49  ;;  %v10046_v50 = vld [vmem:[#allocation94_spill] sm:$0xff] }
 0x3a4   : > { %v5218_v6 = vpack.c.bf16 %v4674_v58, %v4674_v58  ;;  %v4679_v18 = vadd.f32 %v4647_v14, %v10039_v4  ;;  %v4087_v10 = vadd.f32 %v10040_v20, %v8625_v23  ;;  %v4284_v32 = vadd.f32 %v10041_v35, %v4086_v1  ;;  %v5840_v0 = vpop.f32.mrf.mxu1  ;;  %v10048_v20 = vld [vmem:[#allocation92_spill] sm:$0xff] }
 0x3a5   : > { %v10043_v58 = vmax.f32 %v10042_v28, 0.0  ;;  %v10045_v24 = vmax.f32 %v10044_v26, 0.0  ;;  %v4646_v40 = vmax.f32 %v4614_v61, 0.0  ;;  %v4619_v49 = vadd.f32 %v8681_v37, %v4580_v41  ;;  %v10050_v41 = vld [vmem:[#allocation83_spill] sm:$0xff]  ;;  %v10052_v26 = vld [vmem:[#allocation93_spill] sm:$0xff] }
 0x3a6   : > { %4835 = vst.msk [vmem:[%s8740_s29 + $0x4] sm:$0xf] %vm4833_vm14, %v5218_v6  ;;  %v5223_v8 = vpack.c.bf16 %v4679_v18, %v4679_v18  ;;  %v4578_v23 = vmul.f32 %v8652_v57, %v4539_v54  ;;  %v4282_v1 = vadd.f32 %v10046_v50, %v4084_v56  ;;  %v4287_v6 = vadd.f32 %v10047_v16, %v4089_v12 }
 0x3a7   : > { %v4677_v14 = vadd.f32 %v4645_v29, %v10043_v58  ;;  %v4680_v47 = vadd.f32 %v4648_v51, %v10045_v24  ;;  %v4542_v18 = vadd.f32 %v5840_v0, %v4284_v32  ;;  %v4439_v29 = vpop.f32.mrf.mxu1  ;;  %v10049_v35 = vmax.f32 %v10048_v20, 0.0  ;;  %v10051_v58 = vld [vmem:[#allocation45_spill] sm:$0xff] }
 0x3a8   : > { %4840 = vst.msk [vmem:[%s8740_s29 + $0x18] sm:$0xf] %vm4833_vm14, %v5223_v8  ;;  %v4651_v28 = vmax.f32 %v4619_v49, 0.0  ;;  %v4617_v61 = vadd.f32 %v8681_v37, %v4578_v23  ;;  %v4090_v54 = vadd.f32 %v10050_v41, %v8629_v55  ;;  %v4285_v56 = vadd.f32 %v10051_v58, %v4087_v10  ;;  %v10054_v55 = vld [vmem:[#allocation85_spill] sm:$0xff]  ;;  %v10055_v23 = vld [vmem:[#allocation8_spill] sm:$0xff] }
 0x3a9   : > { %v5221_v4 = vpack.c.bf16 %v4677_v14, %v4677_v14  ;;  %v5224_v22 = vpack.c.bf16 %v4680_v47, %v4680_v47  ;;  %v4678_v51 = vadd.f32 %v4646_v40, %v10049_v35  ;;  %v4581_v12 = vmul.f32 %v8652_v57, %v4542_v18  ;;  %v5843_v32 = vpop.f32.mrf.mxu1  ;;  %v8812_v14 = vpop.f32.mrf.mxu0 }
 0x3aa   : > { %v4540_v8 = vadd.f32 %v4439_v29, %v4282_v1  ;;  %v10053_v24 = vmax.f32 %v10052_v26, 0.0  ;;  %v4649_v40 = vmax.f32 %v4617_v61, 0.0  ;;  %v4545_v49 = vadd.f32 %v5843_v32, %v4287_v6  ;;  %v10056_v29 = vld [vmem:[#allocation95_spill] sm:$0xff]  ;;  %v10060_v26 = vld [vmem:[#allocation58_spill] sm:$0xff] }
 0x3ab   : > { %4838 = vst.msk [vmem:[%s8740_s29 + $0x10] sm:$0xf] %vm4833_vm14, %v5221_v4  ;;  %4841 = vst.msk [vmem:[%s8740_s29 + $0x1c] sm:$0xf] %vm4833_vm14, %v5224_v22  ;;  %v5222_v0 = vpack.c.bf16 %v4678_v51, %v4678_v51  ;;  %v4088_v10 = vadd.f32 %v10054_v55, %v8635_v48  ;;  %v4288_v50 = vadd.f32 %v10055_v23, %v4090_v54  ;;  %v4452_v4 = vpop.f32.mrf.mxu1  ;;  %v10057_v22 = vmax.f32 %v10056_v29, 0.0  ;;  %v10058_v51 = vld [vmem:[#allocation88_spill] sm:$0xff]  ;;  %v8832_v58 = vpop.f32.mrf.mxu0 }
 0x3ac   : > { %v4683_v47 = vadd.f32 %v4651_v28, %v10053_v24  ;;  %v4620_v16 = vadd.f32 %v8681_v37, %v4581_v12  ;;  %v4579_v1 = vmul.f32 %v8652_v57, %v4540_v8  ;;  %v4584_v35 = vmul.f32 %v8652_v57, %v4545_v49  ;;  %v10061_v24 = vld [vmem:[#allocation96_spill] sm:$0xff] }
 0x3ad   : > { %4839 = vst.msk [vmem:[%s8740_s29 + $0x14] sm:$0xf] %vm4833_vm14, %v5222_v0  ;;  %v4681_v20 = vadd.f32 %v4649_v40, %v10057_v22  ;;  %v4543_v6 = vadd.f32 %v4452_v4, %v4285_v56  ;;  %v4093_v48 = vadd.f32 %v10058_v51, %v8639_v13  ;;  %v4286_v28 = vadd.f32 %v8562_v3, %v4088_v10  ;;  %v5844_v54 = vpop.f32.mrf.mxu1  ;;  %v10059_v0 = vld [vmem:[#allocation90_spill] sm:$0xff] }
 0x3ae   : > { %v5227_v18 = vpack.c.bf16 %v4683_v47, %v4683_v47  ;;  %v4652_v61 = vmax.f32 %v4620_v16, 0.0  ;;  %v4618_v41 = vadd.f32 %v8681_v37, %v4579_v1  ;;  %v4623_v8 = vadd.f32 %v8681_v37, %v4584_v35  ;;  %v10063_v1 = vld [vmem:[#allocation64_spill] sm:$0xff]  ;;  %v8853_v35 = vpop.f32.mrf.mxu0 }
 0x3af   : > { %v5225_v12 = vpack.c.bf16 %v4681_v20, %v4681_v20  ;;  %v4582_v32 = vmul.f32 %v8652_v57, %v4543_v6  ;;  %v4546_v56 = vadd.f32 %v5844_v54, %v4288_v50  ;;  %v4091_v13 = vadd.f32 %v10059_v0, %v8643_v15  ;;  %v4455_v55 = vpop.f32.mrf.mxu1  ;;  %v10066_v6 = vld [vmem:[#allocation100_spill] sm:$0xff] }
 0x3b0   : > { %4844 = vst.msk [vmem:[%s8740_s29 + $0x28] sm:$0xf] %vm4833_vm14, %v5227_v18  ;;  %v4094_v3 = vadd.f32 %v10060_v26, %v8647_v21  ;;  %v10062_v47 = vmax.f32 %v10061_v24, 0.0  ;;  %v4650_v49 = vmax.f32 %v4618_v41, 0.0  ;;  %v4655_v10 = vmax.f32 %v4623_v8, 0.0  ;;  %v10064_v18 = vld [vmem:[#allocation97_spill] sm:$0xff] }
 0x3b1   : > { %4842 = vst.msk [vmem:[%s8740_s29 + $0x20] sm:$0xf] %vm4833_vm14, %v5225_v12  ;;  %v4621_v23 = vadd.f32 %v8681_v37, %v4582_v32  ;;  %v4585_v16 = vmul.f32 %v8652_v57, %v4546_v56  ;;  %v4544_v50 = vadd.f32 %v4455_v55, %v4286_v28  ;;  %v4092_v15 = vadd.f32 %v10063_v1, %v8656_v42  ;;  %v5847_v20 = vpop.f32.mrf.mxu1 }
 0x3b2   : > { %v4684_v40 = vadd.f32 %v4652_v61, %v10062_v47  ;;  %v4291_v4 = vadd.f32 %v8603_v45, %v4093_v48  ;;  %v10065_v29 = vmax.f32 %v10064_v18, 0.0  ;;  %v10067_v51 = vmax.f32 %v10066_v6, 0.0  ;;  %v10069_v47 = vld [vmem:[#allocation29_spill] sm:$0xff] }
 0x3b3   : > { %v4653_v41 = vmax.f32 %v4621_v23, 0.0  ;;  %v4624_v54 = vadd.f32 %v8681_v37, %v4585_v16  ;;  %v4583_v28 = vmul.f32 %v8652_v57, %v4544_v50  ;;  %v4289_v42 = vadd.f32 %v8660_v39, %v4091_v13  ;;  %v4468_v8 = vpop.f32.mrf.mxu1 }
 0x3b4   : > { %v5228_v21 = vpack.c.bf16 %v4684_v40, %v4684_v40  ;;  %v4682_v22 = vadd.f32 %v4650_v49, %v10065_v29  ;;  %v4687_v61 = vadd.f32 %v4655_v10, %v10067_v51  ;;  %v4292_v45 = vadd.f32 %v8703_v27, %v4094_v3  ;;  %v8872_v49 = vpop.f32.mrf.mxu0 }
 0x3b5   : > { %v4549_v12 = vadd.f32 %v5847_v20, %v4291_v4  ;;  %v10068_v56 = vmax.f32 %v8496_v60, 0.0  ;;  %v4656_v26 = vmax.f32 %v4624_v54, 0.0  ;;  %v4622_v24 = vadd.f32 %v8681_v37, %v4583_v28  ;;  %v5848_v3 = vpop.f32.mrf.mxu1  ;;  %v10073_v20 = vld [vmem:[#allocation98_spill] sm:$0xff] }
 0x3b6   : > { %4845 = vst.msk [vmem:[%s8740_s29 + $0x2c] sm:$0xf] %vm4833_vm14, %v5228_v21  ;;  %v5226_v48 = vpack.c.bf16 %v4682_v22, %v4682_v22  ;;  %v5231_v32 = vpack.c.bf16 %v4687_v61, %v4687_v61  ;;  %v4097_v40 = vadd.f32 %v10069_v47, %v8664_v59  ;;  %v4290_v39 = vadd.f32 %v8730_v25, %v4092_v15  ;;  %v10071_v59 = vld [vmem:[#allocation36_spill] sm:$0xff] }
 0x3b7   : > { %v4685_v0 = vadd.f32 %v4653_v41, %v10068_v56  ;;  %v4588_v27 = vmul.f32 %v8652_v57, %v4549_v12  ;;  %v4547_v13 = vadd.f32 %v4468_v8, %v4289_v42  ;;  %v10070_v55 = vmax.f32 %v8499_v7, 0.0  ;;  %v4471_v4 = vpop.f32.mrf.mxu1  ;;  %v4245_v41 = vpop.f32.mrf.mxu0 }
 0x3b8   : > { %4843 = vst.msk [vmem:[%s8740_s29 + $0x24] sm:$0xf] %vm4833_vm14, %v5226_v48  ;;  %4848 = vst.msk [vmem:[%s8740_s29 + $0x38] sm:$0xf] %vm4833_vm14, %v5231_v32  ;;  %v4654_v23 = vmax.f32 %v4622_v24, 0.0  ;;  %v4550_v16 = vadd.f32 %v5848_v3, %v4292_v45  ;;  %v4095_v25 = vadd.f32 %v10071_v59, %v8668_v9  ;;  %v4295_v50 = vadd.f32 %v8754_v53, %v4097_v40  ;;  %v10074_v45 = vld [vmem:[#allocation101_spill] sm:$0xff] }
 0x3b9   : > { %v5229_v60 = vpack.c.bf16 %v4685_v0, %v4685_v0  ;;  %v4688_v10 = vadd.f32 %v4656_v26, %v10070_v55  ;;  %v4627_v1 = vadd.f32 %v8681_v37, %v4588_v27  ;;  %v4586_v15 = vmul.f32 %v8652_v57, %v4547_v13  ;;  %v5851_v61 = vpop.f32.mrf.mxu1  ;;  %v10077_v40 = vld [vmem:[#allocation25_spill] sm:$0xff]  ;;  %v5825_v3 = vpop.f32.mrf.mxu0 }
 0x3ba   : > { %v10072_v18 = vmax.f32 %v8502_v36, 0.0  ;;  %v4589_v29 = vmul.f32 %v8652_v57, %v4550_v16  ;;  %v4548_v22 = vadd.f32 %v4471_v4, %v4290_v39  ;;  %v4098_v9 = vadd.f32 %v10073_v20, %v8672_v11  ;;  %v10075_v11 = vld [vmem:[#allocation6_spill] sm:$0xff] }
 0x3bb   : > { %4846 = vst.msk [vmem:[%s8740_s29 + $0x30] sm:$0xf] %vm4833_vm14, %v5229_v60  ;;  %v5232_v21 = vpack.c.bf16 %v4688_v10, %v4688_v10  ;;  %v4293_v53 = vadd.f32 %v8774_v52, %v4095_v25  ;;  %v4659_v6 = vmax.f32 %v4627_v1, 0.0  ;;  %v4625_v51 = vadd.f32 %v8681_v37, %v4586_v15  ;;  %v4484_v56 = vpop.f32.mrf.mxu1 }
 0x3bc   : > { %v4686_v7 = vadd.f32 %v4654_v23, %v10072_v18  ;;  %v4628_v36 = vadd.f32 %v8681_v37, %v4589_v29  ;;  %v4587_v28 = vmul.f32 %v8652_v57, %v4548_v22  ;;  %v4553_v42 = vadd.f32 %v5851_v61, %v4295_v50  ;;  %v4258_v22 = vpop.f32.mrf.mxu0 }
 0x3bd   : > { %4849 = vst.msk [vmem:[%s8740_s29 + $0x3c] sm:$0xf] %vm4833_vm14, %v5232_v21  ;;  %v4096_v48 = vadd.f32 %v10074_v45, %v8676_v30  ;;  %v4101_v12 = vadd.f32 %v10075_v11, %v8685_v5  ;;  %v10076_v52 = vmax.f32 %v8505_v31, 0.0  ;;  %v4657_v32 = vmax.f32 %v4625_v51, 0.0  ;;  %v5852_v13 = vpop.f32.mrf.mxu1  ;;  %v10081_v21 = vld [vmem:[#allocation2_spill] sm:$0xff] }
 0x3be   : > { %v5230_v54 = vpack.c.bf16 %v4686_v7, %v4686_v7  ;;  %v4660_v0 = vmax.f32 %v4628_v36, 0.0  ;;  %v4626_v26 = vadd.f32 %v8681_v37, %v4587_v28  ;;  %v4592_v24 = vmul.f32 %v8652_v57, %v4553_v42 }
 0x3bf   : > { %v4691_v8 = vadd.f32 %v4659_v6, %v10076_v52  ;;  %v4551_v47 = vadd.f32 %v4484_v56, %v4293_v53  ;;  %v4099_v30 = vadd.f32 %v10077_v40, %v8691_v63  ;;  %v4296_v39 = vadd.f32 %v8793_v38, %v4098_v9  ;;  %v4487_v25 = vpop.f32.mrf.mxu1  ;;  %v10087_v40 = vld [vmem:[#allocation40_spill] sm:$0xff] }
 0x3c0   : > { %4847 = vst.msk [vmem:[%s8740_s29 + $0x34] sm:$0xf] %vm4833_vm14, %v5230_v54  ;;  %v10078_v31 = vmax.f32 %v8508_v34, 0.0  ;;  %v10079_v60 = vmax.f32 %v8511_v43, 0.0  ;;  %v4658_v10 = vmax.f32 %v4626_v26, 0.0  ;;  %v4631_v23 = vadd.f32 %v8681_v37, %v4592_v24  ;;  %v10085_v26 = vld [vmem:[#allocation11_spill] sm:$0xff] }
 0x3c1   : > { %v5235_v5 = vpack.c.bf16 %v4691_v8, %v4691_v8  ;;  %v4590_v16 = vmul.f32 %v8652_v57, %v4551_v47  ;;  %v4294_v59 = vadd.f32 %v8812_v14, %v4096_v48  ;;  %v4299_v63 = vadd.f32 %v8832_v58, %v4101_v12  ;;  %v5855_v29 = vpop.f32.mrf.mxu1  ;;  %v5826_v8 = vpop.f32.mrf.mxu0  ;;  %v10086_v24 = vld [vmem:[#allocation21_spill] sm:$0xff] }
 0x3c2   : > { %v4689_v27 = vadd.f32 %v4657_v32, %v10078_v31  ;;  %v4692_v55 = vadd.f32 %v4660_v0, %v10079_v60  ;;  %v4554_v38 = vadd.f32 %v5852_v13, %v4296_v39  ;;  %v10080_v43 = vmax.f32 %v8514_v62, 0.0 }
 0x3c3   : > { %4852 = vst.msk [vmem:[%s8740_s29 + $0x48] sm:$0xf] %vm4833_vm14, %v5235_v5  ;;  %v4663_v15 = vmax.f32 %v4631_v23, 0.0  ;;  %v4629_v4 = vadd.f32 %v8681_v37, %v4590_v16  ;;  %v4102_v18 = vadd.f32 %v10081_v21, %v8695_v17  ;;  %v4297_v14 = vadd.f32 %v8853_v35, %v4099_v30  ;;  %v10083_v17 = vld [vmem:[#allocation39_spill] sm:$0xff]  ;;  %v4500_v36 = vpop.f32.mrf.mxu1  ;;  %v10092_v23 = vld [vmem:[#allocation32_spill] sm:$0xff] }
 0x3c4   : > { %v5233_v34 = vpack.c.bf16 %v4689_v27, %v4689_v27  ;;  %v5236_v50 = vpack.c.bf16 %v4692_v55, %v4692_v55  ;;  %v4690_v1 = vadd.f32 %v4658_v10, %v10080_v43  ;;  %v4593_v58 = vmul.f32 %v8652_v57, %v4554_v38  ;;  %v10091_v10 = vld [vmem:[#allocation47_spill] sm:$0xff]  ;;  %v4261_v43 = vpop.f32.mrf.mxu0 }
 0x3c5   : > { %v4552_v7 = vadd.f32 %v4487_v25, %v4294_v59  ;;  %v10082_v20 = vmax.f32 %v8517_v46, 0.0  ;;  %v4661_v53 = vmax.f32 %v4629_v4, 0.0  ;;  %v4557_v6 = vadd.f32 %v5855_v29, %v4299_v63  ;;  %v5856_v52 = vpop.f32.mrf.mxu1 }
 0x3c6   : > { %4850 = vst.msk [vmem:[%s8740_s29 + $0x40] sm:$0xf] %vm4833_vm14, %v5233_v34  ;;  %4853 = vst.msk [vmem:[%s8740_s29 + $0x4c] sm:$0xf] %vm4833_vm14, %v5236_v50  ;;  %v5234_v62 = vpack.c.bf16 %v4690_v1, %v4690_v1  ;;  %v4100_v51 = vadd.f32 %v10083_v17, %v8699_v44  ;;  %v4300_v35 = vadd.f32 %v8872_v49, %v4102_v18  ;;  %v10084_v42 = vmax.f32 %v8522_v2, 0.0  ;;  %v10093_v34 = vld [vmem:[#allocation3_spill] sm:$0xff] }
 0x3c7   : > { %v4695_v9 = vadd.f32 %v4663_v15, %v10082_v20  ;;  %v4632_v61 = vadd.f32 %v8681_v37, %v4593_v58  ;;  %v4591_v54 = vmul.f32 %v8652_v57, %v4552_v7  ;;  %v4596_v45 = vmul.f32 %v8652_v57, %v4557_v6  ;;  %v4503_v31 = vpop.f32.mrf.mxu1  ;;  %v10095_v1 = vld [vmem:[#allocation7_spill] sm:$0xff] }
 0x3c8   : > { %4851 = vst.msk [vmem:[%s8740_s29 + $0x44] sm:$0xf] %vm4833_vm14, %v5234_v62  ;;  %v4693_v46 = vadd.f32 %v4661_v53, %v10084_v42  ;;  %v4555_v48 = vadd.f32 %v4500_v36, %v4297_v14  ;;  %v4105_v44 = vadd.f32 %v8556_v33, %v8709_v19  ;;  %v4298_v11 = vadd.f32 %v4245_v41, %v4100_v51  ;;  %v10088_v33 = vld [vmem:[#allocation27_spill] sm:$0xff]  ;;  %v10089_v41 = vld [vmem:[#allocation46_spill] sm:$0xff] }
 0x3c9   : > { %v5239_v28 = vpack.c.bf16 %v4695_v9, %v4695_v9  ;;  %v4664_v49 = vmax.f32 %v4632_v61, 0.0  ;;  %v4630_v12 = vadd.f32 %v8681_v37, %v4591_v54  ;;  %v4635_v56 = vadd.f32 %v8681_v37, %v4596_v45  ;;  %v5859_v50 = vpop.f32.mrf.mxu1  ;;  %v10097_v9 = vld [vmem:[#allocation13_spill] sm:$0xff]  ;;  %v10100_v61 = vld [vmem:[#allocation86_spill] sm:$0xff] }
 0x3ca   : > { %v5237_v32 = vpack.c.bf16 %v4693_v46, %v4693_v46  ;;  %v4594_v2 = vmul.f32 %v8652_v57, %v4555_v48  ;;  %v4558_v0 = vadd.f32 %v5856_v52, %v4300_v35  ;;  %v4103_v47 = vadd.f32 %v10086_v24, %v10085_v26  ;;  %v10099_v35 = vld [vmem:[#allocation50_spill] sm:$0xff]  ;;  %v10104_v52 = vld [vmem:[#allocation49_spill] sm:$0xff] }
 0x3cb   : > { %4856 = vst.msk [vmem:[%s8740_s29 + $0x58] sm:$0xf] %vm4833_vm14, %v5239_v28  ;;  %v4106_v19 = vadd.f32 %v10088_v33, %v10087_v40  ;;  %v10090_v30 = vmax.f32 %v10089_v41, 0.0  ;;  %v4662_v5 = vmax.f32 %v4630_v12, 0.0  ;;  %v4667_v27 = vmax.f32 %v4635_v56, 0.0  ;;  %v4516_v62 = vpop.f32.mrf.mxu1  ;;  %v10101_v45 = vld [vmem:[#allocation14_spill] sm:$0xff] }
 0x3cc   : > { %4854 = vst.msk [vmem:[%s8740_s29 + $0x50] sm:$0xf] %vm4833_vm14, %v5237_v32  ;;  %v4633_v13 = vadd.f32 %v8681_v37, %v4594_v2  ;;  %v4597_v60 = vmul.f32 %v8652_v57, %v4558_v0  ;;  %v4556_v55 = vadd.f32 %v4503_v31, %v4298_v11  ;;  %v4104_v16 = vadd.f32 %v10092_v23, %v10091_v10  ;;  %v10103_v12 = vld [vmem:[#allocation22_spill] sm:$0xff] }
 0x3cd   : > { %v4696_v39 = vadd.f32 %v4664_v49, %v10090_v30  ;;  %v4303_v59 = vadd.f32 %v5825_v3, %v4105_v44  ;;  %v10094_v38 = vmax.f32 %v10093_v34, 0.0  ;;  %v10096_v15 = vmax.f32 %v10095_v1, 0.0  ;;  %v5860_v42 = vpop.f32.mrf.mxu1  ;;  %v10105_v32 = vld [vmem:[#allocation26_spill] sm:$0xff] }
 0x3ce   : > { %v4665_v21 = vmax.f32 %v4633_v13, 0.0  ;;  %v4636_v18 = vadd.f32 %v8681_v37, %v4597_v60  ;;  %v4595_v14 = vmul.f32 %v8652_v57, %v4556_v55  ;;  %v4301_v58 = vadd.f32 %v4258_v22, %v4103_v47  ;;  %v10106_v47 = vld [vmem:[#allocation17_spill] sm:$0xff]  ;;  %v10108_v30 = vld [vmem:[#allocation18_spill] sm:$0xff] }
 0x3cf   : > { %v5240_v63 = vpack.c.bf16 %v4696_v39, %v4696_v39  ;;  %v4694_v25 = vadd.f32 %v4662_v5, %v10094_v38  ;;  %v4699_v4 = vadd.f32 %v4667_v27, %v10096_v15  ;;  %v4304_v7 = vadd.f32 %v5826_v8, %v4106_v19  ;;  %v4519_v26 = vpop.f32.mrf.mxu1 }
 0x3d0   : > { %v4561_v29 = vadd.f32 %v5859_v50, %v4303_v59  ;;  %v10098_v53 = vmax.f32 %v10097_v9, 0.0  ;;  %v4668_v17 = vmax.f32 %v4636_v18, 0.0  ;;  %v4634_v51 = vadd.f32 %v8681_v37, %v4595_v14 }
 0x3d1   : > { %4857 = vst.msk [vmem:[%s8740_s29 + $0x5c] sm:$0xf] %vm4833_vm14, %v5240_v63  ;;  %v5238_v3 = vpack.c.bf16 %v4694_v25, %v4694_v25  ;;  %v5243_v20 = vpack.c.bf16 %v4699_v4, %v4699_v4  ;;  %v1262_v54 = vmul.f32 %v10100_v61, %v10099_v35  ;;  %v4302_v36 = vadd.f32 %v4261_v43, %v4104_v16 }
 0x3d2   : > { %v4697_v6 = vadd.f32 %v4665_v21, %v10098_v53  ;;  %v4600_v22 = vmul.f32 %v8652_v57, %v4561_v29  ;;  %v4559_v28 = vadd.f32 %v4516_v62, %v4301_v58  ;;  %v10102_v48 = vmax.f32 %v10101_v45, 0.0 }
 0x3d3   : > { %4855 = vst.msk [vmem:[%s8740_s29 + $0x54] sm:$0xf] %vm4833_vm14, %v5238_v3  ;;  %4860 = vst.msk [vmem:[%s8740_s29 + $0x68] sm:$0xf] %vm4833_vm14, %v5243_v20  ;;  %v4666_v11 = vmax.f32 %v4634_v51, 0.0  ;;  %v4562_v49 = vadd.f32 %v5860_v42, %v4304_v7  ;;  %v1300_v8 = vadd.f32 %v10104_v52, %v10103_v12  ;;  %v1303_v56 = vadd.f32 %v10104_v52, %v10105_v32 }
 0x3d4   : > { %v5241_v46 = vpack.c.bf16 %v4697_v6, %v4697_v6  ;;  %v4700_v44 = vadd.f32 %v4668_v17, %v10102_v48  ;;  %v4639_v2 = vadd.f32 %v8681_v37, %v4600_v22  ;;  %v4598_v0 = vmul.f32 %v8652_v57, %v4559_v28 }
 0x3d5   : > { %v10107_v40 = vmax.f32 %v10106_v47, 0.0  ;;  %v4601_v19 = vmul.f32 %v8652_v57, %v4562_v49  ;;  %v4560_v41 = vadd.f32 %v4519_v26, %v4302_v36  ;;  %v1334_v39 = vmax.f32 %v10108_v30, 0.0 }
 0x3d6   : > { %4858 = vst.msk [vmem:[%s8740_s29 + $0x60] sm:$0xf] %vm4833_vm14, %v5241_v46  ;;  %v5244_v24 = vpack.c.bf16 %v4700_v44, %v4700_v44  ;;  %v4671_v5 = vmax.f32 %v4639_v2, 0.0  ;;  %v4637_v31 = vadd.f32 %v8681_v37, %v4598_v0  ;;  %v1301_v27 = vadd.f32 %v10104_v52, %v1262_v54 }
 0x3d7   : > { %v4698_v33 = vadd.f32 %v4666_v11, %v10107_v40  ;;  %v4640_v60 = vadd.f32 %v8681_v37, %v4601_v19  ;;  %v4599_v55 = vmul.f32 %v8652_v57, %v4560_v41  ;;  %v1332_v10 = vmax.f32 %v1300_v8, 0.0 }
 0x3d8   : > { %4861 = vst.msk [vmem:[%s8740_s29 + $0x6c] sm:$0xf] %vm4833_vm14, %v5244_v24  ;;  %v4703_v23 = vadd.f32 %v4671_v5, %v1334_v39  ;;  %v4669_v16 = vmax.f32 %v4637_v31, 0.0  ;;  %v1335_v59 = vmax.f32 %v1303_v56, 0.0  ;;  %v1333_v50 = vmax.f32 %v1301_v27, 0.0 }
 0x3d9   : > { %v5242_v13 = vpack.c.bf16 %v4698_v33, %v4698_v33  ;;  %v4672_v63 = vmax.f32 %v4640_v60, 0.0  ;;  %v4638_v34 = vadd.f32 %v8681_v37, %v4599_v55 }
 0x3da   : > { %v5247_v38 = vpack.c.bf16 %v4703_v23, %v4703_v23  ;;  %v4701_v25 = vadd.f32 %v4669_v16, %v1332_v10 }
 0x3db   : > { %4859 = vst.msk [vmem:[%s8740_s29 + $0x64] sm:$0xf] %vm4833_vm14, %v5242_v13  ;;  %v4704_v43 = vadd.f32 %v4672_v63, %v1335_v59  ;;  %v4670_v1 = vmax.f32 %v4638_v34, 0.0 }
 0x3dc   : > { %4864 = vst.msk [vmem:[%s8740_s29 + $0x78] sm:$0xf] %vm4833_vm14, %v5247_v38  ;;  %v5245_v57 = vpack.c.bf16 %v4701_v25, %v4701_v25 }
 0x3dd   : > { %v5248_v15 = vpack.c.bf16 %v4704_v43, %v4704_v43  ;;  %v4702_v4 = vadd.f32 %v4670_v1, %v1333_v50 }
 0x3de   : > { %4862 = vst.msk [vmem:[%s8740_s29 + $0x70] sm:$0xf] %vm4833_vm14, %v5245_v57 }
 0x3df   : > { %4865 = vst.msk [vmem:[%s8740_s29 + $0x7c] sm:$0xf] %vm4833_vm14, %v5248_v15  ;;  %v5246_v21 = vpack.c.bf16 %v4702_v4, %v4702_v4 }
 0x3e1   : > { %4863 = vst.msk [vmem:[%s8740_s29 + $0x74] sm:$0xf] %vm4833_vm14, %v5246_v21 }
 0x3e2 PF: > { %s21_s17 = sadd.s32 1, %s5905_s17  }
 0x3e3   : > { %p18_p4 = scmp.ge.s32.totalorder %s21_s17, 4  }
 0x3e5   :  { %20 = sbr.rel (!%p18_p4) target bundleno = 1 (0x1), region = 102 }

// kernel: unet_decoder_forward.5
= control target key start
LH: loop header
LB: loop body
LE: loop exit
PB: predicated region body
PF: predicated region fallthrough
CT: control target
= control target key end

     0   :  { %s6044_s17 = smov 0   ;;  %s9074_s0 = inlined_call_operand.vmem [shape: bf16[2,256,32], index: 0, kind: input, shape index: {}]   ;;  %s9075_s1 = inlined_call_operand.vmem [shape: bf16[32,16], index: 1, kind: input, shape index: {}]   ;;  %s9076_s2 = inlined_call_operand.vmem [shape: bf16[16,16], index: 2, kind: input, shape index: {}]   ;;  %s9077_s3 = inlined_call_operand.vmem [shape: f32[1,16], index: 3, kind: input, shape index: {}]   ;;  %s9078_s4 = inlined_call_operand.vmem [shape: f32[1,16], index: 4, kind: input, shape index: {}]   ;;  %s9079_s5 = inlined_call_operand.vmem [shape: bf16[16,16], index: 5, kind: input, shape index: {}]   ;;  %s9080_s6 = inlined_call_operand.vmem [shape: f32[1,16], index: 6, kind: input, shape index: {}]   ;;  %s9081_s7 = inlined_call_operand.vmem [shape: f32[1,16], index: 7, kind: input, shape index: {}]   ;;  %s9082_s8 = inlined_call_operand.vmem [shape: bf16[9,16,16], index: 8, kind: input, shape index: {}]   ;;  %s9083_s9 = inlined_call_operand.vmem [shape: f32[1,16], index: 9, kind: input, shape index: {}]   ;;  %s9084_s10 = inlined_call_operand.vmem [shape: f32[1,16], index: 10, kind: input, shape index: {}]   ;;  %s9085_s11 = inlined_call_operand.vmem [shape: bf16[2,256,16], index: 11, kind: output, shape index: {}]  }
   0x1 LB: > { %s4972_s18 = sadd.s32 4294967295, %s5980_s17   ;;  %p4976_p0 = scmp.ge.s32.totalorder %s5980_s17, 1  ;;  %s5980_s17 = sphi %s6044_s17, %s21_s17  }
   0x2   : > { %p337_p1 = scmp.lt.s32.totalorder %s5980_s17, 3 }
   0x4   : > { %p338_p2 = pnand %p4976_p0, %p337_p1 }
   0x6   : > { %341 = sbr.rel (%p338_p2) target bundleno = 991 (0x3df), region = 64 }
   0xb   : > { %v5945_v0 = vld [vmem:[%s9075_s1 + $0x8] sm:$0xff]   ;;  %p377_p3 = scmp.lt.s32.totalorder %s4972_s18, 1  ;;  %v5946_v1 = vld [vmem:[%s9075_s1] sm:$0xff]   ;;  %vm518_vm0 = vcmask 261120   ;;  %vm9086_vm1 = vcmask 130048   ;;  %vm5983_vm6 = vmmov 1  }
   0xc   : > { %5525 = vmatprep.subr.bf16.mxu0 %v5945_v0  ;;  %v5963_v18 = vld [vmem:[%s9076_s2] sm:$0xff]   ;;  %v5965_v22 = vld [vmem:[%s9082_s8 + $0x8] sm:$0xff]   ;;  %vm6186_vm7 = vmpackc.low %vm5983_vm6, %vm5983_vm6 }
   0xd   : > { %s10143_s18 = smov (!%p377_p3, %s4972_s18), 1  ;;  %5526 = vmatpush3.bf16.msra.mxu0 %v5945_v0  ;;  %5561 = vmatprep.subr.bf16.mxu1 %v5963_v18  ;;  %v5964_v19 = vld [vmem:[%s9079_s5] sm:$0xff]  }
   0xe   : > { %5527 = vmatprep.subr.bf16.mxu0 %v5946_v1  ;;  %s5286_s23 = sshll.u32 %s10143_s18, 7  ;;  %5562 = vmatpush3.bf16.msra.mxu1 %v5963_v18 }
   0xf   : > { %s6066_s26 = scalar_lea.vmem %s9074_s0, %s5286_s23  ;;  %5595 = vmatprep.subr.bf16.mxu1 %v5964_v19  ;;  %s8800_s12 = scalar_lea.vmem %s9085_s11, %s5286_s23 }
  0x10   : > { %v5947_v2 = vld [vmem:[%s6066_s26] sm:$0xff]   ;;  %v5948_v3 = vld [vmem:[%s6066_s26 + $0x8] sm:$0xff]   ;;  %v5949_v4 = vld [vmem:[%s6066_s26 + $0x10] sm:$0xff]  }
  0x11   : > { %5528 = vmatpush3.bf16.msra.mxu0 %v5946_v1  ;;  %5529 = vmatprep.mubr.msk.bf16.mxu0 %vm518_vm0, %v5947_v2  ;;  %v5950_v5 = vld [vmem:[%s6066_s26 + $0x18] sm:$0xff]   ;;  %v5951_v6 = vld [vmem:[%s6066_s26 + $0x20] sm:$0xff]   ;;  %v5952_v7 = vld [vmem:[%s6066_s26 + $0x28] sm:$0xff]  }
  0x12   : > { %v5953_v8 = vld [vmem:[%s6066_s26 + $0x30] sm:$0xff]   ;;  %v5954_v9 = vld [vmem:[%s6066_s26 + $0x38] sm:$0xff]   ;;  %v5955_v10 = vld [vmem:[%s6066_s26 + $0x40] sm:$0xff]   ;;  %5629 = vmatprep.subr.bf16.mxu0 %v5965_v22 }
  0x13   : > { %v5956_v11 = vld [vmem:[%s6066_s26 + $0x48] sm:$0xff]   ;;  %v5957_v12 = vld [vmem:[%s6066_s26 + $0x50] sm:$0xff]   ;;  %v5958_v13 = vld [vmem:[%s6066_s26 + $0x58] sm:$0xff]  }
  0x14   : > { %5530 = vmatmul.mubr.msk.bf16.vlgmr.msra.gmra.mxu0 %vm518_vm0, %v5948_v3  ;;  %v5959_v14 = vld [vmem:[%s6066_s26 + $0x60] sm:$0xff]   ;;  %v5960_v15 = vld [vmem:[%s6066_s26 + $0x68] sm:$0xff]   ;;  %v5961_v16 = vld [vmem:[%s6066_s26 + $0x70] sm:$0xff]  }
  0x15   : > { %5533 = vmatprep.mubr.msk.bf16.mxu0 %vm518_vm0, %v5949_v4  ;;  %v5962_v17 = vld [vmem:[%s6066_s26 + $0x78] sm:$0xff]   ;;  %5630 = vmatpush3.bf16.msra.mxu0 %v5965_v22 }
  0x1c   : > { %5534 = vmatmul.mubr.msk.bf16.gmra.mxu0 %vm518_vm0, %v5950_v5  ;;  %v9097_v5 = vmov 0  }
  0x1d   : > { %5537 = vmatprep.mubr.msk.bf16.mxu0 %vm518_vm0, %v5951_v6  ;;  %v5966_v6 = vld [vmem:[%s9082_s8] sm:$0xff]  }
  0x24   : > { %5538 = vmatmul.mubr.msk.bf16.gmra.mxu0 %vm518_vm0, %v5952_v7  ;;  %v6139_v7 = vld [vmem:[%s9082_s8 + $0x10] sm:$0xff]  }
  0x25   : > { %5541 = vmatprep.mubr.msk.bf16.mxu0 %vm518_vm0, %v5953_v8  ;;  %5697 = vmatprep.subr.bf16.mxu0 %v6139_v7  ;;  %v6155_v8 = vld [vmem:[%s9082_s8 + $0x18] sm:$0xff]  }
  0x2c   : > { %5542 = vmatmul.mubr.msk.bf16.gmra.mxu0 %vm518_vm0, %v5954_v9  ;;  %v1367_v9 = vlaneseq }
  0x2d   : > { %5545 = vmatprep.mubr.msk.bf16.mxu0 %vm518_vm0, %v5955_v10 }
  0x2e   : > { %v6158_v10 = vshrl.u32 %v1367_v9, 7 }
  0x30   : > { %v1376_v18 = vadd.s32 64, %v6158_v10  ;;  %v1373_v22 = vadd.s32 40, %v6158_v10 }
  0x34   : > { %5546 = vmatmul.mubr.msk.bf16.gmra.mxu0 %vm518_vm0, %v5956_v11  ;;  %v1370_v11 = vadd.s32 16, %v6158_v10 }
  0x35   : > { %5549 = vmatprep.mubr.msk.bf16.mxu0 %vm518_vm0, %v5957_v12  ;;  %v1372_v12 = vadd.s32 32, %v6158_v10 }
  0x3c   : > { %5550 = vmatmul.mubr.msk.bf16.gmra.mxu0 %vm518_vm0, %v5958_v13  ;;  %v1369_v13 = vadd.s32 8, %v6158_v10 }
  0x3d   : > { %5553 = vmatprep.mubr.msk.bf16.mxu0 %vm518_vm0, %v5959_v14  ;;  %v1418_v14 = vand.u32 15, %v1370_v11  ;;  %v1392_v11 = vadd.s32 192, %v6158_v10 }
  0x3f   : > { %vm6166_vm2 = vcmp.gt.s32.totalorder %v1418_v14, 0 }
  0x40   : > { %vm2018_vm4 = vmpackc.low %vm6166_vm2, %vm6166_vm2 }
  0x44   : > { %5554 = vmatmul.mubr.msk.bf16.gmra.mxu0 %vm518_vm0, %v5960_v15  ;;  %v1371_v15 = vadd.s32 24, %v6158_v10 }
  0x45   : > { %5557 = vmatprep.mubr.msk.bf16.mxu0 %vm518_vm0, %v5961_v16  ;;  %v1374_v16 = vadd.s32 48, %v6158_v10 }
  0x4c   : > { %5558 = vmatmul.mubr.msk.bf16.gmra.mxu0 %vm518_vm0, %v5962_v17  ;;  %v1432_v17 = vand.u32 15, %v1372_v12 }
  0x4d   : > { %5631 = vmatprep.mubr.bf16.mxu0 %v9097_v5 }
  0x4e   : > { %vm6172_vm3 = vcmp.gt.s32.totalorder %v1432_v17, 0 }
  0x4f   : > { %vm2020_vm9 = vmpackc.low %vm6172_vm3, %vm6172_vm3 }
  0xd4   : > { %v5531_v20 = vpop.f32.mrf.mxu0 }
  0xd6   : > { %v601_v21 = vpop.f32.mrf.mxu0 }
  0xd8   : > { %v5532_v23 = vpop.f32.mrf.mxu0 }
  0xd9   : > { %v729_v26 = vpack.c.bf16 %v5532_v23, %v5531_v20  ;;  %v1446_v23 = vand.u32 15, %v1374_v16 }
  0xda   : > { %v604_v24 = vpop.f32.mrf.mxu0 }
  0xdb   : > { %v728_v25 = vpack.c.bf16 %v604_v24, %v601_v21  ;;  %v1425_v21 = vand.u32 15, %v1371_v15  ;;  %v1378_v24 = vadd.s32 80, %v6158_v10  ;;  %vm6198_vm10 = vcmp.gt.s32.totalorder %v1446_v23, 0 }
  0xdc   : > { %v5535_v27 = vpop.f32.mrf.mxu0  ;;  %vm2022_vm15 = vmpackc.low %vm6198_vm10, %vm6198_vm10 }
  0xdd   : > { %5563 = vmatprep.mubr.msk.bf16.mxu1 %vm9086_vm1, %v728_v25  ;;  %vm6191_vm8 = vcmp.lt.s32.totalorder %v1425_v21, 15 }
  0xde   : > { %v617_v28 = vpop.f32.mrf.mxu0  ;;  %5564 = vmatmul.mubr.msk.bf16.vlgmr.msra.gmra.mxu1 %vm9086_vm1, %v729_v26  ;;  %vm2738_vm13 = vmpackc.low %vm6191_vm8, %vm6191_vm8 }
  0xdf   : > { %5596 = vmatpush3.bf16.msra.mxu1 %v5964_v19  ;;  %v1411_v19 = vand.u32 15, %v1369_v13 }
  0xe0   : > { %v5536_v29 = vpop.f32.mrf.mxu0  ;;  %5663 = vmatprep.subr.bf16.mxu1 %v5966_v6 }
  0xe1   : > { %v731_v32 = vpack.c.bf16 %v5536_v29, %v5535_v27  ;;  %v1380_v27 = vadd.s32 96, %v6158_v10  ;;  %vm6180_vm5 = vcmp.lt.s32.totalorder %v1411_v19, 15  ;;  %v1404_v29 = vand.u32 15, %v6158_v10 }
  0xe2   : > { %v620_v30 = vpop.f32.mrf.mxu0  ;;  %vm2736_vm12 = vmpackc.low %vm6180_vm5, %vm6180_vm5 }
  0xe3   : > { %v730_v31 = vpack.c.bf16 %v620_v30, %v617_v28  ;;  %v1375_v30 = vadd.s32 56, %v6158_v10  ;;  %vm6213_vm14 = vcmp.gt.s32.totalorder %v1404_v29, 0 }
  0xe4   : > { %v5539_v33 = vpop.f32.mrf.mxu0 }
  0xe5   : > { %5567 = vmatprep.mubr.msk.bf16.mxu1 %vm9086_vm1, %v730_v31 }
  0xe6   : > { %v633_v34 = vpop.f32.mrf.mxu0  ;;  %5568 = vmatmul.mubr.msk.bf16.gmra.mxu1 %vm9086_vm1, %v731_v32 }
  0xe8   : > { %v5540_v35 = vpop.f32.mrf.mxu0 }
  0xe9   : > { %v733_v38 = vpack.c.bf16 %v5540_v35, %v5539_v33 }
  0xea   : > { %v636_v36 = vpop.f32.mrf.mxu0 }
  0xeb   : > { %v732_v37 = vpack.c.bf16 %v636_v36, %v633_v34  ;;  %v1439_v34 = vand.u32 15, %v1373_v22  ;;  %v1474_v36 = vand.u32 15, %v1378_v24 }
  0xec   : > { %v5543_v39 = vpop.f32.mrf.mxu0 }
  0xed   : > { %5571 = vmatprep.mubr.msk.bf16.mxu1 %vm9086_vm1, %v732_v37  ;;  %vm6222_vm0 = vcmp.lt.s32.totalorder %v1439_v34, 15 }
  0xee   : > { %v649_v40 = vpop.f32.mrf.mxu0  ;;  %5572 = vmatmul.mubr.msk.bf16.gmra.mxu1 %vm9086_vm1, %v733_v38  ;;  %vm2740_vm3 = vmpackc.low %vm6222_vm0, %vm6222_vm0 }
  0xef   : > { %v6388_v23 = vsel %vm2740_vm3, 65537, %v9097_v5 }
  0xf0   : > { %v5544_v41 = vpop.f32.mrf.mxu0 }
  0xf1   : > { %v735_v44 = vpack.c.bf16 %v5544_v41, %v5543_v39  ;;  %v1384_v39 = vadd.s32 128, %v6158_v10  ;;  %v1453_v41 = vand.u32 15, %v1375_v30 }
  0xf2   : > { %v652_v42 = vpop.f32.mrf.mxu0 }
  0xf3   : > { %v734_v43 = vpack.c.bf16 %v652_v42, %v649_v40  ;;  %v1377_v42 = vadd.s32 72, %v6158_v10 }
  0xf4   : > { %v5547_v45 = vpop.f32.mrf.mxu0 }
  0xf5   : > { %5575 = vmatprep.mubr.msk.bf16.mxu1 %vm9086_vm1, %v734_v43 }
  0xf6   : > { %v665_v46 = vpop.f32.mrf.mxu0  ;;  %5576 = vmatmul.mubr.msk.bf16.gmra.mxu1 %vm9086_vm1, %v735_v44 }
  0xf8   : > { %v5548_v47 = vpop.f32.mrf.mxu0 }
  0xf9   : > { %v737_v50 = vpack.c.bf16 %v5548_v47, %v5547_v45  ;;  %v6237_v47 = vsel %vm6186_vm7, 65537, %v9097_v5  ;;  %vm6275_vm7 = vcmp.lt.s32.totalorder %v1453_v41, 15 }
  0xfa   : > { %v668_v48 = vpop.f32.mrf.mxu0 }
  0xfb   : > { %v736_v49 = vpack.c.bf16 %v668_v48, %v665_v46  ;;  %v6232_v46 = vsel %vm2018_vm4, 65537, %v9097_v5 }
  0xfc   : > { %v5551_v51 = vpop.f32.mrf.mxu0 }
  0xfd   : > { %5579 = vmatprep.mubr.msk.bf16.mxu1 %vm9086_vm1, %v736_v49 }
  0xfe   : > { %v681_v52 = vpop.f32.mrf.mxu0  ;;  %5580 = vmatmul.mubr.msk.bf16.gmra.mxu1 %vm9086_vm1, %v737_v50 }
 0x100   : > { %v5552_v53 = vpop.f32.mrf.mxu0 }
 0x101   : > { %v739_v56 = vpack.c.bf16 %v5552_v53, %v5551_v51  ;;  %v1379_v53 = vadd.s32 88, %v6158_v10 }
 0x102   : > { %v684_v54 = vpop.f32.mrf.mxu0 }
 0x103   : > { %v738_v55 = vpack.c.bf16 %v684_v54, %v681_v52  ;;  %v1516_v52 = vand.u32 15, %v1384_v39  ;;  %v1390_v54 = vadd.s32 176, %v6158_v10 }
 0x104   : > { %v5555_v57 = vpop.f32.mrf.mxu0 }
 0x105   : > { %5583 = vmatprep.mubr.msk.bf16.mxu1 %vm9086_vm1, %v738_v55  ;;  %vm6314_vm8 = vcmp.gt.s32.totalorder %v1516_v52, 0  ;;  %v1558_v9 = vand.u32 15, %v1390_v54 }
 0x106   : > { %v697_v58 = vpop.f32.mrf.mxu0  ;;  %5584 = vmatmul.mubr.msk.bf16.gmra.mxu1 %vm9086_vm1, %v739_v56 }
 0x108   : > { %v5556_v59 = vpop.f32.mrf.mxu0 }
 0x109   : > { %v741_v62 = vpack.c.bf16 %v5556_v59, %v5555_v57  ;;  %v1467_v57 = vand.u32 15, %v1377_v42 }
 0x10a   : > { %v700_v60 = vpop.f32.mrf.mxu0 }
 0x10b   : > { %v740_v61 = vpack.c.bf16 %v700_v60, %v697_v58  ;;  %v6292_v60 = vsel %vm2738_vm13, 65537, %v9097_v5  ;;  %vm6329_vm10 = vcmp.lt.s32.totalorder %v1467_v57, 15 }
 0x10c   : > { %v5559_v63 = vpop.f32.mrf.mxu0  ;;  %v5103_v12 = vcombine.low %v6237_v47, %v6292_v60  ;;  %vm2744_vm0 = vmpackc.low %vm6329_vm10, %vm6329_vm10 }
 0x10d   : > { %5587 = vmatprep.mubr.msk.bf16.mxu1 %vm9086_vm1, %v740_v61 }
 0x10e   : > { %v713_v0 = vpop.f32.mrf.mxu0  ;;  %5588 = vmatmul.mubr.msk.bf16.gmra.mxu1 %vm9086_vm1, %v741_v62 }
 0x110   : > { %v5560_v1 = vpop.f32.mrf.mxu0 }
 0x111   : > { %v743_v4 = vpack.c.bf16 %v5560_v1, %v5559_v63  ;;  %v6312_v1 = vsel %vm2022_vm15, 65537, %v9097_v5 }
 0x112   : > { %v716_v2 = vpop.f32.mrf.mxu0  ;;  %v5055_v29 = vcombine.low %v6312_v1, %v6237_v47 }
 0x113   : > { %v742_v3 = vpack.c.bf16 %v716_v2, %v713_v0 }
 0x115   : > { %5591 = vmatprep.mubr.msk.bf16.mxu1 %vm9086_vm1, %v742_v3 }
 0x116   : > { %5592 = vmatmul.mubr.msk.bf16.gmra.mxu1 %vm9086_vm1, %v743_v4 }
 0x117   : > { %5597 = vmatprep.mubr.msk.bf16.mxu1 %vm9086_vm1, %v728_v25 }
 0x11e   : > { %5598 = vmatmul.mubr.msk.bf16.vlgmr.msra.gmra.mxu1 %vm9086_vm1, %v729_v26  ;;  %v1460_v26 = vand.u32 15, %v1376_v18  ;;  %v6357_v18 = vld [vmem:[%s9078_s4] ss:$0 sm:$0xff] }
 0x11f   : > { %5601 = vmatprep.mubr.msk.bf16.mxu1 %vm9086_vm1, %v730_v31  ;;  %5664 = vmatpush3.bf16.msra.mxu1 %v5966_v6 }
 0x120   : > { %5731 = vmatprep.subr.bf16.mxu1 %v6155_v8  ;;  %vm6202_vm11 = vcmp.gt.s32.totalorder %v1460_v26, 0 }
 0x121   : > { %vm2024_vm6 = vmpackc.low %vm6202_vm11, %vm6202_vm11 }
 0x122   : > { %v6340_v15 = vsel %vm2024_vm6, 65537, %v9097_v5  ;;  %vm2032_vm11 = vmpackc.low %vm6314_vm8, %vm6314_vm8 }
 0x123   : > { %v5056_v30 = vcombine.low %v6340_v15, %v6237_v47  ;;  %v6454_v45 = vsel %vm2032_vm11, 65537, %v9097_v5  ;;  %vm9348_vm11 = vcmask 130048  }
 0x126   : > { %5602 = vmatmul.mubr.msk.bf16.gmra.mxu1 %vm9086_vm1, %v731_v32  ;;  %v1382_v32 = vadd.s32 112, %v6158_v10 }
 0x127   : > { %5605 = vmatprep.mubr.msk.bf16.mxu1 %vm9086_vm1, %v732_v37 }
 0x12e   : > { %5606 = vmatmul.mubr.msk.bf16.gmra.mxu1 %vm9086_vm1, %v733_v38  ;;  %v1488_v38 = vand.u32 15, %v1380_v27  ;;  %v9351_v27 = vmov 0 }
 0x12f   : > { %5609 = vmatprep.mubr.msk.bf16.mxu1 %vm9086_vm1, %v734_v43  ;;  %v1502_v43 = vand.u32 15, %v1382_v32  ;;  %v1572_v32 = vand.u32 15, %v1392_v11 }
 0x130   : > { %vm6255_vm2 = vcmp.gt.s32.totalorder %v1488_v38, 0 }
 0x131   : > { %vm6282_vm4 = vcmp.gt.s32.totalorder %v1502_v43, 0  ;;  %vm2028_vm5 = vmpackc.low %vm6255_vm2, %vm6255_vm2  ;;  %vm6475_vm8 = vcmp.gt.s32.totalorder %v1572_v32, 0  ;;  %v9342_v32 = vmov 0 }
 0x132   : > { %vm2030_vm13 = vmpackc.low %vm6282_vm4, %vm6282_vm4  ;;  %v6373_v21 = vsel %vm2028_vm5, 65537, %v9097_v5  ;;  %vm6421_vm4 = vcmp.gt.s32.totalorder %v1558_v9, 0  ;;  %vm9112_vm5 = vsmask.f32 256 }
 0x133   : > { %v6397_v25 = vsel %vm2030_vm13, 65537, %v9097_v5  ;;  %v5058_v39 = vcombine.low %v6373_v21, %v6237_v47  ;;  %vm2040_vm13 = vmpackc.low %vm6475_vm8, %vm6475_vm8 }
 0x136   : > { %5610 = vmatmul.mubr.msk.bf16.gmra.mxu1 %vm9086_vm1, %v735_v44  ;;  %v1386_v44 = vadd.s32 144, %v6158_v10 }
 0x137   : > { %5613 = vmatprep.mubr.msk.bf16.mxu1 %vm9086_vm1, %v736_v49  ;;  %v1388_v49 = vadd.s32 160, %v6158_v10 }
 0x138   : > { %v1530_v59 = vand.u32 15, %v1386_v44 }
 0x139   : > { %v1544_v0 = vand.u32 15, %v1388_v49 }
 0x13a   : > { %vm6342_vm15 = vcmp.gt.s32.totalorder %v1530_v59, 0 }
 0x13b   : > { %vm2034_vm2 = vmpackc.low %vm6342_vm15, %vm6342_vm15 }
 0x13c   : > { %v6465_v49 = vsel %vm2034_vm2, 65537, %v9097_v5  ;;  %vm6613_vm2 = vcmp.ne.s16.totalorder %v5055_v29, 0 }
 0x13e   : > { %5614 = vmatmul.mubr.msk.bf16.gmra.mxu1 %vm9086_vm1, %v737_v50  ;;  %v6253_v50 = vsel %vm2020_vm9, 65537, %v9097_v5 }
 0x13f   : > { %5617 = vmatprep.mubr.msk.bf16.mxu1 %vm9086_vm1, %v738_v55  ;;  %v6270_v55 = vsel %vm2736_vm12, 65537, %v9097_v5  ;;  %v5054_v63 = vcombine.low %v6253_v50, %v6237_v47  ;;  %vm9332_vm12 = vmpackc.low %vm6213_vm14, %vm6213_vm14  ;;  %vm6378_vm14 = vcmp.gt.s32.totalorder %v1544_v0, 0  ;;  %v9345_v50 = vmov 0 }
 0x140   : > { %v6352_v17 = vsel %vm9332_vm12, 65537, %v9097_v5  ;;  %vm2036_vm3 = vmpackc.low %vm6378_vm14, %vm6378_vm14  ;;  %vm1919_vm12 = vcmask 1040384  }
 0x141   : > { %v6473_v51 = vsel %vm2036_vm3, 65537, %v9097_v5  ;;  %vm6522_vm10 = vcmp.ne.s16.totalorder %v5054_v63, 0  ;;  %vm9349_vm14 = vmmov %vm9348_vm11 }
 0x142   : > { %v9343_v32 = vsel %vm6522_vm10, 4294967295, %v9342_v32  ;;  %vm9367_vm3 = vmmov %vm9348_vm11 }
 0x143   : > { %9344 = vst [vmem:[#allocation2_spill] sm:$0xff] %v9343_v32  ;;  %vm9370_vm8 = vmmov %vm9367_vm3 }
 0x146   : > { %5618 = vmatmul.mubr.msk.bf16.gmra.mxu1 %vm9086_vm1, %v739_v56 }
 0x147   : > { %5621 = vmatprep.mubr.msk.bf16.mxu1 %vm9086_vm1, %v740_v61  ;;  %v6297_v61 = vld [vmem:[%s9077_s3] ss:$0 sm:$0xff] }
 0x14e   : > { %5622 = vmatmul.mubr.msk.bf16.gmra.mxu1 %vm9086_vm1, %v741_v62  ;;  %v5053_v62 = vcombine.low %v6232_v46, %v6237_v47 }
 0x14f   : > { %5625 = vmatprep.mubr.msk.bf16.mxu1 %vm9086_vm1, %v742_v3 }
 0x150   : > { %vm6538_vm15 = vcmp.ne.s16.totalorder %v5053_v62, 0 }
 0x151   : > { %v9346_v50 = vsel %vm6538_vm15, 4294967295, %v9345_v50 }
 0x152   : > { %9347 = vst [vmem:[#allocation3_spill] sm:$0xff] %v9346_v50 }
 0x156   : > { %5626 = vmatmul.mubr.msk.bf16.gmra.mxu1 %vm9086_vm1, %v743_v4  ;;  %vm6242_vm1 = vcmp.gt.s32.totalorder %v1474_v36, 0  ;;  %v1481_v4 = vand.u32 15, %v1379_v53  ;;  %v6485_v53 = vsel %vm2744_vm0, 65537, %v9097_v5  ;;  %vm6588_vm0 = vcmp.ne.s16.totalorder %v5056_v30, 0 }
 0x157   : > { %5665 = vmatprep.mubr.bf16.mxu1 %v9097_v5  ;;  %vm2026_vm9 = vmpackc.low %vm6242_vm1, %vm6242_vm1 }
 0x158   : > { %v6365_v20 = vsel %vm2026_vm9, 65537, %v9097_v5  ;;  %vm9335_vm1 = vmpackc.low %vm6275_vm7, %vm6275_vm7  ;;  %vm6410_vm6 = vcmp.lt.s32.totalorder %v1481_v4, 15 }
 0x159   : > { %v6405_v26 = vsel %vm9335_vm1, 65537, %v9097_v5  ;;  %v5057_v38 = vcombine.low %v6365_v20, %v6237_v47  ;;  %vm2746_vm7 = vmpackc.low %vm6410_vm6, %vm6410_vm6 }
 0x15a   : > { %vm2038_vm9 = vmpackc.low %vm6421_vm4, %vm6421_vm4  ;;  %v6500_v4 = vsel %vm2746_vm7, 65537, %v9097_v5 }
 0x15b   : > { %v6492_v2 = vsel %vm2038_vm9, 65537, %v9097_v5  ;;  %vm6579_vm1 = vmand %vm1919_vm12, %vm9112_vm5 }
 0x15c   : > { %v9352_v27 = vsel %vm6579_vm1, 4294967295, %v9351_v27  ;;  %vm9368_vm9 = vmmov %vm9367_vm3 }
 0x15d   : > { %9353 = vst [vmem:[#allocation5_spill] sm:$0xff] %v9352_v27  ;;  %vm9369_vm12 = vmmov %vm9367_vm3 }
 0x19e   : > { %v5565_v6 = vpop.f32.mrf.mxu1 }
 0x19f   : > { %v971_v14 = vmul.f32 %v5565_v6, %v6297_v61  ;;  %v1381_v6 = vadd.s32 104, %v6158_v10 }
 0x1a0   : > { %v835_v19 = vpop.f32.mrf.mxu1 }
 0x1a1   : > { %v969_v24 = vmul.f32 %v6297_v61, %v835_v19  ;;  %v1010_v33 = vadd.f32 %v6357_v18, %v971_v14 }
 0x1a2   : > { %v5566_v28 = vpop.f32.mrf.mxu1 }
 0x1a3   : > { %v972_v34 = vmul.f32 %v5566_v28, %v6297_v61  ;;  %v1008_v42 = vadd.f32 %v6357_v18, %v969_v24  ;;  %v1042_v54 = vmax.f32 %v1010_v33, 0.0 }
 0x1a4   : > { %v838_v37 = vpop.f32.mrf.mxu1 }
 0x1a5   : > { %v1011_v43 = vadd.f32 %v6357_v18, %v972_v34  ;;  %v970_v44 = vmul.f32 %v6297_v61, %v838_v37  ;;  %v1040_v9 = vmax.f32 %v1008_v42, 0.0  ;;  %v6531_v34 = vld [vmem:[%s9082_s8 + $0x20] sm:$0xff]   ;;  %v1396_v37 = vadd.s32 224, %v6158_v10 }
 0x1a6   : > { %v5569_v48 = vpop.f32.mrf.mxu1 }
 0x1a7   : > { %v1043_v56 = vmax.f32 %v1011_v43, 0.0  ;;  %v1009_v57 = vadd.f32 %v6357_v18, %v970_v44  ;;  %v975_v58 = vmul.f32 %v5569_v48, %v6297_v61  ;;  %v6544_v43 = vsel %vm2040_vm13, 65537, %v9097_v5 }
 0x1a8   : > { %v851_v59 = vpop.f32.mrf.mxu1  ;;  %v1394_v44 = vadd.s32 208, %v6158_v10  ;;  %v1495_v48 = vand.u32 15, %v1381_v6  ;;  %v6562_v6 = vadd.s32 120, %v6158_v10 }
 0x1a9   : > { %v6503_v11 = vpack.c.bf16 %v1043_v56, %v1042_v54  ;;  %v1041_v13 = vmax.f32 %v1009_v57, 0.0  ;;  %v973_v14 = vmul.f32 %v6297_v61, %v851_v59  ;;  %v1014_v16 = vadd.f32 %v6357_v18, %v975_v58 }
 0x1aa   : > { %v5570_v19 = vpop.f32.mrf.mxu1  ;;  %vm6594_vm6 = vcmp.lt.s32.totalorder %v1495_v48, 15  ;;  %v9361_v48 = vmov 0 }
 0x1ab   : > { %v6516_v28 = vpack.c.bf16 %v1041_v13, %v1040_v9  ;;  %v976_v31 = vmul.f32 %v5570_v19, %v6297_v61  ;;  %v9087_v63 = vshrl.u32 %v6503_v11, 16  ;;  %v1012_v54 = vadd.f32 %v6357_v18, %v973_v14  ;;  %vm2748_vm7 = vmpackc.low %vm6594_vm6, %vm6594_vm6 }
 0x1ac   : > { %v854_v42 = vpop.f32.mrf.mxu1  ;;  %v1046_v62 = vmax.f32 %v1014_v16, 0.0  ;;  %v9088_v59 = vshll.u32 %v6503_v11, 16  ;;  %v9362_v48 = vsel %vm6613_vm2, 4294967295, %v9361_v48  ;;  %vm6712_vm6 = vcmp.ne.s16.totalorder %v5057_v38, 0 }
 0x1ad   : > { %v9089_v52 = vshrl.u32 %v6516_v28, 16  ;;  %v1015_v56 = vadd.f32 %v6357_v18, %v976_v31  ;;  %v974_v46 = vmul.f32 %v6297_v61, %v854_v42  ;;  %5632 = vmatmul.mubr.msk.bf16.vlgmr.msra.gmra.mxu0 %vm9348_vm11, %v6516_v28  ;;  %v6558_v58 = vrot.slane %v9087_v63, 7  ;;  %9363 = vst [vmem:[#allocation9_spill] sm:$0xff] %v9362_v48 }
 0x1ae   : > { %5698 = vmatpush3.bf16.msra.mxu0 %v6139_v7  ;;  %v5573_v57 = vpop.f32.mrf.mxu1  ;;  %5635 = vmatprep.mubr.msk.bf16.mxu0 %vm9349_vm14, %v6503_v11  ;;  %v9090_v19 = vshll.u32 %v6516_v28, 16  ;;  %v1586_v42 = vand.u32 15, %v1394_v44  ;;  %v9354_v44 = vmov 0  ;;  %vm6681_vm11 = vcmp.ne.s16.totalorder %v5058_v39, 0 }
 0x1af   : > { %v1047_v9 = vmax.f32 %v1015_v56, 0.0  ;;  %v1013_v13 = vadd.f32 %v6357_v18, %v974_v46  ;;  %v979_v14 = vmul.f32 %v5573_v57, %v6297_v61  ;;  %v1788_v7 = vrot.slane %v9089_v52, 7  ;;  %5765 = vmatprep.subr.bf16.mxu0 %v6531_v34 }
 0x1b0   : > { %v867_v16 = vpop.f32.mrf.mxu1  ;;  %v1798_v31 = vor.u32 %v9088_v59, %v6558_v58  ;;  %v1044_v56 = vmax.f32 %v1012_v54, 0.0  ;;  %v9355_v44 = vsel %vm6588_vm0, 4294967295, %v9354_v44  ;;  %vm6618_vm4 = vcmp.gt.s32.totalorder %v1586_v42, 0 }
 0x1b1   : > { %v6574_v63 = vpack.c.bf16 %v1047_v9, %v1046_v62  ;;  %v1045_v46 = vmax.f32 %v1013_v13, 0.0  ;;  %v977_v57 = vmul.f32 %v6297_v61, %v867_v16  ;;  %v1791_v35 = vor.u32 %v9090_v19, %v1788_v7  ;;  %9356 = vst [vmem:[#allocation6_spill] sm:$0xff] %v9355_v44  ;;  %vm2042_vm13 = vmpackc.low %vm6618_vm4, %vm6618_vm4 }
 0x1b2   : > { %v5574_v41 = vpop.f32.mrf.mxu1  ;;  %v1509_v9 = vand.u32 15, %v6562_v6  ;;  %v1018_v16 = vadd.f32 %v6357_v18, %v979_v14  ;;  %v6604_v15 = vsel %vm9112_vm5, %v1788_v7, %v1798_v31  ;;  %v6625_v7 = vld [vmem:[%s9082_s8 + $0x28] sm:$0xff]   ;;  %v9373_v62 = vmov 0 }
 0x1b3   : > { %9350 = vst [vmem:[#allocation4_spill] sm:$0xff] %v6574_v63  ;;  %v6599_v13 = vpack.c.bf16 %v1045_v46, %v1044_v56  ;;  %v980_v36 = vmul.f32 %v5574_v41, %v6297_v61  ;;  %9360 = vst [vmem:[#allocation8_spill] sm:$0xff] %v6604_v15  ;;  %v6608_v59 = vsel %vm6579_vm1, 0, %v1791_v35  ;;  %v9091_v6 = vshrl.u32 %v6574_v63, 16 }
 0x1b4   : > { %v870_v30 = vpop.f32.mrf.mxu1  ;;  %v1600_v41 = vand.u32 15, %v1396_v37  ;;  %9366 = vst [vmem:[#allocation10_spill] sm:$0xff] %v6625_v7  ;;  %v1016_v35 = vadd.f32 %v6357_v18, %v977_v57  ;;  %v2138_v31 = vsel %vm6538_vm15, %v6608_v59, 0  ;;  %v9093_v46 = vshll.u32 %v6574_v63, 16 }
 0x1b5   : > { %9359 = vst [vmem:[#allocation7_spill] sm:$0xff] %v6599_v13  ;;  %v1019_v1 = vadd.f32 %v6357_v18, %v980_v36  ;;  %v978_v29 = vmul.f32 %v6297_v61, %v870_v30  ;;  %5636 = vmatmul.mubr.msk.bf16.gmra.mxu0 %vm9367_vm3, %v6599_v13  ;;  %5666 = vmatmul.mubr.msk.bf16.vlgmr.msra.gmra.mxu1 %vm9368_vm9, %v2138_v31  ;;  %v2139_v36 = vsel %vm6522_vm10, %v6604_v15, 0  ;;  %v1801_v42 = vshrl.u32 %v6599_v13, 16  ;;  %vm9385_vm9 = vmmov %vm9367_vm3 }
 0x1b6   : > { %v5577_v37 = vpop.f32.mrf.mxu1  ;;  %5639 = vmatprep.mubr.msk.bf16.mxu0 %vm9369_vm12, %v6574_v63  ;;  %v6647_v56 = vrot.slane %v9091_v6, 7  ;;  %v1050_v57 = vmax.f32 %v1018_v16, 0.0  ;;  %5669 = vmatprep.mubr.msk.bf16.mxu1 %vm9370_vm8, %v2139_v36  ;;  %v1804_v3 = vshll.u32 %v6599_v13, 16  ;;  %v9374_v62 = vsel %vm6681_vm11, 4294967295, %v9373_v62  ;;  %vm9386_vm12 = vmmov %vm9367_vm3 }
 0x1b7   : > { %v1051_v30 = vmax.f32 %v1019_v1, 0.0  ;;  %v1017_v31 = vadd.f32 %v6357_v18, %v978_v29  ;;  %v983_v52 = vmul.f32 %v5577_v37, %v6297_v61  ;;  %5732 = vmatpush3.bf16.msra.mxu1 %v6155_v8  ;;  %v1803_v6 = vrot.slane %v1801_v42, 7  ;;  %9375 = vst [vmem:[#allocation13_spill] sm:$0xff] %v9374_v62  ;;  %vm9387_vm8 = vmmov %vm9367_vm3 }
 0x1b8   : > { %v883_v19 = vpop.f32.mrf.mxu1  ;;  %v1814_v16 = vor.u32 %v9093_v46, %v6647_v56  ;;  %v6669_v1 = vsel %vm2748_vm7, 65537, %v9097_v5  ;;  %5799 = vmatprep.subr.bf16.mxu1 %v6625_v7  ;;  %v1048_v8 = vmax.f32 %v1016_v35, 0.0  ;;  %v6691_v35 = vsel %vm2042_vm13, 65537, %v9097_v5 }
 0x1b9   : > { %v6672_v29 = vpack.c.bf16 %v1051_v30, %v1050_v57  ;;  %v1049_v37 = vmax.f32 %v1017_v31, 0.0  ;;  %v981_v36 = vmul.f32 %v6297_v61, %v883_v19  ;;  %v1806_v54 = vor.u32 %v1804_v3, %v1803_v6 }
 0x1ba   : > { %v5578_v33 = vpop.f32.mrf.mxu1  ;;  %v6676_v22 = vsel %vm9112_vm5, %v1803_v6, %v1814_v16  ;;  %vm6693_vm14 = vcmp.gt.s32.totalorder %v1600_v41, 0  ;;  %v1022_v21 = vadd.f32 %v6357_v18, %v983_v52  ;;  %v6702_v57 = vadd.s32 240, %v6158_v10 }
 0x1bb   : > { %9371 = vst [vmem:[#allocation11_spill] sm:$0xff] %v6672_v29  ;;  %9372 = vst [vmem:[#allocation12_spill] sm:$0xff] %v6676_v22  ;;  %v6697_v6 = vpack.c.bf16 %v1049_v37, %v1048_v8  ;;  %v984_v39 = vmul.f32 %v5578_v33, %v6297_v61  ;;  %v1020_v30 = vadd.f32 %v6357_v18, %v981_v36  ;;  %v9380_v41 = vmov 0 }
 0x1bc   : > { %v886_v31 = vpop.f32.mrf.mxu1  ;;  %v6707_v14 = vsel %vm9112_vm5, %v6558_v58, %v1806_v54  ;;  %v9381_v41 = vsel %vm6712_vm6, 4294967295, %v9380_v41  ;;  %v9092_v52 = vshrl.u32 %v6672_v29, 16  ;;  %v6717_v33 = vrot.slane %v1804_v3, 1  ;;  %vm2044_vm13 = vmpackc.low %vm6693_vm14, %vm6693_vm14 }
 0x1bd   : > { %9378 = vst [vmem:[#allocation14_spill] sm:$0xff] %v6697_v6  ;;  %9379 = vst [vmem:[#allocation15_spill] sm:$0xff] %v6707_v14  ;;  %vm6719_vm4 = vcmp.lt.s32.totalorder %v1509_v9, 15  ;;  %v1023_v8 = vadd.f32 %v6357_v18, %v984_v39  ;;  %v982_v58 = vmul.f32 %v6297_v61, %v886_v31  ;;  %5640 = vmatmul.mubr.msk.bf16.gmra.mxu0 %vm9367_vm3, %v6697_v6  ;;  %v2140_v20 = vsel %vm6613_vm2, %v6707_v14, 0 }
 0x1be   : > { %9382 = vst [vmem:[#allocation16_spill] sm:$0xff] %v9381_v41  ;;  %v2141_v3 = vsel %vm6588_vm0, %v6676_v22, 0  ;;  %vm9111_vm7 = vsmask.f32 7424  ;;  %5670 = vmatmul.mubr.msk.bf16.gmra.mxu1 %vm9385_vm9, %v2140_v20  ;;  %v5581_v54 = vpop.f32.mrf.mxu1  ;;  %5643 = vmatprep.mubr.msk.bf16.mxu0 %vm9386_vm12, %v6672_v29  ;;  %v9094_v9 = vshrl.u32 %v6697_v6, 16  ;;  %v6742_v37 = vrot.slane %v9092_v52, 7  ;;  %vm9404_vm12 = vmmov %vm9387_vm8 }
 0x1bf   : > { %v9095_v36 = vshll.u32 %v6672_v29, 16  ;;  %v1054_v39 = vmax.f32 %v1022_v21, 0.0  ;;  %v1055_v31 = vmax.f32 %v1023_v8, 0.0  ;;  %v1021_v20 = vadd.f32 %v6357_v18, %v982_v58  ;;  %5673 = vmatprep.mubr.msk.bf16.mxu1 %vm9387_vm8, %v2141_v3 }
 0x1c0   : > { %v987_v24 = vmul.f32 %v5581_v54, %v6297_v61  ;;  %vm6754_vm3 = vcmp.ne.s16.totalorder %v5103_v12, 0  ;;  %v9388_v38 = vmov 0  ;;  %v899_v52 = vpop.f32.mrf.mxu1  ;;  %v1819_v21 = vrot.slane %v9094_v9, 7 }
 0x1c1   : > { %v9389_v38 = vsel %vm6754_vm3, 4294967295, %v9388_v38  ;;  %v9096_v8 = vshll.u32 %v6697_v6, 16  ;;  %v1830_v58 = vor.u32 %v9095_v36, %v6742_v37  ;;  %v1052_v3 = vmax.f32 %v1020_v30, 0.0 }
 0x1c2   : > { %9390 = vst [vmem:[#allocation17_spill] sm:$0xff] %v9389_v38  ;;  %v6766_v54 = vpack.c.bf16 %v1055_v31, %v1054_v39  ;;  %v1053_v60 = vmax.f32 %v1021_v20, 0.0  ;;  %v985_v12 = vmul.f32 %v6297_v61, %v899_v52  ;;  %v5582_v46 = vpop.f32.mrf.mxu1  ;;  %v6775_v0 = vsel %vm2044_vm13, 65537, %v9097_v5  ;;  %vm9405_vm13 = vmmov %vm9387_vm8 }
 0x1c3   : > { %v1822_v40 = vor.u32 %v9096_v8, %v1819_v21  ;;  %v6772_v9 = vsel %vm9112_vm5, %v1819_v21, %v1830_v58  ;;  %v2578_v36 = vor.u32 %v6717_v33, %v1801_v42  ;;  %v1026_v39 = vadd.f32 %v6357_v18, %v987_v24 }
 0x1c4   : > { %9391 = vst [vmem:[#allocation18_spill] sm:$0xff] %v6766_v54  ;;  %9392 = vst [vmem:[#allocation19_spill] sm:$0xff] %v6772_v9  ;;  %v6780_v30 = vpack.c.bf16 %v1053_v60, %v1052_v3  ;;  %v988_v52 = vmul.f32 %v5582_v46, %v6297_v61  ;;  %v9394_v31 = vcombine.low %v6454_v45, %v6237_v47  ;;  %v9395_v20 = vmov 0  ;;  %v902_v8 = vpop.f32.mrf.mxu1 }
 0x1c5   : > { %v1614_v21 = vand.u32 15, %v6702_v57  ;;  %v1024_v58 = vadd.f32 %v6357_v18, %v985_v12  ;;  %v6795_v42 = vsel %vm9112_vm5, %v6647_v56, %v1822_v40  ;;  %v9399_v24 = vcombine.low %v6397_v25, %v6237_v47 }
 0x1c6   : > { %9393 = vst [vmem:[#allocation20_spill] sm:$0xff] %v6780_v30  ;;  %vm6787_vm14 = vcmp.ne.s16.totalorder %v9394_v31, 0  ;;  %9398 = vst [vmem:[#allocation22_spill] sm:$0xff] %v6795_v42  ;;  %v9400_v46 = vmov 0  ;;  %v9099_v45 = vshrl.u32 %v6766_v54, 16  ;;  %v9403_v3 = vshll.u32 %v6574_v63, 16  ;;  %5644 = vmatmul.mubr.msk.bf16.gmra.mxu0 %vm9404_vm12, %v6780_v30  ;;  %v5585_v56 = vpop.f32.mrf.mxu1 }
 0x1c7   : > { %v9396_v20 = vsel %vm6787_vm14, 4294967295, %v9395_v20  ;;  %vm6800_vm9 = vcmp.ne.s16.totalorder %v9399_v24, 0  ;;  %v1027_v57 = vadd.f32 %v6357_v18, %v988_v52  ;;  %v986_v12 = vmul.f32 %v6297_v61, %v902_v8  ;;  %5647 = vmatprep.mubr.msk.bf16.mxu0 %vm9405_vm13, %v6766_v54  ;;  %vm9407_vm12 = vmmov %vm9387_vm8 }
 0x1c8   : > { %9397 = vst [vmem:[#allocation21_spill] sm:$0xff] %v9396_v20  ;;  %v9401_v46 = vsel %vm6800_vm9, 4294967295, %v9400_v46  ;;  %v6807_v60 = vrot.slane %v9403_v3, 1  ;;  %v2142_v25 = vsel %vm6712_vm6, %v6795_v42, 0  ;;  %v2143_v40 = vsel %vm6681_vm11, %v6772_v9, 0 }
 0x1c9   : > { %9402 = vst [vmem:[#allocation23_spill] sm:$0xff] %v9401_v46  ;;  %5674 = vmatmul.mubr.msk.bf16.gmra.mxu1 %vm9387_vm8, %v2142_v25  ;;  %v9103_v52 = vshrl.u32 %v6780_v30, 16  ;;  %v6825_v8 = vrot.slane %v9099_v45, 7  ;;  %v1058_v3 = vmax.f32 %v1026_v39, 0.0  ;;  %v1059_v19 = vmax.f32 %v1027_v57, 0.0  ;;  %vm2750_vm8 = vmpackc.low %vm6719_vm4, %vm6719_vm4  ;;  %v915_v45 = vpop.f32.mrf.mxu1 }
 0x1ca   : > { %v6830_v24 = vsel %vm9111_vm7, %v2578_v36, %v6807_v60  ;;  %v1025_v25 = vadd.f32 %v6357_v18, %v986_v12  ;;  %v991_v5 = vmul.f32 %v5585_v56, %v6297_v61  ;;  %5677 = vmatprep.mubr.msk.bf16.mxu1 %vm9407_vm12, %v2143_v40  ;;  %v9110_v13 = vshll.u32 %v6780_v30, 16 }
 0x1cb   : > { %9406 = vst [vmem:[#allocation24_spill] sm:$0xff] %v6830_v24  ;;  %v1835_v31 = vrot.slane %v9103_v52, 7  ;;  %v9408_v36 = vshll.u32 %v6766_v54, 16  ;;  %v1056_v12 = vmax.f32 %v1024_v58, 0.0  ;;  %v6847_v40 = vpack.c.bf16 %v1059_v19, %v1058_v3  ;;  %v5586_v27 = vpop.f32.mrf.mxu1 }
 0x1cc   : > { %v1057_v16 = vmax.f32 %v1025_v25, 0.0  ;;  %v989_v56 = vmul.f32 %v6297_v61, %v915_v45  ;;  %v9410_v62 = vmov 0   ;;  %v1030_v19 = vadd.f32 %v6357_v18, %v991_v5 }
 0x1cd   : > { %v1846_v39 = vor.u32 %v9408_v36, %v6825_v8  ;;  %9409 = vst [vmem:[#allocation25_spill] sm:$0xff] %v6847_v40  ;;  %v1838_v52 = vor.u32 %v9110_v13, %v1835_v31  ;;  %v6855_v41 = vsel %vm2750_vm8, 65537, %v9410_v62  ;;  %v6858_v36 = vadd.s32 136, %v6158_v10  ;;  %v918_v13 = vpop.f32.mrf.mxu1 }
 0x1ce   : > { %v6860_v57 = vpack.c.bf16 %v1057_v16, %v1056_v12  ;;  %v992_v58 = vmul.f32 %v5586_v27, %v6297_v61  ;;  %v9413_v3 = vcombine.low %v6473_v51, %v6237_v47  ;;  %v9414_v25 = vmov 0 }
 0x1cf   : > { %v6865_v45 = vsel %vm9112_vm5, %v1835_v31, %v1846_v39  ;;  %v6876_v9 = vsel %vm9112_vm5, %v6742_v37, %v1838_v52  ;;  %v9418_v5 = vcombine.low %v6465_v49, %v6237_v47  ;;  %v9419_v27 = vmov 0 }
 0x1d0   : > { %9411 = vst [vmem:[#allocation26_spill] sm:$0xff] %v6860_v57  ;;  %9412 = vst [vmem:[#allocation27_spill] sm:$0xff] %v6865_v45  ;;  %vm6870_vm4 = vcmp.ne.s16.totalorder %v9413_v3, 0  ;;  %v9119_v31 = vshrl.u32 %v6847_v40, 16  ;;  %vm6886_vm12 = vcmp.gt.s32.totalorder %v1614_v21, 0  ;;  %v6891_v39 = vadd.s32 152, %v6158_v10  ;;  %v5589_v21 = vpop.f32.mrf.mxu1 }
 0x1d1   : > { %v9415_v25 = vsel %vm6870_vm4, 4294967295, %v9414_v25  ;;  %9417 = vst [vmem:[#allocation29_spill] sm:$0xff] %v6876_v9  ;;  %vm6881_vm13 = vcmp.ne.s16.totalorder %v9418_v5, 0  ;;  %v1028_v12 = vadd.f32 %v6357_v18, %v989_v56  ;;  %v1031_v37 = vadd.f32 %v6357_v18, %v992_v58 }
 0x1d2   : > { %9416 = vst [vmem:[#allocation28_spill] sm:$0xff] %v9415_v25  ;;  %v9420_v27 = vsel %vm6881_vm13, 4294967295, %v9419_v27  ;;  %v990_v52 = vmul.f32 %v6297_v61, %v918_v13  ;;  %vm9424_vm8 = vcmask 130048   ;;  %v2144_v49 = vsel %vm6800_vm9, %v6876_v9, 0  ;;  %v931_v20 = vpop.f32.mrf.mxu1 }
 0x1d3   : > { %9421 = vst [vmem:[#allocation30_spill] sm:$0xff] %v9420_v27  ;;  %5648 = vmatmul.mubr.msk.bf16.gmra.mxu0 %vm9424_vm8, %v6860_v57  ;;  %vm9425_vm7 = vmmov %vm9424_vm8  ;;  %v2145_v16 = vsel %vm6787_vm14, %v6865_v45, 0  ;;  %v9123_v56 = vshrl.u32 %v6860_v57, 16  ;;  %v6910_v13 = vrot.slane %v9119_v31, 7  ;;  %v9128_v58 = vshll.u32 %v6847_v40, 16 }
 0x1d4   : > { %5678 = vmatmul.mubr.msk.bf16.gmra.mxu1 %vm9425_vm7, %v2144_v49  ;;  %vm9426_vm5 = vmmov %vm9425_vm7  ;;  %v1062_v3 = vmax.f32 %v1030_v19, 0.0  ;;  %v1063_v5 = vmax.f32 %v1031_v37, 0.0  ;;  %v1029_v49 = vadd.f32 %v6357_v18, %v990_v52  ;;  %v995_v46 = vmul.f32 %v5589_v21, %v6297_v61  ;;  %v5590_v9 = vpop.f32.mrf.mxu1 }
 0x1d5   : > { %5651 = vmatprep.mubr.msk.bf16.mxu0 %vm9426_vm5, %v6847_v40  ;;  %vm9427_vm7 = vmmov %vm9426_vm5  ;;  %v1851_v45 = vrot.slane %v9123_v56, 7  ;;  %v9129_v31 = vshll.u32 %v6860_v57, 16  ;;  %v1862_v19 = vor.u32 %v9128_v58, %v6910_v13  ;;  %v1523_v37 = vand.u32 15, %v6858_v36 }
 0x1d6   : > { %5681 = vmatprep.mubr.msk.bf16.mxu1 %vm9427_vm7, %v2145_v16  ;;  %vm2046_vm5 = vmpackc.low %vm6886_vm12, %vm6886_vm12  ;;  %v1060_v52 = vmax.f32 %v1028_v12, 0.0  ;;  %v6926_v21 = vpack.c.bf16 %v1063_v5, %v1062_v3  ;;  %v1061_v16 = vmax.f32 %v1029_v49, 0.0  ;;  %v993_v51 = vmul.f32 %v6297_v61, %v931_v20 }
 0x1d7   : > { %v1854_v7 = vor.u32 %v9129_v31, %v1851_v45  ;;  %v6932_v56 = vsel %vm2046_vm5, 65537, %v9410_v62  ;;  %v6936_v42 = vadd.s32 168, %v6158_v10  ;;  %v1034_v36 = vadd.f32 %v6357_v18, %v995_v46  ;;  %v934_v31 = vpop.f32.mrf.mxu1 }
 0x1d8   : > { %v6938_v58 = vpack.c.bf16 %v1061_v16, %v1060_v52  ;;  %v996_v12 = vmul.f32 %v5590_v9, %v6297_v61  ;;  %vm9429_vm12 = vsmask.f32 256  ;;  %v9431_v3 = vcombine.low %v6544_v43, %v6237_v47 }
 0x1d9   : > { %v6943_v20 = vsel %vm9429_vm12, %v1851_v45, %v1862_v19  ;;  %v9432_v5 = vmov 0  ;;  %v1032_v49 = vadd.f32 %v6357_v18, %v993_v51  ;;  %vm9435_vm7 = vmmov %vm9429_vm12  ;;  %v9437_v9 = vcombine.low %v6492_v2, %v6237_v47 }
 0x1da   : > { %9428 = vst [vmem:[#allocation31_spill] sm:$0xff] %v6938_v58  ;;  %9430 = vst [vmem:[#allocation32_spill] sm:$0xff] %v6943_v20  ;;  %vm6948_vm8 = vcmp.ne.s16.totalorder %v9431_v3, 0  ;;  %v6955_v52 = vsel %vm9435_vm7, %v6825_v8, %v1854_v7  ;;  %v9438_v46 = vmov 0  ;;  %v9141_v43 = vshrl.u32 %v6926_v21, 16  ;;  %v5593_v8 = vpop.f32.mrf.mxu1 }
 0x1db   : > { %v9433_v5 = vsel %vm6948_vm8, 4294967295, %v9432_v5  ;;  %9436 = vst [vmem:[#allocation34_spill] sm:$0xff] %v6955_v52  ;;  %vm6960_vm5 = vcmp.ne.s16.totalorder %v9437_v9, 0  ;;  %v6966_v45 = vadd.s32 184, %v6158_v10  ;;  %v1035_v19 = vadd.f32 %v6357_v18, %v996_v12 }
 0x1dc   : > { %9434 = vst [vmem:[#allocation33_spill] sm:$0xff] %v9433_v5  ;;  %v9439_v46 = vsel %vm6960_vm5, 4294967295, %v9438_v46  ;;  %v994_v16 = vmul.f32 %v6297_v61, %v934_v31  ;;  %vm9441_vm7 = vcmask 130048   ;;  %v2146_v2 = vsel %vm6881_vm13, %v6955_v52, 0  ;;  %v947_v40 = vpop.f32.mrf.mxu1 }
 0x1dd   : > { %9440 = vst [vmem:[#allocation35_spill] sm:$0xff] %v9439_v46  ;;  %5652 = vmatmul.mubr.msk.bf16.gmra.mxu0 %vm9441_vm7, %v6938_v58  ;;  %v6976_v7 = vadd.s32 200, %v6158_v10  ;;  %vm9442_vm1 = vmmov %vm9441_vm7  ;;  %v2147_v31 = vsel %vm6870_vm4, %v6943_v20, 0  ;;  %v9142_v51 = vshrl.u32 %v6938_v58, 16  ;;  %v6987_v12 = vrot.slane %v9141_v43, 7 }
 0x1de   : > { %5682 = vmatmul.mubr.msk.bf16.gmra.mxu1 %vm9442_vm1, %v2146_v2  ;;  %vm9443_vm12 = vmmov %vm9442_vm1  ;;  %v9145_v3 = vshll.u32 %v6926_v21, 16  ;;  %v1066_v9 = vmax.f32 %v1034_v36, 0.0  ;;  %v1067_v44 = vmax.f32 %v1035_v19, 0.0  ;;  %v1033_v2 = vadd.f32 %v6357_v18, %v994_v16 }
 0x1df   : > { %5655 = vmatprep.mubr.msk.bf16.mxu0 %vm9443_vm12, %v6926_v21  ;;  %v999_v27 = vmul.f32 %v5593_v8, %v6297_v61  ;;  %5685 = vmatprep.mubr.msk.bf16.mxu1 %vm9442_vm1, %v2147_v31  ;;  %v1064_v52 = vmax.f32 %v1032_v49, 0.0  ;;  %v1867_v25 = vrot.slane %v9142_v51, 7  ;;  %v9148_v20 = vshll.u32 %v6938_v58, 16  ;;  %v5594_v31 = vpop.f32.mrf.mxu1 }
 0x1e0   : > { %v1878_v43 = vor.u32 %v9145_v3, %v6987_v12  ;;  %vm6999_vm12 = vcmp.lt.s32.totalorder %v1523_v37, 15  ;;  %v7003_v19 = vpack.c.bf16 %v1067_v44, %v1066_v9  ;;  %v1065_v16 = vmax.f32 %v1033_v2, 0.0 }
 0x1e1   : > { %v1038_v8 = vadd.f32 %v6357_v18, %v999_v27  ;;  %v997_v49 = vmul.f32 %v6297_v61, %v947_v40  ;;  %v1870_v51 = vor.u32 %v9148_v20, %v1867_v25  ;;  %v9447_v48 = vcombine.low %v6237_v47, %v6270_v55  ;;  %v950_v20 = vpop.f32.mrf.mxu1 }
 0x1e2   : > { %9446 = vst [vmem:[#allocation36_spill] sm:$0xff] %v7003_v19  ;;  %v9448_v3 = vmov 0  ;;  %v1551_v37 = vand.u32 15, %v6936_v42  ;;  %v1565_v44 = vand.u32 15, %v6966_v45  ;;  %v1579_v9 = vand.u32 15, %v6976_v7 }
 0x1e3   : > { %vm7012_vm7 = vcmp.ne.s16.totalorder %v9447_v48, 0  ;;  %v7019_v27 = vpack.c.bf16 %v1065_v16, %v1064_v52  ;;  %v1000_v40 = vmul.f32 %v5594_v31, %v6297_v61  ;;  %vm9451_vm1 = vsmask.f32 256  ;;  %v7429_v38 = vpop.f32.mrf.mxu1 }
 0x1e4   : > { %v9449_v3 = vsel %vm7012_vm7, 4294967295, %v9448_v3  ;;  %v7023_v2 = vsel %vm9451_vm1, %v1867_v25, %v1878_v43  ;;  %v9453_v55 = vcombine.low %v6775_v0, %v6237_v47  ;;  %v9454_v48 = vmov 0  ;;  %vm9456_vm13 = vmmov %vm9451_vm1 }
 0x1e5   : > { %9450 = vst [vmem:[#allocation37_spill] sm:$0xff] %v9449_v3  ;;  %9452 = vst [vmem:[#allocation38_spill] sm:$0xff] %v7023_v2  ;;  %v1395_v42 = vadd.s32 216, %v6158_v10  ;;  %v7035_v45 = vsel %vm9456_vm13, %v6910_v13, %v1870_v51  ;;  %v9157_v52 = vshrl.u32 %v7003_v19, 16  ;;  %v9458_v7 = vshll.u32 %v6516_v28, 16 }
 0x1e6   : > { %vm7028_vm4 = vcmp.ne.s16.totalorder %v9453_v55, 0  ;;  %9457 = vst [vmem:[#allocation39_spill] sm:$0xff] %v7035_v45  ;;  %v1399_v43 = vadd.s32 248, %v6158_v10  ;;  %v1036_v0 = vadd.f32 %v6357_v18, %v997_v49  ;;  %v1039_v16 = vadd.f32 %v6357_v18, %v1000_v40 }
 0x1e7   : > { %v9455_v48 = vsel %vm7028_vm4, 4294967295, %v9454_v48  ;;  %v2571_v25 = vrot.slane %v9458_v7, 1  ;;  %v998_v31 = vmul.f32 %v6297_v61, %v950_v20  ;;  %vm9459_vm1 = vcmask 130048  }
 0x1e8   : > { %5656 = vmatmul.mubr.msk.bf16.gmra.mxu0 %vm9459_vm1, %v7019_v27  ;;  %v2148_v13 = vsel %vm6960_vm5, %v7035_v45, 0  ;;  %vm9460_vm13 = vmmov %vm9459_vm1  ;;  %v2149_v51 = vsel %vm6948_vm8, %v7023_v2, 0  ;;  %v7058_v61 = vrot.slane %v9157_v52, 7  ;;  %v9191_v20 = vshll.u32 %v7003_v19, 16 }
 0x1e9   : > { %5686 = vmatmul.mubr.msk.bf16.gmra.mxu1 %vm9460_vm13, %v2148_v13  ;;  %vm9461_vm14 = vmmov %vm9459_vm1  ;;  %v1070_v40 = vmax.f32 %v1038_v8, 0.0  ;;  %v1071_v55 = vmax.f32 %v1039_v16, 0.0  ;;  %v1037_v7 = vadd.f32 %v6357_v18, %v998_v31  ;;  %vm9462_vm13 = vsmask.f32 7424 }
 0x1ea   : > { %5659 = vmatprep.mubr.msk.bf16.mxu0 %vm9461_vm14, %v7003_v19  ;;  %5689 = vmatprep.mubr.msk.bf16.mxu1 %vm9459_vm1, %v2149_v51  ;;  %vm9463_vm14 = vcmask 1047552   ;;  %v9464_v13 = vmov 0  ;;  %v1397_v49 = vadd.s32 232, %v6158_v10  ;;  %v9466_v5 = vshrl.u32 %v7019_v27, 16 }
 0x1eb   : > { %vm7065_vm5 = vmand %vm9463_vm14, %vm9462_vm13  ;;  %v9193_v46 = vshll.u32 %v7019_v27, 16  ;;  %v1894_v8 = vor.u32 %v9191_v20, %v7058_v61  ;;  %v1621_v18 = vand.u32 15, %v1399_v43  ;;  %v1068_v16 = vmax.f32 %v1036_v0, 0.0 }
 0x1ec   : > { %v9465_v13 = vsel %vm7065_vm5, 4294967295, %v9464_v13  ;;  %v1883_v52 = vrot.slane %v9466_v5, 7  ;;  %v7076_v31 = vpack.c.bf16 %v1071_v55, %v1070_v40  ;;  %v1069_v51 = vmax.f32 %v1037_v7, 0.0 }
 0x1ed   : > { %v9468_v2 = vand.u32 15, %v6891_v39  ;;  %v2638_v5 = vsel %vm7065_vm5, 0, %v2571_v25  ;;  %vm7088_vm13 = vcmp.lt.s32.totalorder %v1551_v37, 15  ;;  %v1593_v43 = vand.u32 15, %v1395_v42  ;;  %v7287_v39 = vld [vmem:[%s9082_s8 + $0x30] sm:$0xff]  }
 0x1ee   : > { %9467 = vst [vmem:[#allocation40_spill] sm:$0xff] %v7076_v31  ;;  %v1886_v10 = vor.u32 %v9193_v46, %v1883_v52  ;;  %v7092_v0 = vpack.c.bf16 %v1069_v51, %v1068_v16  ;;  %vm9474_vm14 = vsmask.f32 256  ;;  %vm7100_vm9 = vcmp.lt.s32.totalorder %v1565_v44, 15  ;;  %v9548_v46 = vld [vmem:[#allocation9_spill] sm:$0xff] }
 0x1ef   : > { %vm7080_vm1 = vcmp.lt.s32.totalorder %v9468_v2, 15  ;;  %v7095_v40 = vsel %vm9474_vm14, %v1883_v52, %v1894_v8  ;;  %v1607_v2 = vand.u32 15, %v1397_v49  ;;  %vm9477_vm11 = vmmov %vm9474_vm14  ;;  %v9478_v42 = vcombine.low %v6691_v35, %v6237_v47 }
 0x1f0   : > { %9473 = vst [vmem:[#allocation41_spill] sm:$0xff] %v7092_v0  ;;  %v7106_v37 = vsel %vm9477_vm11, %v6987_v12, %v1886_v10  ;;  %v9479_v55 = vmov 0  ;;  %vm7118_vm8 = vcmp.lt.s32.totalorder %v1579_v9, 15  ;;  %vm7122_vm5 = vcmp.lt.s32.totalorder %v1621_v18, 15 }
 0x1f1   : > { %vm7111_vm6 = vcmp.ne.s16.totalorder %v9478_v42, 0  ;;  %vm9485_vm11 = vcmask 130048   ;;  %v9486_v12 = vshrl.u32 %v6516_v28, 16  ;;  %v2863_v9 = vsel %vm7012_vm7, %v2638_v5, 0 }
 0x1f2   : > { %v9480_v55 = vsel %vm7111_vm6, 4294967295, %v9479_v55  ;;  %5660 = vmatmul.mubr.msk.bf16.gmra.mxu0 %vm9485_vm11, %v7092_v0  ;;  %v2150_v35 = vsel %vm7111_vm6, %v7106_v37, 0  ;;  %v9487_v7 = vshll.u32 %v6503_v11, 16  ;;  %v9488_v18 = vcombine.low %v6352_v17, %v6237_v47  ;;  %vm9492_vm6 = vmmov %vm9485_vm11 }
 0x1f3   : > { %v2572_v49 = vor.u32 %v2571_v25, %v9486_v12  ;;  %v9489_v16 = vmov 0  ;;  %5690 = vmatmul.mubr.msk.bf16.gmra.mxu1 %vm9492_vm6, %v2150_v35  ;;  %v2151_v25 = vsel %vm7028_vm4, %v7095_v40, 0  ;;  %vm9493_vm7 = vmmov %vm9492_vm6  ;;  %v9190_v51 = vshrl.u32 %v7092_v0, 16 }
 0x1f4   : > { %v2573_v8 = vrot.slane %v9487_v7, 1  ;;  %vm7140_vm14 = vcmp.ne.s16.totalorder %v9488_v18, 0  ;;  %5699 = vmatprep.mubr.msk.bf16.mxu0 %vm9493_vm7, %v2863_v9  ;;  %v5067_v17 = vcombine.low %v6932_v56, %v6237_v47  ;;  %vm7158_vm2 = vcmp.lt.s32.totalorder %v1593_v43, 15  ;;  %5693 = vmatprep.mubr.msk.bf16.mxu1 %vm9492_vm6, %v2151_v25  ;;  %vm9504_vm6 = vmpackc.low %vm6999_vm12, %vm6999_vm12 }
 0x1f5   : > { %v9490_v16 = vsel %vm7140_vm14, 4294967295, %v9489_v16  ;;  %v9496_v5 = vcombine.low %v6237_v47, %v6388_v23  ;;  %v9497_v42 = vmov 0  ;;  %v9500_v56 = vcombine.low %v6237_v47, %v6405_v26 }
 0x1f6   : > { %9491 = vst [vmem:[#allocation42_spill] sm:$0xff] %v9490_v16  ;;  %v9501_v35 = vmov 0  ;;  %v7183_v43 = vsel %vm9504_vm6, 65537, %v9410_v62  ;;  %vm7185_vm0 = vcmp.lt.s32.totalorder %v1607_v2, 15  ;;  %v7194_v26 = vrot.slane %v9190_v51, 7 }
 0x1f7   : > { %vm7166_vm11 = vcmp.ne.s16.totalorder %v9496_v5, 0  ;;  %vm7173_vm7 = vcmp.ne.s16.totalorder %v9500_v56, 0  ;;  %v9192_v12 = vshll.u32 %v7092_v0, 16  ;;  %v9507_v36 = vcombine.low %v6237_v47, %v6485_v53 }
 0x1f8   : > { %v9498_v42 = vsel %vm7166_vm11, 4294967295, %v9497_v42  ;;  %v9502_v35 = vsel %vm7173_vm7, 4294967295, %v9501_v35  ;;  %v9508_v9 = vmov 0  ;;  %v5108_v2 = vcombine.low %v6237_v47, %v6669_v1  ;;  %vm9522_vm7 = vmpackc.low %vm7080_vm1, %vm7080_vm1 }
 0x1f9   : > { %9499 = vst [vmem:[#allocation43_spill] sm:$0xff] %v9498_v42  ;;  %9503 = vst [vmem:[#allocation44_spill] sm:$0xff] %v9502_v35  ;;  %vm7200_vm12 = vcmp.ne.s16.totalorder %v9507_v36, 0  ;;  %vm9510_vm4 = vsmask.f32 7424  ;;  %v9511_v18 = vshrl.u32 %v6503_v11, 16  ;;  %v9513_v56 = vcombine.low %v6237_v47, %v6500_v4 }
 0x1fa   : > { %v9509_v9 = vsel %vm7200_vm12, 4294967295, %v9508_v9  ;;  %v7210_v7 = vsel %vm9510_vm4, %v2572_v49, %v2573_v8  ;;  %v9512_v5 = vshll.u32 %v6697_v6, 16  ;;  %v9514_v36 = vmov 0  ;;  %vm2762_vm4 = vmpackc.low %vm7158_vm2, %vm7158_vm2 }
 0x1fb   : > { %v2575_v25 = vor.u32 %v2573_v8, %v9511_v18  ;;  %vm7219_vm12 = vcmp.ne.s16.totalorder %v9513_v56, 0  ;;  %v5109_v1 = vcombine.low %v6237_v47, %v6855_v41  ;;  %v1902_v49 = vor.u32 %v9192_v12, %v7194_v26  ;;  %vm9519_vm2 = vmpackc.low %vm7122_vm5, %vm7122_vm5  ;;  %v9694_v8 = vld [vmem:[#allocation17_spill] sm:$0xff] }
 0x1fc   : > { %v2582_v53 = vrot.slane %v9512_v5, 1  ;;  %v9515_v36 = vsel %vm7219_vm12, 4294967295, %v9514_v36  ;;  %vm7231_vm6 = vcmp.ne.s16.totalorder %v5067_v17, 0  ;;  %v5110_v4 = vcombine.low %v6237_v47, %v7183_v43  ;;  %vm2764_vm12 = vmpackc.low %vm7185_vm0, %vm7185_vm0 }
 0x1fd   : > { %9516 = vst [vmem:[#allocation45_spill] sm:$0xff] %v9515_v36  ;;  %v2798_v41 = vsel %vm9519_vm2, 65537, %v9410_v62  ;;  %vm9520_vm10 = vsmask.f32 7424  ;;  %v2786_v10 = vsel %vm9522_vm7, 65537, %v9410_v62  ;;  %vm9523_vm0 = vmpackc.low %vm7088_vm13, %vm7088_vm13  ;;  %v2864_v45 = vsel %vm6754_vm3, %v7210_v7, 0 }
 0x1fe   : > { %v7248_v17 = vsel %vm9520_vm10, %v2575_v25, %v6717_v33  ;;  %v2788_v52 = vsel %vm9523_vm0, 65537, %v9410_v62  ;;  %vm9524_vm10 = vmpackc.low %vm7100_vm9, %vm7100_vm9  ;;  %vm9525_vm5 = vsmask.f32 256  ;;  %v7282_v23 = vsel %vm2762_vm4, 65537, %v9410_v62 }
 0x1ff   : > { %9521 = vst [vmem:[#allocation46_spill] sm:$0xff] %v7248_v17  ;;  %v2790_v33 = vsel %vm9524_vm10, 65537, %v9410_v62  ;;  %v7270_v43 = vsel %vm9525_vm5, %v7058_v61, %v1902_v49  ;;  %vm9526_vm1 = vmpackc.low %vm7118_vm8, %vm7118_vm8  ;;  %vm9527_vm9 = vcmask 130048   ;;  %v9528_v18 = vshrl.u32 %v6697_v6, 16 }
 0x200   : > { %v2792_v19 = vsel %vm9526_vm1, 65537, %v9410_v62  ;;  %v2152_v61 = vsel %vm7231_vm6, %v7270_v43, 0  ;;  %5700 = vmatmul.mubr.msk.bf16.vlgmr.msra.gmra.mxu0 %vm9527_vm9, %v2864_v45  ;;  %v7296_v44 = vsel %vm2764_vm12, 65537, %v9410_v62  ;;  %v5117_v5 = vcombine.low %v6237_v47, %v2798_v41  ;;  %vm9529_vm8 = vmmov %vm9527_vm9 }
 0x201   : > { %v2584_v25 = vor.u32 %v2582_v53, %v9528_v18  ;;  %5694 = vmatmul.mubr.msk.bf16.gmra.mxu1 %vm9529_vm8, %v2152_v61  ;;  %5766 = vmatpush3.bf16.msra.mxu0 %v6531_v34  ;;  %v2865_v56 = vsel %vm7166_vm11, %v7248_v17, 0  ;;  %v3143_v49 = vsel %vm7140_vm14, %v6608_v59, 0  ;;  %v9530_v45 = vshrl.u32 %v6574_v63, 16  ;;  %vm9531_vm13 = vmmov %vm9529_vm8  ;;  %v9588_v63 = vld [vmem:[#allocation10_spill] sm:$0xff] }
 0x202   : > { %v5111_v51 = vcombine.low %v6237_v47, %v2786_v10  ;;  %5703 = vmatprep.mubr.msk.bf16.mxu0 %vm9531_vm13, %v2865_v56  ;;  %vm9532_vm7 = vmmov %vm9529_vm8  ;;  %v9533_v34 = vshll.u32 %v6672_v29, 16  ;;  %v5112_v61 = vcombine.low %v6237_v47, %v2788_v52  ;;  %v5113_v20 = vcombine.low %v6237_v47, %v2790_v33  ;;  %5833 = vmatprep.subr.bf16.mxu0 %v7287_v39 }
 0x203   : > { %v2581_v18 = vor.u32 %v6807_v60, %v9530_v45  ;;  %5733 = vmatprep.mubr.msk.bf16.mxu1 %vm9532_vm7, %v3143_v49  ;;  %v5114_v12 = vcombine.low %v6237_v47, %v2792_v19  ;;  %vm9534_vm12 = vsmask.f32 7424  ;;  %v9536_v60 = vshll.u32 %v6780_v30, 16 }
 0x204   : > { %v2585_v41 = vrot.slane %v9533_v34, 1  ;;  %v3144_v52 = vsel %vm6538_vm15, %v6604_v15, 0  ;;  %vm9537_vm4 = vmmov %vm9534_vm12  ;;  %vm7336_vm2 = vcmp.ne.s16.totalorder %v5117_v5, 0  ;;  %v9539_v49 = vmov 0 }
 0x205   : > { %v7319_v59 = vsel %vm9534_vm12, %v2581_v18, %v2582_v53  ;;  %v2588_v45 = vrot.slane %v9536_v60, 1  ;;  %v9538_v53 = vshll.u32 %v6860_v57, 16  ;;  %v9540_v49 = vsel %vm7336_vm2, 4294967295, %v9539_v49 }
 0x206   : > { %9535 = vst [vmem:[#allocation47_spill] sm:$0xff] %v7319_v59  ;;  %v7332_v33 = vsel %vm9537_vm4, %v2584_v25, %v2585_v41  ;;  %vm9541_vm0 = vnez %v9502_v35  ;;  %vm9542_vm10 = vnez %v9343_v32  ;;  %vm7346_vm5 = vcmp.ne.s16.totalorder %v5108_v2, 0  ;;  %v9552_v2 = vld [vmem:[#allocation25_spill] sm:$0xff] }
 0x207   : > { %v2594_v19 = vrot.slane %v9538_v53, 1  ;;  %v2866_v18 = vsel %vm9541_vm0, %v6830_v24, 0  ;;  %v3145_v34 = vsel %vm9542_vm10, %v6707_v14, 0  ;;  %v9543_v60 = vmov 0 }
 0x208   : > { %v9544_v60 = vsel %vm7346_vm5, 4294967295, %v9543_v60  ;;  %v9545_v25 = vshll.u32 %v6766_v54, 16  ;;  %v9546_v5 = vshll.u32 %v6938_v58, 16  ;;  %vm9547_vm1 = vnez %v9509_v9  ;;  %5704 = vmatmul.mubr.msk.bf16.gmra.mxu0 %vm9532_vm7, %v2866_v18 }
 0x209   : > { %v2867_v10 = vsel %vm9547_vm1, %v7319_v59, 0  ;;  %vm9549_vm9 = vnez %v9548_v46  ;;  %vm7360_vm8 = vcmp.ne.s16.totalorder %v5109_v1, 0  ;;  %v9550_v32 = vmov 0  ;;  %v7379_v59 = vld [vmem:[%s9082_s8 + $0x38] sm:$0xff]  }
 0x20a   : > { %v2591_v56 = vrot.slane %v9545_v25, 1  ;;  %v2600_v53 = vrot.slane %v9546_v5, 1  ;;  %v3146_v62 = vsel %vm9549_vm9, %v6676_v22, 0  ;;  %v9551_v32 = vsel %vm7360_vm8, 4294967295, %v9550_v32 }
 0x20b   : > { %v9553_v14 = vshll.u32 %v9552_v2, 16  ;;  %v9554_v25 = vshll.u32 %v7019_v27, 16  ;;  %vm9555_vm13 = vnez %v9515_v36  ;;  %v9556_v15 = vshrl.u32 %v6672_v29, 16  ;;  %v9731_v36 = vld [vmem:[#allocation31_spill] sm:$0xff] }
 0x20c   : > { %v2868_v5 = vsel %vm9555_vm13, %v7332_v33, 0  ;;  %v9557_v46 = vshrl.u32 %v6780_v30, 16  ;;  %v2616_v1 = vshll.u32 %v7076_v31, 16  ;;  %vm7385_vm4 = vcmp.ne.s16.totalorder %v5110_v4, 0 }
 0x20d   : > { %v2597_v50 = vrot.slane %v9553_v14, 1  ;;  %v2606_v16 = vrot.slane %v9554_v25, 1  ;;  %v2587_v35 = vor.u32 %v2585_v41, %v9556_v15  ;;  %v9558_v14 = vld [vmem:[#allocation22_spill] sm:$0xff]  ;;  %v9561_v24 = vmov 0 }
 0x20e   : > { %v2590_v22 = vor.u32 %v2588_v45, %v9557_v46  ;;  %v9559_v25 = vld [vmem:[#allocation6_spill] sm:$0xff]  ;;  %v9562_v24 = vsel %vm7385_vm4, 4294967295, %v9561_v24  ;;  %v9563_v15 = vshrl.u32 %v6860_v57, 16  ;;  %vm7391_vm9 = vcmp.ne.s16.totalorder %v5111_v51, 0 }
 0x20f   : > { %vm9560_vm12 = vnez %v9559_v25  ;;  %v9564_v41 = vmov 0  ;;  %vm7395_vm10 = vcmp.ne.s16.totalorder %v5112_v61, 0  ;;  %v9567_v30 = vmov 0 }
 0x210   : > { %v3147_v42 = vsel %vm9560_vm12, %v9558_v14, 0  ;;  %v2596_v46 = vor.u32 %v2594_v19, %v9563_v15  ;;  %v9565_v41 = vsel %vm7391_vm9, 4294967295, %v9564_v41  ;;  %v9568_v30 = vsel %vm7395_vm10, 4294967295, %v9567_v30 }
 0x211   : > { %9566 = vst [vmem:[#allocation25_spill] sm:$0xff] %v9565_v41  ;;  %9569 = vst [vmem:[#allocation48_spill] sm:$0xff] %v9568_v30  ;;  %v9570_v18 = vshll.u32 %v6926_v21, 16  ;;  %vm7401_vm7 = vcmp.ne.s16.totalorder %v5113_v20, 0  ;;  %v9571_v25 = vmov 0  ;;  %v9574_v4 = vshll.u32 %v7092_v0, 16 }
 0x212   : > { %v9572_v25 = vsel %vm7401_vm7, 4294967295, %v9571_v25  ;;  %vm9575_vm12 = vcmask 130048   ;;  %v9577_v51 = vshrl.u32 %v6766_v54, 16  ;;  %v9578_v15 = vshrl.u32 %v6938_v58, 16  ;;  %v9586_v58 = vld [vmem:[#allocation36_spill] sm:$0xff] }
 0x213   : > { %v2603_v29 = vrot.slane %v9570_v18, 1  ;;  %9573 = vst [vmem:[#allocation49_spill] sm:$0xff] %v9572_v25  ;;  %v2612_v14 = vrot.slane %v9574_v4, 1  ;;  %5734 = vmatmul.mubr.msk.bf16.vlgmr.msra.gmra.mxu1 %vm9575_vm12, %v3144_v52  ;;  %vm9576_vm15 = vmmov %vm9575_vm12  ;;  %vm7413_vm14 = vcmp.ne.s16.totalorder %v5114_v12, 0  ;;  %v9579_v6 = vmov 0  ;;  %v9753_v30 = vld [vmem:[#allocation40_spill] sm:$0xff] }
 0x214   : > { %5707 = vmatprep.mubr.msk.bf16.mxu0 %vm9576_vm15, %v2867_v10  ;;  %v2593_v61 = vor.u32 %v2591_v56, %v9577_v51  ;;  %v2602_v57 = vor.u32 %v2600_v53, %v9578_v15  ;;  %v9580_v6 = vsel %vm7413_vm14, 4294967295, %v9579_v6  ;;  %v2618_v20 = vrot.slane %v2616_v1, 1  ;;  %vm9582_vm0 = vmmov %vm9575_vm12  ;;  %5800 = vmatpush3.bf16.msra.mxu1 %v9588_v63  ;;  %9589 = vst [vmem:[#allocation36_spill] sm:$0xff] %v7429_v38 }
 0x215   : > { %9581 = vst [vmem:[#allocation50_spill] sm:$0xff] %v9580_v6  ;;  %v3129_v18 = vshrl.u32 %v7076_v31, 16  ;;  %5737 = vmatprep.mubr.msk.bf16.mxu1 %vm9582_vm0, %v3145_v34  ;;  %vm9583_vm11 = vsmask.f32 7424  ;;  %v9584_v10 = vshrl.u32 %v9552_v2, 16  ;;  %v9585_v51 = vshrl.u32 %v7019_v27, 16  ;;  %5867 = vmatprep.subr.bf16.mxu1 %v7379_v59 }
 0x216   : > { %v7420_v4 = vsel %vm9583_vm11, %v2587_v35, %v2588_v45  ;;  %v9587_v15 = vshll.u32 %v9586_v58, 16  ;;  %vm9590_vm15 = vmmov %vm9583_vm11  ;;  %v9594_v63 = vshrl.u32 %v6926_v21, 16  ;;  %v9595_v38 = vshrl.u32 %v7092_v0, 16 }
 0x217   : > { %v2599_v52 = vor.u32 %v2597_v50, %v9584_v10  ;;  %v2608_v54 = vor.u32 %v2606_v16, %v9585_v51  ;;  %v7432_v31 = vsel %vm9590_vm15, %v2590_v22, %v2591_v56  ;;  %vm9591_vm0 = vmmov %vm9583_vm11  ;;  %v3131_v35 = vrot.slane %v3129_v18, 7 }
 0x218   : > { %v2609_v12 = vrot.slane %v9587_v15, 1  ;;  %v7435_v34 = vsel %vm9591_vm0, %v2593_v61, %v2594_v19  ;;  %v3613_v45 = vor.u32 %v3129_v18, %v2618_v20  ;;  %vm9592_vm11 = vmmov %vm9591_vm0  ;;  %v2605_v15 = vor.u32 %v2603_v29, %v9594_v63  ;;  %v9627_v63 = vld [vmem:[#allocation34_spill] sm:$0xff] }
 0x219   : > { %v7439_v10 = vsel %vm9592_vm11, %v2596_v46, %v2597_v50  ;;  %vm9593_vm12 = vmmov %vm9591_vm0  ;;  %v2614_v22 = vor.u32 %v2612_v14, %v9595_v38  ;;  %v3132_v61 = vor.u32 %v3131_v35, %v2616_v1  ;;  %v9603_v38 = vshrl.u32 %v9586_v58, 16  ;;  %v9637_v50 = vld [vmem:[#allocation38_spill] sm:$0xff] }
 0x21a   : > { %v7442_v51 = vsel %vm9593_vm12, %v2599_v52, %v2600_v53  ;;  %vm9596_vm15 = vmmov %vm9591_vm0  ;;  %vm9598_vm0 = vnez %v9465_v13  ;;  %v7459_v53 = vsel %vm9592_vm11, %v2605_v15, %v2606_v16  ;;  %v2869_v52 = vsel %vm7346_vm5, %v7420_v4, 0 }
 0x21b   : > { %v7449_v56 = vsel %vm9596_vm15, %v2602_v57, %v2603_v29  ;;  %v7453_v19 = vsel %vm9598_vm0, %v3613_v45, 0  ;;  %9600 = vst [vmem:[#allocation52_spill] sm:$0xff] %v7459_v53  ;;  %vm9601_vm12 = vmmov %vm9592_vm11  ;;  %v2611_v18 = vor.u32 %v2609_v12, %v9603_v38  ;;  %v7469_v57 = vpop.f32.mrf.mxu1  ;;  %vm9605_vm15 = vsmask.f32 256  ;;  %v9628_v38 = vld [vmem:[#allocation23_spill] sm:$0xff]  ;;  %v9638_v29 = vld [vmem:[#allocation28_spill] sm:$0xff] }
 0x21c   : > { %9597 = vst [vmem:[#allocation10_spill] sm:$0xff] %v7449_v56  ;;  %9599 = vst [vmem:[#allocation51_spill] sm:$0xff] %v7453_v19  ;;  %v7462_v46 = vsel %vm9601_vm12, %v2608_v54, %v2609_v12  ;;  %v7473_v13 = vsel %vm9605_vm15, %v7194_v26, %v3132_v61  ;;  %vm9606_vm0 = vcmask 130048   ;;  %v9613_v15 = vmov 0  ;;  %v9634_v54 = vld [vmem:[#allocation39_spill] sm:$0xff] }
 0x21d   : > { %9602 = vst [vmem:[#allocation53_spill] sm:$0xff] %v7462_v46  ;;  %9604 = vst [vmem:[#allocation54_spill] sm:$0xff] %v7469_v57  ;;  %5708 = vmatmul.mubr.msk.bf16.gmra.mxu0 %vm9606_vm0, %v2868_v5  ;;  %v7489_v26 = vsel %vm9592_vm11, %v2611_v18, %v2612_v14  ;;  %v9617_v61 = vmov 0  ;;  %v7529_v18 = vpop.f32.mrf.mxu1  ;;  %v9630_v14 = vld [vmem:[#allocation32_spill] sm:$0xff]  ;;  %v9631_v5 = vld [vmem:[#allocation21_spill] sm:$0xff]  ;;  %vm9644_vm7 = vcmask 130048  }
 0x21e   : > { %9607 = vst [vmem:[#allocation55_spill] sm:$0xff] %v7489_v26  ;;  %vm9608_vm12 = vmmov %vm9592_vm11  ;;  %vm9632_vm2 = vnez %v9631_v5  ;;  %v9642_v57 = vld [vmem:[#allocation33_spill] sm:$0xff]  ;;  %v2871_v16 = vsel %vm7385_vm4, %v7435_v34, 0  ;;  %vm9660_vm4 = vnez %v9628_v38 }
 0x21f   : > { %v7492_v12 = vsel %vm9608_vm12, %v2614_v22, %v2618_v20  ;;  %vm9610_vm15 = vmmov %vm9606_vm0  ;;  %v9616_v22 = vcombine.low %v6237_v47, %v7296_v44  ;;  %9620 = vst [vmem:[#allocation59_spill] sm:$0xff] %v7529_v18  ;;  %v7552_v1 = vpop.f32.mrf.mxu1  ;;  %v9635_v44 = vld [vmem:[#allocation30_spill] sm:$0xff]  ;;  %v9640_v20 = vld [vmem:[#allocation35_spill] sm:$0xff] }
 0x220   : > { %9609 = vst [vmem:[#allocation56_spill] sm:$0xff] %v7492_v12  ;;  %5738 = vmatmul.mubr.msk.bf16.gmra.mxu1 %vm9610_vm15, %v3146_v62  ;;  %vm9611_vm3 = vmmov %vm9606_vm0  ;;  %v9612_v62 = vcombine.low %v6237_v47, %v7282_v23  ;;  %v9622_v47 = vld [vmem:[#allocation16_spill] sm:$0xff]  ;;  %v9645_v23 = vld [vmem:[#allocation19_spill] sm:$0xff] }
 0x221   : > { %5711 = vmatprep.mubr.msk.bf16.mxu0 %vm9611_vm3, %v2869_v52  ;;  %5741 = vmatprep.mubr.msk.bf16.mxu1 %vm9606_vm0, %v3147_v42  ;;  %vm7522_vm11 = vcmp.ne.s16.totalorder %v9616_v22, 0  ;;  %v9621_v52 = vld [vmem:[#allocation29_spill] sm:$0xff]  ;;  %vm9623_vm12 = vnez %v9622_v47  ;;  %v2870_v42 = vsel %vm7360_vm8, %v7432_v31, 0  ;;  %vm9648_vm0 = vmmov %vm9644_vm7 }
 0x222   : > { %vm7515_vm3 = vcmp.ne.s16.totalorder %v9612_v62, 0  ;;  %v9618_v61 = vsel %vm7522_vm11, 4294967295, %v9617_v61  ;;  %v9624_v62 = vld [vmem:[#allocation27_spill] sm:$0xff]  ;;  %v9625_v22 = vld [vmem:[#allocation13_spill] sm:$0xff]  ;;  %9633 = vst [vmem:[#allocation29_spill] sm:$0xff] %v7552_v1  ;;  %v3148_v1 = vsel %vm9623_vm12, %v9645_v23, 0  ;;  %vm9647_vm11 = vmmov %vm9644_vm7 }
 0x223   : > { %v9614_v15 = vsel %vm7515_vm3, 4294967295, %v9613_v15  ;;  %9619 = vst [vmem:[#allocation58_spill] sm:$0xff] %v9618_v61  ;;  %vm9626_vm15 = vnez %v9625_v22  ;;  %vm9646_vm3 = vnez %v9480_v55  ;;  %v9650_v18 = vld [vmem:[#allocation5_spill] sm:$0xff]  ;;  %vm9652_vm14 = vmmov %vm9648_vm0 }
 0x224   : > { %9615 = vst [vmem:[#allocation57_spill] sm:$0xff] %v9614_v15  ;;  %vm9651_vm12 = vnez %v9650_v18  ;;  %v3150_v18 = vsel %vm9660_vm4, %v9624_v62, 0 }
 0x225   : > { %5712 = vmatmul.mubr.msk.bf16.gmra.mxu0 %vm9644_vm7, %v2870_v42  ;;  %v3149_v42 = vsel %vm9626_vm15, %v9621_v52, 0  ;;  %vm9649_vm7 = vnez %v9455_v48  ;;  %v3883_v47 = vsel %vm9651_vm12, %v3131_v35, 0  ;;  %vm9657_vm12 = vnez %v9614_v15  ;;  %v9766_v15 = vld [vmem:[#allocation15_spill] sm:$0xff] }
 0x226   : > { %5715 = vmatprep.mubr.msk.bf16.mxu0 %vm9648_vm0, %v2871_v16  ;;  %v7589_v45 = vsel %vm7231_vm6, %v3883_v47, 0  ;;  %v2872_v47 = vsel %vm7391_vm9, %v7439_v10, 0  ;;  %vm9658_vm0 = vnez %v9618_v61  ;;  %vm9659_vm15 = vcmask 130048   ;;  %v9778_v61 = vld [vmem:[#allocation9_spill] sm:$0xff] }
 0x227   : > { %v2873_v35 = vsel %vm7395_vm10, %v7442_v51, 0  ;;  %vm9661_vm8 = vmmov %vm9659_vm15 }
 0x228   : > { %5742 = vmatmul.mubr.msk.bf16.gmra.mxu1 %vm9647_vm11, %v3148_v1  ;;  %v7591_v1 = vpop.f32.mrf.mxu1  ;;  %vm9655_vm11 = vnez %v9580_v6  ;;  %vm9662_vm9 = vmmov %vm9661_vm8 }
 0x229   : > { %5745 = vmatprep.mubr.msk.bf16.mxu1 %vm9652_vm14, %v3149_v42  ;;  %9653 = vst [vmem:[#allocation27_spill] sm:$0xff] %v7591_v1  ;;  %vm9654_vm14 = vnez %v9572_v25  ;;  %v3151_v42 = vsel %vm9632_vm2, %v9627_v63, 0  ;;  %vm9663_vm5 = vmmov %vm9661_vm8  ;;  %vm9669_vm2 = vnez %v9638_v29  ;;  %v9706_v1 = vld [vmem:[#allocation11_spill] sm:$0xff]  ;;  %v9755_v25 = vld [vmem:[#allocation8_spill] sm:$0xff] }
 0x22a   : > { %v7620_v16 = vpop.f32.mrf.mxu1  ;;  %v2874_v0 = vsel %vm9654_vm14, %v7449_v56, 0  ;;  %vm9670_vm4 = vmmov %vm9663_vm5 }
 0x22b   : > { %9656 = vst [vmem:[#allocation34_spill] sm:$0xff] %v7620_v16  ;;  %v9702_v16 = vld [vmem:[#allocation43_spill] sm:$0xff] }
 0x22c   : > { %v7644_v22 = vpop.f32.mrf.mxu1 }
 0x22d   : > { %5716 = vmatmul.mubr.msk.bf16.gmra.mxu0 %vm9659_vm15, %v2872_v47  ;;  %9664 = vst [vmem:[#allocation23_spill] sm:$0xff] %v7644_v22  ;;  %vm9666_vm15 = vmmov %vm9663_vm5  ;;  %v2876_v22 = vsel %vm9657_vm12, %v7462_v46, 0 }
 0x22e   : > { %5719 = vmatprep.mubr.msk.bf16.mxu0 %vm9662_vm9, %v2873_v35  ;;  %v7646_v47 = vpop.f32.mrf.mxu1  ;;  %vm9668_vm9 = vmmov %vm9663_vm5 }
 0x22f   : > { %9665 = vst [vmem:[#allocation32_spill] sm:$0xff] %v7646_v47 }
 0x230   : > { %5746 = vmatmul.mubr.msk.bf16.gmra.mxu1 %vm9661_vm8, %v3150_v18  ;;  %vm9667_vm8 = vnez %v9635_v44  ;;  %v2875_v18 = vsel %vm9655_vm11, %v7459_v53, 0  ;;  %v7664_v47 = vpop.f32.mrf.mxu1 }
 0x231   : > { %5749 = vmatprep.mubr.msk.bf16.mxu1 %vm9663_vm5, %v3151_v42  ;;  %v3152_v35 = vsel %vm9667_vm8, %v9630_v14, 0  ;;  %v3153_v42 = vsel %vm9669_vm2, %v9634_v54, 0  ;;  %9671 = vst [vmem:[#allocation21_spill] sm:$0xff] %v7664_v47  ;;  %vm9676_vm2 = vnez %v9642_v57  ;;  %vm9677_vm8 = vmmov %vm9670_vm4 }
 0x235   : > { %5720 = vmatmul.mubr.msk.bf16.gmra.mxu0 %vm9666_vm15, %v2874_v0  ;;  %v7666_v0 = vpop.f32.mrf.mxu1  ;;  %vm9673_vm15 = vmmov %vm9670_vm4 }
 0x236   : > { %5723 = vmatprep.mubr.msk.bf16.mxu0 %vm9663_vm5, %v2875_v18  ;;  %9672 = vst [vmem:[#allocation39_spill] sm:$0xff] %v7666_v0  ;;  %v2877_v18 = vsel %vm9658_vm0, %v7489_v26, 0  ;;  %vm9675_vm5 = vmmov %vm9670_vm4 }
 0x237   : > { %v7684_v0 = vpop.f32.mrf.mxu1 }
 0x238   : > { %5750 = vmatmul.mubr.msk.bf16.gmra.mxu1 %vm9668_vm9, %v3152_v35  ;;  %vm9674_vm9 = vnez %v9640_v20  ;;  %9678 = vst [vmem:[#allocation30_spill] sm:$0xff] %v7684_v0  ;;  %v9696_v0 = vld [vmem:[#allocation4_spill] sm:$0xff] }
 0x239   : > { %5753 = vmatprep.mubr.msk.bf16.mxu1 %vm9670_vm4, %v3153_v42  ;;  %v3154_v35 = vsel %vm9674_vm9, %v9637_v50, 0  ;;  %v3155_v42 = vsel %vm9676_vm2, %v7106_v37, 0  ;;  %vm9681_vm9 = vmmov %vm9670_vm4 }
 0x23d   : > { %5724 = vmatmul.mubr.msk.bf16.gmra.mxu0 %vm9673_vm15, %v2876_v22  ;;  %v7686_v22 = vpop.f32.mrf.mxu1  ;;  %vm9680_vm15 = vnez %v9540_v49 }
 0x23e   : > { %5727 = vmatprep.mubr.msk.bf16.mxu0 %vm9670_vm4, %v2877_v18  ;;  %9679 = vst [vmem:[#allocation38_spill] sm:$0xff] %v7686_v22  ;;  %v2878_v47 = vsel %vm9680_vm15, %v7492_v12, 0  ;;  %v3157_v18 = vsel %vm9649_vm7, %v7270_v43, 0  ;;  %vm9691_vm7 = vmmov %vm9670_vm4 }
 0x240   : > { %5754 = vmatmul.mubr.msk.bf16.gmra.mxu1 %vm9675_vm5, %v3154_v35  ;;  %v3156_v35 = vsel %vm9646_vm3, %v7095_v40, 0  ;;  %vm9682_vm5 = vmmov %vm9670_vm4 }
 0x241   : > { %5757 = vmatprep.mubr.msk.bf16.mxu1 %vm9677_vm8, %v3155_v42  ;;  %vm9683_vm8 = vmmov %vm9670_vm4  ;;  %v7702_v42 = vpop.f32.mrf.mxu1 }
 0x242   : > { %9684 = vst [vmem:[#allocation28_spill] sm:$0xff] %v7702_v42 }
 0x243   : > { %v7704_v22 = vpop.f32.mrf.mxu1 }
 0x244   : > { %9685 = vst [vmem:[#allocation35_spill] sm:$0xff] %v7704_v22 }
 0x245   : > { %5728 = vmatmul.mubr.msk.bf16.gmra.mxu0 %vm9681_vm9, %v2878_v47  ;;  %v5973_v47 = vld [vmem:[%s9082_s8 + $0x40] sm:$0xff]   ;;  %vm9686_vm9 = vmmov %vm9670_vm4  ;;  %v7723_v22 = vpop.f32.mrf.mxu1 }
 0x246   : > { %5767 = vmatprep.mubr.msk.bf16.mxu0 %vm9683_vm8, %v6516_v28  ;;  %vm9689_vm8 = vnez %v9449_v3  ;;  %9692 = vst [vmem:[#allocation33_spill] sm:$0xff] %v7723_v22 }
 0x247   : > { %v3616_v28 = vsel %vm9689_vm8, %v7210_v7, 0  ;;  %v7725_v42 = vpop.f32.mrf.mxu1  ;;  %v9699_v7 = vld [vmem:[#allocation14_spill] sm:$0xff]  ;;  %vm9700_vm8 = vmmov %vm9670_vm4 }
 0x248   : > { %5758 = vmatmul.mubr.msk.bf16.gmra.mxu1 %vm9682_vm5, %v3156_v35  ;;  %v9687_v35 = vsel %vm7231_vm6, %v7473_v13, 0  ;;  %vm9688_vm5 = vmmov %vm9670_vm4  ;;  %9693 = vst [vmem:[#allocation19_spill] sm:$0xff] %v7725_v42  ;;  %vm9695_vm6 = vnez %v9694_v8  ;;  %v9708_v8 = vld [vmem:[#allocation47_spill] sm:$0xff] }
 0x249   : > { %5761 = vmatprep.mubr.msk.bf16.mxu1 %vm9670_vm4, %v3157_v18  ;;  %v9690_v18 = vld [vmem:[#allocation7_spill] sm:$0xff]  ;;  %v7740_v42 = vpop.f32.mrf.mxu1 }
 0x24a   : > { %9704 = vst [vmem:[#allocation5_spill] sm:$0xff] %v7740_v42  ;;  %v9717_v42 = vld [vmem:[#allocation18_spill] sm:$0xff] }
 0x24b   : > { %v7742_v22 = vpop.f32.mrf.mxu1 }
 0x24c   : > { %9705 = vst [vmem:[#allocation7_spill] sm:$0xff] %v7742_v22 }
 0x24d   : > { %5768 = vmatmul.mubr.msk.bf16.vlgmr.msra.gmra.mxu0 %vm9686_vm9, %v6503_v11  ;;  %vm9697_vm9 = vmmov %vm9670_vm4 }
 0x24e   : > { %5834 = vmatpush3.bf16.msra.mxu0 %v7287_v39  ;;  %5771 = vmatprep.mubr.msk.bf16.mxu0 %vm9670_vm4, %v9690_v18  ;;  %v9701_v39 = vld [vmem:[#allocation24_spill] sm:$0xff] }
 0x24f   : > { %5901 = vmatprep.subr.bf16.mxu0 %v5973_v47 }
 0x250   : > { %5762 = vmatmul.mubr.msk.bf16.gmra.mxu1 %vm9688_vm5, %v9687_v35  ;;  %v3617_v35 = vsel %vm9695_vm6, %v7248_v17, 0  ;;  %vm9698_vm5 = vmmov %vm9670_vm4  ;;  %v9712_v17 = vld [vmem:[#allocation20_spill] sm:$0xff] }
 0x251   : > { %5801 = vmatprep.mubr.msk.bf16.mxu1 %vm9691_vm7, %v3616_v28  ;;  %vm9703_vm7 = vnez %v9702_v16  ;;  %vm9707_vm6 = vmmov %vm9670_vm4 }
 0x252   : > { %v3618_v28 = vsel %vm9703_vm7, %v9701_v39, 0 }
 0x255   : > { %5772 = vmatmul.mubr.msk.bf16.gmra.mxu0 %vm9697_vm9, %v9696_v0 }
 0x256   : > { %5775 = vmatprep.mubr.msk.bf16.mxu0 %vm9700_vm8, %v9699_v7  ;;  %vm9711_vm8 = vmmov %vm9670_vm4 }
 0x258   : > { %5802 = vmatmul.mubr.msk.bf16.vlgmr.msra.gmra.mxu1 %vm9698_vm5, %v3617_v35  ;;  %v9709_v35 = vld [vmem:[#allocation44_spill] sm:$0xff]  ;;  %vm9713_vm5 = vmmov %vm9670_vm4 }
 0x259   : > { %5805 = vmatprep.mubr.msk.bf16.mxu1 %vm9670_vm4, %v3618_v28  ;;  %5868 = vmatpush3.bf16.msra.mxu1 %v7379_v59  ;;  %vm9710_vm9 = vnez %v9709_v35  ;;  %v9714_v59 = vsel %vm9547_vm1, %v7332_v33, 0  ;;  %v7757_v28 = vpop.f32.mrf.mxu1  ;;  %v9721_v35 = vld [vmem:[#allocation26_spill] sm:$0xff]  ;;  %vm9723_vm1 = vnez %v9544_v60 }
 0x25a   : > { %v3619_v3 = vsel %vm9710_vm9, %v9708_v8, 0  ;;  %9715 = vst [vmem:[#allocation4_spill] sm:$0xff] %v7757_v28 }
 0x25b   : > { %v7759_v22 = vpop.f32.mrf.mxu1 }
 0x25c   : > { %9716 = vst [vmem:[#allocation14_spill] sm:$0xff] %v7759_v22 }
 0x25d   : > { %5776 = vmatmul.mubr.msk.bf16.gmra.mxu0 %vm9707_vm6, %v9706_v1  ;;  %vm9718_vm6 = vmmov %vm9670_vm4  ;;  %v7775_v28 = vpop.f32.mrf.mxu1 }
 0x25e   : > { %5779 = vmatprep.mubr.msk.bf16.mxu0 %vm9713_vm5, %v9712_v17  ;;  %vm9722_vm5 = vmmov %vm9670_vm4  ;;  %9725 = vst [vmem:[#allocation24_spill] sm:$0xff] %v7775_v28 }
 0x25f   : > { %v7777_v22 = vpop.f32.mrf.mxu1 }
 0x260   : > { %5806 = vmatmul.mubr.msk.bf16.gmra.mxu1 %vm9711_vm8, %v3619_v3  ;;  %v9719_v3 = vsel %vm9555_vm13, %v7420_v4, 0  ;;  %vm9720_vm8 = vmmov %vm9670_vm4  ;;  %9726 = vst [vmem:[#allocation43_spill] sm:$0xff] %v7777_v22  ;;  %vm9728_vm13 = vnez %v9551_v32 }
 0x261   : > { %5809 = vmatprep.mubr.msk.bf16.mxu1 %vm9670_vm4, %v9714_v59  ;;  %v9724_v59 = vsel %vm9723_vm1, %v7432_v31, 0  ;;  %vm9733_vm1 = vnez %v9562_v24  ;;  %v7793_v28 = vpop.f32.mrf.mxu1 }
 0x262   : > { %9735 = vst [vmem:[#allocation11_spill] sm:$0xff] %v7793_v28 }
 0x263   : > { %v7795_v22 = vpop.f32.mrf.mxu1 }
 0x264   : > { %9736 = vst [vmem:[#allocation47_spill] sm:$0xff] %v7795_v22 }
 0x265   : > { %5780 = vmatmul.mubr.msk.bf16.gmra.mxu0 %vm9718_vm6, %v9717_v42  ;;  %vm9727_vm6 = vmmov %vm9670_vm4  ;;  %v7811_v28 = vpop.f32.mrf.mxu1 }
 0x266   : > { %5783 = vmatprep.mubr.msk.bf16.mxu0 %vm9722_vm5, %v9721_v35  ;;  %vm9732_vm5 = vmmov %vm9670_vm4  ;;  %9743 = vst [vmem:[#allocation20_spill] sm:$0xff] %v7811_v28 }
 0x267   : > { %v7813_v22 = vpop.f32.mrf.mxu1 }
 0x268   : > { %5810 = vmatmul.mubr.msk.bf16.gmra.mxu1 %vm9720_vm8, %v9719_v3  ;;  %v9729_v3 = vsel %vm9728_vm13, %v7435_v34, 0  ;;  %vm9730_vm8 = vmmov %vm9670_vm4  ;;  %vm9738_vm13 = vnez %v9565_v41  ;;  %9744 = vst [vmem:[#allocation18_spill] sm:$0xff] %v7813_v22  ;;  %v9748_v41 = vld [vmem:[#allocation41_spill] sm:$0xff] }
 0x269   : > { %5813 = vmatprep.mubr.msk.bf16.mxu1 %vm9670_vm4, %v9724_v59  ;;  %v9734_v59 = vsel %vm9733_vm1, %v7439_v10, 0  ;;  %v7829_v28 = vpop.f32.mrf.mxu1 }
 0x26a   : > { %9751 = vst [vmem:[#allocation26_spill] sm:$0xff] %v7829_v28 }
 0x26b   : > { %v7831_v22 = vpop.f32.mrf.mxu1 }
 0x26c   : > { %9752 = vst [vmem:[#allocation31_spill] sm:$0xff] %v7831_v22 }
 0x26d   : > { %5784 = vmatmul.mubr.msk.bf16.gmra.mxu0 %vm9727_vm6, %v9552_v2  ;;  %vm9737_vm6 = vmmov %vm9670_vm4  ;;  %v7849_v22 = vpop.f32.mrf.mxu1 }
 0x26e   : > { %5787 = vmatprep.mubr.msk.bf16.mxu0 %vm9732_vm5, %v9731_v36  ;;  %vm9741_vm5 = vmmov %vm9670_vm4  ;;  %9762 = vst [vmem:[#allocation41_spill] sm:$0xff] %v7849_v22 }
 0x26f   : > { %v7851_v28 = vpop.f32.mrf.mxu1 }
 0x270   : > { %5814 = vmatmul.mubr.msk.bf16.gmra.mxu1 %vm9730_vm8, %v9729_v3  ;;  %v9739_v3 = vsel %vm9738_vm13, %v7442_v51, 0  ;;  %vm9740_vm8 = vmmov %vm9670_vm4  ;;  %9763 = vst [vmem:[#allocation40_spill] sm:$0xff] %v7851_v28 }
 0x271   : > { %5817 = vmatprep.mubr.msk.bf16.mxu1 %vm9670_vm4, %v9734_v59  ;;  %v9742_v59 = vsel %vm7395_vm10, %v7449_v56, 0  ;;  %v9758_v56 = vsel %vm9657_vm12, %v7489_v26, 0 }
 0x275   : > { %5788 = vmatmul.mubr.msk.bf16.gmra.mxu0 %vm9737_vm6, %v6926_v21  ;;  %vm9745_vm6 = vmmov %vm9670_vm4 }
 0x276   : > { %5791 = vmatprep.mubr.msk.bf16.mxu0 %vm9741_vm5, %v7019_v27  ;;  %vm9749_vm5 = vmmov %vm9670_vm4 }
 0x278   : > { %5818 = vmatmul.mubr.msk.bf16.gmra.mxu1 %vm9740_vm8, %v9739_v3  ;;  %v9746_v3 = vsel %vm9654_vm14, %v7459_v53, 0  ;;  %vm9747_vm8 = vmmov %vm9670_vm4  ;;  %v9756_v53 = vld [vmem:[#allocation42_spill] sm:$0xff] }
 0x279   : > { %5821 = vmatprep.mubr.msk.bf16.mxu1 %vm9670_vm4, %v9742_v59  ;;  %v9750_v59 = vsel %vm9655_vm11, %v7462_v46, 0  ;;  %vm9757_vm14 = vnez %v9756_v53  ;;  %v5633_v53 = vpop.f32.mrf.mxu0  ;;  %v9785_v46 = vld [vmem:[#allocation16_spill] sm:$0xff] }
 0x27d   : > { %5792 = vmatmul.mubr.msk.bf16.gmra.mxu0 %vm9745_vm6, %v9586_v58  ;;  %vm9754_vm6 = vmmov %vm9670_vm4 }
 0x27e   : > { %5795 = vmatprep.mubr.msk.bf16.mxu0 %vm9749_vm5, %v9748_v41  ;;  %vm9760_vm5 = vmmov %vm9670_vm4 }
 0x280   : > { %5822 = vmatmul.mubr.msk.bf16.gmra.mxu1 %vm9747_vm8, %v9746_v3  ;;  %v3884_v3 = vsel %vm9757_vm14, %v9755_v25, 0  ;;  %vm9759_vm8 = vmmov %vm9670_vm4  ;;  %v9764_v25 = vld [vmem:[#allocation3_spill] sm:$0xff] }
 0x281   : > { %5825 = vmatprep.mubr.msk.bf16.mxu1 %vm9670_vm4, %v9750_v59  ;;  %v9761_v59 = vsel %vm9658_vm0, %v7492_v12, 0  ;;  %vm9765_vm14 = vnez %v9764_v25  ;;  %vm9774_vm0 = vmmov %vm9670_vm4  ;;  %v2231_v25 = vpop.f32.mrf.mxu0 }
 0x282   : > { %v9767_v6 = vsel %vm9765_vm14, %v9766_v15, 0  ;;  %v7869_v15 = vpop.f32.mrf.mxu1  ;;  %vm9780_vm14 = vmmov %vm9774_vm0 }
 0x283   : > { %9775 = vst [vmem:[#allocation8_spill] sm:$0xff] %v7869_v15 }
 0x284   : > { %v7871_v49 = vpop.f32.mrf.mxu1 }
 0x285   : > { %5796 = vmatmul.mubr.msk.bf16.gmra.mxu0 %vm9754_vm6, %v9753_v30  ;;  %vm9768_vm6 = vmmov %vm9670_vm4  ;;  %9776 = vst [vmem:[#allocation42_spill] sm:$0xff] %v7871_v49 }
 0x286   : > { %5835 = vmatprep.mubr.msk.bf16.mxu0 %vm9760_vm5, %v3884_v3  ;;  %v9771_v3 = vld [vmem:[#allocation12_spill] sm:$0xff] }
 0x288   : > { %5826 = vmatmul.mubr.msk.bf16.gmra.mxu1 %vm9759_vm8, %v9758_v56  ;;  %v9769_v56 = vsel %vm9680_vm15, %v7453_v19, 0  ;;  %vm9770_vm8 = vmmov %vm9670_vm4  ;;  %v9777_v19 = vld [vmem:[#allocation22_spill] sm:$0xff]  ;;  %vm9779_vm15 = vnez %v9778_v61 }
 0x289   : > { %5829 = vmatprep.mubr.msk.bf16.mxu1 %vm9670_vm4, %v9761_v59  ;;  %v9772_v59 = vld [vmem:[#allocation2_spill] sm:$0xff] }
 0x28a   : > { %vm9773_vm5 = vnez %v9772_v59  ;;  %v5667_v59 = vpop.f32.mrf.mxu1 }
 0x28b   : > { %v3886_v22 = vsel %vm9773_vm5, %v9771_v3, 0  ;;  %v9781_v3 = vld [vmem:[#allocation6_spill] sm:$0xff]  ;;  %vm9784_vm5 = vmmov %vm9774_vm0 }
 0x28d   : > { %5836 = vmatmul.mubr.msk.bf16.vlgmr.msra.gmra.mxu0 %vm9768_vm6, %v9767_v6  ;;  %v5634_v6 = vpop.f32.mrf.mxu0  ;;  %vm9782_vm6 = vnez %v9781_v3 }
 0x28e   : > { %5902 = vmatpush3.bf16.msra.mxu0 %v5973_v47  ;;  %5839 = vmatprep.mubr.msk.bf16.mxu0 %vm9670_vm4, %v3886_v22  ;;  %v3887_v47 = vsel %vm9779_vm15, %v9777_v19, 0  ;;  %v3888_v22 = vsel %vm9782_vm6, %v9645_v23, 0  ;;  %v2443_v19 = vpop.f32.mrf.mxu1  ;;  %vm9786_vm4 = vnez %v9785_v46  ;;  %vm9788_vm15 = vmmov %vm9774_vm0 }
 0x28f   : > { %v2234_v28 = vpop.f32.mrf.mxu0  ;;  %v7887_v49 = vadd.f32 %v2443_v19, %v2231_v25  ;;  %v9790_v25 = vld [vmem:[#allocation13_spill] sm:$0xff] }
 0x290   : > { %5830 = vmatmul.mubr.msk.bf16.gmra.mxu1 %vm9770_vm8, %v9769_v56  ;;  %vm9783_vm8 = vmmov %vm9774_vm0  ;;  %v5668_v15 = vpop.f32.mrf.mxu1  ;;  %vm9791_vm6 = vnez %v9790_v25 }
 0x291   : > { %5869 = vmatprep.mubr.msk.bf16.mxu1 %vm9774_vm0, %v6503_v11  ;;  %v5637_v56 = vpop.f32.mrf.mxu0  ;;  %v7883_v11 = vadd.f32 %v5667_v59, %v5633_v53  ;;  %v7889_v12 = vadd.f32 %v5668_v15, %v5634_v6  ;;  %v9787_v53 = vsel %vm9786_vm4, %v9621_v52, 0  ;;  %v9792_v15 = vsel %vm9791_vm6, %v9624_v62, 0  ;;  %vm9796_vm4 = vmmov %vm9774_vm0 }
 0x292   : > { %v2446_v3 = vpop.f32.mrf.mxu1  ;;  %vm9800_vm6 = vmmov %vm9774_vm0 }
 0x293   : > { %v2247_v61 = vpop.f32.mrf.mxu0  ;;  %v7891_v26 = vadd.f32 %v2446_v3, %v2234_v28 }
 0x295   : > { %5840 = vmatmul.mubr.msk.bf16.gmra.mxu0 %vm9780_vm14, %v3887_v47  ;;  %v5638_v47 = vpop.f32.mrf.mxu0  ;;  %vm9789_vm14 = vmmov %vm9774_vm0 }
 0x296   : > { %5843 = vmatprep.mubr.msk.bf16.mxu0 %vm9783_vm8, %v3888_v22  ;;  %vm9793_vm8 = vmmov %vm9774_vm0 }
 0x297   : > { %v2250_v23 = vpop.f32.mrf.mxu0 }
 0x298   : > { %5870 = vmatmul.mubr.msk.bf16.vlgmr.msra.gmra.mxu1 %vm9774_vm0, %v9690_v18 }
 0x299   : > { %5873 = vmatprep.mubr.msk.bf16.mxu1 %vm9784_vm5, %v9696_v0  ;;  %v5641_v18 = vpop.f32.mrf.mxu0  ;;  %v5671_v0 = vpop.f32.mrf.mxu1  ;;  %vm9794_vm5 = vnez %v9628_v38 }
 0x29a   : > { %v7905_v6 = vadd.f32 %v5671_v0, %v5637_v56  ;;  %v9795_v56 = vsel %vm9794_vm5, %v9627_v63, 0  ;;  %vm9803_vm5 = vmmov %vm9774_vm0 }
 0x29b   : > { %v2263_v46 = vpop.f32.mrf.mxu0  ;;  %v2459_v28 = vpop.f32.mrf.mxu1 }
 0x29c   : > { %v7909_v52 = vadd.f32 %v2459_v28, %v2247_v61 }
 0x29d   : > { %5844 = vmatmul.mubr.msk.bf16.gmra.mxu0 %vm9788_vm15, %v9787_v53  ;;  %v5642_v22 = vpop.f32.mrf.mxu0  ;;  %v5672_v59 = vpop.f32.mrf.mxu1  ;;  %vm9797_vm15 = vmmov %vm9774_vm0 }
 0x29e   : > { %5847 = vmatprep.mubr.msk.bf16.mxu0 %vm9774_vm0, %v9792_v15  ;;  %v7911_v19 = vadd.f32 %v5672_v59, %v5638_v47 }
 0x29f   : > { %v2462_v3 = vpop.f32.mrf.mxu1 }
 0x2a0   : > { %5874 = vmatmul.mubr.msk.bf16.gmra.mxu1 %vm9789_vm14, %v9699_v7  ;;  %v2266_v7 = vpop.f32.mrf.mxu0  ;;  %v7913_v53 = vadd.f32 %v2462_v3, %v2250_v23  ;;  %vm9798_vm14 = vnez %v9631_v5 }
 0x2a1   : > { %5877 = vmatprep.mubr.msk.bf16.mxu1 %vm9793_vm8, %v9706_v1  ;;  %v5675_v1 = vpop.f32.mrf.mxu1  ;;  %v9799_v61 = vsel %vm9798_vm14, %v9630_v14, 0  ;;  %vm9801_vm8 = vnez %v9635_v44  ;;  %vm9807_vm14 = vmmov %vm9774_vm0 }
 0x2a2   : > { %v5645_v62 = vpop.f32.mrf.mxu0  ;;  %v7927_v47 = vadd.f32 %v5675_v1, %v5641_v18  ;;  %v9802_v18 = vsel %vm9801_vm8, %v9634_v54, 0 }
 0x2a3   : > { %v2475_v23 = vpop.f32.mrf.mxu1 }
 0x2a4   : > { %v2279_v38 = vpop.f32.mrf.mxu0  ;;  %v7931_v63 = vadd.f32 %v2475_v23, %v2263_v46 }
 0x2a5   : > { %5848 = vmatmul.mubr.msk.bf16.gmra.mxu0 %vm9796_vm4, %v9795_v56  ;;  %v5676_v25 = vpop.f32.mrf.mxu1  ;;  %vm9804_vm4 = vmmov %vm9774_vm0 }
 0x2a6   : > { %5851 = vmatprep.mubr.msk.bf16.mxu0 %vm9800_vm6, %v9799_v61  ;;  %v5646_v0 = vpop.f32.mrf.mxu0  ;;  %v7933_v15 = vadd.f32 %v5676_v25, %v5642_v22  ;;  %vm9808_vm6 = vmmov %vm9774_vm0  ;;  %v9813_v61 = vsel %vm9676_vm2, %v7095_v40, 0 }
 0x2a7   : > { %v2478_v28 = vpop.f32.mrf.mxu1  ;;  %vm9811_vm8 = vmmov %vm9804_vm4 }
 0x2a8   : > { %5878 = vmatmul.mubr.msk.bf16.gmra.mxu1 %vm9797_vm15, %v9712_v17  ;;  %v2282_v17 = vpop.f32.mrf.mxu0  ;;  %v7935_v5 = vadd.f32 %v2478_v28, %v2266_v7  ;;  %vm9805_vm15 = vnez %v9638_v29  ;;  %vm9816_vm2 = vmmov %vm9804_vm4 }
 0x2a9   : > { %5881 = vmatprep.mubr.msk.bf16.mxu1 %vm9774_vm0, %v9717_v42  ;;  %v5679_v42 = vpop.f32.mrf.mxu1  ;;  %v9806_v46 = vsel %vm9805_vm15, %v9637_v50, 0  ;;  %vm9809_vm0 = vnez %v9640_v20  ;;  %vm9814_vm15 = vmmov %vm9804_vm4 }
 0x2aa   : > { %v5649_v14 = vpop.f32.mrf.mxu0  ;;  %v7949_v22 = vadd.f32 %v5679_v42, %v5645_v62  ;;  %v9810_v62 = vsel %vm9809_vm0, %v7106_v37, 0  ;;  %vm9820_vm0 = vmmov %vm9816_vm2 }
 0x2ab   : > { %v2491_v59 = vpop.f32.mrf.mxu1 }
 0x2ac   : > { %v2295_v44 = vpop.f32.mrf.mxu0  ;;  %v7953_v54 = vadd.f32 %v2491_v59, %v2279_v38 }
 0x2ad   : > { %5852 = vmatmul.mubr.msk.bf16.gmra.mxu0 %vm9803_vm5, %v9802_v18  ;;  %v5680_v3 = vpop.f32.mrf.mxu1  ;;  %vm9812_vm5 = vmmov %vm9804_vm4 }
 0x2ae   : > { %5855 = vmatprep.mubr.msk.bf16.mxu0 %vm9807_vm14, %v9806_v46  ;;  %v5650_v7 = vpop.f32.mrf.mxu0  ;;  %v7955_v56 = vadd.f32 %v5680_v3, %v5646_v0  ;;  %vm9817_vm14 = vmmov %vm9816_vm2 }
 0x2af   : > { %v2494_v1 = vpop.f32.mrf.mxu1 }
 0x2b0   : > { %5882 = vmatmul.mubr.msk.bf16.gmra.mxu1 %vm9804_vm4, %v9721_v35  ;;  %v2298_v35 = vpop.f32.mrf.mxu0  ;;  %v7957_v29 = vadd.f32 %v2494_v1, %v2282_v17  ;;  %v9824_v1 = vld [vmem:[#allocation37_spill] sm:$0xff] }
 0x2b1   : > { %5885 = vmatprep.mubr.msk.bf16.mxu1 %vm9808_vm6, %v9552_v2  ;;  %v5683_v2 = vpop.f32.mrf.mxu1  ;;  %vm9818_vm6 = vnez %v9455_v48 }
 0x2b2   : > { %v5653_v50 = vpop.f32.mrf.mxu0  ;;  %v7971_v38 = vadd.f32 %v5683_v2, %v5649_v14  ;;  %v9815_v14 = vsel %vm9646_vm3, %v7270_v43, 0  ;;  %v9819_v18 = vsel %vm9818_vm6, %v7473_v13, 0  ;;  %vm9822_vm3 = vmmov %vm9820_vm0 }
 0x2b3   : > { %v2507_v23 = vpop.f32.mrf.mxu1  ;;  %vm9832_vm6 = vmmov %vm9820_vm0 }
 0x2b4   : > { %v2311_v20 = vpop.f32.mrf.mxu0  ;;  %v7975_v37 = vadd.f32 %v2507_v23, %v2295_v44 }
 0x2b5   : > { %5856 = vmatmul.mubr.msk.bf16.gmra.mxu0 %vm9811_vm8, %v9810_v62  ;;  %v5684_v25 = vpop.f32.mrf.mxu1  ;;  %vm9821_vm8 = vmmov %vm9820_vm0 }
 0x2b6   : > { %5859 = vmatprep.mubr.msk.bf16.mxu0 %vm9804_vm4, %v9813_v61  ;;  %v5654_v0 = vpop.f32.mrf.mxu0  ;;  %v7977_v17 = vadd.f32 %v5684_v25, %v5650_v7  ;;  %vm9826_vm4 = vmmov %vm9820_vm0 }
 0x2b7   : > { %v2510_v28 = vpop.f32.mrf.mxu1 }
 0x2b8   : > { %5886 = vmatmul.mubr.msk.bf16.gmra.mxu1 %vm9812_vm5, %v9731_v36  ;;  %v2314_v36 = vpop.f32.mrf.mxu0  ;;  %v7979_v57 = vadd.f32 %v2510_v28, %v2298_v35  ;;  %v9823_v35 = vld [vmem:[#allocation46_spill] sm:$0xff]  ;;  %vm9825_vm5 = vnez %v9824_v1 }
 0x2b9   : > { %5889 = vmatprep.mubr.msk.bf16.mxu1 %vm9814_vm15, %v6926_v21  ;;  %v5687_v21 = vpop.f32.mrf.mxu1  ;;  %vm9827_vm15 = vmmov %vm9820_vm0 }
 0x2ba   : > { %v5657_v40 = vpop.f32.mrf.mxu0  ;;  %v7993_v42 = vadd.f32 %v5687_v21, %v5653_v50 }
 0x2bb   : > { %v2523_v46 = vpop.f32.mrf.mxu1 }
 0x2bc   : > { %v2327_v55 = vpop.f32.mrf.mxu0  ;;  %v7997_v43 = vadd.f32 %v2523_v46, %v2311_v20 }
 0x2bd   : > { %5860 = vmatmul.mubr.msk.bf16.gmra.mxu0 %vm9816_vm2, %v9815_v14  ;;  %v5688_v59 = vpop.f32.mrf.mxu1  ;;  %vm9828_vm2 = vmmov %vm9820_vm0  ;;  %v9829_v14 = vld [vmem:[#allocation17_spill] sm:$0xff] }
 0x2be   : > { %5863 = vmatprep.mubr.msk.bf16.mxu0 %vm9820_vm0, %v9819_v18  ;;  %v5658_v44 = vpop.f32.mrf.mxu0  ;;  %v7999_v7 = vadd.f32 %v5688_v59, %v5654_v0 }
 0x2bf   : > { %v2526_v3 = vpop.f32.mrf.mxu1 }
 0x2c0   : > { %5890 = vmatmul.mubr.msk.bf16.gmra.mxu1 %vm9817_vm14, %v7019_v27  ;;  %v2330_v27 = vpop.f32.mrf.mxu0  ;;  %v8001_v48 = vadd.f32 %v2526_v3, %v2314_v36  ;;  %vm9830_vm14 = vnez %v9829_v14 }
 0x2c1   : > { %5893 = vmatprep.mubr.msk.bf16.mxu1 %vm9821_vm8, %v9586_v58  ;;  %v4352_v58 = vsel %vm9825_vm5, %v9823_v35, 0  ;;  %v5691_v50 = vpop.f32.mrf.mxu1  ;;  %vm9836_vm8 = vnez %v9509_v9  ;;  %vm9842_vm5 = vmmov %vm9820_vm0 }
 0x2c2   : > { %v5661_v13 = vpop.f32.mrf.mxu0  ;;  %v8011_v62 = vadd.f32 %v5691_v50, %v5657_v40  ;;  %v9831_v40 = vsel %vm9830_vm14, %v9701_v39, 0  ;;  %vm9848_vm14 = vmmov %vm9820_vm0 }
 0x2c3   : > { %v2539_v61 = vpop.f32.mrf.mxu1 }
 0x2c4   : > { %v2343_v2 = vpop.f32.mrf.mxu0  ;;  %v8015_v20 = vadd.f32 %v2539_v61, %v2327_v55  ;;  %v9833_v55 = vmov 0  }
 0x2c5   : > { %5864 = vmatmul.mubr.msk.bf16.gmra.mxu0 %vm9822_vm3, %v7589_v45  ;;  %v5692_v23 = vpop.f32.mrf.mxu1  ;;  %vm9838_vm3 = vmmov %vm9820_vm0 }
 0x2c6   : > { %5903 = vmatprep.mubr.msk.bf16.mxu0 %vm9827_vm15, %v4352_v58  ;;  %v5662_v45 = vpop.f32.mrf.mxu0  ;;  %v8017_v0 = vadd.f32 %v5692_v23, %v5658_v44  ;;  %vm9845_vm15 = vmmov %vm9820_vm0 }
 0x2c7   : > { %v2542_v36 = vpop.f32.mrf.mxu1 }
 0x2c8   : > { %5894 = vmatmul.mubr.msk.bf16.gmra.mxu1 %vm9826_vm4, %v9748_v41  ;;  %v2346_v25 = vpop.f32.mrf.mxu0  ;;  %v8019_v28 = vadd.f32 %v2542_v36, %v2330_v27  ;;  %vm9843_vm4 = vnez %v9544_v60 }
 0x2c9   : > { %5897 = vmatprep.mubr.msk.bf16.mxu1 %vm9828_vm2, %v9753_v30  ;;  %v4354_v30 = vsel %vm9703_vm7, %v9708_v8, 0  ;;  %v5695_v21 = vpop.f32.mrf.mxu1  ;;  %vm9835_vm7 = vmmov %vm9820_vm0  ;;  %vm9846_vm2 = vnez %v9551_v32 }
 0x2ca   : > { %v5701_v41 = vpop.f32.mrf.mxu0  ;;  %v8032_v46 = vadd.f32 %v5695_v21, %v5661_v13  ;;  %v4355_v13 = vsel %vm9710_vm9, %v7332_v33, 0 }
 0x2cb   : > { %v3099_v18 = vadd.f32 %v5701_v41, %v7883_v11  ;;  %v2555_v59 = vpop.f32.mrf.mxu1 }
 0x2cc   : > { %v2970_v44 = vpop.f32.mrf.mxu0  ;;  %v8035_v39 = vadd.f32 %v2555_v59, %v2343_v2 }
 0x2cd   : > { %5904 = vmatmul.mubr.msk.bf16.vlgmr.msra.gmra.mxu0 %vm9832_vm6, %v9831_v40  ;;  %v3097_v27 = vadd.f32 %v2970_v44, %v7887_v49  ;;  %v5696_v35 = vpop.f32.mrf.mxu1  ;;  %v9839_v44 = vld [vmem:[#allocation45_spill] sm:$0xff]  ;;  %vm9850_vm6 = vmmov %vm9820_vm0 }
 0x2ce   : > { %5907 = vmatprep.mubr.msk.bf16.mxu0 %vm9820_vm0, %v4354_v30  ;;  %v5702_v3 = vpop.f32.mrf.mxu0  ;;  %v8038_v8 = vadd.f32 %v5696_v35, %v5662_v45  ;;  %vm9840_vm9 = vnez %v9839_v44 }
 0x2cf   : > { %v3100_v16 = vadd.f32 %v5702_v3, %v7889_v12  ;;  %v2558_v11 = vpop.f32.mrf.mxu1  ;;  %v9837_v12 = vsel %vm9836_vm8, %v7420_v4, 0 }
 0x2d0   : > { %5898 = vmatmul.mubr.bf16.gmra.mxu1 %v9833_v55  ;;  %v2973_v1 = vpop.f32.mrf.mxu0  ;;  %v8044_v61 = vadd.f32 %v2558_v11, %v2346_v25 }
 0x2d1   : > { %v3098_v58 = vadd.f32 %v2973_v1, %v7891_v26 }
 0x2d2   : > { %v5705_v23 = vpop.f32.mrf.mxu0 }
 0x2d3   : > { %v3103_v49 = vadd.f32 %v5705_v23, %v7905_v6  ;;  %v5735_v2 = vpop.f32.mrf.mxu1 }
 0x2d4   : > { %v8053_v45 = vadd.f32 %v5735_v2, %v3099_v18  ;;  %v2986_v26 = vpop.f32.mrf.mxu0 }
 0x2d5   : > { %5908 = vmatmul.mubr.msk.bf16.gmra.mxu0 %vm9835_vm7, %v4355_v13  ;;  %v3101_v36 = vadd.f32 %v2986_v26, %v7909_v52  ;;  %v3250_v33 = vpop.f32.mrf.mxu1  ;;  %v9841_v52 = vsel %vm9840_vm9, %v7432_v31, 0  ;;  %vm9866_vm7 = vmmov %vm9820_vm0 }
 0x2d6   : > { %5911 = vmatprep.mubr.msk.bf16.mxu0 %vm9838_vm3, %v9837_v12  ;;  %v8056_v25 = vadd.f32 %v3250_v33, %v3097_v27  ;;  %v5706_v41 = vpop.f32.mrf.mxu0  ;;  %vm9875_vm3 = vmmov %vm9820_vm0 }
 0x2d7   : > { %v3104_v14 = vadd.f32 %v5706_v41, %v7911_v19  ;;  %v5736_v40 = vpop.f32.mrf.mxu1  ;;  %v9844_v19 = vsel %vm9843_vm4, %v7435_v34, 0 }
 0x2d8   : > { %v8059_v6 = vadd.f32 %v5736_v40, %v3100_v16  ;;  %v2989_v30 = vpop.f32.mrf.mxu0 }
 0x2d9   : > { %v3102_v9 = vadd.f32 %v2989_v30, %v7913_v53  ;;  %v3253_v4 = vpop.f32.mrf.mxu1 }
 0x2da   : > { %v8062_v21 = vadd.f32 %v3253_v4, %v3098_v58  ;;  %v9852_v4 = vld [vmem:[#allocation10_spill] sm:$0xff] }
 0x2dd   : > { %v5709_v18 = vpop.f32.mrf.mxu0  ;;  %5912 = vmatmul.mubr.msk.bf16.gmra.mxu0 %vm9842_vm5, %v9841_v52  ;;  %v9856_v52 = vld [vmem:[#allocation52_spill] sm:$0xff] }
 0x2de   : > { %v3107_v59 = vadd.f32 %v5709_v18, %v7927_v47  ;;  %5915 = vmatprep.mubr.msk.bf16.mxu0 %vm9845_vm15, %v9844_v19 }
 0x2df   : > { %v3002_v3 = vpop.f32.mrf.mxu0 }
 0x2e0   : > { %v5739_v27 = vpop.f32.mrf.mxu1  ;;  %v3105_v35 = vadd.f32 %v3002_v3, %v7931_v63  ;;  %v9847_v63 = vsel %vm9846_vm2, %v7439_v10, 0 }
 0x2e1   : > { %v8075_v53 = vadd.f32 %v5739_v27, %v3103_v49  ;;  %v5710_v31 = vpop.f32.mrf.mxu0 }
 0x2e2   : > { %v3266_v16 = vpop.f32.mrf.mxu1  ;;  %v3108_v11 = vadd.f32 %v5710_v31, %v7933_v15  ;;  %v9849_v15 = vsel %vm9733_vm1, %v7442_v51, 0  ;;  %vm9854_vm1 = vmmov %vm9820_vm0 }
 0x2e3   : > { %v8078_v1 = vadd.f32 %v3266_v16, %v3101_v36  ;;  %v3005_v50 = vpop.f32.mrf.mxu0 }
 0x2e4   : > { %v5740_v58 = vpop.f32.mrf.mxu1  ;;  %v3106_v60 = vadd.f32 %v3005_v50, %v7935_v5 }
 0x2e5   : > { %v8081_v47 = vadd.f32 %v5740_v58, %v3104_v14  ;;  %v5713_v23 = vpop.f32.mrf.mxu0  ;;  %5916 = vmatmul.mubr.msk.bf16.gmra.mxu0 %vm9848_vm14, %v9847_v63  ;;  %v9858_v63 = vld [vmem:[#allocation49_spill] sm:$0xff] }
 0x2e6   : > { %v3269_v34 = vpop.f32.mrf.mxu1  ;;  %v3111_v49 = vadd.f32 %v5713_v23, %v7949_v22  ;;  %5919 = vmatprep.mubr.msk.bf16.mxu0 %vm9850_vm6, %v9849_v15 }
 0x2e7   : > { %v8084_v13 = vadd.f32 %v3269_v34, %v3102_v9  ;;  %v3018_v12 = vpop.f32.mrf.mxu0 }
 0x2e8   : > { %v5743_v2 = vpop.f32.mrf.mxu1  ;;  %v3109_v26 = vadd.f32 %v3018_v12, %v7953_v54  ;;  %v9853_v54 = vsel %vm9738_vm13, %v9852_v4, 0  ;;  %vm9862_vm13 = vmmov %vm9820_vm0  ;;  %v9864_v12 = vld [vmem:[#allocation55_spill] sm:$0xff] }
 0x2e9   : > { %v8097_v5 = vadd.f32 %v5743_v2, %v3107_v59  ;;  %v5714_v10 = vpop.f32.mrf.mxu0  ;;  %v9857_v59 = vsel %vm7395_vm10, %v9856_v52, 0  ;;  %vm9859_vm10 = vnez %v9858_v63 }
 0x2ea   : > { %v3282_v36 = vpop.f32.mrf.mxu1  ;;  %v3112_v33 = vadd.f32 %v5714_v10, %v7955_v56  ;;  %v9868_v56 = vld [vmem:[#allocation56_spill] sm:$0xff] }
 0x2eb   : > { %v8100_v32 = vadd.f32 %v3282_v36, %v3105_v35  ;;  %v3021_v14 = vpop.f32.mrf.mxu0 }
 0x2ec   : > { %v5744_v41 = vpop.f32.mrf.mxu1  ;;  %v3110_v24 = vadd.f32 %v3021_v14, %v7957_v29 }
 0x2ed   : > { %v8103_v22 = vadd.f32 %v5744_v41, %v3108_v11  ;;  %v5717_v30 = vpop.f32.mrf.mxu0  ;;  %5920 = vmatmul.mubr.msk.bf16.gmra.mxu0 %vm9854_vm1, %v9853_v54 }
 0x2ee   : > { %v3285_v51 = vpop.f32.mrf.mxu1  ;;  %v3115_v18 = vadd.f32 %v5717_v30, %v7971_v38  ;;  %5923 = vmatprep.mubr.msk.bf16.mxu0 %vm9820_vm0, %v9857_v59 }
 0x2ef   : > { %v8106_v40 = vadd.f32 %v3285_v51, %v3106_v60  ;;  %v3034_v27 = vpop.f32.mrf.mxu0 }
 0x2f0   : > { %v5747_v44 = vpop.f32.mrf.mxu1  ;;  %v3113_v19 = vadd.f32 %v3034_v27, %v7975_v37  ;;  %v9873_v27 = vld [vmem:[#allocation51_spill] sm:$0xff] }
 0x2f1   : > { %v8119_v29 = vadd.f32 %v5747_v44, %v3111_v49  ;;  %v5718_v16 = vpop.f32.mrf.mxu0  ;;  %v9860_v49 = vld [vmem:[#allocation53_spill] sm:$0xff] }
 0x2f2   : > { %v3298_v3 = vpop.f32.mrf.mxu1  ;;  %v3116_v31 = vadd.f32 %v5718_v16, %v7977_v17  ;;  %v9861_v37 = vsel %vm9859_vm10, %v9860_v49, 0 }
 0x2f3   : > { %v8122_v35 = vadd.f32 %v3298_v3, %v3109_v26  ;;  %v3037_v58 = vpop.f32.mrf.mxu0  ;;  %v9865_v26 = vsel %vm9655_vm11, %v9864_v12, 0  ;;  %vm9870_vm11 = vmmov %vm9820_vm0 }
 0x2f4   : > { %v5748_v11 = vpop.f32.mrf.mxu1  ;;  %v3114_v50 = vadd.f32 %v3037_v58, %v7979_v57 }
 0x2f5   : > { %v8125_v38 = vadd.f32 %v5748_v11, %v3112_v33  ;;  %v5721_v23 = vpop.f32.mrf.mxu0  ;;  %5924 = vmatmul.mubr.msk.bf16.gmra.mxu0 %vm9862_vm13, %v9861_v37 }
 0x2f6   : > { %v3301_v60 = vpop.f32.mrf.mxu1  ;;  %v3119_v2 = vadd.f32 %v5721_v23, %v7993_v42  ;;  %5927 = vmatprep.mubr.msk.bf16.mxu0 %vm9866_vm7, %v9865_v26 }
 0x2f7   : > { %v8128_v34 = vadd.f32 %v3301_v60, %v3110_v24  ;;  %v3050_v36 = vpop.f32.mrf.mxu0 }
 0x2f8   : > { %v5751_v15 = vpop.f32.mrf.mxu1  ;;  %v3117_v10 = vadd.f32 %v3050_v36, %v7997_v43  ;;  %v9869_v43 = vsel %vm9657_vm12, %v9868_v56, 0  ;;  %vm4884_vm12 = vcmask 125952  }
 0x2f9   : > { %v8141_v57 = vadd.f32 %v5751_v15, %v3115_v18  ;;  %v5722_v14 = vpop.f32.mrf.mxu0 }
 0x2fa   : > { %v3314_v33 = vpop.f32.mrf.mxu1  ;;  %v3120_v24 = vadd.f32 %v5722_v14, %v7999_v7  ;;  %v9871_v7 = vld [vmem:[#allocation58_spill] sm:$0xff] }
 0x2fb   : > { %v8144_v41 = vadd.f32 %v3314_v33, %v3113_v19  ;;  %v3053_v30 = vpop.f32.mrf.mxu0  ;;  %vm9872_vm8 = vnez %v9871_v7 }
 0x2fc   : > { %v5752_v51 = vpop.f32.mrf.mxu1  ;;  %v3118_v9 = vadd.f32 %v3053_v30, %v8001_v48  ;;  %v9874_v19 = vsel %vm9872_vm8, %v9873_v27, 0 }
 0x2fd   : > { %v8147_v42 = vadd.f32 %v5752_v51, %v3116_v31  ;;  %v5725_v18 = vpop.f32.mrf.mxu0  ;;  %5928 = vmatmul.mubr.msk.bf16.gmra.mxu0 %vm9870_vm11, %v9869_v43 }
 0x2fe   : > { %v3317_v4 = vpop.f32.mrf.mxu1  ;;  %v3123_v52 = vadd.f32 %v5725_v18, %v8011_v62  ;;  %5931 = vmatprep.mubr.msk.bf16.mxu0 %vm9875_vm3, %v9874_v19 }
 0x2ff   : > { %v8150_v54 = vadd.f32 %v3317_v4, %v3114_v50  ;;  %v3066_v3 = vpop.f32.mrf.mxu0 }
 0x300   : > { %v5755_v59 = vpop.f32.mrf.mxu1  ;;  %v3121_v16 = vadd.f32 %v3066_v3, %v8015_v20 }
 0x301   : > { %v8163_v48 = vadd.f32 %v5755_v59, %v3119_v2  ;;  %v5726_v58 = vpop.f32.mrf.mxu0 }
 0x302   : > { %v3330_v31 = vpop.f32.mrf.mxu1  ;;  %v3124_v50 = vadd.f32 %v5726_v58, %v8017_v0 }
 0x303   : > { %v8166_v11 = vadd.f32 %v3330_v31, %v3117_v10  ;;  %v3069_v23 = vpop.f32.mrf.mxu0 }
 0x304   : > { %v5756_v60 = vpop.f32.mrf.mxu1  ;;  %v3122_v63 = vadd.f32 %v3069_v23, %v8019_v28 }
 0x305   : > { %v8169_v62 = vadd.f32 %v5756_v60, %v3120_v24  ;;  %v5729_v2 = vpop.f32.mrf.mxu0  ;;  %5932 = vmatmul.mubr.bf16.gmra.mxu0 %v9833_v55 }
 0x306   : > { %v3333_v49 = vpop.f32.mrf.mxu1  ;;  %v3127_v20 = vadd.f32 %v5729_v2, %v8032_v46 }
 0x307   : > { %v8172_v37 = vadd.f32 %v3333_v49, %v3118_v9  ;;  %v3082_v12 = vpop.f32.mrf.mxu0 }
 0x308   : > { %v5759_v15 = vpop.f32.mrf.mxu1  ;;  %v3125_v0 = vadd.f32 %v3082_v12, %v8035_v39 }
 0x309   : > { %v8176_v17 = vadd.f32 %v5759_v15, %v3123_v52  ;;  %v5730_v10 = vpop.f32.mrf.mxu0 }
 0x30a   : > { %v3346_v26 = vpop.f32.mrf.mxu1  ;;  %v3128_v28 = vadd.f32 %v5730_v10, %v8038_v8 }
 0x30b   : > { %v8179_v36 = vadd.f32 %v3346_v26, %v3121_v16  ;;  %v3085_v24 = vpop.f32.mrf.mxu0 }
 0x30c   : > { %v5760_v33 = vpop.f32.mrf.mxu1  ;;  %v3126_v55 = vadd.f32 %v3085_v24, %v8044_v61 }
 0x30d   : > { %v8182_v14 = vadd.f32 %v5760_v33, %v3124_v50  ;;  %v5769_v30 = vpop.f32.mrf.mxu0 }
 0x30e   : > { %v3349_v51 = vpop.f32.mrf.mxu1  ;;  %v8188_v4 = vadd.f32 %v5769_v30, %v8053_v45 }
 0x30f   : > { %v8185_v46 = vadd.f32 %v3349_v51, %v3122_v63  ;;  %v3454_v18 = vpop.f32.mrf.mxu0 }
 0x310   : > { %v5763_v9 = vpop.f32.mrf.mxu1  ;;  %v8193_v8 = vadd.f32 %v3454_v18, %v8056_v25 }
 0x311   : > { %v8190_v39 = vadd.f32 %v5763_v9, %v3127_v20  ;;  %v5770_v43 = vpop.f32.mrf.mxu0 }
 0x312   : > { %v3362_v44 = vpop.f32.mrf.mxu1  ;;  %v8198_v61 = vadd.f32 %v5770_v43, %v8059_v6 }
 0x313   : > { %v8195_v56 = vadd.f32 %v3362_v44, %v3125_v0  ;;  %v3457_v7 = vpop.f32.mrf.mxu0 }
 0x314   : > { %v5764_v52 = vpop.f32.mrf.mxu1  ;;  %v8203_v45 = vadd.f32 %v3457_v7, %v8062_v21 }
 0x315   : > { %v8200_v59 = vadd.f32 %v5764_v52, %v3128_v28  ;;  %v5773_v3 = vpop.f32.mrf.mxu0 }
 0x316   : > { %v3365_v27 = vpop.f32.mrf.mxu1  ;;  %v8208_v25 = vadd.f32 %v5773_v3, %v8075_v53 }
 0x317   : > { %v8205_v19 = vadd.f32 %v3365_v27, %v3126_v55  ;;  %v3470_v31 = vpop.f32.mrf.mxu0 }
 0x318   : > { %v8210_v16 = vpop.f32.mrf.mxu1  ;;  %v8213_v58 = vadd.f32 %v3470_v31, %v8078_v1 }
 0x319   : > { %v5774_v50 = vpop.f32.mrf.mxu0 }
 0x31a   : > { %v8215_v6 = vpop.f32.mrf.mxu1  ;;  %v8218_v60 = vadd.f32 %v5774_v50, %v8081_v47 }
 0x31b   : > { %v3473_v23 = vpop.f32.mrf.mxu0 }
 0x31c   : > { %v8220_v21 = vpop.f32.mrf.mxu1  ;;  %v8223_v63 = vadd.f32 %v3473_v23, %v8084_v13 }
 0x31d   : > { %v5777_v49 = vpop.f32.mrf.mxu0 }
 0x31e   : > { %v8225_v53 = vpop.f32.mrf.mxu1  ;;  %v8228_v2 = vadd.f32 %v5777_v49, %v8097_v5 }
 0x31f   : > { %v3486_v20 = vpop.f32.mrf.mxu0 }
 0x320   : > { %v8230_v1 = vpop.f32.mrf.mxu1  ;;  %v8233_v15 = vadd.f32 %v3486_v20, %v8100_v32 }
 0x321   : > { %v5778_v12 = vpop.f32.mrf.mxu0 }
 0x322   : > { %v8235_v47 = vpop.f32.mrf.mxu1  ;;  %v8238_v0 = vadd.f32 %v5778_v12, %v8103_v22 }
 0x323   : > { %v3489_v26 = vpop.f32.mrf.mxu0 }
 0x324   : > { %v8240_v13 = vpop.f32.mrf.mxu1  ;;  %v8243_v10 = vadd.f32 %v3489_v26, %v8106_v40 }
 0x325   : > { %v5781_v28 = vpop.f32.mrf.mxu0 }
 0x326   : > { %v8245_v5 = vpop.f32.mrf.mxu1  ;;  %v8248_v33 = vadd.f32 %v5781_v28, %v8119_v29 }
 0x327   : > { %v3502_v24 = vpop.f32.mrf.mxu0 }
 0x328   : > { %v8250_v32 = vpop.f32.mrf.mxu1  ;;  %v8253_v55 = vadd.f32 %v3502_v24, %v8122_v35 }
 0x329   : > { %v5782_v51 = vpop.f32.mrf.mxu0 }
 0x32a   : > { %v8255_v22 = vpop.f32.mrf.mxu1  ;;  %v8258_v30 = vadd.f32 %v5782_v51, %v8125_v38 }
 0x32b   : > { %v3505_v9 = vpop.f32.mrf.mxu0 }
 0x32c   : > { %v8260_v40 = vpop.f32.mrf.mxu1  ;;  %v8263_v18 = vadd.f32 %v3505_v9, %v8128_v34 }
 0x32d   : > { %v5785_v44 = vpop.f32.mrf.mxu0 }
 0x32e   : > { %v8265_v29 = vpop.f32.mrf.mxu1  ;;  %v8268_v43 = vadd.f32 %v5785_v44, %v8141_v57 }
 0x32f   : > { %v3518_v52 = vpop.f32.mrf.mxu0 }
 0x330   : > { %9876 = vst [vmem:[#allocation3_spill] sm:$0xff] %v8268_v43  ;;  %v8270_v35 = vpop.f32.mrf.mxu1  ;;  %v8273_v7 = vadd.f32 %v3518_v52, %v8144_v41 }
 0x331   : > { %v5786_v27 = vpop.f32.mrf.mxu0 }
 0x332   : > { %9877 = vst [vmem:[#allocation15_spill] sm:$0xff] %v8273_v7  ;;  %v8275_v38 = vpop.f32.mrf.mxu1  ;;  %v8278_v3 = vadd.f32 %v5786_v27, %v8147_v42  ;;  %v3852_v7 = vadd.f32 %v8210_v16, %v8188_v4  ;;  %v3857_v4 = vadd.f32 %v8240_v13, %v8218_v60  ;;  %v8679_v60 = vadd.f32 %v8270_v35, %v8248_v33 }
 0x333   : > { %v3521_v31 = vpop.f32.mrf.mxu0 }
 0x334   : > { %9878 = vst [vmem:[#allocation12_spill] sm:$0xff] %v8278_v3  ;;  %v8280_v34 = vpop.f32.mrf.mxu1  ;;  %v8283_v50 = vadd.f32 %v3521_v31, %v8150_v54 }
 0x335   : > { %v5789_v23 = vpop.f32.mrf.mxu0 }
 0x336   : > { %9879 = vst [vmem:[#allocation2_spill] sm:$0xff] %v8283_v50  ;;  %v8285_v57 = vpop.f32.mrf.mxu1  ;;  %v8288_v49 = vadd.f32 %v5789_v23, %v8163_v48 }
 0x337   : > { %v3534_v20 = vpop.f32.mrf.mxu0 }
 0x338   : > { %9880 = vst [vmem:[#allocation22_spill] sm:$0xff] %v8288_v49  ;;  %v8290_v41 = vpop.f32.mrf.mxu1  ;;  %v8293_v12 = vadd.f32 %v3534_v20, %v8166_v11 }
 0x339   : > { %9881 = vst [vmem:[#allocation9_spill] sm:$0xff] %v8290_v41  ;;  %v5790_v26 = vpop.f32.mrf.mxu0 }
 0x33a   : > { %9882 = vst [vmem:[#allocation6_spill] sm:$0xff] %v8293_v12  ;;  %v8295_v42 = vpop.f32.mrf.mxu1  ;;  %v8298_v28 = vadd.f32 %v5790_v26, %v8169_v62  ;;  %v9943_v12 = vld [vmem:[#allocation32_spill] sm:$0xff] }
 0x33b   : > { %9883 = vst [vmem:[#allocation16_spill] sm:$0xff] %v8295_v42  ;;  %v3537_v24 = vpop.f32.mrf.mxu0 }
 0x33c   : > { %9884 = vst [vmem:[#allocation13_spill] sm:$0xff] %v8298_v28  ;;  %v8300_v54 = vpop.f32.mrf.mxu1  ;;  %v8303_v51 = vadd.f32 %v3537_v24, %v8172_v37  ;;  %v9942_v28 = vld [vmem:[#allocation23_spill] sm:$0xff] }
 0x33d   : > { %9885 = vst [vmem:[#allocation46_spill] sm:$0xff] %v8300_v54  ;;  %v5793_v9 = vpop.f32.mrf.mxu0 }
 0x33e   : > { %9886 = vst [vmem:[#allocation37_spill] sm:$0xff] %v8303_v51  ;;  %v8305_v48 = vpop.f32.mrf.mxu1  ;;  %v8308_v44 = vadd.f32 %v5793_v9, %v8176_v17 }
 0x33f   : > { %9887 = vst [vmem:[#allocation17_spill] sm:$0xff] %v8305_v48  ;;  %v3550_v52 = vpop.f32.mrf.mxu0 }
 0x340   : > { %9888 = vst [vmem:[#allocation44_spill] sm:$0xff] %v8308_v44  ;;  %v8310_v11 = vpop.f32.mrf.mxu1  ;;  %v8313_v27 = vadd.f32 %v3550_v52, %v8179_v36 }
 0x341   : > { %9889 = vst [vmem:[#allocation45_spill] sm:$0xff] %v8310_v11  ;;  %v5794_v31 = vpop.f32.mrf.mxu0  ;;  %v9944_v11 = vld [vmem:[#allocation21_spill] sm:$0xff] }
 0x342   : > { %9890 = vst [vmem:[#allocation25_spill] sm:$0xff] %v8313_v27  ;;  %v8315_v62 = vpop.f32.mrf.mxu1  ;;  %v8318_v23 = vadd.f32 %v5794_v31, %v8182_v14 }
 0x343   : > { %9891 = vst [vmem:[#allocation10_spill] sm:$0xff] %v8315_v62  ;;  %v3553_v20 = vpop.f32.mrf.mxu0 }
 0x344   : > { %9892 = vst [vmem:[#allocation48_spill] sm:$0xff] %v8318_v23  ;;  %v8320_v37 = vpop.f32.mrf.mxu1  ;;  %v8323_v26 = vadd.f32 %v3553_v20, %v8185_v46 }
 0x345   : > { %9893 = vst [vmem:[#allocation52_spill] sm:$0xff] %v8320_v37  ;;  %v5797_v24 = vpop.f32.mrf.mxu0 }
 0x346   : > { %9894 = vst [vmem:[#allocation49_spill] sm:$0xff] %v8323_v26  ;;  %v8325_v17 = vpop.f32.mrf.mxu1  ;;  %v8328_v9 = vadd.f32 %v5797_v24, %v8190_v39 }
 0x347   : > { %9895 = vst [vmem:[#allocation53_spill] sm:$0xff] %v8325_v17  ;;  %v3566_v52 = vpop.f32.mrf.mxu0  ;;  %v9938_v17 = vld [vmem:[#allocation29_spill] sm:$0xff] }
 0x348   : > { %9896 = vst [vmem:[#allocation50_spill] sm:$0xff] %v8328_v9  ;;  %v8330_v36 = vpop.f32.mrf.mxu1  ;;  %v8333_v27 = vadd.f32 %v3566_v52, %v8195_v56 }
 0x349   : > { %9897 = vst [vmem:[#allocation55_spill] sm:$0xff] %v8330_v36  ;;  %v5798_v31 = vpop.f32.mrf.mxu0 }
 0x34a   : > { %9898 = vst [vmem:[#allocation57_spill] sm:$0xff] %v8333_v27  ;;  %v8335_v14 = vpop.f32.mrf.mxu1  ;;  %v8338_v23 = vadd.f32 %v5798_v31, %v8200_v59 }
 0x34b   : > { %9899 = vst [vmem:[#allocation56_spill] sm:$0xff] %v8335_v14  ;;  %v3569_v20 = vpop.f32.mrf.mxu0 }
 0x34c   : > { %9900 = vst [vmem:[#allocation58_spill] sm:$0xff] %v8338_v23  ;;  %v8340_v46 = vpop.f32.mrf.mxu1  ;;  %v8343_v26 = vadd.f32 %v3569_v20, %v8205_v19 }
 0x34d   : > { %9901 = vst [vmem:[#allocation51_spill] sm:$0xff] %v8340_v46  ;;  %v8347_v24 = vpop.f32.mrf.mxu0 }
 0x34e   : > { %9902 = vst [vmem:[#allocation60_spill] sm:$0xff] %v8343_v26  ;;  %v8345_v39 = vpop.f32.mrf.mxu1 }
 0x34f   : > { %9903 = vst [vmem:[#allocation61_spill] sm:$0xff] %v8345_v39  ;;  %v8351_v56 = vpop.f32.mrf.mxu0 }
 0x350   : > { %v8349_v9 = vpop.f32.mrf.mxu1 }
 0x351   : > { %9904 = vst [vmem:[#allocation62_spill] sm:$0xff] %v8349_v9  ;;  %v8355_v27 = vpop.f32.mrf.mxu0 }
 0x352   : > { %v8353_v52 = vpop.f32.mrf.mxu1  ;;  %9906 = vst [vmem:[#allocation64_spill] sm:$0xff] %v8355_v27  ;;  %v9948_v27 = vld [vmem:[#allocation38_spill] sm:$0xff] }
 0x353   : > { %9905 = vst [vmem:[#allocation63_spill] sm:$0xff] %v8353_v52  ;;  %v8359_v31 = vpop.f32.mrf.mxu0 }
 0x354   : > { %v8357_v59 = vpop.f32.mrf.mxu1  ;;  %9908 = vst [vmem:[#allocation66_spill] sm:$0xff] %v8359_v31 }
 0x355   : > { %9907 = vst [vmem:[#allocation65_spill] sm:$0xff] %v8357_v59  ;;  %v8363_v19 = vpop.f32.mrf.mxu0 }
 0x356   : > { %v8361_v23 = vpop.f32.mrf.mxu1  ;;  %9910 = vst [vmem:[#allocation68_spill] sm:$0xff] %v8363_v19 }
 0x357   : > { %9909 = vst [vmem:[#allocation67_spill] sm:$0xff] %v8361_v23  ;;  %v8367_v26 = vpop.f32.mrf.mxu0 }
 0x358   : > { %v8365_v20 = vpop.f32.mrf.mxu1  ;;  %9911 = vst [vmem:[#allocation69_spill] sm:$0xff] %v8367_v26 }
 0x359   : > { %v8371_v9 = vpop.f32.mrf.mxu0 }
 0x35a   : > { %v8369_v39 = vpop.f32.mrf.mxu1  ;;  %9913 = vst [vmem:[#allocation71_spill] sm:$0xff] %v8371_v9 }
 0x35b   : > { %9912 = vst [vmem:[#allocation70_spill] sm:$0xff] %v8369_v39  ;;  %v8375_v52 = vpop.f32.mrf.mxu0 }
 0x35c   : > { %v8373_v46 = vpop.f32.mrf.mxu1  ;;  %9915 = vst [vmem:[#allocation73_spill] sm:$0xff] %v8375_v52 }
 0x35d   : > { %9914 = vst [vmem:[#allocation72_spill] sm:$0xff] %v8373_v46  ;;  %v8379_v59 = vpop.f32.mrf.mxu0 }
 0x35e   : > { %v8377_v14 = vpop.f32.mrf.mxu1  ;;  %9917 = vst [vmem:[#allocation75_spill] sm:$0xff] %v8379_v59 }
 0x35f   : > { %9916 = vst [vmem:[#allocation74_spill] sm:$0xff] %v8377_v14  ;;  %v8383_v23 = vpop.f32.mrf.mxu0 }
 0x360   : > { %v8381_v36 = vpop.f32.mrf.mxu1  ;;  %9919 = vst [vmem:[#allocation77_spill] sm:$0xff] %v8383_v23 }
 0x361   : > { %9918 = vst [vmem:[#allocation76_spill] sm:$0xff] %v8381_v36  ;;  %v8387_v44 = vpop.f32.mrf.mxu0 }
 0x362   : > { %v8385_v19 = vpop.f32.mrf.mxu1  ;;  %9921 = vst [vmem:[#allocation79_spill] sm:$0xff] %v8387_v44  ;;  %v8408_v44 = vld [vmem:[%s9080_s6] ss:$0 sm:$0xff] }
 0x363   : > { %9920 = vst [vmem:[#allocation78_spill] sm:$0xff] %v8385_v19  ;;  %v8391_v31 = vpop.f32.mrf.mxu0  ;;  %9930 = vst [vmem:[#allocation88_spill] sm:$0xff] %v8408_v44  ;;  %v1255_v62 = vmul.f32 %v9942_v28, %v8408_v44 }
 0x364   : > { %v8389_v26 = vpop.f32.mrf.mxu1  ;;  %9923 = vst [vmem:[#allocation81_spill] sm:$0xff] %v8391_v31 }
 0x365   : > { %9922 = vst [vmem:[#allocation80_spill] sm:$0xff] %v8389_v26  ;;  %v8393_v9 = vpop.f32.mrf.mxu0  ;;  %v9937_v26 = vld [vmem:[#allocation59_spill] sm:$0xff] }
 0x366   : > { %9924 = vst [vmem:[#allocation82_spill] sm:$0xff] %v8393_v9  ;;  %v8395_v46 = vpop.f32.mrf.mxu1  ;;  %v1251_v19 = vmul.f32 %v9937_v26, %v8408_v44  ;;  %v1258_v26 = vmul.f32 %v9944_v11, %v8408_v44 }
 0x367   : > { %9925 = vst [vmem:[#allocation83_spill] sm:$0xff] %v8395_v46  ;;  %v8397_v52 = vpop.f32.mrf.mxu0  ;;  %v9934_v46 = vld [vmem:[#allocation36_spill] sm:$0xff] }
 0x368   : > { %9926 = vst [vmem:[#allocation84_spill] sm:$0xff] %v8397_v52  ;;  %v8401_v59 = vpop.f32.mrf.mxu1  ;;  %v1250_v52 = vmul.f32 %v9934_v46, %v8408_v44  ;;  %v9941_v46 = vld [vmem:[#allocation34_spill] sm:$0xff] }
 0x369   : > { %v8399_v14 = vpop.f32.mrf.mxu0  ;;  %9928 = vst [vmem:[#allocation86_spill] sm:$0xff] %v8401_v59  ;;  %v1252_v37 = vmul.f32 %v8408_v44, %v9941_v46  ;;  %v1257_v46 = vmul.f32 %v8408_v44, %v9948_v27 }
 0x36a   : > { %9927 = vst [vmem:[#allocation85_spill] sm:$0xff] %v8399_v14  ;;  %v8412_v31 = vpop.f32.mrf.mxu1  ;;  %v8421_v14 = vld [vmem:[%s9081_s7] ss:$0 sm:$0xff] }
 0x36b   : > { %v8403_v36 = vpop.f32.mrf.mxu0  ;;  %9932 = vst [vmem:[#allocation90_spill] sm:$0xff] %v8412_v31  ;;  %9935 = vst [vmem:[#allocation36_spill] sm:$0xff] %v8421_v14  ;;  %v9939_v31 = vld [vmem:[#allocation27_spill] sm:$0xff]  ;;  %v8452_v28 = vadd.f32 %v8421_v14, %v1250_v52  ;;  %v8458_v11 = vadd.f32 %v8421_v14, %v1251_v19  ;;  %v8469_v27 = vadd.f32 %v8421_v14, %v1252_v37 }
 0x36c   : > { %9929 = vst [vmem:[#allocation87_spill] sm:$0xff] %v8403_v36  ;;  %v9936_v36 = vld [vmem:[#allocation54_spill] sm:$0xff]  ;;  %v8441_v49 = vpop.f32.mrf.mxu1  ;;  %v8472_v52 = vadd.f32 %v8421_v14, %v1255_v62  ;;  %v8478_v19 = vadd.f32 %v8421_v14, %v1258_v26  ;;  %v8489_v37 = vadd.f32 %v8421_v14, %v1257_v46  ;;  %v9964_v62 = vld [vmem:[#allocation28_spill] sm:$0xff]  ;;  %v9970_v46 = vld [vmem:[#allocation35_spill] sm:$0xff] }
 0x36d   : > { %v8410_v23 = vpop.f32.mrf.mxu0  ;;  %v1248_v59 = vmul.f32 %v8408_v44, %v9936_v36  ;;  %v1253_v36 = vmul.f32 %v8408_v44, %v9943_v12  ;;  %9945 = vst [vmem:[#allocation59_spill] sm:$0xff] %v8441_v49  ;;  %9950 = vst [vmem:[#allocation27_spill] sm:$0xff] %v8452_v28  ;;  %v1260_v3 = vmul.f32 %v8408_v44, %v9970_v46  ;;  %v9973_v26 = vld [vmem:[#allocation5_spill] sm:$0xff]  ;;  %v9977_v46 = vld [vmem:[#allocation24_spill] sm:$0xff] }
 0x36e   : > { %9931 = vst [vmem:[#allocation89_spill] sm:$0xff] %v8410_v23  ;;  %v1249_v23 = vmul.f32 %v8408_v44, %v9938_v17  ;;  %v9946_v17 = vld [vmem:[#allocation39_spill] sm:$0xff]  ;;  %9952 = vst [vmem:[#allocation23_spill] sm:$0xff] %v8458_v11  ;;  %v9984_v11 = vld [vmem:[#allocation18_spill] sm:$0xff] }
 0x36f   : > { %v8414_v9 = vpop.f32.mrf.mxu0  ;;  %v1256_v39 = vmul.f32 %v8408_v44, %v9946_v17  ;;  %v8455_v12 = vadd.f32 %v8421_v14, %v1248_v59  ;;  %9957 = vst [vmem:[#allocation38_spill] sm:$0xff] %v8472_v52  ;;  %v8475_v59 = vadd.f32 %v8421_v14, %v1253_v36  ;;  %9959 = vst [vmem:[#allocation93_spill] sm:$0xff] %v8478_v19  ;;  %v9980_v52 = vld [vmem:[#allocation11_spill] sm:$0xff] }
 0x370   : > { %9933 = vst [vmem:[#allocation91_spill] sm:$0xff] %v8414_v9  ;;  %v1254_v9 = vmul.f32 %v9939_v31, %v8408_v44  ;;  %v9947_v31 = vld [vmem:[#allocation30_spill] sm:$0xff]  ;;  %v8461_v49 = vadd.f32 %v8421_v14, %v1249_v23  ;;  %9963 = vst [vmem:[#allocation97_spill] sm:$0xff] %v8489_v37 }
 0x371   : > { %v8431_v51 = vpop.f32.mrf.mxu0  ;;  %9951 = vst [vmem:[#allocation34_spill] sm:$0xff] %v8455_v12  ;;  %9956 = vst [vmem:[#allocation30_spill] sm:$0xff] %v8469_v27  ;;  %v8483_v23 = vadd.f32 %v8421_v14, %v1256_v39  ;;  %v9981_v27 = vld [vmem:[#allocation47_spill] sm:$0xff] }
 0x372   : > { %9940 = vst [vmem:[#allocation54_spill] sm:$0xff] %v8431_v51  ;;  %v1259_v51 = vmul.f32 %v9947_v31, %v8408_v44  ;;  %9953 = vst [vmem:[#allocation32_spill] sm:$0xff] %v8461_v49  ;;  %v8464_v17 = vadd.f32 %v8421_v14, %v1254_v9 }
 0x373   : > { %v8449_v48 = vpop.f32.mrf.mxu0  ;;  %9958 = vst [vmem:[#allocation92_spill] sm:$0xff] %v8475_v59  ;;  %9961 = vst [vmem:[#allocation95_spill] sm:$0xff] %v8483_v23  ;;  %v1266_v23 = vmul.f32 %v9973_v26, %v8408_v44  ;;  %v1270_v59 = vmul.f32 %v9977_v46, %v8408_v44  ;;  %v1271_v26 = vmul.f32 %v9980_v52, %v8408_v44 }
 0x374   : > { %9949 = vst [vmem:[#allocation29_spill] sm:$0xff] %v8449_v48  ;;  %9954 = vst [vmem:[#allocation21_spill] sm:$0xff] %v8464_v17  ;;  %v8480_v48 = vpop.f32.mrf.mxu1  ;;  %v8486_v9 = vadd.f32 %v8421_v14, %v1259_v51  ;;  %v9982_v17 = vld [vmem:[#allocation20_spill] sm:$0xff]  ;;  %v1272_v46 = vmul.f32 %v8408_v44, %v9984_v11 }
 0x375   : > { %v8466_v31 = vpop.f32.mrf.mxu0  ;;  %9960 = vst [vmem:[#allocation94_spill] sm:$0xff] %v8480_v48  ;;  %v9974_v48 = vld [vmem:[#allocation7_spill] sm:$0xff] }
 0x376   : > { %9955 = vst [vmem:[#allocation39_spill] sm:$0xff] %v8466_v31  ;;  %9962 = vst [vmem:[#allocation96_spill] sm:$0xff] %v8486_v9  ;;  %v1262_v31 = vmul.f32 %v9964_v62, %v8408_v44  ;;  %v8506_v42 = vpop.f32.mrf.mxu1  ;;  %v9971_v62 = vld [vmem:[#allocation33_spill] sm:$0xff]  ;;  %v1264_v39 = vmul.f32 %v8408_v44, %v9974_v48  ;;  %v9976_v9 = vld [vmem:[#allocation14_spill] sm:$0xff]  ;;  %v1269_v48 = vmul.f32 %v8408_v44, %v9981_v27 }
 0x377   : > { %v8493_v50 = vpop.f32.mrf.mxu0  ;;  %9967 = vst [vmem:[#allocation99_spill] sm:$0xff] %v8506_v42  ;;  %v8554_v27 = vadd.f32 %v8421_v14, %v1260_v3  ;;  %v8575_v3 = vadd.f32 %v8421_v14, %v1270_v59 }
 0x378   : > { %9965 = vst [vmem:[#allocation28_spill] sm:$0xff] %v8493_v50  ;;  %v8512_v54 = vadd.f32 %v8421_v14, %v1262_v31  ;;  %v9972_v50 = vld [vmem:[#allocation19_spill] sm:$0xff]  ;;  %v9975_v31 = vld [vmem:[#allocation4_spill] sm:$0xff]  ;;  %v8542_v49 = vpop.f32.mrf.mxu1  ;;  %v8566_v11 = vadd.f32 %v8421_v14, %v1264_v39  ;;  %v8586_v39 = vadd.f32 %v8421_v14, %v1269_v48 }
 0x379   : > { %v8500_v51 = vpop.f32.mrf.mxu0  ;;  %v1261_v19 = vmul.f32 %v8408_v44, %v9972_v50  ;;  %v1267_v37 = vmul.f32 %v9975_v31, %v8408_v44  ;;  %v1274_v31 = vmul.f32 %v9982_v17, %v8408_v44  ;;  %9983 = vst [vmem:[#allocation33_spill] sm:$0xff] %v8542_v49 }
 0x37a   : > { %9966 = vst [vmem:[#allocation98_spill] sm:$0xff] %v8500_v51  ;;  %9968 = vst [vmem:[#allocation100_spill] sm:$0xff] %v8512_v54  ;;  %v1263_v51 = vmul.f32 %v9971_v62, %v8408_v44  ;;  %v9979_v62 = vld [vmem:[#allocation43_spill] sm:$0xff] }
 0x37b   : > { %v8514_v36 = vpop.f32.mrf.mxu0  ;;  %v1268_v50 = vmul.f32 %v8408_v44, %v9979_v62  ;;  %v9986_v62 = vld [vmem:[#allocation31_spill] sm:$0xff]  ;;  %v8560_v49 = vadd.f32 %v8421_v14, %v1261_v19  ;;  %9990 = vst [vmem:[#allocation4_spill] sm:$0xff] %v8586_v39 }
 0x37c   : > { %9969 = vst [vmem:[#allocation101_spill] sm:$0xff] %v8514_v36  ;;  %v1265_v36 = vmul.f32 %v8408_v44, %v9976_v9  ;;  %v1273_v28 = vmul.f32 %v8408_v44, %v9986_v62  ;;  %v8557_v17 = vadd.f32 %v8421_v14, %v1263_v51  ;;  %v8563_v9 = vadd.f32 %v8421_v14, %v1266_v23 }
 0x37d   : > { %v8532_v42 = vpop.f32.mrf.mxu0  ;;  %v8580_v19 = vadd.f32 %v8421_v14, %v1268_v50  ;;  %v8583_v23 = vadd.f32 %v8421_v14, %v1271_v26  ;;  %v9996_v26 = vld [vmem:[#allocation41_spill] sm:$0xff] }
 0x37e   : > { %9978 = vst [vmem:[#allocation35_spill] sm:$0xff] %v8532_v42  ;;  %v9985_v42 = vld [vmem:[#allocation26_spill] sm:$0xff]  ;;  %v8572_v62 = vadd.f32 %v8421_v14, %v1265_v36  ;;  %v8594_v36 = vadd.f32 %v8421_v14, %v1272_v46  ;;  %v8600_v50 = vadd.f32 %v8421_v14, %v1273_v28  ;;  %v3851_v28 = vadd.f32 %v8225_v53, %v8203_v45 }
 0x37f   : > { %v1275_v12 = vmul.f32 %v9985_v42, %v8408_v44  ;;  %v8551_v52 = vpop.f32.mrf.mxu0  ;;  %v8569_v42 = vadd.f32 %v8421_v14, %v1267_v37  ;;  %9989 = vst [vmem:[#allocation7_spill] sm:$0xff] %v8583_v23  ;;  %v8589_v37 = vadd.f32 %v8421_v14, %v1274_v31  ;;  %v10003_v31 = vld [vmem:[#allocation8_spill] sm:$0xff]  ;;  %v4120_v45 = vadd.f32 %v8347_v24, %v3852_v7  ;;  %v10049_v23 = vld [vmem:[#allocation71_spill] sm:$0xff] }
 0x380   : > { %9987 = vst [vmem:[#allocation19_spill] sm:$0xff] %v8551_v52  ;;  %v8591_v52 = vpop.f32.mrf.mxu1  ;;  %9993 = vst [vmem:[#allocation43_spill] sm:$0xff] %v8594_v36  ;;  %v8689_v53 = vadd.f32 %v8280_v34, %v8258_v30  ;;  %v10015_v7 = vld [vmem:[#allocation64_spill] sm:$0xff]  ;;  %v10016_v34 = vld [vmem:[#allocation70_spill] sm:$0xff] }
 0x381   : > { %v8577_v51 = vpop.f32.mrf.mxu0  ;;  %9991 = vst [vmem:[#allocation14_spill] sm:$0xff] %v8589_v37  ;;  %9992 = vst [vmem:[#allocation24_spill] sm:$0xff] %v8591_v52  ;;  %v8597_v59 = vadd.f32 %v8421_v14, %v1275_v12  ;;  %v8636_v52 = vmul.f32 %v10003_v31, %v8408_v44  ;;  %v3850_v12 = vadd.f32 %v8215_v6, %v8193_v8 }
 0x382   : > { %9988 = vst [vmem:[#allocation5_spill] sm:$0xff] %v8577_v51  ;;  %9995 = vst [vmem:[#allocation47_spill] sm:$0xff] %v8600_v50  ;;  %v1278_v51 = vmul.f32 %v9996_v26, %v8408_v44  ;;  %v10001_v26 = vld [vmem:[#allocation40_spill] sm:$0xff]  ;;  %v8656_v8 = vadd.f32 %v8245_v5, %v8223_v63  ;;  %v8675_v6 = vadd.f32 %v8265_v29, %v8243_v10  ;;  %v10009_v10 = vld [vmem:[#allocation15_spill] sm:$0xff] }
 0x383   : > { %9994 = vst [vmem:[#allocation11_spill] sm:$0xff] %v8597_v59  ;;  %v8604_v54 = vpop.f32.mrf.mxu0  ;;  %v8632_v48 = vmul.f32 %v8408_v44, %v10001_v26  ;;  %10004 = vst [vmem:[#allocation40_spill] sm:$0xff] %v8636_v52  ;;  %v3856_v26 = vadd.f32 %v8230_v1, %v8208_v25  ;;  %v8667_v25 = vadd.f32 %v8255_v22, %v8233_v15  ;;  %v10010_v5 = vld [vmem:[#allocation16_spill] sm:$0xff]  ;;  %v10014_v29 = vld [vmem:[#allocation17_spill] sm:$0xff] }
 0x384   : > { %9997 = vst [vmem:[#allocation20_spill] sm:$0xff] %v8604_v54  ;;  %v8620_v54 = vpop.f32.mrf.mxu1  ;;  %v8626_v41 = vadd.f32 %v8421_v14, %v1278_v51  ;;  %v3853_v51 = vadd.f32 %v8220_v21, %v8198_v61  ;;  %v8660_v61 = vadd.f32 %v8250_v32, %v8228_v2  ;;  %v8685_v63 = vadd.f32 %v8275_v38, %v8253_v55  ;;  %v10011_v32 = vld [vmem:[#allocation12_spill] sm:$0xff]  ;;  %v10012_v55 = vld [vmem:[#allocation46_spill] sm:$0xff]  ;;  %v10032_v14 = vld [vmem:[#allocation51_spill] sm:$0xff] }
 0x385   : > { %v8614_v43 = vpop.f32.mrf.mxu0  ;;  %10002 = vst [vmem:[#allocation41_spill] sm:$0xff] %v8632_v48  ;;  %v4118_v2 = vadd.f32 %v8351_v56, %v3850_v12  ;;  %v4322_v1 = vadd.f32 %v8365_v20, %v4120_v45  ;;  %v8695_v15 = vadd.f32 %v8285_v57, %v8263_v18  ;;  %v8703_v33 = vadd.f32 %v10010_v5, %v10009_v10  ;;  %v10013_v18 = vld [vmem:[#allocation2_spill] sm:$0xff]  ;;  %v10018_v12 = vld [vmem:[#allocation45_spill] sm:$0xff]  ;;  %v10031_v52 = vld [vmem:[#allocation48_spill] sm:$0xff] }
 0x386   : > { %9998 = vst [vmem:[#allocation18_spill] sm:$0xff] %v8614_v43  ;;  %9999 = vst [vmem:[#allocation26_spill] sm:$0xff] %v8626_v41  ;;  %v3854_v41 = vadd.f32 %v8235_v47, %v8213_v58  ;;  %v8663_v16 = vpop.f32.mrf.mxu1  ;;  %v8671_v58 = vadd.f32 %v8260_v40, %v8238_v0  ;;  %v10007_v47 = vld [vmem:[#allocation3_spill] sm:$0xff]  ;;  %v10008_v0 = vld [vmem:[#allocation9_spill] sm:$0xff]  ;;  %v8707_v22 = vadd.f32 %v10012_v55, %v10011_v32 }
 0x387   : > { %v8628_v46 = vpop.f32.mrf.mxu0  ;;  %v8699_v13 = vadd.f32 %v10008_v0, %v10007_v47  ;;  %v8712_v40 = vld [vmem:[%s9083_s9] ss:$0 sm:$0xff]  ;;  %v8716_v35 = vadd.f32 %v10014_v29, %v10013_v18  ;;  %v4121_v38 = vadd.f32 %v10015_v7, %v3853_v51  ;;  %v4320_v57 = vadd.f32 %v10016_v34, %v4118_v2  ;;  %v10021_v5 = vld [vmem:[#allocation13_spill] sm:$0xff]  ;;  %v10022_v32 = vld [vmem:[#allocation52_spill] sm:$0xff] }
 0x388   : > { %10000 = vst [vmem:[#allocation31_spill] sm:$0xff] %v8628_v46  ;;  %v8720_v24 = vpop.f32.mrf.mxu1  ;;  %v10017_v20 = vld [vmem:[#allocation22_spill] sm:$0xff]  ;;  %v8732_v55 = vadd.f32 %v10022_v32, %v10021_v5  ;;  %v10023_v18 = vld [vmem:[#allocation37_spill] sm:$0xff]  ;;  %v10026_v34 = vld [vmem:[#allocation72_spill] sm:$0xff]  ;;  %v8756_v48 = vadd.f32 %v10032_v14, %v10031_v52 }
 0x389   : > { %v8650_v31 = vpop.f32.mrf.mxu0  ;;  %v8724_v45 = vadd.f32 %v10018_v12, %v10017_v20  ;;  %v10019_v47 = vld [vmem:[#allocation6_spill] sm:$0xff]  ;;  %v10024_v29 = vld [vmem:[#allocation53_spill] sm:$0xff]  ;;  %v4323_v20 = vadd.f32 %v10026_v34, %v4121_v38  ;;  %v10028_v5 = vld [vmem:[#allocation55_spill] sm:$0xff] }
 0x38a   : > { %10005 = vst [vmem:[#allocation8_spill] sm:$0xff] %v8650_v31  ;;  %v10020_v0 = vld [vmem:[#allocation10_spill] sm:$0xff]  ;;  %v8736_v51 = vadd.f32 %v10024_v29, %v10023_v18  ;;  %v10029_v18 = vld [vmem:[#allocation25_spill] sm:$0xff]  ;;  %v10030_v29 = vld [vmem:[#allocation56_spill] sm:$0xff]  ;;  %v4125_v31 = vadd.f32 %v10049_v23, %v3857_v4 }
 0x38b   : > { %v8681_v21 = vpop.f32.mrf.mxu0  ;;  %v8728_v10 = vadd.f32 %v10020_v0, %v10019_v47  ;;  %v8741_v2 = vld [vmem:[%s9084_s10] ss:$0 sm:$0xff]  ;;  %v10027_v0 = vld [vmem:[#allocation44_spill] sm:$0xff]  ;;  %v8752_v50 = vadd.f32 %v10030_v29, %v10029_v18  ;;  %v10033_v59 = vld [vmem:[#allocation49_spill] sm:$0xff] }
 0x38c   : > { %10006 = vst [vmem:[#allocation102_spill] sm:$0xff] %v8681_v21  ;;  %v8748_v32 = vadd.f32 %v10028_v5, %v10027_v0  ;;  %v10034_v44 = vld [vmem:[#allocation61_spill] sm:$0xff]  ;;  %v10036_v5 = vld [vmem:[#allocation50_spill] sm:$0xff]  ;;  %v10039_v52 = vld [vmem:[#allocation63_spill] sm:$0xff] }
 0x38d   : > { %v5905_v30 = vpop.f32.mrf.mxu0  ;;  %v10037_v18 = vld [vmem:[#allocation62_spill] sm:$0xff]  ;;  %v10038_v14 = vld [vmem:[#allocation57_spill] sm:$0xff] }
 0x38e   : > { %v4584_v56 = vadd.f32 %v5905_v30, %v4322_v1  ;;  %v10025_v30 = vld [vmem:[#allocation66_spill] sm:$0xff]  ;;  %v8769_v29 = vadd.f32 %v10037_v18, %v10036_v5  ;;  %v8773_v36 = vadd.f32 %v10039_v52, %v10038_v14  ;;  %v10045_v5 = vld [vmem:[#allocation60_spill] sm:$0xff]  ;;  %v10046_v18 = vld [vmem:[#allocation67_spill] sm:$0xff] }
 0x38f   : > { %v4455_v1 = vpop.f32.mrf.mxu0  ;;  %v4119_v7 = vadd.f32 %v10025_v30, %v3851_v28  ;;  %v8760_v28 = vadd.f32 %v10034_v44, %v10033_v59  ;;  %v10035_v30 = vld [vmem:[#allocation74_spill] sm:$0xff]  ;;  %v10042_v59 = vld [vmem:[#allocation65_spill] sm:$0xff]  ;;  %v8784_v21 = vadd.f32 %v10046_v18, %v10045_v5 }
 0x390   : > { %v4623_v12 = vmul.f32 %v8712_v40, %v4584_v56  ;;  %v4582_v47 = vadd.f32 %v4455_v1, %v4320_v57  ;;  %v8763_v57 = vpop.f32.mrf.mxu1  ;;  %10040 = vst [vmem:[#allocation3_spill] sm:$0xff] %v8773_v36  ;;  %v10041_v44 = vld [vmem:[#allocation58_spill] sm:$0xff]  ;;  %v10048_v14 = vld [vmem:[#allocation69_spill] sm:$0xff]  ;;  %v10059_v36 = vld [vmem:[#allocation83_spill] sm:$0xff] }
 0x391   : > { %v5906_v38 = vpop.f32.mrf.mxu0  ;;  %v4321_v56 = vadd.f32 %v10035_v30, %v4119_v7  ;;  %v8777_v37 = vadd.f32 %v10042_v59, %v10041_v44  ;;  %v10044_v7 = vld [vmem:[#allocation68_spill] sm:$0xff]  ;;  %10047 = vst [vmem:[#allocation15_spill] sm:$0xff] %v8784_v21  ;;  %v4122_v52 = vadd.f32 %v10048_v14, %v3854_v41  ;;  %v10053_v41 = vld [vmem:[#allocation73_spill] sm:$0xff]  ;;  %v10054_v4 = vld [vmem:[#allocation78_spill] sm:$0xff] }
 0x392   : > { %v4662_v1 = vadd.f32 %v8741_v2, %v4623_v12  ;;  %v4621_v34 = vmul.f32 %v8712_v40, %v4582_v47  ;;  %v4585_v0 = vadd.f32 %v5906_v38, %v4323_v20  ;;  %v4124_v30 = vadd.f32 %v10044_v7, %v3856_v26  ;;  %v10050_v44 = vld [vmem:[#allocation76_spill] sm:$0xff]  ;;  %v8789_v26 = vpop.f32.mrf.mxu1  ;;  %v10051_v7 = vld [vmem:[#allocation27_spill] sm:$0xff] }
 0x393   : > { %10043 = vst [vmem:[#allocation9_spill] sm:$0xff] %v8777_v37  ;;  %v4458_v39 = vpop.f32.mrf.mxu0  ;;  %v4123_v23 = vadd.f32 %v10053_v41, %v8656_v8 }
 0x394   : > { %v4694_v12 = vmax.f32 %v4662_v1, 0.0  ;;  %v4660_v47 = vadd.f32 %v8741_v2, %v4621_v34  ;;  %v4624_v20 = vmul.f32 %v8712_v40, %v4585_v0  ;;  %v4583_v38 = vadd.f32 %v4458_v39, %v4321_v56 }
 0x395   : > { %v4326_v59 = vadd.f32 %v10050_v44, %v4124_v30  ;;  %v5909_v37 = vpop.f32.mrf.mxu0  ;;  %v10052_v1 = vmax.f32 %v10051_v7, 0.0  ;;  %v4324_v56 = vadd.f32 %v10054_v4, %v4122_v52  ;;  %v10055_v30 = vld [vmem:[#allocation80_spill] sm:$0xff]  ;;  %v4325_v43 = vadd.f32 %v10059_v36, %v4123_v23  ;;  %v10062_v4 = vld [vmem:[#allocation77_spill] sm:$0xff] }
 0x396   : > { %v4692_v34 = vmax.f32 %v4660_v47, 0.0  ;;  %v4663_v0 = vadd.f32 %v8741_v2, %v4624_v20  ;;  %v4622_v39 = vmul.f32 %v8712_v40, %v4583_v38  ;;  %v4327_v5 = vadd.f32 %v10055_v30, %v4125_v31  ;;  %v10056_v20 = vld [vmem:[#allocation34_spill] sm:$0xff]  ;;  %v8813_v31 = vpop.f32.mrf.mxu1 }
 0x397   : > { %v4726_v46 = vadd.f32 %v4694_v12, %v10052_v1  ;;  %v4588_v12 = vadd.f32 %v5909_v37, %v4326_v59  ;;  %v4471_v47 = vpop.f32.mrf.mxu0  ;;  %v10057_v14 = vmax.f32 %v10056_v20, 0.0  ;;  %v10058_v1 = vld [vmem:[#allocation75_spill] sm:$0xff]  ;;  %v10063_v30 = vld [vmem:[#allocation86_spill] sm:$0xff] }
 0x398   : > { %v4695_v44 = vmax.f32 %v4663_v0, 0.0  ;;  %v4661_v7 = vadd.f32 %v8741_v2, %v4622_v39  ;;  %v4128_v21 = vadd.f32 %v10058_v1, %v8660_v61  ;;  %v4586_v52 = vadd.f32 %v4471_v47, %v4324_v56 }
 0x399   : > { %v5290_v18 = vpack.c.bf16 %v4726_v46, %v4726_v46  ;;  %v4724_v38 = vadd.f32 %v4692_v34, %v10057_v14  ;;  %v4627_v8 = vmul.f32 %v8712_v40, %v4588_v12  ;;  %v5910_v41 = vpop.f32.mrf.mxu0  ;;  %v10060_v46 = vld [vmem:[#allocation23_spill] sm:$0xff]  ;;  %v4126_v61 = vadd.f32 %v10062_v4, %v8667_v25  ;;  %v10070_v4 = vld [vmem:[#allocation21_spill] sm:$0xff] }
 0x39a   : > { %v10061_v59 = vmax.f32 %v10060_v46, 0.0  ;;  %v4693_v0 = vmax.f32 %v4661_v7, 0.0  ;;  %v4589_v39 = vadd.f32 %v5910_v41, %v4327_v5  ;;  %v4330_v36 = vadd.f32 %v10063_v30, %v4128_v21  ;;  %v10067_v7 = vld [vmem:[#allocation90_spill] sm:$0xff]  ;;  %v8833_v41 = vpop.f32.mrf.mxu1 }
 0x39b   : > { %4887 = vst.msk [vmem:[%s8800_s12 + $0x8] sm:$0xf] %vm4884_vm12, %v5290_v18  ;;  %v5288_v37 = vpack.c.bf16 %v4724_v38, %v4724_v38  ;;  %v4666_v23 = vadd.f32 %v8741_v2, %v4627_v8  ;;  %v4625_v56 = vmul.f32 %v8712_v40, %v4586_v52  ;;  %v4474_v12 = vpop.f32.mrf.mxu0  ;;  %v10064_v18 = vld [vmem:[#allocation32_spill] sm:$0xff]  ;;  %v4328_v21 = vadd.f32 %v10067_v7, %v4126_v61 }
 0x39c   : > { %v4727_v34 = vadd.f32 %v4695_v44, %v10061_v59  ;;  %v10065_v20 = vmax.f32 %v10064_v18, 0.0  ;;  %v4628_v38 = vmul.f32 %v8712_v40, %v4589_v39  ;;  %v4587_v5 = vadd.f32 %v4474_v12, %v4325_v43  ;;  %v10066_v44 = vld [vmem:[#allocation79_spill] sm:$0xff] }
 0x39d   : > { %4885 = vst.msk [vmem:[%s8800_s12] sm:$0xf] %vm4884_vm12, %v5288_v37  ;;  %v4129_v25 = vadd.f32 %v10066_v44, %v8671_v58  ;;  %v4698_v1 = vmax.f32 %v4666_v23, 0.0  ;;  %v4664_v8 = vadd.f32 %v8741_v2, %v4625_v56  ;;  %v5913_v52 = vpop.f32.mrf.mxu0  ;;  %v10071_v61 = vmax.f32 %v10070_v4, 0.0 }
 0x39e   : > { %v5291_v47 = vpack.c.bf16 %v4727_v34, %v4727_v34  ;;  %v4725_v14 = vadd.f32 %v4693_v0, %v10065_v20  ;;  %v4667_v46 = vadd.f32 %v8741_v2, %v4628_v38  ;;  %v4626_v59 = vmul.f32 %v8712_v40, %v4587_v5  ;;  %v10068_v34 = vld [vmem:[#allocation81_spill] sm:$0xff]  ;;  %v10069_v0 = vld [vmem:[#allocation82_spill] sm:$0xff]  ;;  %v10072_v20 = vld [vmem:[#allocation84_spill] sm:$0xff] }
 0x39f   : > { %v4592_v43 = vadd.f32 %v5913_v52, %v4330_v36  ;;  %v4127_v58 = vadd.f32 %v10068_v34, %v8675_v6  ;;  %v4132_v39 = vadd.f32 %v10069_v0, %v8679_v60  ;;  %v4730_v30 = vadd.f32 %v4698_v1, %v10071_v61  ;;  %v4487_v56 = vpop.f32.mrf.mxu0  ;;  %v10074_v5 = vld [vmem:[#allocation30_spill] sm:$0xff]  ;;  %v10079_v0 = vld [vmem:[#allocation99_spill] sm:$0xff] }
 0x3a0   : > { %4888 = vst.msk [vmem:[%s8800_s12 + $0xc] sm:$0xf] %vm4884_vm12, %v5291_v47  ;;  %v5289_v37 = vpack.c.bf16 %v4725_v14, %v4725_v14  ;;  %v4696_v23 = vmax.f32 %v4664_v8, 0.0  ;;  %v4699_v12 = vmax.f32 %v4667_v46, 0.0  ;;  %v4665_v47 = vadd.f32 %v8741_v2, %v4626_v59  ;;  %v10073_v14 = vld [vmem:[#allocation59_spill] sm:$0xff]  ;;  %v8854_v8 = vpop.f32.mrf.mxu1  ;;  %v10076_v52 = vld [vmem:[#allocation38_spill] sm:$0xff] }
 0x3a1   : > { %v4631_v18 = vmul.f32 %v8712_v40, %v4592_v43  ;;  %v4590_v36 = vadd.f32 %v4487_v56, %v4328_v21  ;;  %v4130_v6 = vadd.f32 %v10072_v20, %v8685_v63  ;;  %v4331_v38 = vadd.f32 %v10073_v14, %v4129_v25  ;;  %v5914_v1 = vpop.f32.mrf.mxu0  ;;  %v10078_v34 = vld [vmem:[#allocation94_spill] sm:$0xff]  ;;  %v10080_v56 = vld [vmem:[#allocation92_spill] sm:$0xff] }
 0x3a2   : > { %4886 = vst.msk [vmem:[%s8800_s12 + $0x4] sm:$0xf] %vm4884_vm12, %v5289_v37  ;;  %v5294_v60 = vpack.c.bf16 %v4730_v30, %v4730_v30  ;;  %v10075_v44 = vmax.f32 %v10074_v5, 0.0  ;;  %v10077_v37 = vmax.f32 %v10076_v52, 0.0  ;;  %v4697_v59 = vmax.f32 %v4665_v47, 0.0  ;;  %v10083_v5 = vld [vmem:[#allocation33_spill] sm:$0xff] }
 0x3a3   : > { %v4670_v43 = vadd.f32 %v8741_v2, %v4631_v18  ;;  %v4629_v21 = vmul.f32 %v8712_v40, %v4590_v36  ;;  %v4329_v63 = vadd.f32 %v10078_v34, %v4127_v58  ;;  %v4334_v25 = vadd.f32 %v10079_v0, %v4132_v39  ;;  %v4490_v30 = vpop.f32.mrf.mxu0  ;;  %v10082_v18 = vld [vmem:[#allocation85_spill] sm:$0xff] }
 0x3a4   : > { %v4728_v7 = vadd.f32 %v4696_v23, %v10075_v44  ;;  %v4731_v46 = vadd.f32 %v4699_v12, %v10077_v37  ;;  %4891 = vst.msk [vmem:[%s8800_s12 + $0x18] sm:$0xf] %vm4884_vm12, %v5294_v60  ;;  %v4593_v61 = vadd.f32 %v5914_v1, %v4331_v38  ;;  %v10081_v20 = vmax.f32 %v10080_v56, 0.0  ;;  %v8873_v44 = vpop.f32.mrf.mxu1  ;;  %v10084_v1 = vld [vmem:[#allocation93_spill] sm:$0xff] }
 0x3a5   : > { %v4702_v14 = vmax.f32 %v4670_v43, 0.0  ;;  %v4668_v47 = vadd.f32 %v8741_v2, %v4629_v21  ;;  %v4133_v36 = vadd.f32 %v10082_v18, %v8689_v53  ;;  %v4332_v58 = vadd.f32 %v10083_v5, %v4130_v6  ;;  %v5917_v38 = vpop.f32.mrf.mxu0  ;;  %v10086_v53 = vld [vmem:[#allocation87_spill] sm:$0xff]  ;;  %v10087_v43 = vld [vmem:[#allocation24_spill] sm:$0xff] }
 0x3a6   : > { %v5292_v4 = vpack.c.bf16 %v4728_v7, %v4728_v7  ;;  %v5295_v23 = vpack.c.bf16 %v4731_v46, %v4731_v46  ;;  %v4729_v12 = vadd.f32 %v4697_v59, %v10081_v20  ;;  %v4632_v39 = vmul.f32 %v8712_v40, %v4593_v61  ;;  %v10088_v61 = vld [vmem:[#allocation95_spill] sm:$0xff]  ;;  %v10090_v20 = vld [vmem:[#allocation89_spill] sm:$0xff] }
 0x3a7   : > { %v4591_v60 = vadd.f32 %v4490_v30, %v4329_v63  ;;  %v10085_v52 = vmax.f32 %v10084_v1, 0.0  ;;  %v4700_v46 = vmax.f32 %v4668_v47, 0.0  ;;  %v4596_v59 = vadd.f32 %v5917_v38, %v4334_v25  ;;  %v4503_v0 = vpop.f32.mrf.mxu0  ;;  %v10091_v38 = vld [vmem:[#allocation91_spill] sm:$0xff]  ;;  %v10093_v1 = vld [vmem:[#allocation96_spill] sm:$0xff] }
 0x3a8   : > { %4889 = vst.msk [vmem:[%s8800_s12 + $0x10] sm:$0xf] %vm4884_vm12, %v5292_v4  ;;  %4892 = vst.msk [vmem:[%s8800_s12 + $0x1c] sm:$0xf] %vm4884_vm12, %v5295_v23  ;;  %v5293_v7 = vpack.c.bf16 %v4729_v12, %v4729_v12  ;;  %v4131_v6 = vadd.f32 %v10086_v53, %v8695_v15  ;;  %v4335_v21 = vadd.f32 %v10087_v43, %v4133_v36  ;;  %v10089_v30 = vmax.f32 %v10088_v61, 0.0  ;;  %v8893_v36 = vpop.f32.mrf.mxu1 }
 0x3a9   : > { %v4734_v37 = vadd.f32 %v4702_v14, %v10085_v52  ;;  %v4671_v34 = vadd.f32 %v8741_v2, %v4632_v39  ;;  %v4630_v63 = vmul.f32 %v8712_v40, %v4591_v60  ;;  %v4635_v56 = vmul.f32 %v8712_v40, %v4596_v59  ;;  %v5918_v18 = vpop.f32.mrf.mxu0 }
 0x3aa   : > { %4890 = vst.msk [vmem:[%s8800_s12 + $0x14] sm:$0xf] %vm4884_vm12, %v5293_v7  ;;  %v4732_v23 = vadd.f32 %v4700_v46, %v10089_v30  ;;  %v4594_v25 = vadd.f32 %v4503_v0, %v4332_v58  ;;  %v4136_v15 = vadd.f32 %v10090_v20, %v8699_v13  ;;  %v4333_v12 = vadd.f32 %v8620_v54, %v4131_v6  ;;  %v10092_v7 = vld [vmem:[#allocation54_spill] sm:$0xff]  ;;  %v10096_v0 = vld [vmem:[#allocation97_spill] sm:$0xff] }
 0x3ab   : > { %v5298_v4 = vpack.c.bf16 %v4734_v37, %v4734_v37  ;;  %v4703_v14 = vmax.f32 %v4671_v34, 0.0  ;;  %v4669_v47 = vadd.f32 %v8741_v2, %v4630_v63  ;;  %v4674_v39 = vadd.f32 %v8741_v2, %v4635_v56  ;;  %v4506_v59 = vpop.f32.mrf.mxu0  ;;  %v10095_v34 = vld [vmem:[#allocation29_spill] sm:$0xff]  ;;  %v10098_v56 = vld [vmem:[#allocation100_spill] sm:$0xff] }
 0x3ac   : > { %v5296_v5 = vpack.c.bf16 %v4732_v23, %v4732_v23  ;;  %v4633_v60 = vmul.f32 %v8712_v40, %v4594_v25  ;;  %v4597_v58 = vadd.f32 %v5918_v18, %v4335_v21  ;;  %v4134_v13 = vadd.f32 %v10091_v38, %v8703_v33  ;;  %v8914_v23 = vpop.f32.mrf.mxu1 }
 0x3ad   : > { %4895 = vst.msk [vmem:[%s8800_s12 + $0x28] sm:$0xf] %vm4884_vm12, %v5298_v4  ;;  %v4137_v54 = vadd.f32 %v10092_v7, %v8707_v22  ;;  %v10094_v52 = vmax.f32 %v10093_v1, 0.0  ;;  %v4701_v46 = vmax.f32 %v4669_v47, 0.0  ;;  %v4706_v53 = vmax.f32 %v4674_v39, 0.0  ;;  %v5921_v30 = vpop.f32.mrf.mxu0  ;;  %v10101_v1 = vld [vmem:[#allocation39_spill] sm:$0xff] }
 0x3ae   : > { %4893 = vst.msk [vmem:[%s8800_s12 + $0x20] sm:$0xf] %vm4884_vm12, %v5296_v5  ;;  %v4672_v6 = vadd.f32 %v8741_v2, %v4633_v60  ;;  %v4636_v43 = vmul.f32 %v8712_v40, %v4597_v58  ;;  %v4595_v21 = vadd.f32 %v4506_v59, %v4333_v12  ;;  %v4135_v33 = vadd.f32 %v10095_v34, %v8716_v35 }
 0x3af   : > { %v4735_v37 = vadd.f32 %v4703_v14, %v10094_v52  ;;  %v4338_v63 = vadd.f32 %v8663_v16, %v4136_v15  ;;  %v10097_v4 = vmax.f32 %v10096_v0, 0.0  ;;  %v10099_v25 = vmax.f32 %v10098_v56, 0.0  ;;  %v4519_v5 = vpop.f32.mrf.mxu0 }
 0x3b0   : > { %v4704_v14 = vmax.f32 %v4672_v6, 0.0  ;;  %v4675_v47 = vadd.f32 %v8741_v2, %v4636_v43  ;;  %v4634_v12 = vmul.f32 %v8712_v40, %v4595_v21  ;;  %v4336_v35 = vadd.f32 %v8720_v24, %v4134_v13 }
 0x3b1   : > { %v5299_v22 = vpack.c.bf16 %v4735_v37, %v4735_v37  ;;  %v4733_v61 = vadd.f32 %v4701_v46, %v10097_v4  ;;  %v4738_v20 = vadd.f32 %v4706_v53, %v10099_v25  ;;  %v4339_v16 = vadd.f32 %v8763_v57, %v4137_v54  ;;  %v5922_v54 = vpop.f32.mrf.mxu0  ;;  %v8933_v37 = vpop.f32.mrf.mxu1 }
 0x3b2   : > { %v4600_v18 = vadd.f32 %v5921_v30, %v4338_v63  ;;  %v10100_v60 = vmax.f32 %v8554_v27, 0.0  ;;  %v4707_v38 = vmax.f32 %v4675_v47, 0.0  ;;  %v4673_v7 = vadd.f32 %v8741_v2, %v4634_v12 }
 0x3b3   : > { %4896 = vst.msk [vmem:[%s8800_s12 + $0x2c] sm:$0xf] %vm4884_vm12, %v5299_v22  ;;  %v5297_v15 = vpack.c.bf16 %v4733_v61, %v4733_v61  ;;  %v5302_v39 = vpack.c.bf16 %v4738_v20, %v4738_v20  ;;  %v4140_v52 = vadd.f32 %v10101_v1, %v8724_v45  ;;  %v4337_v24 = vadd.f32 %v8789_v26, %v4135_v33  ;;  %v10103_v45 = vld [vmem:[#allocation28_spill] sm:$0xff]  ;;  %v4522_v33 = vpop.f32.mrf.mxu0  ;;  %v10105_v61 = vld [vmem:[#allocation98_spill] sm:$0xff]  ;;  %v4292_v20 = vpop.f32.mrf.mxu1  ;;  %v10109_v1 = vld [vmem:[#allocation19_spill] sm:$0xff] }
 0x3b4   : > { %v4736_v58 = vadd.f32 %v4704_v14, %v10100_v60  ;;  %v4639_v57 = vmul.f32 %v8712_v40, %v4600_v18  ;;  %v4598_v13 = vadd.f32 %v4519_v5, %v4336_v35  ;;  %v10102_v46 = vmax.f32 %v8557_v17, 0.0  ;;  %v10106_v35 = vld [vmem:[#allocation101_spill] sm:$0xff] }
 0x3b5   : > { %4894 = vst.msk [vmem:[%s8800_s12 + $0x24] sm:$0xf] %vm4884_vm12, %v5297_v15  ;;  %4899 = vst.msk [vmem:[%s8800_s12 + $0x38] sm:$0xf] %vm4884_vm12, %v5302_v39  ;;  %v4705_v53 = vmax.f32 %v4673_v7, 0.0  ;;  %v4601_v6 = vadd.f32 %v5922_v54, %v4339_v16  ;;  %v4138_v26 = vadd.f32 %v10103_v45, %v8728_v10  ;;  %v4342_v43 = vadd.f32 %v8813_v31, %v4140_v52  ;;  %v5925_v25 = vpop.f32.mrf.mxu0 }
 0x3b6   : > { %v5300_v27 = vpack.c.bf16 %v4736_v58, %v4736_v58  ;;  %v4739_v59 = vadd.f32 %v4707_v38, %v10102_v46  ;;  %v4678_v21 = vadd.f32 %v8741_v2, %v4639_v57  ;;  %v4637_v34 = vmul.f32 %v8712_v40, %v4598_v13  ;;  %v5899_v13 = vpop.f32.mrf.mxu1 }
 0x3b7   : > { %v10104_v22 = vmax.f32 %v8560_v49, 0.0  ;;  %v4640_v0 = vmul.f32 %v8712_v40, %v4601_v6  ;;  %v4599_v4 = vadd.f32 %v4522_v33, %v4337_v24  ;;  %v4141_v10 = vadd.f32 %v10105_v61, %v8732_v55  ;;  %v10107_v55 = vld [vmem:[#allocation35_spill] sm:$0xff]  ;;  %v4535_v39 = vpop.f32.mrf.mxu0  ;;  %v10113_v33 = vld [vmem:[#allocation5_spill] sm:$0xff] }
 0x3b8   : > { %4897 = vst.msk [vmem:[%s8800_s12 + $0x30] sm:$0xf] %vm4884_vm12, %v5300_v27  ;;  %v5303_v63 = vpack.c.bf16 %v4739_v59, %v4739_v59  ;;  %v4340_v31 = vadd.f32 %v8833_v41, %v4138_v26  ;;  %v4710_v30 = vmax.f32 %v4678_v21, 0.0  ;;  %v4676_v56 = vadd.f32 %v8741_v2, %v4637_v34 }
 0x3b9   : > { %v4737_v17 = vadd.f32 %v4705_v53, %v10104_v22  ;;  %v4679_v49 = vadd.f32 %v8741_v2, %v4640_v0  ;;  %v4638_v47 = vmul.f32 %v8712_v40, %v4599_v4  ;;  %v4604_v12 = vadd.f32 %v5925_v25, %v4342_v43  ;;  %v5926_v57 = vpop.f32.mrf.mxu0  ;;  %v4305_v0 = vpop.f32.mrf.mxu1 }
 0x3ba   : > { %4900 = vst.msk [vmem:[%s8800_s12 + $0x3c] sm:$0xf] %vm4884_vm12, %v5303_v63  ;;  %v4139_v16 = vadd.f32 %v10106_v35, %v8736_v51  ;;  %v4144_v15 = vadd.f32 %v10107_v55, %v8748_v32  ;;  %v10108_v41 = vmax.f32 %v8563_v9, 0.0  ;;  %v4708_v5 = vmax.f32 %v4676_v56, 0.0 }
 0x3bb   : > { %v5301_v14 = vpack.c.bf16 %v4737_v17, %v4737_v17  ;;  %v4711_v60 = vmax.f32 %v4679_v49, 0.0  ;;  %v4677_v58 = vadd.f32 %v8741_v2, %v4638_v47  ;;  %v4643_v38 = vmul.f32 %v8712_v40, %v4604_v12  ;;  %v4538_v45 = vpop.f32.mrf.mxu0 }
 0x3bc   : > { %v4742_v18 = vadd.f32 %v4710_v30, %v10108_v41  ;;  %v4602_v7 = vadd.f32 %v4535_v39, %v4340_v31  ;;  %v4142_v51 = vadd.f32 %v10109_v1, %v8752_v50  ;;  %v4343_v52 = vadd.f32 %v8854_v8, %v4141_v10  ;;  %v10120_v1 = vld [vmem:[#allocation9_spill] sm:$0xff] }
 0x3bd   : > { %4898 = vst.msk [vmem:[%s8800_s12 + $0x34] sm:$0xf] %vm4884_vm12, %v5301_v14  ;;  %v10110_v9 = vmax.f32 %v8566_v11, 0.0  ;;  %v10111_v54 = vmax.f32 %v8569_v42, 0.0  ;;  %v4709_v46 = vmax.f32 %v4677_v58, 0.0  ;;  %v4682_v59 = vadd.f32 %v8741_v2, %v4643_v38  ;;  %v5929_v17 = vpop.f32.mrf.mxu0  ;;  %v10118_v58 = vld [vmem:[#allocation3_spill] sm:$0xff] }
 0x3be   : > { %v5306_v32 = vpack.c.bf16 %v4742_v18, %v4742_v18  ;;  %v4641_v53 = vmul.f32 %v8712_v40, %v4602_v7  ;;  %v4341_v6 = vadd.f32 %v8873_v44, %v4139_v16  ;;  %v4346_v50 = vadd.f32 %v8893_v36, %v4144_v15  ;;  %v10117_v16 = vld [vmem:[#allocation18_spill] sm:$0xff]  ;;  %v5900_v18 = vpop.f32.mrf.mxu1  ;;  %v10119_v38 = vld [vmem:[#allocation31_spill] sm:$0xff] }
 0x3bf   : > { %v4740_v24 = vadd.f32 %v4708_v5, %v10110_v9  ;;  %v4743_v27 = vadd.f32 %v4711_v60, %v10111_v54  ;;  %v4605_v8 = vadd.f32 %v5926_v57, %v4343_v52  ;;  %v10112_v42 = vmax.f32 %v8572_v62, 0.0  ;;  %v4551_v14 = vpop.f32.mrf.mxu0 }
 0x3c0   : > { %4903 = vst.msk [vmem:[%s8800_s12 + $0x48] sm:$0xf] %vm4884_vm12, %v5306_v32  ;;  %v4714_v21 = vmax.f32 %v4682_v59, 0.0  ;;  %v4680_v34 = vadd.f32 %v8741_v2, %v4641_v53  ;;  %v4145_v63 = vadd.f32 %v10113_v33, %v8756_v48  ;;  %v4344_v44 = vadd.f32 %v8914_v23, %v4142_v51  ;;  %v10115_v48 = vld [vmem:[#allocation20_spill] sm:$0xff]  ;;  %v10124_v59 = vld [vmem:[#allocation15_spill] sm:$0xff]  ;;  %v10125_v53 = vld [vmem:[#allocation102_spill] sm:$0xff] }
 0x3c1   : > { %v5304_v11 = vpack.c.bf16 %v4740_v24, %v4740_v24  ;;  %v5307_v26 = vpack.c.bf16 %v4743_v27, %v4743_v27  ;;  %v4741_v43 = vadd.f32 %v4709_v46, %v10112_v42  ;;  %v4644_v36 = vmul.f32 %v8712_v40, %v4605_v8  ;;  %v5930_v41 = vpop.f32.mrf.mxu0  ;;  %v10126_v8 = vld [vmem:[#allocation4_spill] sm:$0xff] }
 0x3c2   : > { %v4603_v22 = vadd.f32 %v4538_v45, %v4341_v6  ;;  %v10114_v4 = vmax.f32 %v8575_v3, 0.0  ;;  %v4712_v10 = vmax.f32 %v4680_v34, 0.0  ;;  %v4608_v31 = vadd.f32 %v5929_v17, %v4346_v50 }
 0x3c3   : > { %4901 = vst.msk [vmem:[%s8800_s12 + $0x40] sm:$0xf] %vm4884_vm12, %v5304_v11  ;;  %4904 = vst.msk [vmem:[%s8800_s12 + $0x4c] sm:$0xf] %vm4884_vm12, %v5307_v26  ;;  %v5305_v62 = vpack.c.bf16 %v4741_v43, %v4741_v43  ;;  %v4143_v30 = vadd.f32 %v10115_v48, %v8760_v28  ;;  %v4347_v23 = vadd.f32 %v8933_v37, %v4145_v63  ;;  %v10116_v47 = vmax.f32 %v8580_v19, 0.0  ;;  %v4554_v24 = vpop.f32.mrf.mxu0  ;;  %v4308_v43 = vpop.f32.mrf.mxu1 }
 0x3c4   : > { %v4746_v61 = vadd.f32 %v4714_v21, %v10114_v4  ;;  %v4683_v56 = vadd.f32 %v8741_v2, %v4644_v36  ;;  %v4642_v25 = vmul.f32 %v8712_v40, %v4603_v22  ;;  %v4647_v12 = vmul.f32 %v8712_v40, %v4608_v31  ;;  %v10128_v21 = vld [vmem:[#allocation14_spill] sm:$0xff] }
 0x3c5   : > { %4902 = vst.msk [vmem:[%s8800_s12 + $0x44] sm:$0xf] %vm4884_vm12, %v5305_v62  ;;  %v4744_v3 = vadd.f32 %v4712_v10, %v10116_v47  ;;  %v4606_v35 = vadd.f32 %v4551_v14, %v4344_v44  ;;  %v4148_v28 = vadd.f32 %v10117_v16, %v8769_v29  ;;  %v4345_v55 = vadd.f32 %v4292_v20, %v4143_v30  ;;  %v10121_v29 = vld [vmem:[#allocation8_spill] sm:$0xff]  ;;  %v10122_v20 = vld [vmem:[#allocation7_spill] sm:$0xff]  ;;  %v5933_v42 = vpop.f32.mrf.mxu0 }
 0x3c6   : > { %v5310_v49 = vpack.c.bf16 %v4746_v61, %v4746_v61  ;;  %v4715_v37 = vmax.f32 %v4683_v56, 0.0  ;;  %v4681_v15 = vadd.f32 %v8741_v2, %v4642_v25  ;;  %v4686_v39 = vadd.f32 %v8741_v2, %v4647_v12  ;;  %v10130_v10 = vld [vmem:[#allocation43_spill] sm:$0xff]  ;;  %v10132_v56 = vld [vmem:[#allocation42_spill] sm:$0xff]  ;;  %v10133_v25 = vld [vmem:[#allocation88_spill] sm:$0xff] }
 0x3c7   : > { %v5308_v5 = vpack.c.bf16 %v4744_v3, %v4744_v3  ;;  %v4645_v19 = vmul.f32 %v8712_v40, %v4606_v35  ;;  %v4609_v60 = vadd.f32 %v5930_v41, %v4347_v23  ;;  %v4146_v7 = vadd.f32 %v10119_v38, %v10118_v58  ;;  %v4567_v4 = vpop.f32.mrf.mxu0  ;;  %v10134_v35 = vld [vmem:[#allocation11_spill] sm:$0xff]  ;;  %v10137_v41 = vld [vmem:[#allocation36_spill] sm:$0xff] }
 0x3c8   : > { %4907 = vst.msk [vmem:[%s8800_s12 + $0x58] sm:$0xf] %vm4884_vm12, %v5310_v49  ;;  %v4149_v51 = vadd.f32 %v10121_v29, %v10120_v1  ;;  %v10123_v52 = vmax.f32 %v10122_v20, 0.0  ;;  %v4713_v9 = vmax.f32 %v4681_v15, 0.0  ;;  %v4718_v57 = vmax.f32 %v4686_v39, 0.0  ;;  %v10136_v15 = vld [vmem:[#allocation41_spill] sm:$0xff] }
 0x3c9   : > { %4905 = vst.msk [vmem:[%s8800_s12 + $0x50] sm:$0xf] %vm4884_vm12, %v5308_v5  ;;  %v4684_v54 = vadd.f32 %v8741_v2, %v4645_v19  ;;  %v4648_v27 = vmul.f32 %v8712_v40, %v4609_v60  ;;  %v4607_v46 = vadd.f32 %v4554_v24, %v4345_v55  ;;  %v4147_v6 = vadd.f32 %v10125_v53, %v10124_v59  ;;  %v5934_v3 = vpop.f32.mrf.mxu0  ;;  %v10138_v5 = vld [vmem:[#allocation40_spill] sm:$0xff] }
 0x3ca   : > { %v4747_v32 = vadd.f32 %v4715_v37, %v10123_v52  ;;  %v4350_v50 = vadd.f32 %v5899_v13, %v4148_v28  ;;  %v10127_v45 = vmax.f32 %v10126_v8, 0.0  ;;  %v10129_v34 = vmax.f32 %v10128_v21, 0.0  ;;  %v10141_v52 = vld [vmem:[#allocation26_spill] sm:$0xff] }
 0x3cb   : > { %v4716_v63 = vmax.f32 %v4684_v54, 0.0  ;;  %v4687_v44 = vadd.f32 %v8741_v2, %v4648_v27  ;;  %v4646_v36 = vmul.f32 %v8712_v40, %v4607_v46  ;;  %v4348_v22 = vadd.f32 %v4305_v0, %v4146_v7  ;;  %v4570_v58 = vpop.f32.mrf.mxu0  ;;  %v10139_v7 = vld [vmem:[#allocation47_spill] sm:$0xff] }
 0x3cc   : > { %v5311_v11 = vpack.c.bf16 %v4747_v32, %v4747_v32  ;;  %v4745_v26 = vadd.f32 %v4713_v9, %v10127_v45  ;;  %v4750_v33 = vadd.f32 %v4718_v57, %v10129_v34  ;;  %v4351_v17 = vadd.f32 %v5900_v18, %v4149_v51 }
 0x3cd   : > { %v4612_v62 = vadd.f32 %v5933_v42, %v4350_v50  ;;  %v10131_v31 = vmax.f32 %v10130_v10, 0.0  ;;  %v4719_v30 = vmax.f32 %v4687_v44, 0.0  ;;  %v4685_v23 = vadd.f32 %v8741_v2, %v4646_v36 }
 0x3ce   : > { %4908 = vst.msk [vmem:[%s8800_s12 + $0x5c] sm:$0xf] %vm4884_vm12, %v5311_v11  ;;  %v5309_v13 = vpack.c.bf16 %v4745_v26, %v4745_v26  ;;  %v5314_v61 = vpack.c.bf16 %v4750_v33, %v4750_v33  ;;  %v1277_v14 = vmul.f32 %v10133_v25, %v10132_v56  ;;  %v4349_v49 = vadd.f32 %v4308_v43, %v4147_v6 }
 0x3cf   : > { %v4748_v48 = vadd.f32 %v4716_v63, %v10131_v31  ;;  %v4651_v0 = vmul.f32 %v8712_v40, %v4612_v62  ;;  %v4610_v47 = vadd.f32 %v4567_v4, %v4348_v22  ;;  %v10135_v16 = vmax.f32 %v10134_v35, 0.0 }
 0x3d0   : > { %4906 = vst.msk [vmem:[%s8800_s12 + $0x54] sm:$0xf] %vm4884_vm12, %v5309_v13  ;;  %4911 = vst.msk [vmem:[%s8800_s12 + $0x68] sm:$0xf] %vm4884_vm12, %v5314_v61  ;;  %v4717_v55 = vmax.f32 %v4685_v23, 0.0  ;;  %v4613_v37 = vadd.f32 %v5934_v3, %v4351_v17  ;;  %v1315_v18 = vadd.f32 %v10137_v41, %v10136_v15  ;;  %v1318_v39 = vadd.f32 %v10137_v41, %v10138_v5 }
 0x3d1   : > { %v5312_v12 = vpack.c.bf16 %v4748_v48, %v4748_v48  ;;  %v4751_v28 = vadd.f32 %v4719_v30, %v10135_v16  ;;  %v4690_v19 = vadd.f32 %v8741_v2, %v4651_v0  ;;  %v4649_v60 = vmul.f32 %v8712_v40, %v4610_v47 }
 0x3d2   : > { %v10140_v1 = vmax.f32 %v10139_v7, 0.0  ;;  %v4652_v51 = vmul.f32 %v8712_v40, %v4613_v37  ;;  %v4611_v20 = vadd.f32 %v4570_v58, %v4349_v49  ;;  %v1349_v32 = vmax.f32 %v10141_v52, 0.0 }
 0x3d3   : > { %4909 = vst.msk [vmem:[%s8800_s12 + $0x60] sm:$0xf] %vm4884_vm12, %v5312_v12  ;;  %v5315_v38 = vpack.c.bf16 %v4751_v28, %v4751_v28  ;;  %v4722_v9 = vmax.f32 %v4690_v19, 0.0  ;;  %v4688_v24 = vadd.f32 %v8741_v2, %v4649_v60  ;;  %v1316_v57 = vadd.f32 %v10137_v41, %v1277_v14 }
 0x3d4   : > { %v4749_v29 = vadd.f32 %v4717_v55, %v10140_v1  ;;  %v4691_v27 = vadd.f32 %v8741_v2, %v4652_v51  ;;  %v4650_v46 = vmul.f32 %v8712_v40, %v4611_v20  ;;  %v1347_v59 = vmax.f32 %v1315_v18, 0.0 }
 0x3d5   : > { %4912 = vst.msk [vmem:[%s8800_s12 + $0x6c] sm:$0xf] %vm4884_vm12, %v5315_v38  ;;  %v4754_v53 = vadd.f32 %v4722_v9, %v1349_v32  ;;  %v4720_v6 = vmax.f32 %v4688_v24, 0.0  ;;  %v1350_v50 = vmax.f32 %v1318_v39, 0.0  ;;  %v1348_v42 = vmax.f32 %v1316_v57, 0.0 }
 0x3d6   : > { %v5313_v54 = vpack.c.bf16 %v4749_v29, %v4749_v29  ;;  %v4723_v11 = vmax.f32 %v4691_v27, 0.0  ;;  %v4689_v8 = vadd.f32 %v8741_v2, %v4650_v46 }
 0x3d7   : > { %v5318_v45 = vpack.c.bf16 %v4754_v53, %v4754_v53  ;;  %v4752_v26 = vadd.f32 %v4720_v6, %v1347_v59 }
 0x3d8   : > { %4910 = vst.msk [vmem:[%s8800_s12 + $0x64] sm:$0xf] %vm4884_vm12, %v5313_v54  ;;  %v4755_v43 = vadd.f32 %v4723_v11, %v1350_v50  ;;  %v4721_v21 = vmax.f32 %v4689_v8, 0.0 }
 0x3d9   : > { %4915 = vst.msk [vmem:[%s8800_s12 + $0x78] sm:$0xf] %vm4884_vm12, %v5318_v45  ;;  %v5316_v40 = vpack.c.bf16 %v4752_v26, %v4752_v26 }
 0x3da   : > { %v5319_v34 = vpack.c.bf16 %v4755_v43, %v4755_v43  ;;  %v4753_v33 = vadd.f32 %v4721_v21, %v1348_v42 }
 0x3db   : > { %4913 = vst.msk [vmem:[%s8800_s12 + $0x70] sm:$0xf] %vm4884_vm12, %v5316_v40 }
 0x3dc   : > { %4916 = vst.msk [vmem:[%s8800_s12 + $0x7c] sm:$0xf] %vm4884_vm12, %v5319_v34  ;;  %v5317_v63 = vpack.c.bf16 %v4753_v33, %v4753_v33 }
 0x3de   : > { %4914 = vst.msk [vmem:[%s8800_s12 + $0x74] sm:$0xf] %vm4884_vm12, %v5317_v63 }
 0x3df PF: > { %s21_s17 = sadd.s32 1, %s5980_s17  }
 0x3e0   : > { %p18_p4 = scmp.ge.s32.totalorder %s21_s17, 4  }
 0x3e2   :  { %20 = sbr.rel (!%p18_p4) target bundleno = 1 (0x1), region = 102 }

</bundles_post_ra>
